<compile_context>
chip_gen: v5e
topology: v5e:2x2
jax: 0.10.0
libtpu: 0.0.40
codegen_flags: <defaults>
</compile_context>

<pallas_src>
import math

import jax
import jax.numpy as jnp
from jax.experimental import pallas as pl

# ---------------- small, self-consistent hyperparameters ----------------
BATCH = 2
IMAGE_NUM = 4
DES_NUM = 8
DES_DIM = 30
DES_EMB_DIM = DES_DIM - 1            # so des_emb_dim + 3 == des_dim + 2
IN_DIM = DES_EMB_DIM + 2 + 1         # = 32, transformer model dim
MLP_DIM = 64
NUM_HEADS = 4
HEAD_DIM = IN_DIM // NUM_HEADS       # = 8
NUM_LAYERS = 2
SEQ = IMAGE_NUM * DES_NUM            # = 32
ROWS = BATCH * SEQ                   # = 64  (batch folded into matmul rows)
GROUPS = BATCH * IMAGE_NUM           # = 8   (rows of the first head linear)
LN_EPS = 1e-5

HIDDEN1 = 256
HIDDEN2 = (IMAGE_NUM - 1) * 128      # 384
HIDDEN3 = (IMAGE_NUM - 1) * 32       # 96
OUT_DIM = (IMAGE_NUM - 1) * 6        # 18

_INV_SQRT2 = 1.0 / math.sqrt(2.0)


# ---------------- in-kernel helpers ----------------
def _layernorm(x, g, b):
    mu = jnp.mean(x, axis=-1, keepdims=True)
    var = jnp.mean((x - mu) ** 2, axis=-1, keepdims=True)
    return (x - mu) * jax.lax.rsqrt(var + LN_EPS) * g + b


def _gelu(x):  # exact erf form (torch nn.GELU default)
    return 0.5 * x * (1.0 + jax.lax.erf(x * jnp.float32(_INV_SQRT2)))


def _recip(x):
    # EUP approximate reciprocal (free bundle slot); tiny fallback keeps the script robust.
    if hasattr(pl, "reciprocal"):
        return pl.reciprocal(x, approx=True)
    return 1.0 / x


# ---------------- the single fused kernel ----------------
def fused_forward_kernel(x_ref, pe_ref,
                         wqkvo_ref, bqkvo_ref, ln_ref,
                         wfc1_ref, bfc1_ref, wfc2_ref, bfc2_ref,
                         normgb_ref,
                         perm1_ref, w1_ref, b1_ref,
                         perm2_ref, w2_ref, b2_ref,
                         w3_ref, b3_ref, w4_ref, b4_ref,
                         o_ref):
    D = IN_DIM
    h = x_ref[...] + pe_ref[...]                        # (ROWS, D) residual stream

    # ----------- encoder stack (fully unrolled, NUM_LAYERS=2) -----------
    for layer in range(NUM_LAYERS):
        lnp = ln_ref[layer]                             # (4, D): [g1; b1; g2; b2]
        w_all = wqkvo_ref[layer]                        # (D, 4*D): [wq | wk | wv | wo]
        b_all = bqkvo_ref[layer]                        # (1, 4*D)

        # --- pre-norm multi-head self-attention (scale folded into wq/bq) ---
        xn = _layernorm(h, lnp[0:1, :], lnp[1:2, :])
        qkv = (jnp.dot(xn, w_all[:, :3 * D], preferred_element_type=jnp.float32)
               + b_all[:, :3 * D])                      # (ROWS, 3*D)
        wo = w_all[:, 3 * D:]                           # (D, D)
        bo = b_all[:, 3 * D:]                           # (1, D)

        parts = []
        for b in range(BATCH):                          # attention is per batch element
            r0 = b * SEQ
            qb = qkv[r0:r0 + SEQ, 0:D]
            kb = qkv[r0:r0 + SEQ, D:2 * D]
            vb = qkv[r0:r0 + SEQ, 2 * D:3 * D]
            acc = jnp.zeros((SEQ, D), jnp.float32)
            for hd in range(NUM_HEADS):
                c0 = hd * HEAD_DIM
                qh = qb[:, c0:c0 + HEAD_DIM]
                kh = kb[:, c0:c0 + HEAD_DIM]
                vh = vb[:, c0:c0 + HEAD_DIM]
                s = jnp.dot(qh, kh.T, preferred_element_type=jnp.float32)   # (SEQ, SEQ)
                s = s - jnp.max(s, axis=-1, keepdims=True)
                p = jnp.exp(s)
                p = p * _recip(jnp.sum(p, axis=-1, keepdims=True))
                pv = jnp.dot(p, vh, preferred_element_type=jnp.float32)     # (SEQ, HEAD_DIM)
                # fold this head's slice of the output projection in directly
                # (no per-head concatenate / lane shuffle)
                acc = acc + jnp.dot(pv, wo[c0:c0 + HEAD_DIM, :],
                                    preferred_element_type=jnp.float32)
            parts.append(acc)
        h = h + jnp.concatenate(parts, axis=0) + bo     # residual 1

        # --- pre-norm MLP ---
        xn2 = _layernorm(h, lnp[2:3, :], lnp[3:4, :])
        m = jnp.dot(xn2, wfc1_ref[layer], preferred_element_type=jnp.float32) + bfc1_ref[layer]
        m = _gelu(m)
        m = jnp.dot(m, wfc2_ref[layer], preferred_element_type=jnp.float32) + bfc2_ref[layer]
        h = h + m                                       # residual 2

    enc = _layernorm(h, normgb_ref[0:1, :], normgb_ref[1:2, :])   # (ROWS, D)

    # ----------- regression head: all intermediates stay on-chip -----------
    # reshape(B, I, Nd*D) @ w1  ==  row-permute encoder rows to (descriptor, group)
    # order (one tiny MXU matmul), then a blockwise contraction over descriptors.
    enc_p = jnp.dot(perm1_ref[...], enc, preferred_element_type=jnp.float32)   # (ROWS, D)
    z1 = jnp.zeros((GROUPS, HIDDEN1), jnp.float32)
    for n in range(DES_NUM):
        z1 = z1 + jnp.dot(enc_p[n * GROUPS:(n + 1) * GROUPS, :],
                          w1_ref[n * D:(n + 1) * D, :],
                          preferred_element_type=jnp.float32)
    z1 = z1 + b1_ref[...]                               # (GROUPS, 256)

    # reshape(B, I*256) @ w2  ==  row-permute (b,i) -> (i,b), then block contraction.
    z1_p = jnp.dot(perm2_ref[...], z1, preferred_element_type=jnp.float32)
    z2 = jnp.zeros((BATCH, HIDDEN2), jnp.float32)
    for i in range(IMAGE_NUM):
        z2 = z2 + jnp.dot(z1_p[i * BATCH:(i + 1) * BATCH, :],
                          w2_ref[i * HIDDEN1:(i + 1) * HIDDEN1, :],
                          preferred_element_type=jnp.float32)
    z2 = z2 + b2_ref[...]                               # (BATCH, 384)

    z3 = jnp.dot(z2, w3_ref[...], preferred_element_type=jnp.float32) + b3_ref[...]
    z4 = jnp.dot(z3, w4_ref[...], preferred_element_type=jnp.float32) + b4_ref[...]
    o_ref[...] = z4                                     # (BATCH, 18): the only HBM write


# ---------------- pallas_call wrapper ----------------
def _fused_forward(x_flat, params):
    # Grid-free call: every array is a full-size VMEM block (total ~2.2 MB of weights,
    # <100 KB of activations), so no tiling/pipelining is needed on any TPU generation.
    return pl.pallas_call(
        fused_forward_kernel,
        out_shape=jax.ShapeDtypeStruct((BATCH, OUT_DIM), jnp.float32),
    )(x_flat, params['pe_flat'],
      params['wqkvo'], params['bqkvo'], params['ln'],
      params['wfc1'], params['bfc1'], params['wfc2'], params['bfc2'],
      params['normgb'],
      params['perm1'], params['w1'], params['b1'],
      params['perm2'], params['w2'], params['b2'],
      params['w3'], params['b3'], params['w4'], params['b4'])


@jax.jit
def vo_transformer_forward(x, params):
    B, I, Nd, D = x.shape
    x_flat = x.reshape(B * I * Nd, D)     # contiguous host-side view; pe add is in-kernel
    out = _fused_forward(x_flat, params)
    return out.reshape(B, I - 1, 6)


# ---------------- parameters (deterministic, synthetic, pre-packed) ----------------
def init_params(key):
    keys = iter(jax.random.split(key, 32))

    def dense(shape, fan_in):
        return jax.random.normal(next(keys), shape, jnp.float32) * (fan_in ** -0.5)

    params = {}

    # positional-encoding table: same math as VOPositionEmbs (per-image row of width IN_DIM)
    d_model = DES_DIM + 2
    div_term = jnp.exp(jnp.arange(0, d_model, 2, dtype=jnp.float32)
                       * (-math.log(10000.0) / d_model))
    div_term_ = jnp.exp(jnp.arange(0, d_model - 1, 2, dtype=jnp.float32)
                        * (-math.log(10000.0) / d_model))
    pe = jnp.ones((IMAGE_NUM, IN_DIM), jnp.float32)
    for j in range(IMAGE_NUM):
        pe = pe.at[j, 0::2].set(jnp.sin(j * div_term))
        pe = pe.at[j, 1::2].set(jnp.cos(j * div_term_))
    # broadcast over descriptors and batch once on the host -> (ROWS, IN_DIM)
    params['pe_flat'] = jnp.tile(jnp.repeat(pe, DES_NUM, axis=0), (BATCH, 1))

    # encoder layers: pack the 16 per-layer tensors into 7 stacked arrays
    scale = HEAD_DIM ** 0.5
    wqkvo, bqkvo, ln, wfc1, bfc1, wfc2, bfc2 = [], [], [], [], [], [], []
    for _ in range(NUM_LAYERS):
        wq = dense((IN_DIM, IN_DIM), IN_DIM) / scale        # 1/sqrt(head_dim) folded in
        bq = jnp.zeros((1, IN_DIM), jnp.float32) / scale
        wk = dense((IN_DIM, IN_DIM), IN_DIM)
        wv = dense((IN_DIM, IN_DIM), IN_DIM)
        wo = dense((IN_DIM, IN_DIM), IN_DIM)
        wqkvo.append(jnp.concatenate([wq, wk, wv, wo], axis=1))               # (32, 128)
        bqkvo.append(jnp.concatenate(
            [bq] + [jnp.zeros((1, IN_DIM), jnp.float32)] * 3, axis=1))        # (1, 128)
        ln.append(jnp.concatenate([jnp.ones((1, IN_DIM), jnp.float32),
                                   jnp.zeros((1, IN_DIM), jnp.float32),
                                   jnp.ones((1, IN_DIM), jnp.float32),
                                   jnp.zeros((1, IN_DIM), jnp.float32)], axis=0))  # (4, 32)
        wfc1.append(dense((IN_DIM, MLP_DIM), IN_DIM))
        bfc1.append(jnp.zeros((1, MLP_DIM), jnp.float32))
        wfc2.append(dense((MLP_DIM, IN_DIM), MLP_DIM))
        bfc2.append(jnp.zeros((1, IN_DIM), jnp.float32))
    params['wqkvo'] = jnp.stack(wqkvo)     # (L, 32, 128)
    params['bqkvo'] = jnp.stack(bqkvo)     # (L, 1, 128)
    params['ln'] = jnp.stack(ln)           # (L, 4, 32)
    params['wfc1'] = jnp.stack(wfc1)       # (L, 32, 64)
    params['bfc1'] = jnp.stack(bfc1)       # (L, 1, 64)
    params['wfc2'] = jnp.stack(wfc2)       # (L, 64, 32)
    params['bfc2'] = jnp.stack(bfc2)       # (L, 1, 32)

    params['normgb'] = jnp.concatenate([jnp.ones((1, IN_DIM), jnp.float32),
                                        jnp.zeros((1, IN_DIM), jnp.float32)], axis=0)

    # regression head
    k1 = DES_NUM * IN_DIM
    params['w1'] = dense((k1, HIDDEN1), k1)
    params['b1'] = jnp.zeros((1, HIDDEN1), jnp.float32)
    k2 = IMAGE_NUM * HIDDEN1
    params['w2'] = dense((k2, HIDDEN2), k2)
    params['b2'] = jnp.zeros((1, HIDDEN2), jnp.float32)
    params['w3'] = dense((HIDDEN2, HIDDEN3), HIDDEN2)
    params['b3'] = jnp.zeros((1, HIDDEN3), jnp.float32)
    params['w4'] = dense((HIDDEN3, OUT_DIM), HIDDEN3)
    params['b4'] = jnp.zeros((1, OUT_DIM), jnp.float32)

    # row-permutation matrices implementing the two head reshapes on the MXU:
    # perm1: encoder rows (b,i,n) -> (n, g) order with g = b*I + i
    src1 = jnp.array([g * DES_NUM + n for n in range(DES_NUM) for g in range(GROUPS)],
                     dtype=jnp.int32)
    params['perm1'] = jax.nn.one_hot(src1, ROWS, dtype=jnp.float32)           # (64, 64)
    # perm2: rows (b,i) -> (i, b) order
    src2 = jnp.array([b * IMAGE_NUM + i for i in range(IMAGE_NUM) for b in range(BATCH)],
                     dtype=jnp.int32)
    params['perm2'] = jax.nn.one_hot(src2, GROUPS, dtype=jnp.float32)         # (8, 8)
    return params


if __name__ == "__main__":
    key = jax.random.PRNGKey(0)
    pkey, xkey = jax.random.split(key)
    params = init_params(pkey)
    x = jax.random.normal(xkey, (BATCH, IMAGE_NUM, DES_NUM, IN_DIM), jnp.float32)

    out = vo_transformer_forward(x, params)
    jax.block_until_ready(out)
    assert out.shape == (BATCH, IMAGE_NUM - 1, 6), out.shape
    assert bool(jnp.all(jnp.isfinite(out)))
    print("KERNEL_OK")
</pallas_src>

<mosaic_0001>
module attributes {stable_mosaic.version = 11 : i64} {
  func.func @fused_forward_kernel(%arg0: memref<64x32xf32, #tpu.memory_space<vmem>>, %arg1: memref<64x32xf32, #tpu.memory_space<vmem>>, %arg2: memref<2x32x128xf32, #tpu.memory_space<vmem>>, %arg3: memref<2x1x128xf32, #tpu.memory_space<vmem>>, %arg4: memref<2x4x32xf32, #tpu.memory_space<vmem>>, %arg5: memref<2x32x64xf32, #tpu.memory_space<vmem>>, %arg6: memref<2x1x64xf32, #tpu.memory_space<vmem>>, %arg7: memref<2x64x32xf32, #tpu.memory_space<vmem>>, %arg8: memref<2x1x32xf32, #tpu.memory_space<vmem>>, %arg9: memref<2x32xf32, #tpu.memory_space<vmem>>, %arg10: memref<64x64xf32, #tpu.memory_space<vmem>>, %arg11: memref<256x256xf32, #tpu.memory_space<vmem>>, %arg12: memref<1x256xf32, #tpu.memory_space<vmem>>, %arg13: memref<8x8xf32, #tpu.memory_space<vmem>>, %arg14: memref<1024x384xf32, #tpu.memory_space<vmem>>, %arg15: memref<1x384xf32, #tpu.memory_space<vmem>>, %arg16: memref<384x96xf32, #tpu.memory_space<vmem>>, %arg17: memref<1x96xf32, #tpu.memory_space<vmem>>, %arg18: memref<96x18xf32, #tpu.memory_space<vmem>>, %arg19: memref<1x18xf32, #tpu.memory_space<vmem>>, %arg20: memref<2x18xf32, #tpu.memory_space<vmem>>) attributes {dimension_semantics = [], scalar_prefetch = 0 : i64, scratch_operands = 0 : i64, tpu.core_type = #tpu.core_type<tc>} {
    %c0 = arith.constant 0 : index
    %c0_0 = arith.constant 0 : index
    %0 = vector.load %arg0[%c0, %c0_0] : memref<64x32xf32, #tpu.memory_space<vmem>>, vector<64x32xf32>
    %c0_1 = arith.constant 0 : index
    %c0_2 = arith.constant 0 : index
    %1 = vector.load %arg1[%c0_1, %c0_2] : memref<64x32xf32, #tpu.memory_space<vmem>>, vector<64x32xf32>
    %2 = arith.addf %0, %1 : vector<64x32xf32>
    %c0_3 = arith.constant 0 : index
    %c0_4 = arith.constant 0 : index
    %c0_5 = arith.constant 0 : index
    %3 = vector.load %arg4[%c0_3, %c0_4, %c0_5] : memref<2x4x32xf32, #tpu.memory_space<vmem>>, vector<1x4x32xf32>
    %4 = vector.shape_cast %3 : vector<1x4x32xf32> to vector<4x32xf32>
    %c0_6 = arith.constant 0 : index
    %c0_7 = arith.constant 0 : index
    %c0_8 = arith.constant 0 : index
    %5 = vector.load %arg2[%c0_6, %c0_7, %c0_8] : memref<2x32x128xf32, #tpu.memory_space<vmem>>, vector<1x32x128xf32>
    %6 = vector.shape_cast %5 : vector<1x32x128xf32> to vector<32x128xf32>
    %c0_9 = arith.constant 0 : index
    %c0_10 = arith.constant 0 : index
    %c0_11 = arith.constant 0 : index
    %7 = vector.load %arg3[%c0_9, %c0_10, %c0_11] : memref<2x1x128xf32, #tpu.memory_space<vmem>>, vector<1x1x128xf32>
    %8 = vector.shape_cast %7 : vector<1x1x128xf32> to vector<1x128xf32>
    %9 = vector.extract_strided_slice %4 {offsets = [0, 0], sizes = [1, 32], strides = [1, 1]} : vector<4x32xf32> to vector<1x32xf32>
    %10 = vector.extract_strided_slice %4 {offsets = [1, 0], sizes = [1, 32], strides = [1, 1]} : vector<4x32xf32> to vector<1x32xf32>
    %cst = arith.constant dense<0.000000e+00> : vector<64xf32>
    %11 = vector.multi_reduction <add>, %2, %cst [1] : vector<64x32xf32> to vector<64xf32>
    %12 = vector.shape_cast %11 : vector<64xf32> to vector<64x1xf32>
    %cst_12 = arith.constant 3.200000e+01 : f32
    %13 = vector.broadcast %cst_12 : f32 to vector<64x1xf32>
    %14 = arith.divf %12, %13 : vector<64x1xf32>
    %15 = vector.broadcast %14 : vector<64x1xf32> to vector<64x32xf32>
    %16 = arith.subf %2, %15 : vector<64x32xf32>
    %17 = arith.mulf %16, %16 : vector<64x32xf32>
    %cst_13 = arith.constant dense<0.000000e+00> : vector<64xf32>
    %18 = vector.multi_reduction <add>, %17, %cst_13 [1] : vector<64x32xf32> to vector<64xf32>
    %19 = vector.shape_cast %18 : vector<64xf32> to vector<64x1xf32>
    %cst_14 = arith.constant 3.200000e+01 : f32
    %20 = vector.broadcast %cst_14 : f32 to vector<64x1xf32>
    %21 = arith.divf %19, %20 : vector<64x1xf32>
    %22 = vector.broadcast %14 : vector<64x1xf32> to vector<64x32xf32>
    %23 = arith.subf %2, %22 : vector<64x32xf32>
    %cst_15 = arith.constant 9.99999974E-6 : f32
    %24 = vector.broadcast %cst_15 : f32 to vector<64x1xf32>
    %25 = arith.addf %21, %24 : vector<64x1xf32>
    %26 = math.rsqrt %25 : vector<64x1xf32>
    %27 = vector.broadcast %26 : vector<64x1xf32> to vector<64x32xf32>
    %28 = arith.mulf %23, %27 : vector<64x32xf32>
    %29 = vector.broadcast %9 : vector<1x32xf32> to vector<64x32xf32>
    %30 = arith.mulf %28, %29 : vector<64x32xf32>
    %31 = vector.broadcast %10 : vector<1x32xf32> to vector<64x32xf32>
    %32 = arith.addf %30, %31 : vector<64x32xf32>
    %33 = vector.extract_strided_slice %6 {offsets = [0, 0], sizes = [32, 96], strides = [1, 1]} : vector<32x128xf32> to vector<32x96xf32>
    %cst_16 = arith.constant dense<0.000000e+00> : vector<64x96xf32>
    %34 = tpu.matmul %32, %33, %cst_16 {dimension_numbers = #tpu.dot_dimension_numbers<[1], [0], [0], [1], [0, 0, 1, 1], [], []>} : vector<64x32xf32>, vector<32x96xf32>, vector<64x96xf32> -> vector<64x96xf32>
    %35 = vector.extract_strided_slice %8 {offsets = [0, 0], sizes = [1, 96], strides = [1, 1]} : vector<1x128xf32> to vector<1x96xf32>
    %36 = vector.broadcast %35 : vector<1x96xf32> to vector<64x96xf32>
    %37 = arith.addf %34, %36 : vector<64x96xf32>
    %38 = vector.extract_strided_slice %6 {offsets = [0, 96], sizes = [32, 32], strides = [1, 1]} : vector<32x128xf32> to vector<32x32xf32>
    %39 = vector.extract_strided_slice %8 {offsets = [0, 96], sizes = [1, 32], strides = [1, 1]} : vector<1x128xf32> to vector<1x32xf32>
    %40 = vector.extract_strided_slice %37 {offsets = [0, 0], sizes = [32, 32], strides = [1, 1]} : vector<64x96xf32> to vector<32x32xf32>
    %41 = vector.extract_strided_slice %37 {offsets = [0, 32], sizes = [32, 32], strides = [1, 1]} : vector<64x96xf32> to vector<32x32xf32>
    %42 = vector.extract_strided_slice %37 {offsets = [0, 64], sizes = [32, 32], strides = [1, 1]} : vector<64x96xf32> to vector<32x32xf32>
    %cst_17 = arith.constant 0.000000e+00 : f32
    %43 = vector.broadcast %cst_17 : f32 to vector<32x32xf32>
    %44 = vector.extract_strided_slice %40 {offsets = [0, 0], sizes = [32, 8], strides = [1, 1]} : vector<32x32xf32> to vector<32x8xf32>
    %45 = vector.extract_strided_slice %41 {offsets = [0, 0], sizes = [32, 8], strides = [1, 1]} : vector<32x32xf32> to vector<32x8xf32>
    %46 = vector.extract_strided_slice %42 {offsets = [0, 0], sizes = [32, 8], strides = [1, 1]} : vector<32x32xf32> to vector<32x8xf32>
    %47 = tpu.transpose %45, [1, 0] : vector<32x8xf32> -> vector<8x32xf32>
    %cst_18 = arith.constant dense<0.000000e+00> : vector<32x32xf32>
    %48 = tpu.matmul %44, %47, %cst_18 {dimension_numbers = #tpu.dot_dimension_numbers<[1], [0], [0], [1], [0, 0, 1, 1], [], []>} : vector<32x8xf32>, vector<8x32xf32>, vector<32x32xf32> -> vector<32x32xf32>
    %cst_19 = arith.constant dense<0xFF800000> : vector<32xf32>
    %49 = vector.multi_reduction <maximumf>, %48, %cst_19 [1] : vector<32x32xf32> to vector<32xf32>
    %50 = vector.shape_cast %49 : vector<32xf32> to vector<32x1xf32>
    %51 = vector.broadcast %50 : vector<32x1xf32> to vector<32x32xf32>
    %52 = arith.subf %48, %51 : vector<32x32xf32>
    %53 = math.exp %52 : vector<32x32xf32>
    %cst_20 = arith.constant dense<0.000000e+00> : vector<32xf32>
    %54 = vector.multi_reduction <add>, %53, %cst_20 [1] : vector<32x32xf32> to vector<32xf32>
    %55 = vector.shape_cast %54 : vector<32xf32> to vector<32x1xf32>
    %56 = tpu.reciprocal %55 {approx = true} : vector<32x1xf32> -> vector<32x1xf32>
    %57 = vector.broadcast %56 : vector<32x1xf32> to vector<32x32xf32>
    %58 = arith.mulf %53, %57 : vector<32x32xf32>
    %cst_21 = arith.constant dense<0.000000e+00> : vector<32x8xf32>
    %59 = tpu.matmul %58, %46, %cst_21 {dimension_numbers = #tpu.dot_dimension_numbers<[1], [0], [0], [1], [0, 0, 1, 1], [], []>} : vector<32x32xf32>, vector<32x8xf32>, vector<32x8xf32> -> vector<32x8xf32>
    %60 = vector.extract_strided_slice %38 {offsets = [0, 0], sizes = [8, 32], strides = [1, 1]} : vector<32x32xf32> to vector<8x32xf32>
    %cst_22 = arith.constant dense<0.000000e+00> : vector<32x32xf32>
    %61 = tpu.matmul %59, %60, %cst_22 {dimension_numbers = #tpu.dot_dimension_numbers<[1], [0], [0], [1], [0, 0, 1, 1], [], []>} : vector<32x8xf32>, vector<8x32xf32>, vector<32x32xf32> -> vector<32x32xf32>
    %62 = arith.addf %43, %61 : vector<32x32xf32>
    %63 = vector.extract_strided_slice %40 {offsets = [0, 8], sizes = [32, 8], strides = [1, 1]} : vector<32x32xf32> to vector<32x8xf32>
    %64 = vector.extract_strided_slice %41 {offsets = [0, 8], sizes = [32, 8], strides = [1, 1]} : vector<32x32xf32> to vector<32x8xf32>
    %65 = vector.extract_strided_slice %42 {offsets = [0, 8], sizes = [32, 8], strides = [1, 1]} : vector<32x32xf32> to vector<32x8xf32>
    %66 = tpu.transpose %64, [1, 0] : vector<32x8xf32> -> vector<8x32xf32>
    %cst_23 = arith.constant dense<0.000000e+00> : vector<32x32xf32>
    %67 = tpu.matmul %63, %66, %cst_23 {dimension_numbers = #tpu.dot_dimension_numbers<[1], [0], [0], [1], [0, 0, 1, 1], [], []>} : vector<32x8xf32>, vector<8x32xf32>, vector<32x32xf32> -> vector<32x32xf32>
    %cst_24 = arith.constant dense<0xFF800000> : vector<32xf32>
    %68 = vector.multi_reduction <maximumf>, %67, %cst_24 [1] : vector<32x32xf32> to vector<32xf32>
    %69 = vector.shape_cast %68 : vector<32xf32> to vector<32x1xf32>
    %70 = vector.broadcast %69 : vector<32x1xf32> to vector<32x32xf32>
    %71 = arith.subf %67, %70 : vector<32x32xf32>
    %72 = math.exp %71 : vector<32x32xf32>
    %cst_25 = arith.constant dense<0.000000e+00> : vector<32xf32>
    %73 = vector.multi_reduction <add>, %72, %cst_25 [1] : vector<32x32xf32> to vector<32xf32>
    %74 = vector.shape_cast %73 : vector<32xf32> to vector<32x1xf32>
    %75 = tpu.reciprocal %74 {approx = true} : vector<32x1xf32> -> vector<32x1xf32>
    %76 = vector.broadcast %75 : vector<32x1xf32> to vector<32x32xf32>
    %77 = arith.mulf %72, %76 : vector<32x32xf32>
    %cst_26 = arith.constant dense<0.000000e+00> : vector<32x8xf32>
    %78 = tpu.matmul %77, %65, %cst_26 {dimension_numbers = #tpu.dot_dimension_numbers<[1], [0], [0], [1], [0, 0, 1, 1], [], []>} : vector<32x32xf32>, vector<32x8xf32>, vector<32x8xf32> -> vector<32x8xf32>
    %79 = vector.extract_strided_slice %38 {offsets = [8, 0], sizes = [8, 32], strides = [1, 1]} : vector<32x32xf32> to vector<8x32xf32>
    %cst_27 = arith.constant dense<0.000000e+00> : vector<32x32xf32>
    %80 = tpu.matmul %78, %79, %cst_27 {dimension_numbers = #tpu.dot_dimension_numbers<[1], [0], [0], [1], [0, 0, 1, 1], [], []>} : vector<32x8xf32>, vector<8x32xf32>, vector<32x32xf32> -> vector<32x32xf32>
    %81 = arith.addf %62, %80 : vector<32x32xf32>
    %82 = vector.extract_strided_slice %40 {offsets = [0, 16], sizes = [32, 8], strides = [1, 1]} : vector<32x32xf32> to vector<32x8xf32>
    %83 = vector.extract_strided_slice %41 {offsets = [0, 16], sizes = [32, 8], strides = [1, 1]} : vector<32x32xf32> to vector<32x8xf32>
    %84 = vector.extract_strided_slice %42 {offsets = [0, 16], sizes = [32, 8], strides = [1, 1]} : vector<32x32xf32> to vector<32x8xf32>
    %85 = tpu.transpose %83, [1, 0] : vector<32x8xf32> -> vector<8x32xf32>
    %cst_28 = arith.constant dense<0.000000e+00> : vector<32x32xf32>
    %86 = tpu.matmul %82, %85, %cst_28 {dimension_numbers = #tpu.dot_dimension_numbers<[1], [0], [0], [1], [0, 0, 1, 1], [], []>} : vector<32x8xf32>, vector<8x32xf32>, vector<32x32xf32> -> vector<32x32xf32>
    %cst_29 = arith.constant dense<0xFF800000> : vector<32xf32>
    %87 = vector.multi_reduction <maximumf>, %86, %cst_29 [1] : vector<32x32xf32> to vector<32xf32>
    %88 = vector.shape_cast %87 : vector<32xf32> to vector<32x1xf32>
    %89 = vector.broadcast %88 : vector<32x1xf32> to vector<32x32xf32>
    %90 = arith.subf %86, %89 : vector<32x32xf32>
    %91 = math.exp %90 : vector<32x32xf32>
    %cst_30 = arith.constant dense<0.000000e+00> : vector<32xf32>
    %92 = vector.multi_reduction <add>, %91, %cst_30 [1] : vector<32x32xf32> to vector<32xf32>
    %93 = vector.shape_cast %92 : vector<32xf32> to vector<32x1xf32>
    %94 = tpu.reciprocal %93 {approx = true} : vector<32x1xf32> -> vector<32x1xf32>
    %95 = vector.broadcast %94 : vector<32x1xf32> to vector<32x32xf32>
    %96 = arith.mulf %91, %95 : vector<32x32xf32>
    %cst_31 = arith.constant dense<0.000000e+00> : vector<32x8xf32>
    %97 = tpu.matmul %96, %84, %cst_31 {dimension_numbers = #tpu.dot_dimension_numbers<[1], [0], [0], [1], [0, 0, 1, 1], [], []>} : vector<32x32xf32>, vector<32x8xf32>, vector<32x8xf32> -> vector<32x8xf32>
    %98 = vector.extract_strided_slice %38 {offsets = [16, 0], sizes = [8, 32], strides = [1, 1]} : vector<32x32xf32> to vector<8x32xf32>
    %cst_32 = arith.constant dense<0.000000e+00> : vector<32x32xf32>
    %99 = tpu.matmul %97, %98, %cst_32 {dimension_numbers = #tpu.dot_dimension_numbers<[1], [0], [0], [1], [0, 0, 1, 1], [], []>} : vector<32x8xf32>, vector<8x32xf32>, vector<32x32xf32> -> vector<32x32xf32>
    %100 = arith.addf %81, %99 : vector<32x32xf32>
    %101 = vector.extract_strided_slice %40 {offsets = [0, 24], sizes = [32, 8], strides = [1, 1]} : vector<32x32xf32> to vector<32x8xf32>
    %102 = vector.extract_strided_slice %41 {offsets = [0, 24], sizes = [32, 8], strides = [1, 1]} : vector<32x32xf32> to vector<32x8xf32>
    %103 = vector.extract_strided_slice %42 {offsets = [0, 24], sizes = [32, 8], strides = [1, 1]} : vector<32x32xf32> to vector<32x8xf32>
    %104 = tpu.transpose %102, [1, 0] : vector<32x8xf32> -> vector<8x32xf32>
    %cst_33 = arith.constant dense<0.000000e+00> : vector<32x32xf32>
    %105 = tpu.matmul %101, %104, %cst_33 {dimension_numbers = #tpu.dot_dimension_numbers<[1], [0], [0], [1], [0, 0, 1, 1], [], []>} : vector<32x8xf32>, vector<8x32xf32>, vector<32x32xf32> -> vector<32x32xf32>
    %cst_34 = arith.constant dense<0xFF800000> : vector<32xf32>
    %106 = vector.multi_reduction <maximumf>, %105, %cst_34 [1] : vector<32x32xf32> to vector<32xf32>
    %107 = vector.shape_cast %106 : vector<32xf32> to vector<32x1xf32>
    %108 = vector.broadcast %107 : vector<32x1xf32> to vector<32x32xf32>
    %109 = arith.subf %105, %108 : vector<32x32xf32>
    %110 = math.exp %109 : vector<32x32xf32>
    %cst_35 = arith.constant dense<0.000000e+00> : vector<32xf32>
    %111 = vector.multi_reduction <add>, %110, %cst_35 [1] : vector<32x32xf32> to vector<32xf32>
    %112 = vector.shape_cast %111 : vector<32xf32> to vector<32x1xf32>
    %113 = tpu.reciprocal %112 {approx = true} : vector<32x1xf32> -> vector<32x1xf32>
    %114 = vector.broadcast %113 : vector<32x1xf32> to vector<32x32xf32>
    %115 = arith.mulf %110, %114 : vector<32x32xf32>
    %cst_36 = arith.constant dense<0.000000e+00> : vector<32x8xf32>
    %116 = tpu.matmul %115, %103, %cst_36 {dimension_numbers = #tpu.dot_dimension_numbers<[1], [0], [0], [1], [0, 0, 1, 1], [], []>} : vector<32x32xf32>, vector<32x8xf32>, vector<32x8xf32> -> vector<32x8xf32>
    %117 = vector.extract_strided_slice %38 {offsets = [24, 0], sizes = [8, 32], strides = [1, 1]} : vector<32x32xf32> to vector<8x32xf32>
    %cst_37 = arith.constant dense<0.000000e+00> : vector<32x32xf32>
    %118 = tpu.matmul %116, %117, %cst_37 {dimension_numbers = #tpu.dot_dimension_numbers<[1], [0], [0], [1], [0, 0, 1, 1], [], []>} : vector<32x8xf32>, vector<8x32xf32>, vector<32x32xf32> -> vector<32x32xf32>
    %119 = arith.addf %100, %118 : vector<32x32xf32>
    %120 = vector.extract_strided_slice %37 {offsets = [32, 0], sizes = [32, 32], strides = [1, 1]} : vector<64x96xf32> to vector<32x32xf32>
    %121 = vector.extract_strided_slice %37 {offsets = [32, 32], sizes = [32, 32], strides = [1, 1]} : vector<64x96xf32> to vector<32x32xf32>
    %122 = vector.extract_strided_slice %37 {offsets = [32, 64], sizes = [32, 32], strides = [1, 1]} : vector<64x96xf32> to vector<32x32xf32>
    %cst_38 = arith.constant 0.000000e+00 : f32
    %123 = vector.broadcast %cst_38 : f32 to vector<32x32xf32>
    %124 = vector.extract_strided_slice %120 {offsets = [0, 0], sizes = [32, 8], strides = [1, 1]} : vector<32x32xf32> to vector<32x8xf32>
    %125 = vector.extract_strided_slice %121 {offsets = [0, 0], sizes = [32, 8], strides = [1, 1]} : vector<32x32xf32> to vector<32x8xf32>
    %126 = vector.extract_strided_slice %122 {offsets = [0, 0], sizes = [32, 8], strides = [1, 1]} : vector<32x32xf32> to vector<32x8xf32>
    %127 = tpu.transpose %125, [1, 0] : vector<32x8xf32> -> vector<8x32xf32>
    %cst_39 = arith.constant dense<0.000000e+00> : vector<32x32xf32>
    %128 = tpu.matmul %124, %127, %cst_39 {dimension_numbers = #tpu.dot_dimension_numbers<[1], [0], [0], [1], [0, 0, 1, 1], [], []>} : vector<32x8xf32>, vector<8x32xf32>, vector<32x32xf32> -> vector<32x32xf32>
    %cst_40 = arith.constant dense<0xFF800000> : vector<32xf32>
    %129 = vector.multi_reduction <maximumf>, %128, %cst_40 [1] : vector<32x32xf32> to vector<32xf32>
    %130 = vector.shape_cast %129 : vector<32xf32> to vector<32x1xf32>
    %131 = vector.broadcast %130 : vector<32x1xf32> to vector<32x32xf32>
    %132 = arith.subf %128, %131 : vector<32x32xf32>
    %133 = math.exp %132 : vector<32x32xf32>
    %cst_41 = arith.constant dense<0.000000e+00> : vector<32xf32>
    %134 = vector.multi_reduction <add>, %133, %cst_41 [1] : vector<32x32xf32> to vector<32xf32>
    %135 = vector.shape_cast %134 : vector<32xf32> to vector<32x1xf32>
    %136 = tpu.reciprocal %135 {approx = true} : vector<32x1xf32> -> vector<32x1xf32>
    %137 = vector.broadcast %136 : vector<32x1xf32> to vector<32x32xf32>
    %138 = arith.mulf %133, %137 : vector<32x32xf32>
    %cst_42 = arith.constant dense<0.000000e+00> : vector<32x8xf32>
    %139 = tpu.matmul %138, %126, %cst_42 {dimension_numbers = #tpu.dot_dimension_numbers<[1], [0], [0], [1], [0, 0, 1, 1], [], []>} : vector<32x32xf32>, vector<32x8xf32>, vector<32x8xf32> -> vector<32x8xf32>
    %140 = vector.extract_strided_slice %38 {offsets = [0, 0], sizes = [8, 32], strides = [1, 1]} : vector<32x32xf32> to vector<8x32xf32>
    %cst_43 = arith.constant dense<0.000000e+00> : vector<32x32xf32>
    %141 = tpu.matmul %139, %140, %cst_43 {dimension_numbers = #tpu.dot_dimension_numbers<[1], [0], [0], [1], [0, 0, 1, 1], [], []>} : vector<32x8xf32>, vector<8x32xf32>, vector<32x32xf32> -> vector<32x32xf32>
    %142 = arith.addf %123, %141 : vector<32x32xf32>
    %143 = vector.extract_strided_slice %120 {offsets = [0, 8], sizes = [32, 8], strides = [1, 1]} : vector<32x32xf32> to vector<32x8xf32>
    %144 = vector.extract_strided_slice %121 {offsets = [0, 8], sizes = [32, 8], strides = [1, 1]} : vector<32x32xf32> to vector<32x8xf32>
    %145 = vector.extract_strided_slice %122 {offsets = [0, 8], sizes = [32, 8], strides = [1, 1]} : vector<32x32xf32> to vector<32x8xf32>
    %146 = tpu.transpose %144, [1, 0] : vector<32x8xf32> -> vector<8x32xf32>
    %cst_44 = arith.constant dense<0.000000e+00> : vector<32x32xf32>
    %147 = tpu.matmul %143, %146, %cst_44 {dimension_numbers = #tpu.dot_dimension_numbers<[1], [0], [0], [1], [0, 0, 1, 1], [], []>} : vector<32x8xf32>, vector<8x32xf32>, vector<32x32xf32> -> vector<32x32xf32>
    %cst_45 = arith.constant dense<0xFF800000> : vector<32xf32>
    %148 = vector.multi_reduction <maximumf>, %147, %cst_45 [1] : vector<32x32xf32> to vector<32xf32>
    %149 = vector.shape_cast %148 : vector<32xf32> to vector<32x1xf32>
    %150 = vector.broadcast %149 : vector<32x1xf32> to vector<32x32xf32>
    %151 = arith.subf %147, %150 : vector<32x32xf32>
    %152 = math.exp %151 : vector<32x32xf32>
    %cst_46 = arith.constant dense<0.000000e+00> : vector<32xf32>
    %153 = vector.multi_reduction <add>, %152, %cst_46 [1] : vector<32x32xf32> to vector<32xf32>
    %154 = vector.shape_cast %153 : vector<32xf32> to vector<32x1xf32>
    %155 = tpu.reciprocal %154 {approx = true} : vector<32x1xf32> -> vector<32x1xf32>
    %156 = vector.broadcast %155 : vector<32x1xf32> to vector<32x32xf32>
    %157 = arith.mulf %152, %156 : vector<32x32xf32>
    %cst_47 = arith.constant dense<0.000000e+00> : vector<32x8xf32>
    %158 = tpu.matmul %157, %145, %cst_47 {dimension_numbers = #tpu.dot_dimension_numbers<[1], [0], [0], [1], [0, 0, 1, 1], [], []>} : vector<32x32xf32>, vector<32x8xf32>, vector<32x8xf32> -> vector<32x8xf32>
    %159 = vector.extract_strided_slice %38 {offsets = [8, 0], sizes = [8, 32], strides = [1, 1]} : vector<32x32xf32> to vector<8x32xf32>
    %cst_48 = arith.constant dense<0.000000e+00> : vector<32x32xf32>
    %160 = tpu.matmul %158, %159, %cst_48 {dimension_numbers = #tpu.dot_dimension_numbers<[1], [0], [0], [1], [0, 0, 1, 1], [], []>} : vector<32x8xf32>, vector<8x32xf32>, vector<32x32xf32> -> vector<32x32xf32>
    %161 = arith.addf %142, %160 : vector<32x32xf32>
    %162 = vector.extract_strided_slice %120 {offsets = [0, 16], sizes = [32, 8], strides = [1, 1]} : vector<32x32xf32> to vector<32x8xf32>
    %163 = vector.extract_strided_slice %121 {offsets = [0, 16], sizes = [32, 8], strides = [1, 1]} : vector<32x32xf32> to vector<32x8xf32>
    %164 = vector.extract_strided_slice %122 {offsets = [0, 16], sizes = [32, 8], strides = [1, 1]} : vector<32x32xf32> to vector<32x8xf32>
    %165 = tpu.transpose %163, [1, 0] : vector<32x8xf32> -> vector<8x32xf32>
    %cst_49 = arith.constant dense<0.000000e+00> : vector<32x32xf32>
    %166 = tpu.matmul %162, %165, %cst_49 {dimension_numbers = #tpu.dot_dimension_numbers<[1], [0], [0], [1], [0, 0, 1, 1], [], []>} : vector<32x8xf32>, vector<8x32xf32>, vector<32x32xf32> -> vector<32x32xf32>
    %cst_50 = arith.constant dense<0xFF800000> : vector<32xf32>
    %167 = vector.multi_reduction <maximumf>, %166, %cst_50 [1] : vector<32x32xf32> to vector<32xf32>
    %168 = vector.shape_cast %167 : vector<32xf32> to vector<32x1xf32>
    %169 = vector.broadcast %168 : vector<32x1xf32> to vector<32x32xf32>
    %170 = arith.subf %166, %169 : vector<32x32xf32>
    %171 = math.exp %170 : vector<32x32xf32>
    %cst_51 = arith.constant dense<0.000000e+00> : vector<32xf32>
    %172 = vector.multi_reduction <add>, %171, %cst_51 [1] : vector<32x32xf32> to vector<32xf32>
    %173 = vector.shape_cast %172 : vector<32xf32> to vector<32x1xf32>
    %174 = tpu.reciprocal %173 {approx = true} : vector<32x1xf32> -> vector<32x1xf32>
    %175 = vector.broadcast %174 : vector<32x1xf32> to vector<32x32xf32>
    %176 = arith.mulf %171, %175 : vector<32x32xf32>
    %cst_52 = arith.constant dense<0.000000e+00> : vector<32x8xf32>
    %177 = tpu.matmul %176, %164, %cst_52 {dimension_numbers = #tpu.dot_dimension_numbers<[1], [0], [0], [1], [0, 0, 1, 1], [], []>} : vector<32x32xf32>, vector<32x8xf32>, vector<32x8xf32> -> vector<32x8xf32>
    %178 = vector.extract_strided_slice %38 {offsets = [16, 0], sizes = [8, 32], strides = [1, 1]} : vector<32x32xf32> to vector<8x32xf32>
    %cst_53 = arith.constant dense<0.000000e+00> : vector<32x32xf32>
    %179 = tpu.matmul %177, %178, %cst_53 {dimension_numbers = #tpu.dot_dimension_numbers<[1], [0], [0], [1], [0, 0, 1, 1], [], []>} : vector<32x8xf32>, vector<8x32xf32>, vector<32x32xf32> -> vector<32x32xf32>
    %180 = arith.addf %161, %179 : vector<32x32xf32>
    %181 = vector.extract_strided_slice %120 {offsets = [0, 24], sizes = [32, 8], strides = [1, 1]} : vector<32x32xf32> to vector<32x8xf32>
    %182 = vector.extract_strided_slice %121 {offsets = [0, 24], sizes = [32, 8], strides = [1, 1]} : vector<32x32xf32> to vector<32x8xf32>
    %183 = vector.extract_strided_slice %122 {offsets = [0, 24], sizes = [32, 8], strides = [1, 1]} : vector<32x32xf32> to vector<32x8xf32>
    %184 = tpu.transpose %182, [1, 0] : vector<32x8xf32> -> vector<8x32xf32>
    %cst_54 = arith.constant dense<0.000000e+00> : vector<32x32xf32>
    %185 = tpu.matmul %181, %184, %cst_54 {dimension_numbers = #tpu.dot_dimension_numbers<[1], [0], [0], [1], [0, 0, 1, 1], [], []>} : vector<32x8xf32>, vector<8x32xf32>, vector<32x32xf32> -> vector<32x32xf32>
    %cst_55 = arith.constant dense<0xFF800000> : vector<32xf32>
    %186 = vector.multi_reduction <maximumf>, %185, %cst_55 [1] : vector<32x32xf32> to vector<32xf32>
    %187 = vector.shape_cast %186 : vector<32xf32> to vector<32x1xf32>
    %188 = vector.broadcast %187 : vector<32x1xf32> to vector<32x32xf32>
    %189 = arith.subf %185, %188 : vector<32x32xf32>
    %190 = math.exp %189 : vector<32x32xf32>
    %cst_56 = arith.constant dense<0.000000e+00> : vector<32xf32>
    %191 = vector.multi_reduction <add>, %190, %cst_56 [1] : vector<32x32xf32> to vector<32xf32>
    %192 = vector.shape_cast %191 : vector<32xf32> to vector<32x1xf32>
    %193 = tpu.reciprocal %192 {approx = true} : vector<32x1xf32> -> vector<32x1xf32>
    %194 = vector.broadcast %193 : vector<32x1xf32> to vector<32x32xf32>
    %195 = arith.mulf %190, %194 : vector<32x32xf32>
    %cst_57 = arith.constant dense<0.000000e+00> : vector<32x8xf32>
    %196 = tpu.matmul %195, %183, %cst_57 {dimension_numbers = #tpu.dot_dimension_numbers<[1], [0], [0], [1], [0, 0, 1, 1], [], []>} : vector<32x32xf32>, vector<32x8xf32>, vector<32x8xf32> -> vector<32x8xf32>
    %197 = vector.extract_strided_slice %38 {offsets = [24, 0], sizes = [8, 32], strides = [1, 1]} : vector<32x32xf32> to vector<8x32xf32>
    %cst_58 = arith.constant dense<0.000000e+00> : vector<32x32xf32>
    %198 = tpu.matmul %196, %197, %cst_58 {dimension_numbers = #tpu.dot_dimension_numbers<[1], [0], [0], [1], [0, 0, 1, 1], [], []>} : vector<32x8xf32>, vector<8x32xf32>, vector<32x32xf32> -> vector<32x32xf32>
    %199 = arith.addf %180, %198 : vector<32x32xf32>
    %200 = tpu.concatenate %119, %199 in 0 : vector<32x32xf32>, vector<32x32xf32> -> vector<64x32xf32>
    %201 = arith.addf %2, %200 : vector<64x32xf32>
    %202 = vector.broadcast %39 : vector<1x32xf32> to vector<64x32xf32>
    %203 = arith.addf %201, %202 : vector<64x32xf32>
    %204 = vector.extract_strided_slice %4 {offsets = [2, 0], sizes = [1, 32], strides = [1, 1]} : vector<4x32xf32> to vector<1x32xf32>
    %205 = vector.extract_strided_slice %4 {offsets = [3, 0], sizes = [1, 32], strides = [1, 1]} : vector<4x32xf32> to vector<1x32xf32>
    %cst_59 = arith.constant dense<0.000000e+00> : vector<64xf32>
    %206 = vector.multi_reduction <add>, %203, %cst_59 [1] : vector<64x32xf32> to vector<64xf32>
    %207 = vector.shape_cast %206 : vector<64xf32> to vector<64x1xf32>
    %cst_60 = arith.constant 3.200000e+01 : f32
    %208 = vector.broadcast %cst_60 : f32 to vector<64x1xf32>
    %209 = arith.divf %207, %208 : vector<64x1xf32>
    %210 = vector.broadcast %209 : vector<64x1xf32> to vector<64x32xf32>
    %211 = arith.subf %203, %210 : vector<64x32xf32>
    %212 = arith.mulf %211, %211 : vector<64x32xf32>
    %cst_61 = arith.constant dense<0.000000e+00> : vector<64xf32>
    %213 = vector.multi_reduction <add>, %212, %cst_61 [1] : vector<64x32xf32> to vector<64xf32>
    %214 = vector.shape_cast %213 : vector<64xf32> to vector<64x1xf32>
    %cst_62 = arith.constant 3.200000e+01 : f32
    %215 = vector.broadcast %cst_62 : f32 to vector<64x1xf32>
    %216 = arith.divf %214, %215 : vector<64x1xf32>
    %217 = vector.broadcast %209 : vector<64x1xf32> to vector<64x32xf32>
    %218 = arith.subf %203, %217 : vector<64x32xf32>
    %cst_63 = arith.constant 9.99999974E-6 : f32
    %219 = vector.broadcast %cst_63 : f32 to vector<64x1xf32>
    %220 = arith.addf %216, %219 : vector<64x1xf32>
    %221 = math.rsqrt %220 : vector<64x1xf32>
    %222 = vector.broadcast %221 : vector<64x1xf32> to vector<64x32xf32>
    %223 = arith.mulf %218, %222 : vector<64x32xf32>
    %224 = vector.broadcast %204 : vector<1x32xf32> to vector<64x32xf32>
    %225 = arith.mulf %223, %224 : vector<64x32xf32>
    %226 = vector.broadcast %205 : vector<1x32xf32> to vector<64x32xf32>
    %227 = arith.addf %225, %226 : vector<64x32xf32>
    %c0_64 = arith.constant 0 : index
    %c0_65 = arith.constant 0 : index
    %c0_66 = arith.constant 0 : index
    %228 = vector.load %arg5[%c0_64, %c0_65, %c0_66] : memref<2x32x64xf32, #tpu.memory_space<vmem>>, vector<1x32x64xf32>
    %229 = vector.shape_cast %228 : vector<1x32x64xf32> to vector<32x64xf32>
    %cst_67 = arith.constant dense<0.000000e+00> : vector<64x64xf32>
    %230 = tpu.matmul %227, %229, %cst_67 {dimension_numbers = #tpu.dot_dimension_numbers<[1], [0], [0], [1], [0, 0, 1, 1], [], []>} : vector<64x32xf32>, vector<32x64xf32>, vector<64x64xf32> -> vector<64x64xf32>
    %c0_68 = arith.constant 0 : index
    %c0_69 = arith.constant 0 : index
    %c0_70 = arith.constant 0 : index
    %231 = vector.load %arg6[%c0_68, %c0_69, %c0_70] : memref<2x1x64xf32, #tpu.memory_space<vmem>>, vector<1x1x64xf32>
    %232 = vector.shape_cast %231 : vector<1x1x64xf32> to vector<1x64xf32>
    %233 = vector.broadcast %232 : vector<1x64xf32> to vector<64x64xf32>
    %234 = arith.addf %230, %233 : vector<64x64xf32>
    %cst_71 = arith.constant 5.000000e-01 : f32
    %235 = vector.broadcast %cst_71 : f32 to vector<64x64xf32>
    %236 = arith.mulf %235, %234 : vector<64x64xf32>
    %cst_72 = arith.constant 0.707106769 : f32
    %237 = vector.broadcast %cst_72 : f32 to vector<64x64xf32>
    %238 = arith.mulf %234, %237 : vector<64x64xf32>
    %239 = math.erf %238 : vector<64x64xf32>
    %cst_73 = arith.constant 1.000000e+00 : f32
    %240 = vector.broadcast %cst_73 : f32 to vector<64x64xf32>
    %241 = arith.addf %240, %239 : vector<64x64xf32>
    %242 = arith.mulf %236, %241 : vector<64x64xf32>
    %c0_74 = arith.constant 0 : index
    %c0_75 = arith.constant 0 : index
    %c0_76 = arith.constant 0 : index
    %243 = vector.load %arg7[%c0_74, %c0_75, %c0_76] : memref<2x64x32xf32, #tpu.memory_space<vmem>>, vector<1x64x32xf32>
    %244 = vector.shape_cast %243 : vector<1x64x32xf32> to vector<64x32xf32>
    %cst_77 = arith.constant dense<0.000000e+00> : vector<64x32xf32>
    %245 = tpu.matmul %242, %244, %cst_77 {dimension_numbers = #tpu.dot_dimension_numbers<[1], [0], [0], [1], [0, 0, 1, 1], [], []>} : vector<64x64xf32>, vector<64x32xf32>, vector<64x32xf32> -> vector<64x32xf32>
    %c0_78 = arith.constant 0 : index
    %c0_79 = arith.constant 0 : index
    %c0_80 = arith.constant 0 : index
    %246 = vector.load %arg8[%c0_78, %c0_79, %c0_80] : memref<2x1x32xf32, #tpu.memory_space<vmem>>, vector<1x1x32xf32>
    %247 = vector.shape_cast %246 : vector<1x1x32xf32> to vector<1x32xf32>
    %248 = vector.broadcast %247 : vector<1x32xf32> to vector<64x32xf32>
    %249 = arith.addf %245, %248 : vector<64x32xf32>
    %250 = arith.addf %203, %249 : vector<64x32xf32>
    %c1 = arith.constant 1 : index
    %c0_81 = arith.constant 0 : index
    %c0_82 = arith.constant 0 : index
    %251 = vector.load %arg4[%c1, %c0_81, %c0_82] : memref<2x4x32xf32, #tpu.memory_space<vmem>>, vector<1x4x32xf32>
    %252 = vector.shape_cast %251 : vector<1x4x32xf32> to vector<4x32xf32>
    %c1_83 = arith.constant 1 : index
    %c0_84 = arith.constant 0 : index
    %c0_85 = arith.constant 0 : index
    %253 = vector.load %arg2[%c1_83, %c0_84, %c0_85] : memref<2x32x128xf32, #tpu.memory_space<vmem>>, vector<1x32x128xf32>
    %254 = vector.shape_cast %253 : vector<1x32x128xf32> to vector<32x128xf32>
    %c1_86 = arith.constant 1 : index
    %c0_87 = arith.constant 0 : index
    %c0_88 = arith.constant 0 : index
    %255 = vector.load %arg3[%c1_86, %c0_87, %c0_88] : memref<2x1x128xf32, #tpu.memory_space<vmem>>, vector<1x1x128xf32>
    %256 = vector.shape_cast %255 : vector<1x1x128xf32> to vector<1x128xf32>
    %257 = vector.extract_strided_slice %252 {offsets = [0, 0], sizes = [1, 32], strides = [1, 1]} : vector<4x32xf32> to vector<1x32xf32>
    %258 = vector.extract_strided_slice %252 {offsets = [1, 0], sizes = [1, 32], strides = [1, 1]} : vector<4x32xf32> to vector<1x32xf32>
    %cst_89 = arith.constant dense<0.000000e+00> : vector<64xf32>
    %259 = vector.multi_reduction <add>, %250, %cst_89 [1] : vector<64x32xf32> to vector<64xf32>
    %260 = vector.shape_cast %259 : vector<64xf32> to vector<64x1xf32>
    %cst_90 = arith.constant 3.200000e+01 : f32
    %261 = vector.broadcast %cst_90 : f32 to vector<64x1xf32>
    %262 = arith.divf %260, %261 : vector<64x1xf32>
    %263 = vector.broadcast %262 : vector<64x1xf32> to vector<64x32xf32>
    %264 = arith.subf %250, %263 : vector<64x32xf32>
    %265 = arith.mulf %264, %264 : vector<64x32xf32>
    %cst_91 = arith.constant dense<0.000000e+00> : vector<64xf32>
    %266 = vector.multi_reduction <add>, %265, %cst_91 [1] : vector<64x32xf32> to vector<64xf32>
    %267 = vector.shape_cast %266 : vector<64xf32> to vector<64x1xf32>
    %cst_92 = arith.constant 3.200000e+01 : f32
    %268 = vector.broadcast %cst_92 : f32 to vector<64x1xf32>
    %269 = arith.divf %267, %268 : vector<64x1xf32>
    %270 = vector.broadcast %262 : vector<64x1xf32> to vector<64x32xf32>
    %271 = arith.subf %250, %270 : vector<64x32xf32>
    %cst_93 = arith.constant 9.99999974E-6 : f32
    %272 = vector.broadcast %cst_93 : f32 to vector<64x1xf32>
    %273 = arith.addf %269, %272 : vector<64x1xf32>
    %274 = math.rsqrt %273 : vector<64x1xf32>
    %275 = vector.broadcast %274 : vector<64x1xf32> to vector<64x32xf32>
    %276 = arith.mulf %271, %275 : vector<64x32xf32>
    %277 = vector.broadcast %257 : vector<1x32xf32> to vector<64x32xf32>
    %278 = arith.mulf %276, %277 : vector<64x32xf32>
    %279 = vector.broadcast %258 : vector<1x32xf32> to vector<64x32xf32>
    %280 = arith.addf %278, %279 : vector<64x32xf32>
    %281 = vector.extract_strided_slice %254 {offsets = [0, 0], sizes = [32, 96], strides = [1, 1]} : vector<32x128xf32> to vector<32x96xf32>
    %cst_94 = arith.constant dense<0.000000e+00> : vector<64x96xf32>
    %282 = tpu.matmul %280, %281, %cst_94 {dimension_numbers = #tpu.dot_dimension_numbers<[1], [0], [0], [1], [0, 0, 1, 1], [], []>} : vector<64x32xf32>, vector<32x96xf32>, vector<64x96xf32> -> vector<64x96xf32>
    %283 = vector.extract_strided_slice %256 {offsets = [0, 0], sizes = [1, 96], strides = [1, 1]} : vector<1x128xf32> to vector<1x96xf32>
    %284 = vector.broadcast %283 : vector<1x96xf32> to vector<64x96xf32>
    %285 = arith.addf %282, %284 : vector<64x96xf32>
    %286 = vector.extract_strided_slice %254 {offsets = [0, 96], sizes = [32, 32], strides = [1, 1]} : vector<32x128xf32> to vector<32x32xf32>
    %287 = vector.extract_strided_slice %256 {offsets = [0, 96], sizes = [1, 32], strides = [1, 1]} : vector<1x128xf32> to vector<1x32xf32>
    %288 = vector.extract_strided_slice %285 {offsets = [0, 0], sizes = [32, 32], strides = [1, 1]} : vector<64x96xf32> to vector<32x32xf32>
    %289 = vector.extract_strided_slice %285 {offsets = [0, 32], sizes = [32, 32], strides = [1, 1]} : vector<64x96xf32> to vector<32x32xf32>
    %290 = vector.extract_strided_slice %285 {offsets = [0, 64], sizes = [32, 32], strides = [1, 1]} : vector<64x96xf32> to vector<32x32xf32>
    %cst_95 = arith.constant 0.000000e+00 : f32
    %291 = vector.broadcast %cst_95 : f32 to vector<32x32xf32>
    %292 = vector.extract_strided_slice %288 {offsets = [0, 0], sizes = [32, 8], strides = [1, 1]} : vector<32x32xf32> to vector<32x8xf32>
    %293 = vector.extract_strided_slice %289 {offsets = [0, 0], sizes = [32, 8], strides = [1, 1]} : vector<32x32xf32> to vector<32x8xf32>
    %294 = vector.extract_strided_slice %290 {offsets = [0, 0], sizes = [32, 8], strides = [1, 1]} : vector<32x32xf32> to vector<32x8xf32>
    %295 = tpu.transpose %293, [1, 0] : vector<32x8xf32> -> vector<8x32xf32>
    %cst_96 = arith.constant dense<0.000000e+00> : vector<32x32xf32>
    %296 = tpu.matmul %292, %295, %cst_96 {dimension_numbers = #tpu.dot_dimension_numbers<[1], [0], [0], [1], [0, 0, 1, 1], [], []>} : vector<32x8xf32>, vector<8x32xf32>, vector<32x32xf32> -> vector<32x32xf32>
    %cst_97 = arith.constant dense<0xFF800000> : vector<32xf32>
    %297 = vector.multi_reduction <maximumf>, %296, %cst_97 [1] : vector<32x32xf32> to vector<32xf32>
    %298 = vector.shape_cast %297 : vector<32xf32> to vector<32x1xf32>
    %299 = vector.broadcast %298 : vector<32x1xf32> to vector<32x32xf32>
    %300 = arith.subf %296, %299 : vector<32x32xf32>
    %301 = math.exp %300 : vector<32x32xf32>
    %cst_98 = arith.constant dense<0.000000e+00> : vector<32xf32>
    %302 = vector.multi_reduction <add>, %301, %cst_98 [1] : vector<32x32xf32> to vector<32xf32>
    %303 = vector.shape_cast %302 : vector<32xf32> to vector<32x1xf32>
    %304 = tpu.reciprocal %303 {approx = true} : vector<32x1xf32> -> vector<32x1xf32>
    %305 = vector.broadcast %304 : vector<32x1xf32> to vector<32x32xf32>
    %306 = arith.mulf %301, %305 : vector<32x32xf32>
    %cst_99 = arith.constant dense<0.000000e+00> : vector<32x8xf32>
    %307 = tpu.matmul %306, %294, %cst_99 {dimension_numbers = #tpu.dot_dimension_numbers<[1], [0], [0], [1], [0, 0, 1, 1], [], []>} : vector<32x32xf32>, vector<32x8xf32>, vector<32x8xf32> -> vector<32x8xf32>
    %308 = vector.extract_strided_slice %286 {offsets = [0, 0], sizes = [8, 32], strides = [1, 1]} : vector<32x32xf32> to vector<8x32xf32>
    %cst_100 = arith.constant dense<0.000000e+00> : vector<32x32xf32>
    %309 = tpu.matmul %307, %308, %cst_100 {dimension_numbers = #tpu.dot_dimension_numbers<[1], [0], [0], [1], [0, 0, 1, 1], [], []>} : vector<32x8xf32>, vector<8x32xf32>, vector<32x32xf32> -> vector<32x32xf32>
    %310 = arith.addf %291, %309 : vector<32x32xf32>
    %311 = vector.extract_strided_slice %288 {offsets = [0, 8], sizes = [32, 8], strides = [1, 1]} : vector<32x32xf32> to vector<32x8xf32>
    %312 = vector.extract_strided_slice %289 {offsets = [0, 8], sizes = [32, 8], strides = [1, 1]} : vector<32x32xf32> to vector<32x8xf32>
    %313 = vector.extract_strided_slice %290 {offsets = [0, 8], sizes = [32, 8], strides = [1, 1]} : vector<32x32xf32> to vector<32x8xf32>
    %314 = tpu.transpose %312, [1, 0] : vector<32x8xf32> -> vector<8x32xf32>
    %cst_101 = arith.constant dense<0.000000e+00> : vector<32x32xf32>
    %315 = tpu.matmul %311, %314, %cst_101 {dimension_numbers = #tpu.dot_dimension_numbers<[1], [0], [0], [1], [0, 0, 1, 1], [], []>} : vector<32x8xf32>, vector<8x32xf32>, vector<32x32xf32> -> vector<32x32xf32>
    %cst_102 = arith.constant dense<0xFF800000> : vector<32xf32>
    %316 = vector.multi_reduction <maximumf>, %315, %cst_102 [1] : vector<32x32xf32> to vector<32xf32>
    %317 = vector.shape_cast %316 : vector<32xf32> to vector<32x1xf32>
    %318 = vector.broadcast %317 : vector<32x1xf32> to vector<32x32xf32>
    %319 = arith.subf %315, %318 : vector<32x32xf32>
    %320 = math.exp %319 : vector<32x32xf32>
    %cst_103 = arith.constant dense<0.000000e+00> : vector<32xf32>
    %321 = vector.multi_reduction <add>, %320, %cst_103 [1] : vector<32x32xf32> to vector<32xf32>
    %322 = vector.shape_cast %321 : vector<32xf32> to vector<32x1xf32>
    %323 = tpu.reciprocal %322 {approx = true} : vector<32x1xf32> -> vector<32x1xf32>
    %324 = vector.broadcast %323 : vector<32x1xf32> to vector<32x32xf32>
    %325 = arith.mulf %320, %324 : vector<32x32xf32>
    %cst_104 = arith.constant dense<0.000000e+00> : vector<32x8xf32>
    %326 = tpu.matmul %325, %313, %cst_104 {dimension_numbers = #tpu.dot_dimension_numbers<[1], [0], [0], [1], [0, 0, 1, 1], [], []>} : vector<32x32xf32>, vector<32x8xf32>, vector<32x8xf32> -> vector<32x8xf32>
    %327 = vector.extract_strided_slice %286 {offsets = [8, 0], sizes = [8, 32], strides = [1, 1]} : vector<32x32xf32> to vector<8x32xf32>
    %cst_105 = arith.constant dense<0.000000e+00> : vector<32x32xf32>
    %328 = tpu.matmul %326, %327, %cst_105 {dimension_numbers = #tpu.dot_dimension_numbers<[1], [0], [0], [1], [0, 0, 1, 1], [], []>} : vector<32x8xf32>, vector<8x32xf32>, vector<32x32xf32> -> vector<32x32xf32>
    %329 = arith.addf %310, %328 : vector<32x32xf32>
    %330 = vector.extract_strided_slice %288 {offsets = [0, 16], sizes = [32, 8], strides = [1, 1]} : vector<32x32xf32> to vector<32x8xf32>
    %331 = vector.extract_strided_slice %289 {offsets = [0, 16], sizes = [32, 8], strides = [1, 1]} : vector<32x32xf32> to vector<32x8xf32>
    %332 = vector.extract_strided_slice %290 {offsets = [0, 16], sizes = [32, 8], strides = [1, 1]} : vector<32x32xf32> to vector<32x8xf32>
    %333 = tpu.transpose %331, [1, 0] : vector<32x8xf32> -> vector<8x32xf32>
    %cst_106 = arith.constant dense<0.000000e+00> : vector<32x32xf32>
    %334 = tpu.matmul %330, %333, %cst_106 {dimension_numbers = #tpu.dot_dimension_numbers<[1], [0], [0], [1], [0, 0, 1, 1], [], []>} : vector<32x8xf32>, vector<8x32xf32>, vector<32x32xf32> -> vector<32x32xf32>
    %cst_107 = arith.constant dense<0xFF800000> : vector<32xf32>
    %335 = vector.multi_reduction <maximumf>, %334, %cst_107 [1] : vector<32x32xf32> to vector<32xf32>
    %336 = vector.shape_cast %335 : vector<32xf32> to vector<32x1xf32>
    %337 = vector.broadcast %336 : vector<32x1xf32> to vector<32x32xf32>
    %338 = arith.subf %334, %337 : vector<32x32xf32>
    %339 = math.exp %338 : vector<32x32xf32>
    %cst_108 = arith.constant dense<0.000000e+00> : vector<32xf32>
    %340 = vector.multi_reduction <add>, %339, %cst_108 [1] : vector<32x32xf32> to vector<32xf32>
    %341 = vector.shape_cast %340 : vector<32xf32> to vector<32x1xf32>
    %342 = tpu.reciprocal %341 {approx = true} : vector<32x1xf32> -> vector<32x1xf32>
    %343 = vector.broadcast %342 : vector<32x1xf32> to vector<32x32xf32>
    %344 = arith.mulf %339, %343 : vector<32x32xf32>
    %cst_109 = arith.constant dense<0.000000e+00> : vector<32x8xf32>
    %345 = tpu.matmul %344, %332, %cst_109 {dimension_numbers = #tpu.dot_dimension_numbers<[1], [0], [0], [1], [0, 0, 1, 1], [], []>} : vector<32x32xf32>, vector<32x8xf32>, vector<32x8xf32> -> vector<32x8xf32>
    %346 = vector.extract_strided_slice %286 {offsets = [16, 0], sizes = [8, 32], strides = [1, 1]} : vector<32x32xf32> to vector<8x32xf32>
    %cst_110 = arith.constant dense<0.000000e+00> : vector<32x32xf32>
    %347 = tpu.matmul %345, %346, %cst_110 {dimension_numbers = #tpu.dot_dimension_numbers<[1], [0], [0], [1], [0, 0, 1, 1], [], []>} : vector<32x8xf32>, vector<8x32xf32>, vector<32x32xf32> -> vector<32x32xf32>
    %348 = arith.addf %329, %347 : vector<32x32xf32>
    %349 = vector.extract_strided_slice %288 {offsets = [0, 24], sizes = [32, 8], strides = [1, 1]} : vector<32x32xf32> to vector<32x8xf32>
    %350 = vector.extract_strided_slice %289 {offsets = [0, 24], sizes = [32, 8], strides = [1, 1]} : vector<32x32xf32> to vector<32x8xf32>
    %351 = vector.extract_strided_slice %290 {offsets = [0, 24], sizes = [32, 8], strides = [1, 1]} : vector<32x32xf32> to vector<32x8xf32>
    %352 = tpu.transpose %350, [1, 0] : vector<32x8xf32> -> vector<8x32xf32>
    %cst_111 = arith.constant dense<0.000000e+00> : vector<32x32xf32>
    %353 = tpu.matmul %349, %352, %cst_111 {dimension_numbers = #tpu.dot_dimension_numbers<[1], [0], [0], [1], [0, 0, 1, 1], [], []>} : vector<32x8xf32>, vector<8x32xf32>, vector<32x32xf32> -> vector<32x32xf32>
    %cst_112 = arith.constant dense<0xFF800000> : vector<32xf32>
    %354 = vector.multi_reduction <maximumf>, %353, %cst_112 [1] : vector<32x32xf32> to vector<32xf32>
    %355 = vector.shape_cast %354 : vector<32xf32> to vector<32x1xf32>
    %356 = vector.broadcast %355 : vector<32x1xf32> to vector<32x32xf32>
    %357 = arith.subf %353, %356 : vector<32x32xf32>
    %358 = math.exp %357 : vector<32x32xf32>
    %cst_113 = arith.constant dense<0.000000e+00> : vector<32xf32>
    %359 = vector.multi_reduction <add>, %358, %cst_113 [1] : vector<32x32xf32> to vector<32xf32>
    %360 = vector.shape_cast %359 : vector<32xf32> to vector<32x1xf32>
    %361 = tpu.reciprocal %360 {approx = true} : vector<32x1xf32> -> vector<32x1xf32>
    %362 = vector.broadcast %361 : vector<32x1xf32> to vector<32x32xf32>
    %363 = arith.mulf %358, %362 : vector<32x32xf32>
    %cst_114 = arith.constant dense<0.000000e+00> : vector<32x8xf32>
    %364 = tpu.matmul %363, %351, %cst_114 {dimension_numbers = #tpu.dot_dimension_numbers<[1], [0], [0], [1], [0, 0, 1, 1], [], []>} : vector<32x32xf32>, vector<32x8xf32>, vector<32x8xf32> -> vector<32x8xf32>
    %365 = vector.extract_strided_slice %286 {offsets = [24, 0], sizes = [8, 32], strides = [1, 1]} : vector<32x32xf32> to vector<8x32xf32>
    %cst_115 = arith.constant dense<0.000000e+00> : vector<32x32xf32>
    %366 = tpu.matmul %364, %365, %cst_115 {dimension_numbers = #tpu.dot_dimension_numbers<[1], [0], [0], [1], [0, 0, 1, 1], [], []>} : vector<32x8xf32>, vector<8x32xf32>, vector<32x32xf32> -> vector<32x32xf32>
    %367 = arith.addf %348, %366 : vector<32x32xf32>
    %368 = vector.extract_strided_slice %285 {offsets = [32, 0], sizes = [32, 32], strides = [1, 1]} : vector<64x96xf32> to vector<32x32xf32>
    %369 = vector.extract_strided_slice %285 {offsets = [32, 32], sizes = [32, 32], strides = [1, 1]} : vector<64x96xf32> to vector<32x32xf32>
    %370 = vector.extract_strided_slice %285 {offsets = [32, 64], sizes = [32, 32], strides = [1, 1]} : vector<64x96xf32> to vector<32x32xf32>
    %cst_116 = arith.constant 0.000000e+00 : f32
    %371 = vector.broadcast %cst_116 : f32 to vector<32x32xf32>
    %372 = vector.extract_strided_slice %368 {offsets = [0, 0], sizes = [32, 8], strides = [1, 1]} : vector<32x32xf32> to vector<32x8xf32>
    %373 = vector.extract_strided_slice %369 {offsets = [0, 0], sizes = [32, 8], strides = [1, 1]} : vector<32x32xf32> to vector<32x8xf32>
    %374 = vector.extract_strided_slice %370 {offsets = [0, 0], sizes = [32, 8], strides = [1, 1]} : vector<32x32xf32> to vector<32x8xf32>
    %375 = tpu.transpose %373, [1, 0] : vector<32x8xf32> -> vector<8x32xf32>
    %cst_117 = arith.constant dense<0.000000e+00> : vector<32x32xf32>
    %376 = tpu.matmul %372, %375, %cst_117 {dimension_numbers = #tpu.dot_dimension_numbers<[1], [0], [0], [1], [0, 0, 1, 1], [], []>} : vector<32x8xf32>, vector<8x32xf32>, vector<32x32xf32> -> vector<32x32xf32>
    %cst_118 = arith.constant dense<0xFF800000> : vector<32xf32>
    %377 = vector.multi_reduction <maximumf>, %376, %cst_118 [1] : vector<32x32xf32> to vector<32xf32>
    %378 = vector.shape_cast %377 : vector<32xf32> to vector<32x1xf32>
    %379 = vector.broadcast %378 : vector<32x1xf32> to vector<32x32xf32>
    %380 = arith.subf %376, %379 : vector<32x32xf32>
    %381 = math.exp %380 : vector<32x32xf32>
    %cst_119 = arith.constant dense<0.000000e+00> : vector<32xf32>
    %382 = vector.multi_reduction <add>, %381, %cst_119 [1] : vector<32x32xf32> to vector<32xf32>
    %383 = vector.shape_cast %382 : vector<32xf32> to vector<32x1xf32>
    %384 = tpu.reciprocal %383 {approx = true} : vector<32x1xf32> -> vector<32x1xf32>
    %385 = vector.broadcast %384 : vector<32x1xf32> to vector<32x32xf32>
    %386 = arith.mulf %381, %385 : vector<32x32xf32>
    %cst_120 = arith.constant dense<0.000000e+00> : vector<32x8xf32>
    %387 = tpu.matmul %386, %374, %cst_120 {dimension_numbers = #tpu.dot_dimension_numbers<[1], [0], [0], [1], [0, 0, 1, 1], [], []>} : vector<32x32xf32>, vector<32x8xf32>, vector<32x8xf32> -> vector<32x8xf32>
    %388 = vector.extract_strided_slice %286 {offsets = [0, 0], sizes = [8, 32], strides = [1, 1]} : vector<32x32xf32> to vector<8x32xf32>
    %cst_121 = arith.constant dense<0.000000e+00> : vector<32x32xf32>
    %389 = tpu.matmul %387, %388, %cst_121 {dimension_numbers = #tpu.dot_dimension_numbers<[1], [0], [0], [1], [0, 0, 1, 1], [], []>} : vector<32x8xf32>, vector<8x32xf32>, vector<32x32xf32> -> vector<32x32xf32>
    %390 = arith.addf %371, %389 : vector<32x32xf32>
    %391 = vector.extract_strided_slice %368 {offsets = [0, 8], sizes = [32, 8], strides = [1, 1]} : vector<32x32xf32> to vector<32x8xf32>
    %392 = vector.extract_strided_slice %369 {offsets = [0, 8], sizes = [32, 8], strides = [1, 1]} : vector<32x32xf32> to vector<32x8xf32>
    %393 = vector.extract_strided_slice %370 {offsets = [0, 8], sizes = [32, 8], strides = [1, 1]} : vector<32x32xf32> to vector<32x8xf32>
    %394 = tpu.transpose %392, [1, 0] : vector<32x8xf32> -> vector<8x32xf32>
    %cst_122 = arith.constant dense<0.000000e+00> : vector<32x32xf32>
    %395 = tpu.matmul %391, %394, %cst_122 {dimension_numbers = #tpu.dot_dimension_numbers<[1], [0], [0], [1], [0, 0, 1, 1], [], []>} : vector<32x8xf32>, vector<8x32xf32>, vector<32x32xf32> -> vector<32x32xf32>
    %cst_123 = arith.constant dense<0xFF800000> : vector<32xf32>
    %396 = vector.multi_reduction <maximumf>, %395, %cst_123 [1] : vector<32x32xf32> to vector<32xf32>
    %397 = vector.shape_cast %396 : vector<32xf32> to vector<32x1xf32>
    %398 = vector.broadcast %397 : vector<32x1xf32> to vector<32x32xf32>
    %399 = arith.subf %395, %398 : vector<32x32xf32>
    %400 = math.exp %399 : vector<32x32xf32>
    %cst_124 = arith.constant dense<0.000000e+00> : vector<32xf32>
    %401 = vector.multi_reduction <add>, %400, %cst_124 [1] : vector<32x32xf32> to vector<32xf32>
    %402 = vector.shape_cast %401 : vector<32xf32> to vector<32x1xf32>
    %403 = tpu.reciprocal %402 {approx = true} : vector<32x1xf32> -> vector<32x1xf32>
    %404 = vector.broadcast %403 : vector<32x1xf32> to vector<32x32xf32>
    %405 = arith.mulf %400, %404 : vector<32x32xf32>
    %cst_125 = arith.constant dense<0.000000e+00> : vector<32x8xf32>
    %406 = tpu.matmul %405, %393, %cst_125 {dimension_numbers = #tpu.dot_dimension_numbers<[1], [0], [0], [1], [0, 0, 1, 1], [], []>} : vector<32x32xf32>, vector<32x8xf32>, vector<32x8xf32> -> vector<32x8xf32>
    %407 = vector.extract_strided_slice %286 {offsets = [8, 0], sizes = [8, 32], strides = [1, 1]} : vector<32x32xf32> to vector<8x32xf32>
    %cst_126 = arith.constant dense<0.000000e+00> : vector<32x32xf32>
    %408 = tpu.matmul %406, %407, %cst_126 {dimension_numbers = #tpu.dot_dimension_numbers<[1], [0], [0], [1], [0, 0, 1, 1], [], []>} : vector<32x8xf32>, vector<8x32xf32>, vector<32x32xf32> -> vector<32x32xf32>
    %409 = arith.addf %390, %408 : vector<32x32xf32>
    %410 = vector.extract_strided_slice %368 {offsets = [0, 16], sizes = [32, 8], strides = [1, 1]} : vector<32x32xf32> to vector<32x8xf32>
    %411 = vector.extract_strided_slice %369 {offsets = [0, 16], sizes = [32, 8], strides = [1, 1]} : vector<32x32xf32> to vector<32x8xf32>
    %412 = vector.extract_strided_slice %370 {offsets = [0, 16], sizes = [32, 8], strides = [1, 1]} : vector<32x32xf32> to vector<32x8xf32>
    %413 = tpu.transpose %411, [1, 0] : vector<32x8xf32> -> vector<8x32xf32>
    %cst_127 = arith.constant dense<0.000000e+00> : vector<32x32xf32>
    %414 = tpu.matmul %410, %413, %cst_127 {dimension_numbers = #tpu.dot_dimension_numbers<[1], [0], [0], [1], [0, 0, 1, 1], [], []>} : vector<32x8xf32>, vector<8x32xf32>, vector<32x32xf32> -> vector<32x32xf32>
    %cst_128 = arith.constant dense<0xFF800000> : vector<32xf32>
    %415 = vector.multi_reduction <maximumf>, %414, %cst_128 [1] : vector<32x32xf32> to vector<32xf32>
    %416 = vector.shape_cast %415 : vector<32xf32> to vector<32x1xf32>
    %417 = vector.broadcast %416 : vector<32x1xf32> to vector<32x32xf32>
    %418 = arith.subf %414, %417 : vector<32x32xf32>
    %419 = math.exp %418 : vector<32x32xf32>
    %cst_129 = arith.constant dense<0.000000e+00> : vector<32xf32>
    %420 = vector.multi_reduction <add>, %419, %cst_129 [1] : vector<32x32xf32> to vector<32xf32>
    %421 = vector.shape_cast %420 : vector<32xf32> to vector<32x1xf32>
    %422 = tpu.reciprocal %421 {approx = true} : vector<32x1xf32> -> vector<32x1xf32>
    %423 = vector.broadcast %422 : vector<32x1xf32> to vector<32x32xf32>
    %424 = arith.mulf %419, %423 : vector<32x32xf32>
    %cst_130 = arith.constant dense<0.000000e+00> : vector<32x8xf32>
    %425 = tpu.matmul %424, %412, %cst_130 {dimension_numbers = #tpu.dot_dimension_numbers<[1], [0], [0], [1], [0, 0, 1, 1], [], []>} : vector<32x32xf32>, vector<32x8xf32>, vector<32x8xf32> -> vector<32x8xf32>
    %426 = vector.extract_strided_slice %286 {offsets = [16, 0], sizes = [8, 32], strides = [1, 1]} : vector<32x32xf32> to vector<8x32xf32>
    %cst_131 = arith.constant dense<0.000000e+00> : vector<32x32xf32>
    %427 = tpu.matmul %425, %426, %cst_131 {dimension_numbers = #tpu.dot_dimension_numbers<[1], [0], [0], [1], [0, 0, 1, 1], [], []>} : vector<32x8xf32>, vector<8x32xf32>, vector<32x32xf32> -> vector<32x32xf32>
    %428 = arith.addf %409, %427 : vector<32x32xf32>
    %429 = vector.extract_strided_slice %368 {offsets = [0, 24], sizes = [32, 8], strides = [1, 1]} : vector<32x32xf32> to vector<32x8xf32>
    %430 = vector.extract_strided_slice %369 {offsets = [0, 24], sizes = [32, 8], strides = [1, 1]} : vector<32x32xf32> to vector<32x8xf32>
    %431 = vector.extract_strided_slice %370 {offsets = [0, 24], sizes = [32, 8], strides = [1, 1]} : vector<32x32xf32> to vector<32x8xf32>
    %432 = tpu.transpose %430, [1, 0] : vector<32x8xf32> -> vector<8x32xf32>
    %cst_132 = arith.constant dense<0.000000e+00> : vector<32x32xf32>
    %433 = tpu.matmul %429, %432, %cst_132 {dimension_numbers = #tpu.dot_dimension_numbers<[1], [0], [0], [1], [0, 0, 1, 1], [], []>} : vector<32x8xf32>, vector<8x32xf32>, vector<32x32xf32> -> vector<32x32xf32>
    %cst_133 = arith.constant dense<0xFF800000> : vector<32xf32>
    %434 = vector.multi_reduction <maximumf>, %433, %cst_133 [1] : vector<32x32xf32> to vector<32xf32>
    %435 = vector.shape_cast %434 : vector<32xf32> to vector<32x1xf32>
    %436 = vector.broadcast %435 : vector<32x1xf32> to vector<32x32xf32>
    %437 = arith.subf %433, %436 : vector<32x32xf32>
    %438 = math.exp %437 : vector<32x32xf32>
    %cst_134 = arith.constant dense<0.000000e+00> : vector<32xf32>
    %439 = vector.multi_reduction <add>, %438, %cst_134 [1] : vector<32x32xf32> to vector<32xf32>
    %440 = vector.shape_cast %439 : vector<32xf32> to vector<32x1xf32>
    %441 = tpu.reciprocal %440 {approx = true} : vector<32x1xf32> -> vector<32x1xf32>
    %442 = vector.broadcast %441 : vector<32x1xf32> to vector<32x32xf32>
    %443 = arith.mulf %438, %442 : vector<32x32xf32>
    %cst_135 = arith.constant dense<0.000000e+00> : vector<32x8xf32>
    %444 = tpu.matmul %443, %431, %cst_135 {dimension_numbers = #tpu.dot_dimension_numbers<[1], [0], [0], [1], [0, 0, 1, 1], [], []>} : vector<32x32xf32>, vector<32x8xf32>, vector<32x8xf32> -> vector<32x8xf32>
    %445 = vector.extract_strided_slice %286 {offsets = [24, 0], sizes = [8, 32], strides = [1, 1]} : vector<32x32xf32> to vector<8x32xf32>
    %cst_136 = arith.constant dense<0.000000e+00> : vector<32x32xf32>
    %446 = tpu.matmul %444, %445, %cst_136 {dimension_numbers = #tpu.dot_dimension_numbers<[1], [0], [0], [1], [0, 0, 1, 1], [], []>} : vector<32x8xf32>, vector<8x32xf32>, vector<32x32xf32> -> vector<32x32xf32>
    %447 = arith.addf %428, %446 : vector<32x32xf32>
    %448 = tpu.concatenate %367, %447 in 0 : vector<32x32xf32>, vector<32x32xf32> -> vector<64x32xf32>
    %449 = arith.addf %250, %448 : vector<64x32xf32>
    %450 = vector.broadcast %287 : vector<1x32xf32> to vector<64x32xf32>
    %451 = arith.addf %449, %450 : vector<64x32xf32>
    %452 = vector.extract_strided_slice %252 {offsets = [2, 0], sizes = [1, 32], strides = [1, 1]} : vector<4x32xf32> to vector<1x32xf32>
    %453 = vector.extract_strided_slice %252 {offsets = [3, 0], sizes = [1, 32], strides = [1, 1]} : vector<4x32xf32> to vector<1x32xf32>
    %cst_137 = arith.constant dense<0.000000e+00> : vector<64xf32>
    %454 = vector.multi_reduction <add>, %451, %cst_137 [1] : vector<64x32xf32> to vector<64xf32>
    %455 = vector.shape_cast %454 : vector<64xf32> to vector<64x1xf32>
    %cst_138 = arith.constant 3.200000e+01 : f32
    %456 = vector.broadcast %cst_138 : f32 to vector<64x1xf32>
    %457 = arith.divf %455, %456 : vector<64x1xf32>
    %458 = vector.broadcast %457 : vector<64x1xf32> to vector<64x32xf32>
    %459 = arith.subf %451, %458 : vector<64x32xf32>
    %460 = arith.mulf %459, %459 : vector<64x32xf32>
    %cst_139 = arith.constant dense<0.000000e+00> : vector<64xf32>
    %461 = vector.multi_reduction <add>, %460, %cst_139 [1] : vector<64x32xf32> to vector<64xf32>
    %462 = vector.shape_cast %461 : vector<64xf32> to vector<64x1xf32>
    %cst_140 = arith.constant 3.200000e+01 : f32
    %463 = vector.broadcast %cst_140 : f32 to vector<64x1xf32>
    %464 = arith.divf %462, %463 : vector<64x1xf32>
    %465 = vector.broadcast %457 : vector<64x1xf32> to vector<64x32xf32>
    %466 = arith.subf %451, %465 : vector<64x32xf32>
    %cst_141 = arith.constant 9.99999974E-6 : f32
    %467 = vector.broadcast %cst_141 : f32 to vector<64x1xf32>
    %468 = arith.addf %464, %467 : vector<64x1xf32>
    %469 = math.rsqrt %468 : vector<64x1xf32>
    %470 = vector.broadcast %469 : vector<64x1xf32> to vector<64x32xf32>
    %471 = arith.mulf %466, %470 : vector<64x32xf32>
    %472 = vector.broadcast %452 : vector<1x32xf32> to vector<64x32xf32>
    %473 = arith.mulf %471, %472 : vector<64x32xf32>
    %474 = vector.broadcast %453 : vector<1x32xf32> to vector<64x32xf32>
    %475 = arith.addf %473, %474 : vector<64x32xf32>
    %c1_142 = arith.constant 1 : index
    %c0_143 = arith.constant 0 : index
    %c0_144 = arith.constant 0 : index
    %476 = vector.load %arg5[%c1_142, %c0_143, %c0_144] : memref<2x32x64xf32, #tpu.memory_space<vmem>>, vector<1x32x64xf32>
    %477 = vector.shape_cast %476 : vector<1x32x64xf32> to vector<32x64xf32>
    %cst_145 = arith.constant dense<0.000000e+00> : vector<64x64xf32>
    %478 = tpu.matmul %475, %477, %cst_145 {dimension_numbers = #tpu.dot_dimension_numbers<[1], [0], [0], [1], [0, 0, 1, 1], [], []>} : vector<64x32xf32>, vector<32x64xf32>, vector<64x64xf32> -> vector<64x64xf32>
    %c1_146 = arith.constant 1 : index
    %c0_147 = arith.constant 0 : index
    %c0_148 = arith.constant 0 : index
    %479 = vector.load %arg6[%c1_146, %c0_147, %c0_148] : memref<2x1x64xf32, #tpu.memory_space<vmem>>, vector<1x1x64xf32>
    %480 = vector.shape_cast %479 : vector<1x1x64xf32> to vector<1x64xf32>
    %481 = vector.broadcast %480 : vector<1x64xf32> to vector<64x64xf32>
    %482 = arith.addf %478, %481 : vector<64x64xf32>
    %cst_149 = arith.constant 5.000000e-01 : f32
    %483 = vector.broadcast %cst_149 : f32 to vector<64x64xf32>
    %484 = arith.mulf %483, %482 : vector<64x64xf32>
    %cst_150 = arith.constant 0.707106769 : f32
    %485 = vector.broadcast %cst_150 : f32 to vector<64x64xf32>
    %486 = arith.mulf %482, %485 : vector<64x64xf32>
    %487 = math.erf %486 : vector<64x64xf32>
    %cst_151 = arith.constant 1.000000e+00 : f32
    %488 = vector.broadcast %cst_151 : f32 to vector<64x64xf32>
    %489 = arith.addf %488, %487 : vector<64x64xf32>
    %490 = arith.mulf %484, %489 : vector<64x64xf32>
    %c1_152 = arith.constant 1 : index
    %c0_153 = arith.constant 0 : index
    %c0_154 = arith.constant 0 : index
    %491 = vector.load %arg7[%c1_152, %c0_153, %c0_154] : memref<2x64x32xf32, #tpu.memory_space<vmem>>, vector<1x64x32xf32>
    %492 = vector.shape_cast %491 : vector<1x64x32xf32> to vector<64x32xf32>
    %cst_155 = arith.constant dense<0.000000e+00> : vector<64x32xf32>
    %493 = tpu.matmul %490, %492, %cst_155 {dimension_numbers = #tpu.dot_dimension_numbers<[1], [0], [0], [1], [0, 0, 1, 1], [], []>} : vector<64x64xf32>, vector<64x32xf32>, vector<64x32xf32> -> vector<64x32xf32>
    %c1_156 = arith.constant 1 : index
    %c0_157 = arith.constant 0 : index
    %c0_158 = arith.constant 0 : index
    %494 = vector.load %arg8[%c1_156, %c0_157, %c0_158] : memref<2x1x32xf32, #tpu.memory_space<vmem>>, vector<1x1x32xf32>
    %495 = vector.shape_cast %494 : vector<1x1x32xf32> to vector<1x32xf32>
    %496 = vector.broadcast %495 : vector<1x32xf32> to vector<64x32xf32>
    %497 = arith.addf %493, %496 : vector<64x32xf32>
    %498 = arith.addf %451, %497 : vector<64x32xf32>
    %c0_159 = arith.constant 0 : index
    %c0_160 = arith.constant 0 : index
    %499 = vector.load %arg9[%c0_159, %c0_160] : memref<2x32xf32, #tpu.memory_space<vmem>>, vector<1x32xf32>
    %c1_161 = arith.constant 1 : index
    %c0_162 = arith.constant 0 : index
    %500 = vector.load %arg9[%c1_161, %c0_162] : memref<2x32xf32, #tpu.memory_space<vmem>>, vector<1x32xf32>
    %cst_163 = arith.constant dense<0.000000e+00> : vector<64xf32>
    %501 = vector.multi_reduction <add>, %498, %cst_163 [1] : vector<64x32xf32> to vector<64xf32>
    %502 = vector.shape_cast %501 : vector<64xf32> to vector<64x1xf32>
    %cst_164 = arith.constant 3.200000e+01 : f32
    %503 = vector.broadcast %cst_164 : f32 to vector<64x1xf32>
    %504 = arith.divf %502, %503 : vector<64x1xf32>
    %505 = vector.broadcast %504 : vector<64x1xf32> to vector<64x32xf32>
    %506 = arith.subf %498, %505 : vector<64x32xf32>
    %507 = arith.mulf %506, %506 : vector<64x32xf32>
    %cst_165 = arith.constant dense<0.000000e+00> : vector<64xf32>
    %508 = vector.multi_reduction <add>, %507, %cst_165 [1] : vector<64x32xf32> to vector<64xf32>
    %509 = vector.shape_cast %508 : vector<64xf32> to vector<64x1xf32>
    %cst_166 = arith.constant 3.200000e+01 : f32
    %510 = vector.broadcast %cst_166 : f32 to vector<64x1xf32>
    %511 = arith.divf %509, %510 : vector<64x1xf32>
    %512 = vector.broadcast %504 : vector<64x1xf32> to vector<64x32xf32>
    %513 = arith.subf %498, %512 : vector<64x32xf32>
    %cst_167 = arith.constant 9.99999974E-6 : f32
    %514 = vector.broadcast %cst_167 : f32 to vector<64x1xf32>
    %515 = arith.addf %511, %514 : vector<64x1xf32>
    %516 = math.rsqrt %515 : vector<64x1xf32>
    %517 = vector.broadcast %516 : vector<64x1xf32> to vector<64x32xf32>
    %518 = arith.mulf %513, %517 : vector<64x32xf32>
    %519 = vector.broadcast %499 : vector<1x32xf32> to vector<64x32xf32>
    %520 = arith.mulf %518, %519 : vector<64x32xf32>
    %521 = vector.broadcast %500 : vector<1x32xf32> to vector<64x32xf32>
    %522 = arith.addf %520, %521 : vector<64x32xf32>
    %c0_168 = arith.constant 0 : index
    %c0_169 = arith.constant 0 : index
    %523 = vector.load %arg10[%c0_168, %c0_169] : memref<64x64xf32, #tpu.memory_space<vmem>>, vector<64x64xf32>
    %cst_170 = arith.constant dense<0.000000e+00> : vector<64x32xf32>
    %524 = tpu.matmul %523, %522, %cst_170 {dimension_numbers = #tpu.dot_dimension_numbers<[1], [0], [0], [1], [0, 0, 1, 1], [], []>} : vector<64x64xf32>, vector<64x32xf32>, vector<64x32xf32> -> vector<64x32xf32>
    %cst_171 = arith.constant 0.000000e+00 : f32
    %525 = vector.broadcast %cst_171 : f32 to vector<8x256xf32>
    %526 = vector.extract_strided_slice %524 {offsets = [0, 0], sizes = [8, 32], strides = [1, 1]} : vector<64x32xf32> to vector<8x32xf32>
    %c0_172 = arith.constant 0 : index
    %c0_173 = arith.constant 0 : index
    %527 = vector.load %arg11[%c0_172, %c0_173] : memref<256x256xf32, #tpu.memory_space<vmem>>, vector<32x256xf32>
    %cst_174 = arith.constant dense<0.000000e+00> : vector<8x256xf32>
    %528 = tpu.matmul %526, %527, %cst_174 {dimension_numbers = #tpu.dot_dimension_numbers<[1], [0], [0], [1], [0, 0, 1, 1], [], []>} : vector<8x32xf32>, vector<32x256xf32>, vector<8x256xf32> -> vector<8x256xf32>
    %529 = arith.addf %525, %528 : vector<8x256xf32>
    %530 = vector.extract_strided_slice %524 {offsets = [8, 0], sizes = [8, 32], strides = [1, 1]} : vector<64x32xf32> to vector<8x32xf32>
    %c32 = arith.constant 32 : index
    %c0_175 = arith.constant 0 : index
    %531 = vector.load %arg11[%c32, %c0_175] : memref<256x256xf32, #tpu.memory_space<vmem>>, vector<32x256xf32>
    %cst_176 = arith.constant dense<0.000000e+00> : vector<8x256xf32>
    %532 = tpu.matmul %530, %531, %cst_176 {dimension_numbers = #tpu.dot_dimension_numbers<[1], [0], [0], [1], [0, 0, 1, 1], [], []>} : vector<8x32xf32>, vector<32x256xf32>, vector<8x256xf32> -> vector<8x256xf32>
    %533 = arith.addf %529, %532 : vector<8x256xf32>
    %534 = vector.extract_strided_slice %524 {offsets = [16, 0], sizes = [8, 32], strides = [1, 1]} : vector<64x32xf32> to vector<8x32xf32>
    %c64 = arith.constant 64 : index
    %c0_177 = arith.constant 0 : index
    %535 = vector.load %arg11[%c64, %c0_177] : memref<256x256xf32, #tpu.memory_space<vmem>>, vector<32x256xf32>
    %cst_178 = arith.constant dense<0.000000e+00> : vector<8x256xf32>
    %536 = tpu.matmul %534, %535, %cst_178 {dimension_numbers = #tpu.dot_dimension_numbers<[1], [0], [0], [1], [0, 0, 1, 1], [], []>} : vector<8x32xf32>, vector<32x256xf32>, vector<8x256xf32> -> vector<8x256xf32>
    %537 = arith.addf %533, %536 : vector<8x256xf32>
    %538 = vector.extract_strided_slice %524 {offsets = [24, 0], sizes = [8, 32], strides = [1, 1]} : vector<64x32xf32> to vector<8x32xf32>
    %c96 = arith.constant 96 : index
    %c0_179 = arith.constant 0 : index
    %539 = vector.load %arg11[%c96, %c0_179] : memref<256x256xf32, #tpu.memory_space<vmem>>, vector<32x256xf32>
    %cst_180 = arith.constant dense<0.000000e+00> : vector<8x256xf32>
    %540 = tpu.matmul %538, %539, %cst_180 {dimension_numbers = #tpu.dot_dimension_numbers<[1], [0], [0], [1], [0, 0, 1, 1], [], []>} : vector<8x32xf32>, vector<32x256xf32>, vector<8x256xf32> -> vector<8x256xf32>
    %541 = arith.addf %537, %540 : vector<8x256xf32>
    %542 = vector.extract_strided_slice %524 {offsets = [32, 0], sizes = [8, 32], strides = [1, 1]} : vector<64x32xf32> to vector<8x32xf32>
    %c128 = arith.constant 128 : index
    %c0_181 = arith.constant 0 : index
    %543 = vector.load %arg11[%c128, %c0_181] : memref<256x256xf32, #tpu.memory_space<vmem>>, vector<32x256xf32>
    %cst_182 = arith.constant dense<0.000000e+00> : vector<8x256xf32>
    %544 = tpu.matmul %542, %543, %cst_182 {dimension_numbers = #tpu.dot_dimension_numbers<[1], [0], [0], [1], [0, 0, 1, 1], [], []>} : vector<8x32xf32>, vector<32x256xf32>, vector<8x256xf32> -> vector<8x256xf32>
    %545 = arith.addf %541, %544 : vector<8x256xf32>
    %546 = vector.extract_strided_slice %524 {offsets = [40, 0], sizes = [8, 32], strides = [1, 1]} : vector<64x32xf32> to vector<8x32xf32>
    %c160 = arith.constant 160 : index
    %c0_183 = arith.constant 0 : index
    %547 = vector.load %arg11[%c160, %c0_183] : memref<256x256xf32, #tpu.memory_space<vmem>>, vector<32x256xf32>
    %cst_184 = arith.constant dense<0.000000e+00> : vector<8x256xf32>
    %548 = tpu.matmul %546, %547, %cst_184 {dimension_numbers = #tpu.dot_dimension_numbers<[1], [0], [0], [1], [0, 0, 1, 1], [], []>} : vector<8x32xf32>, vector<32x256xf32>, vector<8x256xf32> -> vector<8x256xf32>
    %549 = arith.addf %545, %548 : vector<8x256xf32>
    %550 = vector.extract_strided_slice %524 {offsets = [48, 0], sizes = [8, 32], strides = [1, 1]} : vector<64x32xf32> to vector<8x32xf32>
    %c192 = arith.constant 192 : index
    %c0_185 = arith.constant 0 : index
    %551 = vector.load %arg11[%c192, %c0_185] : memref<256x256xf32, #tpu.memory_space<vmem>>, vector<32x256xf32>
    %cst_186 = arith.constant dense<0.000000e+00> : vector<8x256xf32>
    %552 = tpu.matmul %550, %551, %cst_186 {dimension_numbers = #tpu.dot_dimension_numbers<[1], [0], [0], [1], [0, 0, 1, 1], [], []>} : vector<8x32xf32>, vector<32x256xf32>, vector<8x256xf32> -> vector<8x256xf32>
    %553 = arith.addf %549, %552 : vector<8x256xf32>
    %554 = vector.extract_strided_slice %524 {offsets = [56, 0], sizes = [8, 32], strides = [1, 1]} : vector<64x32xf32> to vector<8x32xf32>
    %c224 = arith.constant 224 : index
    %c0_187 = arith.constant 0 : index
    %555 = vector.load %arg11[%c224, %c0_187] : memref<256x256xf32, #tpu.memory_space<vmem>>, vector<32x256xf32>
    %cst_188 = arith.constant dense<0.000000e+00> : vector<8x256xf32>
    %556 = tpu.matmul %554, %555, %cst_188 {dimension_numbers = #tpu.dot_dimension_numbers<[1], [0], [0], [1], [0, 0, 1, 1], [], []>} : vector<8x32xf32>, vector<32x256xf32>, vector<8x256xf32> -> vector<8x256xf32>
    %557 = arith.addf %553, %556 : vector<8x256xf32>
    %c0_189 = arith.constant 0 : index
    %c0_190 = arith.constant 0 : index
    %558 = vector.load %arg12[%c0_189, %c0_190] : memref<1x256xf32, #tpu.memory_space<vmem>>, vector<1x256xf32>
    %559 = vector.broadcast %558 : vector<1x256xf32> to vector<8x256xf32>
    %560 = arith.addf %557, %559 : vector<8x256xf32>
    %c0_191 = arith.constant 0 : index
    %c0_192 = arith.constant 0 : index
    %561 = vector.load %arg13[%c0_191, %c0_192] : memref<8x8xf32, #tpu.memory_space<vmem>>, vector<8x8xf32>
    %cst_193 = arith.constant dense<0.000000e+00> : vector<8x256xf32>
    %562 = tpu.matmul %561, %560, %cst_193 {dimension_numbers = #tpu.dot_dimension_numbers<[1], [0], [0], [1], [0, 0, 1, 1], [], []>} : vector<8x8xf32>, vector<8x256xf32>, vector<8x256xf32> -> vector<8x256xf32>
    %cst_194 = arith.constant 0.000000e+00 : f32
    %563 = vector.broadcast %cst_194 : f32 to vector<2x384xf32>
    %564 = vector.extract_strided_slice %562 {offsets = [0, 0], sizes = [2, 256], strides = [1, 1]} : vector<8x256xf32> to vector<2x256xf32>
    %c0_195 = arith.constant 0 : index
    %c0_196 = arith.constant 0 : index
    %565 = vector.load %arg14[%c0_195, %c0_196] : memref<1024x384xf32, #tpu.memory_space<vmem>>, vector<256x384xf32>
    %cst_197 = arith.constant dense<0.000000e+00> : vector<2x384xf32>
    %566 = tpu.matmul %564, %565, %cst_197 {dimension_numbers = #tpu.dot_dimension_numbers<[1], [0], [0], [1], [0, 0, 1, 1], [], []>} : vector<2x256xf32>, vector<256x384xf32>, vector<2x384xf32> -> vector<2x384xf32>
    %567 = arith.addf %563, %566 : vector<2x384xf32>
    %568 = vector.extract_strided_slice %562 {offsets = [2, 0], sizes = [2, 256], strides = [1, 1]} : vector<8x256xf32> to vector<2x256xf32>
    %c256 = arith.constant 256 : index
    %c0_198 = arith.constant 0 : index
    %569 = vector.load %arg14[%c256, %c0_198] : memref<1024x384xf32, #tpu.memory_space<vmem>>, vector<256x384xf32>
    %cst_199 = arith.constant dense<0.000000e+00> : vector<2x384xf32>
    %570 = tpu.matmul %568, %569, %cst_199 {dimension_numbers = #tpu.dot_dimension_numbers<[1], [0], [0], [1], [0, 0, 1, 1], [], []>} : vector<2x256xf32>, vector<256x384xf32>, vector<2x384xf32> -> vector<2x384xf32>
    %571 = arith.addf %567, %570 : vector<2x384xf32>
    %572 = vector.extract_strided_slice %562 {offsets = [4, 0], sizes = [2, 256], strides = [1, 1]} : vector<8x256xf32> to vector<2x256xf32>
    %c512 = arith.constant 512 : index
    %c0_200 = arith.constant 0 : index
    %573 = vector.load %arg14[%c512, %c0_200] : memref<1024x384xf32, #tpu.memory_space<vmem>>, vector<256x384xf32>
    %cst_201 = arith.constant dense<0.000000e+00> : vector<2x384xf32>
    %574 = tpu.matmul %572, %573, %cst_201 {dimension_numbers = #tpu.dot_dimension_numbers<[1], [0], [0], [1], [0, 0, 1, 1], [], []>} : vector<2x256xf32>, vector<256x384xf32>, vector<2x384xf32> -> vector<2x384xf32>
    %575 = arith.addf %571, %574 : vector<2x384xf32>
    %576 = vector.extract_strided_slice %562 {offsets = [6, 0], sizes = [2, 256], strides = [1, 1]} : vector<8x256xf32> to vector<2x256xf32>
    %c768 = arith.constant 768 : index
    %c0_202 = arith.constant 0 : index
    %577 = vector.load %arg14[%c768, %c0_202] : memref<1024x384xf32, #tpu.memory_space<vmem>>, vector<256x384xf32>
    %cst_203 = arith.constant dense<0.000000e+00> : vector<2x384xf32>
    %578 = tpu.matmul %576, %577, %cst_203 {dimension_numbers = #tpu.dot_dimension_numbers<[1], [0], [0], [1], [0, 0, 1, 1], [], []>} : vector<2x256xf32>, vector<256x384xf32>, vector<2x384xf32> -> vector<2x384xf32>
    %579 = arith.addf %575, %578 : vector<2x384xf32>
    %c0_204 = arith.constant 0 : index
    %c0_205 = arith.constant 0 : index
    %580 = vector.load %arg15[%c0_204, %c0_205] : memref<1x384xf32, #tpu.memory_space<vmem>>, vector<1x384xf32>
    %581 = vector.broadcast %580 : vector<1x384xf32> to vector<2x384xf32>
    %582 = arith.addf %579, %581 : vector<2x384xf32>
    %c0_206 = arith.constant 0 : index
    %c0_207 = arith.constant 0 : index
    %583 = vector.load %arg16[%c0_206, %c0_207] : memref<384x96xf32, #tpu.memory_space<vmem>>, vector<384x96xf32>
    %cst_208 = arith.constant dense<0.000000e+00> : vector<2x96xf32>
    %584 = tpu.matmul %582, %583, %cst_208 {dimension_numbers = #tpu.dot_dimension_numbers<[1], [0], [0], [1], [0, 0, 1, 1], [], []>} : vector<2x384xf32>, vector<384x96xf32>, vector<2x96xf32> -> vector<2x96xf32>
    %c0_209 = arith.constant 0 : index
    %c0_210 = arith.constant 0 : index
    %585 = vector.load %arg17[%c0_209, %c0_210] : memref<1x96xf32, #tpu.memory_space<vmem>>, vector<1x96xf32>
    %586 = vector.broadcast %585 : vector<1x96xf32> to vector<2x96xf32>
    %587 = arith.addf %584, %586 : vector<2x96xf32>
    %c0_211 = arith.constant 0 : index
    %c0_212 = arith.constant 0 : index
    %588 = vector.load %arg18[%c0_211, %c0_212] : memref<96x18xf32, #tpu.memory_space<vmem>>, vector<96x18xf32>
    %cst_213 = arith.constant dense<0.000000e+00> : vector<2x18xf32>
    %589 = tpu.matmul %587, %588, %cst_213 {dimension_numbers = #tpu.dot_dimension_numbers<[1], [0], [0], [1], [0, 0, 1, 1], [], []>} : vector<2x96xf32>, vector<96x18xf32>, vector<2x18xf32> -> vector<2x18xf32>
    %c0_214 = arith.constant 0 : index
    %c0_215 = arith.constant 0 : index
    %590 = vector.load %arg19[%c0_214, %c0_215] : memref<1x18xf32, #tpu.memory_space<vmem>>, vector<1x18xf32>
    %591 = vector.broadcast %590 : vector<1x18xf32> to vector<2x18xf32>
    %592 = arith.addf %589, %591 : vector<2x18xf32>
    %c0_216 = arith.constant 0 : index
    %c0_217 = arith.constant 0 : index
    %593 = vector.load %arg20[%c0_216, %c0_217] : memref<2x18xf32, #tpu.memory_space<vmem>>, vector<2x18xf32>
    tpu.vector_store %arg20[%c0_216, %c0_217], %592 {strides = array<i32>} : memref<2x18xf32, #tpu.memory_space<vmem>>, vector<2x18xf32>,
    return
  }
}

</mosaic_0001>

<bundles_post_ra>
// kernel: vo_transformer_forward.1
= control target key start
LH: loop header
LB: loop body
LE: loop exit
PB: predicated region body
PF: predicated region fallthrough
CT: control target
= control target key end

     0   :  { %s11668_s0 = inlined_call_operand.hbm [shape: f32[64,32], index: 0, kind: input, shape index: {}]   ;;  %s11669_s1 = inlined_call_operand.vmem [shape: f32[64,32], index: 1, kind: input, shape index: {}]   ;;  %s11670_s2 = inlined_call_operand.hbm [shape: f32[2,32,128], index: 2, kind: input, shape index: {}]   ;;  %s11671_s3 = inlined_call_operand.hbm [shape: f32[2,1,128], index: 3, kind: input, shape index: {}]   ;;  %s11672_s4 = inlined_call_operand.hbm [shape: f32[2,4,32], index: 4, kind: input, shape index: {}]   ;;  %s11673_s5 = inlined_call_operand.hbm [shape: f32[2,32,64], index: 5, kind: input, shape index: {}]   ;;  %s11674_s6 = inlined_call_operand.hbm [shape: f32[2,1,64], index: 6, kind: input, shape index: {}]   ;;  %s11675_s7 = inlined_call_operand.vmem [shape: f32[2,64,32], index: 7, kind: input, shape index: {}]   ;;  %s11676_s8 = inlined_call_operand.hbm [shape: f32[2,1,32], index: 8, kind: input, shape index: {}]   ;;  %s11677_s9 = inlined_call_operand.hbm [shape: f32[2,32], index: 9, kind: input, shape index: {}]   ;;  %s11678_s10 = inlined_call_operand.hbm [shape: f32[64,64], index: 10, kind: input, shape index: {}]   ;;  %s11679_s11 = inlined_call_operand.hbm [shape: f32[256,256], index: 11, kind: input, shape index: {}]   ;;  %s11680_s12 = inlined_call_operand.hbm [shape: f32[1,256], index: 12, kind: input, shape index: {}]   ;;  %s11681_s13 = inlined_call_operand.hbm [shape: f32[8,8], index: 13, kind: input, shape index: {}]   ;;  %s11682_s14 = inlined_call_operand.hbm [shape: f32[1024,384], index: 14, kind: input, shape index: {}]   ;;  %s11683_s15 = inlined_call_operand.hbm [shape: f32[1,384], index: 15, kind: input, shape index: {}]   ;;  %s11684_s16 = inlined_call_operand.vmem [shape: f32[384,96], index: 16, kind: input, shape index: {}]   ;;  %s11685_s17 = inlined_call_operand.hbm [shape: f32[1,96], index: 17, kind: input, shape index: {}]   ;;  %s11686_s18 = inlined_call_operand.vmem [shape: f32[96,18], index: 18, kind: input, shape index: {}]   ;;  %s11687_s19 = inlined_call_operand.hbm [shape: f32[1,18], index: 19, kind: input, shape index: {}]   ;;  %s11688_s20 = inlined_call_operand.vmem [shape: f32[2,18], index: 20, kind: output, shape index: {}]  }
   0x1   :  { %11692 = sst [smem:[#allocation36_spill]] %s11668_s0 }
   0x2   :  { %11693 = sst [smem:[#allocation37_spill]] %s11669_s1 }
   0x3   :  { %11694 = sst [smem:[#allocation38_spill]] %s11670_s2 }
   0x4   :  { %11695 = sst [smem:[#allocation39_spill]] %s11671_s3 }
   0x5   :  { %11696 = sst [smem:[#allocation40_spill]] %s11672_s4 }
   0x6   :  { %11697 = sst [smem:[#allocation41_spill]] %s11688_s20 }
   0x7   :  { %25 = vsyncpa [#allocation3], 0 }
   0x8   :  { %26 = vsyncpa [#allocation5], 0 }
   0x9   :  { %27 = vsyncpa [#allocation8], 0 }
   0xa   :  { %28 = vsyncpa [#allocation11], 0 }
   0xb   :  { %29 = vsyncpa [#allocation14], 0 }
   0xc   :  { %30 = vsyncpa [#allocation17], 0 }
   0xd   :  { %31 = vsyncpa [#allocation20], 0 }
   0xe   :  { %32 = vsyncpa [#allocation23], 0 }
   0xf   :  { %33 = vsyncpa [#allocation26], 0  ;;  %s11698_s23 = sld [smem:[#allocation38_spill]]  ;;  %s8711_s2 = smov [#allocation4]  }
  0x10   :  { %s55_s25 = sshll.u32 %s8711_s2, 4  ;;  %s11699_s27 = sld [smem:[#allocation40_spill]]  ;;  %s56_s25 = int_to_ptr.vmem [resolvable:$true] %s55_s25 }
  0x11   :  { %s8712_s4 = smov 128   ;;  %s8713_s29 = smov 8  }
  0x12   :  { %s8714_s30 = smov [#allocation7]   ;;  %s11690_s21 = smov 64  }
  0x13   :  { %s81_s0 = sshll.u32 %s8714_s30, 4  ;;  %s8716_s1 = smov 4   ;;  %s82_s0 = int_to_ptr.vmem [resolvable:$true] %s81_s0 }
  0x14   :  { %s105_s2 = sshll.u32 %s11674_s6, 4  ;;  %s8717_s3 = smov [#allocation10]   ;;  %s106_s2 = int_to_ptr.hbm [resolvable:$true] %s105_s2 }
  0x15   :  { %s53_s24 = sshll.u32 %s11698_s23, 4  ;;  %s107_s26 = sshll.u32 %s8717_s3, 4  ;;  %s54_s24 = int_to_ptr.hbm [resolvable:$true] %s53_s24  ;;  %s108_s26 = int_to_ptr.vmem [resolvable:$true] %s107_s26 }
  0x16   :  { %s79_s28 = sshll.u32 %s11699_s27, 4  ;;  %s8719_s30 = smov 1   ;;  %s80_s28 = int_to_ptr.hbm [resolvable:$true] %s79_s28 }
  0x17   :  { %61 = dma.hbm_to_vmem [thread:$0]  %s54_s24, 1024, %s56_s25, [#allocation5], %s8712_s4, %s8712_s4, %s8713_s29  }
  0x18   :  { %87 = dma.hbm_to_vmem [thread:$0]  %s80_s28, 128, %s82_s0, [#allocation8], %s11690_s21, %s11690_s21, %s8716_s1  }
  0x19   :  { %s134_s24 = sshll.u32 %s11677_s9, 4  ;;  %s8718_s25 = smov 16   ;;  %s135_s24 = int_to_ptr.hbm [resolvable:$true] %s134_s24 }
  0x1a   :  { %113 = dma.hbm_to_vmem [thread:$0]  %s106_s2, 32, %s108_s26, [#allocation11], %s8718_s25, %s8718_s25, %s8719_s30  }
  0x1b   :  { %s8720_s28 = smov [#allocation13]   ;;  %s157_s6 = sshll.u32 %s11679_s11, 4  ;;  %s158_s6 = int_to_ptr.hbm [resolvable:$true] %s157_s6 }
  0x1c   :  { %s136_s0 = sshll.u32 %s8720_s28, 4  ;;  %s8721_s23 = smov [#allocation16]   ;;  %s137_s0 = int_to_ptr.vmem [resolvable:$true] %s136_s0 }
  0x1d   :  { %139 = dma.hbm_to_vmem [thread:$0]  %s135_s24, 32, %s137_s0, [#allocation14]  }
  0x1e   :  { %s159_s3 = sshll.u32 %s8721_s23, 4  ;;  %s182_s27 = sshll.u32 %s11681_s13, 4  ;;  %s160_s3 = int_to_ptr.vmem [resolvable:$true] %s159_s3  ;;  %s183_s27 = int_to_ptr.hbm [resolvable:$true] %s182_s27 }
  0x1f   :  { %s8722_s21 = smov 256   ;;  %s206_s28 = sshll.u32 %s11683_s15, 4  ;;  %s207_s28 = int_to_ptr.hbm [resolvable:$true] %s206_s28 }
  0x20   :  { %165 = dma.hbm_to_vmem [thread:$0]  %s158_s6, 8192, %s160_s3, [#allocation17], %s8722_s21, %s8722_s21, %s8718_s25  }
  0x21   :  { %s8723_s1 = smov [#allocation19]   ;;  %s8724_s24 = smov [#allocation22]  }
  0x22   :  { %s184_s11 = sshll.u32 %s8723_s1, 4  ;;  %s208_s0 = sshll.u32 %s8724_s24, 4  ;;  %s185_s11 = int_to_ptr.vmem [resolvable:$true] %s184_s11  ;;  %s209_s0 = int_to_ptr.vmem [resolvable:$true] %s208_s0 }
  0x23   :  { %187 = dma.hbm_to_vmem [thread:$0]  %s183_s27, 128, %s185_s11, [#allocation20]  }
  0x24   :  { %s11700_s20 = sld [smem:[#allocation36_spill]]  ;;  %s8725_s2 = smov [#allocation2]  }
  0x25   :  { %211 = dma.hbm_to_vmem [thread:$0]  %s207_s28, 48, %s209_s0, [#allocation23]  }
  0x26   :  { %s11701_s6 = sld [smem:[#allocation39_spill]]  ;;  %s40_s15 = sshll.u32 %s8725_s2, 4  ;;  %s41_s15 = int_to_ptr.vmem [resolvable:$true] %s40_s15 }
  0x27   :  { %s8726_s27 = smov [#allocation6]   ;;  %s92_s24 = sshll.u32 %s11673_s5, 4  ;;  %s93_s24 = int_to_ptr.hbm [resolvable:$true] %s92_s24 }
  0x28   :  { %s68_s26 = sshll.u32 %s8726_s27, 4  ;;  %s120_s22 = sshll.u32 %s11676_s8, 4  ;;  %s69_s26 = int_to_ptr.vmem [resolvable:$true] %s68_s26  ;;  %s121_s22 = int_to_ptr.hbm [resolvable:$true] %s120_s22 }
  0x29   :  { %s8727_s23 = smov [#allocation9]   ;;  %s171_s2 = sshll.u32 %s11680_s12, 4  ;;  %s172_s2 = int_to_ptr.hbm [resolvable:$true] %s171_s2 }
  0x2a   :  { %s38_s13 = sshll.u32 %s11700_s20, 4  ;;  %s94_s20 = sshll.u32 %s8727_s23, 4  ;;  %s39_s13 = int_to_ptr.hbm [resolvable:$true] %s38_s13  ;;  %s95_s20 = int_to_ptr.vmem [resolvable:$true] %s94_s20 }
  0x2b   :  { %46 = dma.hbm_to_vmem [thread:$0]  %s39_s13, 1024, %s41_s15, [#allocation3], %s8712_s4, %s8712_s4, %s8713_s29  }
  0x2c   :  { %s66_s3 = sshll.u32 %s11701_s6, 4  ;;  %s8728_s13 = smov [#allocation12]   ;;  %s67_s3 = int_to_ptr.hbm [resolvable:$true] %s66_s3 }
  0x2d   :  { %74 = dma.hbm_to_vmem [thread:$0]  %s67_s3, 32, %s69_s26, [#allocation5], %s8718_s25, %s8718_s25, %s8719_s30  }
  0x2e   :  { %100 = dma.hbm_to_vmem [thread:$0]  %s93_s24, 1024, %s95_s20, [#allocation8], %s8712_s4, %s8712_s4, %s8713_s29  }
  0x2f   :  { %s122_s5 = sshll.u32 %s8728_s13, 4  ;;  %s144_s6 = sshll.u32 %s11678_s10, 4  ;;  %s123_s5 = int_to_ptr.vmem [resolvable:$true] %s122_s5  ;;  %s145_s6 = int_to_ptr.hbm [resolvable:$true] %s144_s6 }
  0x30   :  { %128 = dma.hbm_to_vmem [thread:$0]  %s121_s22, 32, %s123_s5, [#allocation11], %s8718_s25, %s8718_s25, %s8719_s30  }
  0x31   :  { %s8729_s15 = smov [#allocation15]   ;;  %s8730_s26 = smov [#allocation18]  }
  0x32   :  { %s146_s27 = sshll.u32 %s8729_s15, 4  ;;  %s173_s10 = sshll.u32 %s8730_s26, 4  ;;  %s147_s27 = int_to_ptr.vmem [resolvable:$true] %s146_s27  ;;  %s174_s10 = int_to_ptr.vmem [resolvable:$true] %s173_s10 }
  0x33   :  { %152 = dma.hbm_to_vmem [thread:$0]  %s145_s6, 1024, %s147_s27, [#allocation14], %s8712_s4, %s8712_s4, %s8713_s29  }
  0x34   :  { %s192_s24 = sshll.u32 %s11682_s14, 4  ;;  %s8731_s25 = smov [#allocation21]   ;;  %s193_s24 = int_to_ptr.hbm [resolvable:$true] %s192_s24 }
  0x35   :  { %176 = dma.hbm_to_vmem [thread:$0]  %s172_s2, 32, %s174_s10, [#allocation17]  }
  0x36   :  { %s194_s30 = sshll.u32 %s8731_s25, 4  ;;  %s219_s0 = sshll.u32 %s11685_s17, 4  ;;  %s195_s30 = int_to_ptr.vmem [resolvable:$true] %s194_s30  ;;  %s220_s0 = int_to_ptr.hbm [resolvable:$true] %s219_s0 }
  0x37   :  { %s8732_s22 = smov 384   ;;  %s8733_s23 = smov 24  }
  0x38   :  { %200 = dma.hbm_to_vmem [thread:$0]  %s193_s24, 49152, %s195_s30, [#allocation20], %s8732_s22, %s8732_s22, %s8733_s23  }
  0x39   :  { %s8734_s4 = smov [#allocation24]   ;;  %s232_s14 = sshll.u32 %s11687_s19, 4  ;;  %s233_s14 = int_to_ptr.hbm [resolvable:$true] %s232_s14 }
  0x3a   :  { %s221_s29 = sshll.u32 %s8734_s4, 4  ;;  %s8735_s5 = smov [#allocation25]   ;;  %s222_s29 = int_to_ptr.vmem [resolvable:$true] %s221_s29 }
  0x3b   :  { %224 = dma.hbm_to_vmem [thread:$0]  %s220_s0, 16, %s222_s29, [#allocation23]  }
  0x3c   :  { %s234_s9 = sshll.u32 %s8735_s5, 4  ;;  %s235_s9 = int_to_ptr.vmem [resolvable:$true] %s234_s9 }
  0x3d   :  { %237 = dma.hbm_to_vmem [thread:$0]  %s233_s14, 16, %s235_s9, [#allocation26]  }
  0x3e   :  { %8693 = dma.done.wait [#allocation3], 1024  }
  0x3f   :  { %8694 = vsyncadd [#allocation3], 4294966272 }
  0x40   :  { %8695 = dma.done.wait [#allocation5], 1056  }
  0x41   :  { %8696 = vsyncadd [#allocation5], 4294966240 }
  0x42   :  { %8697 = dma.done.wait [#allocation8], 1152  }
  0x43   :  { %8698 = vsyncadd [#allocation8], 4294966144 }
  0x44   :  { %8699 = dma.done.wait [#allocation11], 64  }
  0x45   :  { %8700 = vsyncadd [#allocation11], 4294967232 }
  0x46   :  { %8701 = dma.done.wait [#allocation14], 1056  }
  0x47   :  { %8702 = vsyncadd [#allocation14], 4294966240 }
  0x48   :  { %8703 = dma.done.wait [#allocation17], 8224  }
  0x49   :  { %8704 = vsyncadd [#allocation17], 4294959072 }
  0x4a   :  { %8705 = dma.done.wait [#allocation20], 49280  }
  0x4b   :  { %8706 = vsyncadd [#allocation20], 4294918016 }
  0x4c   :  { %8707 = dma.done.wait [#allocation23], 64  }
  0x4d   :  { %8708 = vsyncadd [#allocation23], 4294967232 }
  0x4e   :  { %8709 = dma.done.wait [#allocation26], 16  }
  0x4f   :  { %8710 = vsyncadd [#allocation26], 4294967280  ;;  %v304_v0 = vld [vmem:[#allocation2 + $0x10] sm:$0xff]  ;;  %s11702_s21 = sld [smem:[#allocation37_spill]]  ;;  %vm332_vm0 = vcmask 261120   ;;  %v302_v2 = vld [vmem:[#allocation2] sm:$0xff] }
  0x50   :  { %v305_v5 = vld [vmem:[#allocation2 + $0x18] sm:$0xff]  ;;  %v303_v8 = vld [vmem:[#allocation2 + $0x8] sm:$0xff]  ;;  %v8736_v16 = vmov 32.0   ;;  %v8983_v44 = vld [vmem:[#allocation4 + $0x10] sm:$0xff]  ;;  %s8737_s1 = smov 96   ;;  %s8738_s0 = smov 88  }
  0x51   :  { %7927 = vrcp.f32 %v8736_v16  ;;  %v330_v43 = vld [vmem:[#allocation4 + $0x18] sm:$0xff]  ;;  %v8986_v45 = vld [vmem:[#allocation4 + $0x8] sm:$0xff]  ;;  %v8989_v46 = vld [vmem:[#allocation4] sm:$0xff]  ;;  %s8739_s22 = smov 120   ;;  %vm614_vm14 = vcmask 64512   ;;  %s8740_s23 = smov 80  }
  0x52   :  { %573 = vmatpush.msra.mxu0 %v330_v43  ;;  %v7782_v47 = vpack.i.bf16 %v8983_v44, %v8986_v45  ;;  %v306_v16 = vld [vmem:[#allocation2 + $0x20] sm:$0xff]  ;;  %s8741_s4 = smov 112   ;;  %s11703_s29 = smov 64  }
  0x53   :  { %s8742_s20 = smov 56   ;;  %s8743_s13 = smov 48  }
  0x54   :  { %574 = vmatpush.msra.mxu0 %v8983_v44  ;;  %s8744_s14 = smov 72   ;;  %s8745_s5 = smov 32  }
  0x55   :  { %v312_v1 = vld [vmem:[%s11702_s21 + $0x10] sm:$0xff]  ;;  %v310_v4 = vld [vmem:[%s11702_s21] sm:$0xff]  ;;  %v313_v7 = vld [vmem:[%s11702_s21 + $0x18] sm:$0xff]  ;;  %s8746_s9 = smov 104   ;;  %s8747_s17 = smov 40  }
  0x56   :  { %v8928_v3 = vadd.f32 %v312_v1, %v304_v0  ;;  %v8933_v6 = vadd.f32 %v310_v4, %v302_v2  ;;  %v311_v10 = vld [vmem:[%s11702_s21 + $0x8] sm:$0xff]  ;;  %v8945_v12 = vadd.f32 %v313_v7, %v305_v5  ;;  %575 = vmatpush.msra.mxu0 %v8986_v45  ;;  %v326_v7 = vld [vmem:[#allocation7] sm:$0xf]  ;;  %s11712_s26 = sld [smem:[#allocation41_spill]] }
  0x57   :  { %v8947_v13 = vadd.f32 %v311_v10, %v303_v8  ;;  %v7928_v17 = vpop.eup %7927 }
  0x58   :  { %v339_v9 = vsel %vm332_vm0, %v8928_v3, 0.0  ;;  %v333_v11 = vsel %vm332_vm0, %v8933_v6, 0.0  ;;  %v342_v14 = vsel %vm332_vm0, %v8945_v12, 0.0  ;;  %v358_v18 = vmul.f32 32.0, %v7928_v17  ;;  %576 = vmatpush.msra.mxu0 %v8989_v46 }
  0x59   :  { %340 = vadd.xlane.f32.xlu1 %v339_v9  ;;  %334 = vadd.xlane.f32.xlu0 %v333_v11  ;;  %v336_v15 = vsel %vm332_vm0, %v8947_v13, 0.0  ;;  %vm362_vm1 = vweird.f32 %v7928_v17 }
  0x5a   :  { %v359_v19 = vsub.f32 1.0, %v358_v18 }
  0x5c   :  { %v360_v20 = vmul.f32 %v7928_v17, %v359_v19 }
  0x5e   :  { %v361_v21 = vadd.f32 %v7928_v17, %v360_v20 }
  0x60   :  { %v8953_v22 = vsel %vm362_vm1, %v7928_v17, %v361_v21  ;;  %v314_v17 = vld [vmem:[%s11702_s21 + $0x20] sm:$0xff] }
  0x61   :  { %343 = vadd.xlane.f32.xlu1 %v342_v14  ;;  %337 = vadd.xlane.f32.xlu0 %v336_v15  ;;  %v8998_v15 = vperm.slane %v326_v7, 0  ;;  %v9003_v20 = vadd.f32 %v314_v17, %v306_v16 }
  0xcc   :  { %v341_v23 = vpop.xlane.xlu1 %340  ;;  %v335_v25 = vpop.xlane.xlu0 %334 }
  0xcd   :  { %v366_v24 = vmul.f32 %v8953_v22, %v341_v23  ;;  %v364_v26 = vmul.f32 %v8953_v22, %v335_v25  ;;  %v9006_v23 = vperm.slane %v326_v7, 1  ;;  %v307_v7 = vld [vmem:[#allocation2 + $0x28] sm:$0xff] }
  0xcf   :  { %v8958_v27 = vsub.f32 %v8928_v3, %v366_v24  ;;  %v8961_v28 = vsub.f32 %v8933_v6, %v364_v26 }
  0xd1   :  { %v382_v29 = vmul.f32 %v8958_v27, %v8958_v27  ;;  %v380_v30 = vmul.f32 %v8961_v28, %v8961_v28 }
  0xd3   :  { %v394_v31 = vsel %vm332_vm0, %v382_v29, 0.0  ;;  %v388_v33 = vsel %vm332_vm0, %v380_v30, 0.0  ;;  %v345_v29 = vsel %vm332_vm0, %v9003_v20, 0.0 }
  0xd4   :  { %v344_v32 = vpop.xlane.xlu1 %343  ;;  %395 = vadd.xlane.f32.xlu0 %v394_v31  ;;  %389 = vadd.xlane.f32.xlu2 %v388_v33  ;;  %v338_v35 = vpop.xlane.xlu0 %337 }
  0xd5   :  { %v367_v34 = vmul.f32 %v8953_v22, %v344_v32  ;;  %v365_v36 = vmul.f32 %v8953_v22, %v338_v35 }
  0xd7   :  { %v8972_v37 = vsub.f32 %v8945_v12, %v367_v34  ;;  %v8975_v38 = vsub.f32 %v8947_v13, %v365_v36 }
  0xd9   :  { %v383_v39 = vmul.f32 %v8972_v37, %v8972_v37  ;;  %v381_v40 = vmul.f32 %v8975_v38, %v8975_v38 }
  0xdb   :  { %v397_v41 = vsel %vm332_vm0, %v383_v39, 0.0  ;;  %v391_v42 = vsel %vm332_vm0, %v381_v40, 0.0 }
  0xdc   :  { %398 = vadd.xlane.f32.xlu1 %v397_v41  ;;  %392 = vadd.xlane.f32.xlu2 %v391_v42 }
  0xdd   :  { %346 = vadd.xlane.f32.xlu0 %v345_v29 }
 0x147   :  { %v396_v48 = vpop.xlane.xlu0 %395  ;;  %v390_v49 = vpop.xlane.xlu2 %389 }
 0x148   :  { %v414_v50 = vmul.f32 %v396_v48, %v8953_v22  ;;  %v412_v51 = vmul.f32 %v390_v49, %v8953_v22 }
 0x14a   :  { %v422_v52 = vadd.f32 1e-05, %v414_v50  ;;  %v420_v53 = vadd.f32 1e-05, %v412_v51 }
 0x14c   :  { %7929 = vrsqrt.f32 %v422_v52  ;;  %vm434_vm3 = vweird.f32 %v420_v53  ;;  %vm454_vm5 = vweird.f32 %v422_v52 }
 0x14d   :  { %7931 = vrsqrt.f32 %v420_v53 }
 0x14f   :  { %v399_v54 = vpop.xlane.xlu1 %398  ;;  %v393_v56 = vpop.xlane.xlu2 %392 }
 0x150   :  { %v415_v55 = vmul.f32 %v399_v54, %v8953_v22  ;;  %v413_v57 = vmul.f32 %v393_v56, %v8953_v22 }
 0x152   :  { %v7930_v58 = vpop.eup %7929  ;;  %v423_v59 = vadd.f32 1e-05, %v415_v55  ;;  %v421_v61 = vadd.f32 1e-05, %v413_v57 }
 0x153   :  { %v7932_v60 = vpop.eup %7931  ;;  %v449_v63 = vmul.f32 %v7930_v58, %v422_v52  ;;  %vm455_vm6 = vweird.f32 %v7930_v58 }
 0x154   :  { %v429_v62 = vmul.f32 %v7932_v60, %v420_v53  ;;  %7933 = vrsqrt.f32 %v423_v59  ;;  %vm435_vm2 = vweird.f32 %v7932_v60  ;;  %vm456_vm8 = vmor %vm454_vm5, %vm455_vm6  ;;  %vm444_vm9 = vweird.f32 %v421_v61 }
 0x155   :  { %7935 = vrsqrt.f32 %v421_v61  ;;  %v450_v2 = vmul.f32 %v7930_v58, %v449_v63  ;;  %vm436_vm4 = vmor %vm434_vm3, %vm435_vm2  ;;  %vm464_vm11 = vweird.f32 %v423_v59 }
 0x156   :  { %v430_v0 = vmul.f32 %v7932_v60, %v429_v62  ;;  %v316_v62 = vld [vmem:[%s11702_s21 + $0x30] sm:$0xff] }
 0x157   :  { %v451_v10 = vmul.f32 0.5, %v450_v2  ;;  %v317_v2 = vld [vmem:[%s11702_s21 + $0x38] sm:$0xff] }
 0x158   :  { %v431_v1 = vmul.f32 0.5, %v430_v0 }
 0x159   :  { %v452_v24 = vsub.f32 1.5, %v451_v10 }
 0x15a   :  { %v7934_v4 = vpop.eup %7933  ;;  %v432_v5 = vsub.f32 1.5, %v431_v1  ;;  %v309_v1 = vld [vmem:[#allocation2 + $0x38] sm:$0xff] }
 0x15b   :  { %v7936_v8 = vpop.eup %7935  ;;  %v459_v11 = vmul.f32 %v7934_v4, %v423_v59  ;;  %v453_v33 = vmul.f32 %v7930_v58, %v452_v24  ;;  %vm465_vm12 = vweird.f32 %v7934_v4 }
 0x15c   :  { %v433_v9 = vmul.f32 %v7932_v60, %v432_v5  ;;  %v439_v14 = vmul.f32 %v7936_v8, %v421_v61  ;;  %vm445_vm7 = vweird.f32 %v7936_v8  ;;  %vm466_vm13 = vmor %vm464_vm11, %vm465_vm12  ;;  %v308_v61 = vld [vmem:[#allocation2 + $0x30] sm:$0xff] }
 0x15d   :  { %v460_v25 = vmul.f32 %v7934_v4, %v459_v11  ;;  %vm446_vm10 = vmor %vm444_vm9, %vm445_vm7  ;;  %v457_v40 = vsel %vm456_vm8, %v7930_v58, %v453_v33  ;;  %v9050_v63 = vadd.f32 %v316_v62, %v308_v61 }
 0x15e   :  { %v440_v18 = vmul.f32 %v7936_v8, %v439_v14  ;;  %v437_v19 = vsel %vm436_vm4, %v7932_v60, %v433_v9  ;;  %v510_v43 = vmul.f32 %v457_v40, %v8958_v27  ;;  %v9025_v27 = vld [vmem:[#allocation6] ss:$0 sm:$0xff]  ;;  %v347_v9 = vpop.xlane.xlu0 %346 }
 0x15f   :  { %v508_v21 = vmul.f32 %v437_v19, %v8961_v28  ;;  %v461_v28 = vmul.f32 0.5, %v460_v25  ;;  %v351_v0 = vsel %vm332_vm0, %v9050_v63, 0.0  ;;  %v368_v11 = vmul.f32 %v8953_v22, %v347_v9 }
 0x160   :  { %v441_v26 = vmul.f32 0.5, %v440_v18  ;;  %v519_v49 = vmul.f32 %v8998_v15, %v510_v43 }
 0x161   :  { %v517_v30 = vmul.f32 %v8998_v15, %v508_v21  ;;  %v462_v39 = vsub.f32 1.5, %v461_v28  ;;  %v9070_v16 = vsub.f32 %v9003_v20, %v368_v11 }
 0x162   :  { %v442_v31 = vsub.f32 1.5, %v441_v26  ;;  %v528_v51 = vadd.f32 %v9006_v23, %v519_v49 }
 0x163   :  { %v526_v32 = vadd.f32 %v9006_v23, %v517_v30  ;;  %v463_v48 = vmul.f32 %v7934_v4, %v462_v39  ;;  %v384_v17 = vmul.f32 %v9070_v16, %v9070_v16 }
 0x164   :  { %v443_v34 = vmul.f32 %v7936_v8, %v442_v31 }
 0x165   :  { %7360 = vmatmul.msk.f32.vlgmr.msra.gmra.mxu0 %vm332_vm0, %v526_v32  ;;  %v467_v50 = vsel %vm466_vm13, %v7934_v4, %v463_v48  ;;  %v9057_v4 = vadd.f32 %v317_v2, %v309_v1  ;;  %v400_v18 = vsel %vm332_vm0, %v384_v17, 0.0 }
 0x166   :  { %v447_v35 = vsel %vm446_vm10, %v7936_v8, %v443_v34  ;;  %v315_v8 = vld [vmem:[%s11702_s21 + $0x28] sm:$0xff] }
 0x167   :  { %v509_v36 = vmul.f32 %v447_v35, %v8975_v38  ;;  %v511_v38 = vmul.f32 %v467_v50, %v8972_v37  ;;  %v354_v5 = vsel %vm332_vm0, %v9057_v4, 0.0  ;;  %v9064_v10 = vadd.f32 %v315_v8, %v307_v7 }
 0x169   :  { %v518_v41 = vmul.f32 %v8998_v15, %v509_v36  ;;  %v520_v52 = vmul.f32 %v8998_v15, %v511_v38  ;;  %v348_v14 = vsel %vm332_vm0, %v9064_v10, 0.0 }
 0x16b   :  { %v527_v42 = vadd.f32 %v9006_v23, %v518_v41  ;;  %v529_v53 = vadd.f32 %v9006_v23, %v520_v52 }
 0x16d   :  { %7361 = vmatmul.msk.f32.gmra.mxu0 %vm332_vm0, %v527_v42 }
 0x175   :  { %7362 = vmatmul.msk.f32.gmra.mxu0 %vm332_vm0, %v528_v51 }
 0x17d   :  { %7363 = vmatmul.msk.f32.gmra.mxu0 %vm332_vm0, %v529_v53 }
 0x1e2   :  { %v578_v54 = vpop.f32.mrf.mxu0 }
 0x1e3   :  { %v9028_v55 = vadd.f32 %v9025_v27, %v578_v54 }
 0x1e5   :  { %606 = vrot.lane.b32.xlu2 %v9028_v55, %s8737_s1 }
 0x1ea   :  { %v581_v56 = vpop.f32.mrf.mxu0 }
 0x1eb   :  { %v9033_v37 = vadd.f32 %v9025_v27, %v581_v56 }
 0x1ed   :  { %608 = vrot.lane.b32.xlu1 %v9033_v37, %s8737_s1 }
 0x1f2   :  { %v584_v57 = vpop.f32.mrf.mxu0 }
 0x1f3   :  { %v9038_v58 = vadd.f32 %v9025_v27, %v584_v57 }
 0x1f5   :  { %610 = vrot.lane.b32.xlu0 %v9038_v58, %s8737_s1 }
 0x1fa   :  { %v587_v59 = vpop.f32.mrf.mxu0 }
 0x1fb   :  { %v9043_v60 = vadd.f32 %v9025_v27, %v587_v59 }
 0x1fd   :  { %612 = vrot.lane.b32.xlu2 %v9043_v60, %s8737_s1 }
 0x217   :  { %352 = vadd.xlane.f32.xlu1 %v351_v0 }
 0x21f   :  { %355 = vadd.xlane.f32.xlu0 %v354_v5 }
 0x226   :  { %349 = vadd.xlane.f32.xlu2 %v348_v14 }
 0x22e   :  { %401 = vadd.xlane.f32.xlu2 %v400_v18 }
 0x233   :  { %765 = vrot.lane.b32.xlu0 %v9028_v55, %s8738_s0 }
 0x23b   :  { %771 = vrot.lane.b32.xlu0 %v9043_v60, %s8738_s0 }
 0x23f   :  { %v607_v19 = vpop.permute.xlu2 %606 }
 0x246   :  { %769 = vrot.lane.b32.xlu2 %v9038_v58, %s8738_s0 }
 0x24e   :  { %757 = vrot.lane.b32.xlu2 %v9028_v55, %s8739_s22 }
 0x256   :  { %759 = vrot.lane.b32.xlu2 %v9033_v37, %s8739_s22 }
 0x257   :  { %v613_v21 = vpop.permute.xlu2 %612 }
 0x258   :  { %7368 = vmatpush.xpose.msk.msra.mxu1 %vm614_vm14, %v613_v21 }
 0x25e   :  { %1019 = vrot.lane.b32.xlu2 %v9043_v60, %s8740_s23 }
 0x25f   :  { %v609_v25 = vpop.permute.xlu1 %608 }
 0x266   :  { %1017 = vrot.lane.b32.xlu2 %v9038_v58, %s8740_s23 }
 0x267   :  { %v611_v24 = vpop.permute.xlu0 %610 }
 0x268   :  { %7369 = vmatpush.xpose.msk.msra.mxu1 %vm614_vm14, %v611_v24 }
 0x26c   :  { %7370 = vmatpush.xpose.msk.msra.mxu1 %vm614_vm14, %v609_v25 }
 0x26e   :  { %1013 = vrot.lane.b32.xlu2 %v9028_v55, %s8740_s23 }
 0x270   :  { %7371 = vmatpush.xpose.msk.msra.mxu1 %vm614_vm14, %v607_v19 }
 0x273   :  { %7372 = vmatmul.msk.f32.vlgmr.msra.gmra.mxu1 %vm614_vm14, %v9028_v55 }
 0x276   :  { %1007 = vrot.lane.b32.xlu2 %v9033_v37, %s8741_s4 }
 0x27b   :  { %7373 = vmatmul.msk.f32.gmra.mxu1 %vm614_vm14, %v9033_v37 }
 0x283   :  { %7374 = vmatmul.msk.f32.gmra.mxu1 %vm614_vm14, %v9038_v58 }
 0x28a   :  { %v353_v32 = vpop.xlane.xlu1 %352 }
 0x28b   :  { %7375 = vmatmul.msk.f32.gmra.mxu1 %vm614_vm14, %v9043_v60  ;;  %v370_v35 = vmul.f32 %v8953_v22, %v353_v32 }
 0x28d   :  { %v9118_v39 = vsub.f32 %v9050_v63, %v370_v35 }
 0x28f   :  { %v386_v48 = vmul.f32 %v9118_v39, %v9118_v39 }
 0x291   :  { %v406_v51 = vsel %vm332_vm0, %v386_v48, 0.0  ;;  %v9176_v48 = vpack.i.bf16 %v9038_v58, %v9043_v60 }
 0x292   :  { %v356_v26 = vpop.xlane.xlu0 %355 }
 0x293   :  { %v371_v29 = vmul.f32 %v8953_v22, %v356_v26 }
 0x295   :  { %v9107_v30 = vsub.f32 %v9057_v4, %v371_v29 }
 0x297   :  { %v387_v31 = vmul.f32 %v9107_v30, %v9107_v30 }
 0x299   :  { %v350_v33 = vpop.xlane.xlu2 %349  ;;  %v409_v28 = vsel %vm332_vm0, %v387_v31, 0.0 }
 0x29a   :  { %v369_v34 = vmul.f32 %v8953_v22, %v350_v33  ;;  %410 = vadd.xlane.f32.xlu0 %v409_v28 }
 0x29c   :  { %v9115_v36 = vsub.f32 %v9064_v10, %v369_v34 }
 0x29e   :  { %v385_v40 = vmul.f32 %v9115_v36, %v9115_v36 }
 0x2a0   :  { %v403_v41 = vsel %vm332_vm0, %v385_v40, 0.0 }
 0x2a1   :  { %404 = vadd.xlane.f32.xlu1 %v403_v41  ;;  %v402_v42 = vpop.xlane.xlu2 %401 }
 0x2a2   :  { %v416_v43 = vmul.f32 %v402_v42, %v8953_v22 }
 0x2a4   :  { %v424_v49 = vadd.f32 1e-05, %v416_v43 }
 0x2a5   :  { %v9126_v50 = vpop.permute.xlu0 %765 }
 0x2a6   :  { %7937 = vrsqrt.f32 %v424_v49  ;;  %vm474_vm15 = vweird.f32 %v424_v49 }
 0x2a9   :  { %407 = vadd.xlane.f32.xlu1 %v406_v51  ;;  %v770_v38 = vpop.permute.xlu2 %769 }
 0x2ac   :  { %v7938_v52 = vpop.eup %7937 }
 0x2ad   :  { %v469_v53 = vmul.f32 %v7938_v52, %v424_v49  ;;  %v772_v54 = vpop.permute.xlu0 %771  ;;  %vm475_vm1 = vweird.f32 %v7938_v52 }
 0x2ae   :  { %1009 = vrot.lane.b32.xlu0 %v9038_v58, %s8741_s4  ;;  %7380 = vmatpush.xpose.msk.msra.mxu3 %vm614_vm14, %v772_v54  ;;  %vm476_vm2 = vmor %vm474_vm15, %vm475_vm1 }
 0x2af   :  { %v470_v56 = vmul.f32 %v7938_v52, %v469_v53 }
 0x2b1   :  { %v471_v57 = vmul.f32 0.5, %v470_v56  ;;  %v9132_v59 = vpop.permute.xlu2 %757 }
 0x2b2   :  { %7381 = vmatpush.xpose.msk.msra.mxu3 %vm614_vm14, %v770_v38 }
 0x2b3   :  { %v472_v61 = vsub.f32 1.5, %v471_v57 }
 0x2b5   :  { %v473_v62 = vmul.f32 %v7938_v52, %v472_v61 }
 0x2b7   :  { %v477_v0 = vsel %vm476_vm2, %v7938_v52, %v473_v62 }
 0x2b8   :  { %v512_v1 = vmul.f32 %v477_v0, %v9070_v16 }
 0x2b9   :  { %v9136_v2 = vpop.permute.xlu2 %759 }
 0x2ba   :  { %v521_v5 = vmul.f32 %v8998_v15, %v512_v1 }
 0x2bc   :  { %v530_v7 = vadd.f32 %v9006_v23, %v521_v5 }
 0x2be   :  { %7364 = vmatmul.msk.f32.gmra.mxu0 %vm332_vm0, %v530_v7 }
 0x2c1   :  { %v1020_v8 = vpop.permute.xlu2 %1019 }
 0x2c2   :  { %767 = vrot.lane.b32.xlu1 %v9033_v37, %s8738_s0  ;;  %7400 = vmatpush.xpose.msk.msrb.mxu0 %vm614_vm14, %v1020_v8 }
 0x2c9   :  { %v1018_v9 = vpop.permute.xlu2 %1017 }
 0x2ca   :  { %761 = vrot.lane.b32.xlu1 %v9038_v58, %s8739_s22  ;;  %7401 = vmatpush.xpose.msk.msrb.mxu0 %vm614_vm14, %v1018_v9 }
 0x2d2   :  { %763 = vrot.lane.b32.xlu1 %v9043_v60, %s8739_s22 }
 0x2da   :  { %1015 = vrot.lane.b32.xlu1 %v9033_v37, %s8740_s23 }
 0x2e2   :  { %1005 = vrot.lane.b32.xlu1 %v9028_v55, %s8741_s4 }
 0x2ea   :  { %1011 = vrot.lane.b32.xlu1 %v9043_v60, %s8741_s4 }
 0x2f0   :  { %v9155_v11 = vpop.f32.mrf.mxu1 }
 0x2f1   :  { %v660_v14 = vsel %vm332_vm0, %v9155_v11, -inf }
 0x2f2   :  { %661 = vmax.xlane.f32.xlu2 %v660_v14 }
 0x2f8   :  { %v9159_v16 = vpop.f32.mrf.mxu1 }
 0x2f9   :  { %v663_v29 = vsel %vm332_vm0, %v9159_v16, -inf }
 0x300   :  { %v9161_v17 = vpop.f32.mrf.mxu1 }
 0x301   :  { %v666_v18 = vsel %vm332_vm0, %v9161_v17, -inf }
 0x302   :  { %667 = vmax.xlane.f32.xlu0 %v666_v18 }
 0x308   :  { %v9165_v19 = vpop.f32.mrf.mxu1 }
 0x309   :  { %v669_v21 = vsel %vm332_vm0, %v9165_v19, -inf }
 0x30a   :  { %670 = vmax.xlane.f32.xlu2 %v669_v21 }
 0x30d   :  { %v411_v24 = vpop.xlane.xlu0 %410 }
 0x30e   :  { %v419_v25 = vmul.f32 %v411_v24, %v8953_v22 }
 0x310   :  { %v427_v26 = vadd.f32 1e-05, %v419_v25 }
 0x312   :  { %7939 = vrsqrt.f32 %v427_v26  ;;  %vm504_vm6 = vweird.f32 %v427_v26 }
 0x314   :  { %v405_v31 = vpop.xlane.xlu1 %404  ;;  %664 = vmax.xlane.f32.xlu1 %v663_v29 }
 0x315   :  { %v417_v32 = vmul.f32 %v405_v31, %v8953_v22 }
 0x317   :  { %v425_v33 = vadd.f32 1e-05, %v417_v32 }
 0x318   :  { %v7940_v34 = vpop.eup %7939 }
 0x319   :  { %7941 = vrsqrt.f32 %v425_v33  ;;  %v499_v42 = vmul.f32 %v7940_v34, %v427_v26  ;;  %vm484_vm4 = vweird.f32 %v425_v33  ;;  %vm505_vm7 = vweird.f32 %v7940_v34 }
 0x31a   :  { %vm506_vm9 = vmor %vm504_vm6, %vm505_vm7 }
 0x31b   :  { %v500_v51 = vmul.f32 %v7940_v34, %v499_v42 }
 0x31c   :  { %v408_v28 = vpop.xlane.xlu1 %407 }
 0x31d   :  { %v418_v35 = vmul.f32 %v408_v28, %v8953_v22  ;;  %v501_v54 = vmul.f32 0.5, %v500_v51 }
 0x31f   :  { %v7942_v40 = vpop.eup %7941  ;;  %v426_v41 = vadd.f32 1e-05, %v418_v35  ;;  %v502_v1 = vsub.f32 1.5, %v501_v54 }
 0x320   :  { %v479_v43 = vmul.f32 %v7942_v40, %v425_v33  ;;  %vm485_vm3 = vweird.f32 %v7942_v40 }
 0x321   :  { %7943 = vrsqrt.f32 %v426_v41  ;;  %vm486_vm5 = vmor %vm484_vm4, %vm485_vm3  ;;  %v503_v14 = vmul.f32 %v7940_v34, %v502_v1  ;;  %vm494_vm10 = vweird.f32 %v426_v41 }
 0x322   :  { %v480_v49 = vmul.f32 %v7942_v40, %v479_v43  ;;  %7753 = vrot.lane.b32.xlu2 %v9176_v48, %s11703_s29 }
 0x323   :  { %v507_v25 = vsel %vm506_vm9, %v7940_v34, %v503_v14 }
 0x324   :  { %v481_v38 = vmul.f32 0.5, %v480_v49  ;;  %v515_v31 = vmul.f32 %v507_v25, %v9107_v30 }
 0x326   :  { %v482_v52 = vsub.f32 1.5, %v481_v38  ;;  %v524_v32 = vmul.f32 %v8998_v15, %v515_v31 }
 0x327   :  { %v7944_v53 = vpop.eup %7943 }
 0x328   :  { %v483_v56 = vmul.f32 %v7942_v40, %v482_v52  ;;  %v489_v57 = vmul.f32 %v7944_v53, %v426_v41  ;;  %vm495_vm8 = vweird.f32 %v7944_v53  ;;  %v9211_v52 = vpack.i.bf16 %v9028_v55, %v9033_v37 }
 0x329   :  { %vm496_vm11 = vmor %vm494_vm10, %vm495_vm8 }
 0x32a   :  { %v490_v61 = vmul.f32 %v7944_v53, %v489_v57  ;;  %v487_v62 = vsel %vm486_vm5, %v7942_v40, %v483_v56 }
 0x32b   :  { %v513_v0 = vmul.f32 %v487_v62, %v9115_v36 }
 0x32c   :  { %v491_v5 = vmul.f32 0.5, %v490_v61 }
 0x32d   :  { %v522_v7 = vmul.f32 %v8998_v15, %v513_v0 }
 0x32e   :  { %v492_v8 = vsub.f32 1.5, %v491_v5 }
 0x32f   :  { %v531_v9 = vadd.f32 %v9006_v23, %v522_v7 }
 0x330   :  { %v493_v18 = vmul.f32 %v7944_v53, %v492_v8 }
 0x331   :  { %7365 = vmatmul.msk.f32.gmra.mxu0 %vm332_vm0, %v531_v9 }
 0x332   :  { %v497_v21 = vsel %vm496_vm11, %v7944_v53, %v493_v18 }
 0x333   :  { %v514_v36 = vmul.f32 %v497_v21, %v9118_v39  ;;  %v533_v39 = vadd.f32 %v9006_v23, %v524_v32 }
 0x334   :  { %v768_v24 = vpop.permute.xlu1 %767 }
 0x335   :  { %7382 = vmatpush.xpose.msk.msra.mxu3 %vm614_vm14, %v768_v24  ;;  %v523_v26 = vmul.f32 %v8998_v15, %v514_v36 }
 0x337   :  { %v532_v29 = vadd.f32 %v9006_v23, %v523_v26 }
 0x339   :  { %7366 = vmatmul.msk.f32.gmra.mxu0 %vm332_vm0, %v532_v29  ;;  %7383 = vmatpush.xpose.msk.msra.mxu3 %vm614_vm14, %v9126_v50  ;;  %v1014_v50 = vpop.permute.xlu2 %1013 }
 0x33c   :  { %v762_v33 = vpop.permute.xlu1 %761  ;;  %7384 = vmatmul.msk.f32.vlgmr.msra.gmra.mxu3 %vm614_vm14, %v9132_v59  ;;  %v1010_v59 = vpop.permute.xlu0 %1009 }
 0x341   :  { %7367 = vmatmul.msk.f32.gmra.mxu0 %vm332_vm0, %v533_v39  ;;  %v1008_v23 = vpop.permute.xlu2 %1007 }
 0x344   :  { %v764_v28 = vpop.permute.xlu1 %763  ;;  %7385 = vmatmul.msk.f32.gmra.mxu3 %vm614_vm14, %v9136_v2 }
 0x34c   :  { %v1016_v30 = vpop.permute.xlu1 %1015  ;;  %7386 = vmatmul.msk.f32.gmra.mxu3 %vm614_vm14, %v762_v33 }
 0x34d   :  { %7402 = vmatpush.xpose.msk.msrb.mxu0 %vm614_vm14, %v1016_v30 }
 0x351   :  { %7403 = vmatpush.xpose.msk.msrb.mxu0 %vm614_vm14, %v1014_v50 }
 0x354   :  { %v1006_v15 = vpop.permute.xlu1 %1005  ;;  %7387 = vmatmul.msk.f32.gmra.mxu3 %vm614_vm14, %v764_v28 }
 0x355   :  { %7404 = vmatmul.msk.f32.vlgmr.msrb.gmra.mxu0 %vm614_vm14, %v1006_v15 }
 0x35c   :  { %v1012_v40 = vpop.permute.xlu1 %1011 }
 0x35d   :  { %7405 = vmatmul.msk.f32.gmra.mxu0 %vm614_vm14, %v1008_v23 }
 0x365   :  { %v662_v34 = vpop.xlane.xlu2 %661  ;;  %7406 = vmatmul.msk.f32.gmra.mxu0 %vm614_vm14, %v1010_v59 }
 0x366   :  { %v672_v2 = vsub.f32 %v9155_v11, %v662_v34  ;;  %v9215_v11 = vpop.f32.mrf.mxu0 }
 0x368   :  { %v676_v35 = vmul.f32 1.442695, %v672_v2 }
 0x36a   :  { %7945 = vpow2.f32 %v676_v35 }
 0x36d   :  { %7407 = vmatmul.msk.f32.gmra.mxu0 %vm614_vm14, %v1012_v40 }
 0x370   :  { %v7946_v41 = vpop.eup %7945 }
 0x371   :  { %v684_v42 = vsel %vm332_vm0, %v7946_v41, 0.0 }
 0x372   :  { %685 = vadd.xlane.f32.xlu1 %v684_v42 }
 0x375   :  { %v668_v24 = vpop.xlane.xlu0 %667 }
 0x376   :  { %v674_v26 = vsub.f32 %v9161_v17, %v668_v24 }
 0x37d   :  { %v671_v43 = vpop.xlane.xlu2 %670 }
 0x37e   :  { %v675_v32 = vsub.f32 %v9165_v19, %v671_v43 }
 0x380   :  { %v682_v39 = vmul.f32 1.442695, %v675_v32 }
 0x385   :  { %v7754_v49 = vpop.permute.xlu2 %7753 }
 0x386   :  { %v7755_v51 = vunpack.i.l.bf16 %v7754_v49  ;;  %v7756_v38 = vunpack.i.h.bf16 %v7754_v49 }
 0x387   :  { %v665_v14 = vpop.xlane.xlu1 %664 }
 0x388   :  { %740 = vmatpush.msra.mxu2 %v7755_v51  ;;  %v673_v18 = vsub.f32 %v9159_v16, %v665_v14  ;;  %v680_v16 = vmul.f32 1.442695, %v674_v26 }
 0x38a   :  { %741 = vmatpush.msra.mxu2 %v7756_v38  ;;  %v678_v36 = vmul.f32 1.442695, %v673_v18 }
 0x38b   :  { %7758 = vrot.lane.b32.xlu1 %v9211_v52, %s11703_s29 }
 0x38c   :  { %7947 = vpow2.f32 %v678_v36 }
 0x38d   :  { %7949 = vpow2.f32 %v680_v16 }
 0x38e   :  { %7951 = vpow2.f32 %v682_v39 }
 0x392   :  { %v9245_v31 = vpop.eup %7947 }
 0x393   :  { %v687_v33 = vsel %vm332_vm0, %v9245_v31, 0.0  ;;  %v9250_v28 = vpop.eup %7949 }
 0x394   :  { %v690_v17 = vsel %vm332_vm0, %v9250_v28, 0.0  ;;  %v9254_v50 = vpop.eup %7951 }
 0x395   :  { %v693_v19 = vsel %vm332_vm0, %v9254_v50, 0.0 }
 0x3ae   :  { %v9217_v53 = vpop.f32.mrf.mxu0 }
 0x3b6   :  { %v9221_v62 = vpop.f32.mrf.mxu0 }
 0x3be   :  { %v9227_v5 = vpop.f32.mrf.mxu0 }
 0x3bf   :  { %v806_v54 = vpop.f32.mrf.mxu3 }
 0x3c0   :  { %v818_v56 = vsel %vm332_vm0, %v806_v54, -inf }
 0x3c1   :  { %819 = vmax.xlane.f32.xlu2 %v818_v56 }
 0x3c7   :  { %v809_v57 = vpop.f32.mrf.mxu3 }
 0x3c8   :  { %v821_v61 = vsel %vm332_vm0, %v809_v57, -inf }
 0x3c9   :  { %822 = vmax.xlane.f32.xlu1 %v821_v61 }
 0x3cf   :  { %v9223_v0 = vpop.f32.mrf.mxu3 }
 0x3d0   :  { %v824_v1 = vsel %vm332_vm0, %v9223_v0, -inf }
 0x3d1   :  { %825 = vmax.xlane.f32.xlu0 %v824_v1 }
 0x3d2   :  { %v9233_v9 = vpop.f32.mrf.mxu0 }
 0x3d3   :  { %v1066_v21 = vsel %vm332_vm0, %v9233_v9, -inf }
 0x3d7   :  { %v9229_v7 = vpop.f32.mrf.mxu3 }
 0x3d8   :  { %v827_v8 = vsel %vm332_vm0, %v9229_v7, -inf }
 0x3d9   :  { %828 = vmax.xlane.f32.xlu0 %v827_v8 }
 0x3da   :  { %v9240_v25 = vpop.f32.mrf.mxu0 }
 0x3db   :  { %v1069_v29 = vsel %vm332_vm0, %v9240_v25, -inf }
 0x3e1   :  { %1067 = vmax.xlane.f32.xlu0 %v1066_v21 }
 0x3e2   :  { %7763 = vrot.lane.b32.xlu1 %v9176_v48, %s8742_s20  ;;  %v9258_v35 = vpop.f32.mrf.mxu0 }
 0x3e3   :  { %v1072_v40 = vsel %vm332_vm0, %v9258_v35, -inf }
 0x3e5   :  { %v686_v30 = vpop.xlane.xlu1 %685 }
 0x3e6   :  { %7953 = vrcp.f32 %v686_v30 }
 0x3e9   :  { %1070 = vmax.xlane.f32.xlu0 %v1069_v29 }
 0x3ea   :  { %v9263_v42 = vpop.f32.mrf.mxu0 }
 0x3eb   :  { %v1075_v43 = vsel %vm332_vm0, %v9263_v42, -inf }
 0x3ec   :  { %v7954_v23 = vpop.eup %7953 }
 0x3ed   :  { %v700_v2 = vmul.f32 %v7954_v23, %v7946_v41 }
 0x3f1   :  { %688 = vadd.xlane.f32.xlu0 %v687_v33 }
 0x3f9   :  { %691 = vadd.xlane.f32.xlu0 %v690_v17 }
 0x3fd   :  { %v7759_v15 = vpop.permute.xlu1 %7758 }
 0x3fe   :  { %v7760_v59 = vunpack.i.l.bf16 %v7759_v15  ;;  %v7761_v34 = vunpack.i.h.bf16 %v7759_v15 }
 0x400   :  { %742 = vmatpush.msra.mxu2 %v7760_v59 }
 0x401   :  { %694 = vadd.xlane.f32.xlu0 %v693_v19 }
 0x402   :  { %743 = vmatpush.msra.mxu2 %v7761_v34 }
 0x403   :  { %7376 = vmatmul.msk.f32.vlgmr.msra.gmra.mxu2 %vm332_vm0, %v700_v2 }
 0x409   :  { %1073 = vmax.xlane.f32.xlu0 %v1072_v40 }
 0x411   :  { %1076 = vmax.xlane.f32.xlu0 %v1075_v43 }
 0x434   :  { %v820_v49 = vpop.xlane.xlu2 %819 }
 0x435   :  { %v830_v51 = vsub.f32 %v806_v54, %v820_v49 }
 0x437   :  { %v834_v38 = vmul.f32 1.442695, %v830_v51 }
 0x439   :  { %7955 = vpow2.f32 %v834_v38 }
 0x43c   :  { %v823_v41 = vpop.xlane.xlu1 %822 }
 0x43d   :  { %v831_v56 = vsub.f32 %v809_v57, %v823_v41 }
 0x43f   :  { %v9267_v61 = vpop.eup %7955  ;;  %v836_v1 = vmul.f32 1.442695, %v831_v56 }
 0x440   :  { %v842_v8 = vsel %vm332_vm0, %v9267_v61, 0.0 }
 0x441   :  { %7957 = vpow2.f32 %v836_v1  ;;  %843 = vadd.xlane.f32.xlu2 %v842_v8 }
 0x444   :  { %v826_v14 = vpop.xlane.xlu0 %825 }
 0x445   :  { %v832_v18 = vsub.f32 %v9223_v0, %v826_v14 }
 0x447   :  { %v9272_v21 = vpop.eup %7957  ;;  %v838_v36 = vmul.f32 1.442695, %v832_v18 }
 0x448   :  { %v845_v54 = vsel %vm332_vm0, %v9272_v21, 0.0 }
 0x449   :  { %7959 = vpow2.f32 %v838_v36  ;;  %846 = vadd.xlane.f32.xlu0 %v845_v54 }
 0x44c   :  { %v829_v57 = vpop.xlane.xlu0 %828 }
 0x44d   :  { %v833_v24 = vsub.f32 %v9229_v7, %v829_v57 }
 0x44f   :  { %v9277_v26 = vpop.eup %7959  ;;  %v840_v29 = vmul.f32 1.442695, %v833_v24 }
 0x450   :  { %v848_v16 = vsel %vm332_vm0, %v9277_v26, 0.0 }
 0x451   :  { %7961 = vpow2.f32 %v840_v29  ;;  %849 = vadd.xlane.f32.xlu0 %v848_v16  ;;  %v9333_v29 = vadd.f32 %v9025_v27, %v9227_v5  ;;  %v9343_v5 = vadd.f32 %v9025_v27, %v9221_v62 }
 0x454   :  { %v7764_v0 = vpop.permute.xlu1 %7763  ;;  %v1068_v32 = vpop.xlane.xlu0 %1067 }
 0x455   :  { %v1078_v33 = vsub.f32 %v9233_v9, %v1068_v32  ;;  %v7765_v39 = vunpack.i.l.bf16 %v7764_v0  ;;  %v7766_v15 = vunpack.i.h.bf16 %v7764_v0 }
 0x457   :  { %v9282_v30 = vpop.eup %7961  ;;  %v1082_v17 = vmul.f32 1.442695, %v1078_v33  ;;  %898 = vmatpush.msrb.mxu2 %v7765_v39 }
 0x458   :  { %v851_v7 = vsel %vm332_vm0, %v9282_v30, 0.0 }
 0x459   :  { %7963 = vpow2.f32 %v1082_v17  ;;  %7768 = vrot.lane.b32.xlu2 %v9211_v52, %s8742_s20  ;;  %899 = vmatpush.msrb.mxu2 %v7766_v15  ;;  %v9362_v17 = vadd.f32 %v9025_v27, %v9217_v53 }
 0x45a   :  { %852 = vadd.xlane.f32.xlu0 %v851_v7 }
 0x45c   :  { %v1071_v23 = vpop.xlane.xlu0 %1070 }
 0x45d   :  { %v1079_v38 = vsub.f32 %v9240_v25, %v1071_v23 }
 0x45f   :  { %v9288_v59 = vpop.eup %7963  ;;  %v1084_v56 = vmul.f32 1.442695, %v1079_v38 }
 0x460   :  { %v1090_v9 = vsel %vm332_vm0, %v9288_v59, 0.0 }
 0x461   :  { %7773 = vrot.lane.b32.xlu2 %v9176_v48, %s8743_s13  ;;  %1091 = vadd.xlane.f32.xlu1 %v1090_v9 }
 0x464   :  { %v689_v19 = vpop.xlane.xlu0 %688 }
 0x465   :  { %7965 = vrcp.f32 %v689_v19 }
 0x46b   :  { %v7966_v34 = vpop.eup %7965 }
 0x46c   :  { %v692_v2 = vpop.xlane.xlu0 %691  ;;  %v701_v40 = vmul.f32 %v7966_v34, %v9245_v31 }
 0x46d   :  { %7967 = vrcp.f32 %v692_v2 }
 0x46e   :  { %7778 = vrot.lane.b32.xlu0 %v9211_v52, %s8743_s13  ;;  %7377 = vmatmul.msk.f32.gmra.mxu2 %vm332_vm0, %v701_v40 }
 0x473   :  { %v7968_v43 = vpop.eup %7967 }
 0x474   :  { %v695_v49 = vpop.xlane.xlu0 %694  ;;  %v702_v51 = vmul.f32 %v7968_v43, %v9250_v28 }
 0x475   :  { %7969 = vrcp.f32 %v695_v49 }
 0x476   :  { %7378 = vmatmul.msk.f32.gmra.mxu2 %vm332_vm0, %v702_v51  ;;  %7971 = vpow2.f32 %v1084_v56 }
 0x47b   :  { %v7970_v41 = vpop.eup %7969 }
 0x47c   :  { %v1074_v1 = vpop.xlane.xlu0 %1073  ;;  %v703_v31 = vmul.f32 %v7970_v41, %v9254_v50  ;;  %v9304_v18 = vpop.eup %7971 }
 0x47d   :  { %v1080_v28 = vsub.f32 %v9258_v35, %v1074_v1  ;;  %v1093_v25 = vsel %vm332_vm0, %v9304_v18, 0.0 }
 0x47e   :  { %7379 = vmatmul.msk.f32.gmra.mxu2 %vm332_vm0, %v703_v31 }
 0x47f   :  { %v1086_v54 = vmul.f32 1.442695, %v1080_v28 }
 0x484   :  { %v1077_v8 = vpop.xlane.xlu0 %1076 }
 0x485   :  { %v1081_v14 = vsub.f32 %v9263_v42, %v1077_v8 }
 0x486   :  { %v745_v38 = vpop.f32.mrf.mxu2 }
 0x487   :  { %v1088_v36 = vmul.f32 1.442695, %v1081_v14 }
 0x489   :  { %7973 = vpow2.f32 %v1088_v36 }
 0x48a   :  { %1094 = vadd.xlane.f32.xlu2 %v1093_v25  ;;  %7975 = vpow2.f32 %v1086_v54 }
 0x48f   :  { %v9309_v57 = vpop.eup %7973 }
 0x490   :  { %v1099_v50 = vsel %vm332_vm0, %v9309_v57, 0.0  ;;  %v9313_v24 = vpop.eup %7975 }
 0x491   :  { %1100 = vadd.xlane.f32.xlu1 %v1099_v50  ;;  %v1096_v42 = vsel %vm332_vm0, %v9313_v24, 0.0 }
 0x498   :  { %1097 = vadd.xlane.f32.xlu0 %v1096_v42 }
 0x4a2   :  { %1226 = vrot.lane.b32.xlu2 %v9043_v60, %s8744_s14 }
 0x4aa   :  { %1222 = vrot.lane.b32.xlu2 %v9033_v37, %s8744_s14  ;;  %961 = vrot.lane.b32.xlu1 %v8989_v46, %s8745_s5 }
 0x4ac   :  { %1224 = vrot.lane.b32.xlu0 %v9038_v58, %s8744_s14 }
 0x4b2   :  { %1212 = vrot.lane.b32.xlu2 %v9028_v55, %s8746_s9  ;;  %1220 = vrot.lane.b32.xlu1 %v9028_v55, %s8744_s14 }
 0x4b4   :  { %1216 = vrot.lane.b32.xlu0 %v9038_v58, %s8746_s9  ;;  %v844_v35 = vpop.xlane.xlu2 %843 }
 0x4b5   :  { %7977 = vrcp.f32 %v844_v35 }
 0x4ba   :  { %1218 = vrot.lane.b32.xlu2 %v9043_v60, %s8746_s9  ;;  %1214 = vrot.lane.b32.xlu1 %v9033_v37, %s8746_s9  ;;  %v9348_v37 = vadd.f32 %v9025_v27, %v9215_v11 }
 0x4bb   :  { %v7978_v16 = vpop.eup %7977 }
 0x4bc   :  { %1429 = vrot.lane.b32.xlu0 %v9333_v29, %s8737_s1  ;;  %v7769_v46 = vpop.permute.xlu2 %7768  ;;  %v847_v55 = vpop.xlane.xlu0 %846  ;;  %v858_v32 = vmul.f32 %v7978_v16, %v9267_v61 }
 0x4bd   :  { %v7770_v0 = vunpack.i.l.bf16 %v7769_v46  ;;  %7979 = vrcp.f32 %v847_v55  ;;  %v7771_v58 = vunpack.i.h.bf16 %v7769_v46 }
 0x4bf   :  { %900 = vmatpush.msrb.mxu2 %v7770_v0 }
 0x4c1   :  { %901 = vmatpush.msrb.mxu2 %v7771_v58 }
 0x4c2   :  { %1427 = vrot.lane.b32.xlu2 %v9343_v5, %s8737_s1  ;;  %7388 = vmatmul.msk.f32.vlgmr.msrb.gmra.mxu2 %vm332_vm0, %v858_v32 }
 0x4c3   :  { %7783 = vrot.lane.b32.xlu1 %v7782_v47, %s8745_s5  ;;  %v7980_v61 = vpop.eup %7979 }
 0x4c4   :  { %1423 = vrot.lane.b32.xlu0 %v9348_v37, %s8737_s1  ;;  %v7774_v60 = vpop.permute.xlu2 %7773  ;;  %v850_v62 = vpop.xlane.xlu0 %849  ;;  %v859_v11 = vmul.f32 %v7980_v61, %v9272_v21 }
 0x4c5   :  { %v7775_v33 = vunpack.i.l.bf16 %v7774_v60  ;;  %v7776_v39 = vunpack.i.h.bf16 %v7774_v60  ;;  %7981 = vrcp.f32 %v850_v62 }
 0x4c7   :  { %1146 = vmatpush.msra.mxu2 %v7775_v33 }
 0x4c9   :  { %1147 = vmatpush.msra.mxu2 %v7776_v39 }
 0x4ca   :  { %7788 = vrot.lane.b32.xlu2 %v9176_v48, %s8747_s17  ;;  %7389 = vmatmul.msk.f32.gmra.mxu2 %vm332_vm0, %v859_v11 }
 0x4cb   :  { %1425 = vrot.lane.b32.xlu1 %v9362_v17, %s8737_s1  ;;  %v7982_v44 = vpop.eup %7981 }
 0x4cc   :  { %7793 = vrot.lane.b32.xlu0 %v9211_v52, %s8747_s17  ;;  %v860_v47 = vmul.f32 %v7982_v44, %v9277_v26 }
 0x4cd   :  { %v853_v45 = vpop.xlane.xlu0 %852 }
 0x4ce   :  { %7983 = vrcp.f32 %v853_v45 }
 0x4d2   :  { %1585 = vrot.lane.b32.xlu2 %v9343_v5, %s8738_s0  ;;  %7390 = vmatmul.msk.f32.gmra.mxu2 %vm332_vm0, %v860_v47 }
 0x4d3   :  { %1583 = vrot.lane.b32.xlu1 %v9362_v17, %s8738_s0 }
 0x4d4   :  { %1587 = vrot.lane.b32.xlu0 %v9333_v29, %s8738_s0  ;;  %v7984_v27 = vpop.eup %7983  ;;  %v1092_v48 = vpop.xlane.xlu1 %1091 }
 0x4d5   :  { %v861_v52 = vmul.f32 %v7984_v27, %v9282_v30  ;;  %7985 = vrcp.f32 %v1092_v48 }
 0x4da   :  { %7391 = vmatmul.msk.f32.gmra.mxu2 %vm332_vm0, %v861_v52 }
 0x4db   :  { %v7986_v21 = vpop.eup %7985 }
 0x4dc   :  { %v1106_v7 = vmul.f32 %v7986_v21, %v9288_v59 }
 0x4e0   :  { %v7779_v53 = vpop.permute.xlu0 %7778 }
 0x4e1   :  { %v7780_v26 = vunpack.i.l.bf16 %v7779_v53  ;;  %v7781_v15 = vunpack.i.h.bf16 %v7779_v53 }
 0x4e3   :  { %1148 = vmatpush.msra.mxu2 %v7780_v26 }
 0x4e5   :  { %1149 = vmatpush.msra.mxu2 %v7781_v15 }
 0x4e6   :  { %7408 = vmatmul.msk.f32.vlgmr.msra.gmra.mxu2 %vm332_vm0, %v1106_v7 }
 0x4f1   :  { %v748_v8 = vpop.f32.mrf.mxu2 }
 0x4f9   :  { %v751_v36 = vpop.f32.mrf.mxu2 }
 0x4fd   :  { %v1095_v23 = vpop.xlane.xlu2 %1094 }
 0x4fe   :  { %7987 = vrcp.f32 %v1095_v23 }
 0x501   :  { %v754_v42 = vpop.f32.mrf.mxu2 }
 0x504   :  { %v7988_v9 = vpop.eup %7987  ;;  %v1101_v40 = vpop.xlane.xlu1 %1100 }
 0x505   :  { %v1227_v19 = vpop.permute.xlu2 %1226  ;;  %v1107_v34 = vmul.f32 %v7988_v9, %v9304_v18 }
 0x507   :  { %7409 = vmatmul.msk.f32.gmra.mxu2 %vm332_vm0, %v1107_v34 }
 0x50b   :  { %v1098_v30 = vpop.xlane.xlu0 %1097 }
 0x50c   :  { %7989 = vrcp.f32 %v1098_v30 }
 0x50d   :  { %v1223_v2 = vpop.permute.xlu2 %1222  ;;  %7991 = vrcp.f32 %v1101_v40 }
 0x512   :  { %v7990_v43 = vpop.eup %7989 }
 0x513   :  { %v1108_v49 = vmul.f32 %v7990_v43, %v9313_v24  ;;  %v7992_v51 = vpop.eup %7991 }
 0x514   :  { %v1109_v41 = vmul.f32 %v7992_v51, %v9309_v57 }
 0x515   :  { %7410 = vmatmul.msk.f32.gmra.mxu2 %vm332_vm0, %v1108_v49  ;;  %v1213_v59 = vpop.permute.xlu2 %1212 }
 0x51c   :  { %v9388_v56 = vpop.permute.xlu1 %961 }
 0x51d   :  { %7411 = vmatmul.msk.f32.gmra.mxu2 %vm332_vm0, %v1109_v41  ;;  %v1219_v1 = vpop.permute.xlu2 %1218  ;;  %991 = vmatpush.msrb.mxu3 %v9388_v56 }
 0x51e   :  { %v1225_v31 = vpop.permute.xlu0 %1224  ;;  %7396 = vmatmul.msk.f32.vlgmr.msrb.gmra.mxu3 %vm614_vm14, %v745_v38 }
 0x51f   :  { %7416 = vmatpush.xpose.msk.msra.mxu3 %vm614_vm14, %v1227_v19 }
 0x523   :  { %7417 = vmatpush.xpose.msk.msra.mxu3 %vm614_vm14, %v1225_v31 }
 0x524   :  { %v1221_v14 = vpop.permute.xlu1 %1220 }
 0x525   :  { %v1428_v18 = vpop.permute.xlu2 %1427 }
 0x526   :  { %v1217_v28 = vpop.permute.xlu0 %1216  ;;  %7397 = vmatmul.msk.f32.gmra.mxu3 %vm614_vm14, %v748_v8 }
 0x527   :  { %7418 = vmatpush.xpose.msk.msra.mxu3 %vm614_vm14, %v1223_v2 }
 0x52b   :  { %7419 = vmatpush.xpose.msk.msra.mxu3 %vm614_vm14, %v1221_v14 }
 0x52c   :  { %v1215_v25 = vpop.permute.xlu1 %1214 }
 0x52d   :  { %v7789_v54 = vpop.permute.xlu2 %7788 }
 0x52e   :  { %v7790_v57 = vunpack.i.l.bf16 %v7789_v54  ;;  %v1430_v50 = vpop.permute.xlu0 %1429  ;;  %7398 = vmatmul.msk.f32.gmra.mxu3 %vm614_vm14, %v751_v36  ;;  %v7791_v24 = vunpack.i.h.bf16 %v7789_v54 }
 0x530   :  { %1353 = vmatpush.msra.mxu0 %v7790_v57 }
 0x532   :  { %1354 = vmatpush.msra.mxu0 %v7791_v24 }
 0x535   :  { %v7784_v35 = vpop.permute.xlu1 %7783  ;;  %v1586_v33 = vpop.permute.xlu2 %1585 }
 0x536   :  { %v7786_v46 = vunpack.i.h.bf16 %v7784_v35  ;;  %v1424_v55 = vpop.permute.xlu0 %1423  ;;  %7399 = vmatmul.msk.f32.gmra.mxu3 %vm614_vm14, %v754_v42  ;;  %v7785_v16 = vunpack.i.l.bf16 %v7784_v35 }
 0x538   :  { %946 = vmatpush.msrb.mxu1 %v7785_v16 }
 0x53a   :  { %1194 = vmatpush.msra.mxu1 %v7786_v46 }
 0x53d   :  { %v1426_v60 = vpop.permute.xlu1 %1425 }
 0x53e   :  { %v7794_v0 = vpop.permute.xlu0 %7793  ;;  %7420 = vmatmul.msk.f32.vlgmr.msra.gmra.mxu3 %vm614_vm14, %v1213_v59 }
 0x53f   :  { %v7795_v58 = vunpack.i.l.bf16 %v7794_v0  ;;  %v7796_v32 = vunpack.i.h.bf16 %v7794_v0 }
 0x541   :  { %1355 = vmatpush.msra.mxu0 %v7795_v58 }
 0x543   :  { %1356 = vmatpush.msra.mxu0 %v7796_v32 }
 0x545   :  { %v903_v62 = vpop.f32.mrf.mxu2  ;;  %v1584_v11 = vpop.permute.xlu1 %1583 }
 0x546   :  { %v1588_v61 = vpop.permute.xlu0 %1587  ;;  %7392 = vmatmul.msk.f32.vlgmr.msrb.gmra.mxu1 %vm614_vm14, %v903_v62  ;;  %7421 = vmatmul.msk.f32.gmra.mxu3 %vm614_vm14, %v1215_v25 }
 0x547   :  { %7432 = vmatpush.xpose.msk.msrb.mxu1 %vm614_vm14, %v1430_v50  ;;  %7444 = vmatpush.xpose.msk.msrb.mxu0 %vm614_vm14, %v1588_v61 }
 0x54b   :  { %7433 = vmatpush.xpose.msk.msrb.mxu1 %vm614_vm14, %v1428_v18  ;;  %7445 = vmatpush.xpose.msk.msrb.mxu0 %vm614_vm14, %v1586_v33 }
 0x54d   :  { %v906_v39 = vpop.f32.mrf.mxu2 }
 0x54e   :  { %7393 = vmatmul.msk.f32.gmra.mxu1 %vm614_vm14, %v906_v39  ;;  %7422 = vmatmul.msk.f32.gmra.mxu3 %vm614_vm14, %v1217_v28 }
 0x54f   :  { %7434 = vmatpush.xpose.msk.msrb.mxu1 %vm614_vm14, %v1426_v60  ;;  %7446 = vmatpush.xpose.msk.msrb.mxu0 %vm614_vm14, %v1584_v11 }
 0x553   :  { %7435 = vmatpush.xpose.msk.msrb.mxu1 %vm614_vm14, %v1424_v55 }
 0x555   :  { %v909_v44 = vpop.f32.mrf.mxu2 }
 0x556   :  { %7394 = vmatmul.msk.f32.gmra.mxu1 %vm614_vm14, %v909_v44  ;;  %7423 = vmatmul.msk.f32.gmra.mxu3 %vm614_vm14, %v1219_v1 }
 0x55d   :  { %v912_v45 = vpop.f32.mrf.mxu2 }
 0x55e   :  { %7395 = vmatmul.msk.f32.gmra.mxu1 %vm614_vm14, %v912_v45 }
 0x569   :  { %v1151_v47 = vpop.f32.mrf.mxu2 }
 0x56a   :  { %7412 = vmatmul.msk.f32.vlgmr.msra.gmra.mxu1 %vm614_vm14, %v1151_v47 }
 0x56b   :  { %1758 = vmatpush.msra.mxu1 %v7785_v16 }
 0x58a   :  { %v1154_v27 = vpop.f32.mrf.mxu2 }
 0x58b   :  { %7413 = vmatmul.msk.f32.gmra.mxu1 %vm614_vm14, %v1154_v27  ;;  %v9495_v27 = vpack.i.bf16 %v9348_v37, %v9362_v17 }
 0x598   :  { %v1157_v48 = vpop.f32.mrf.mxu2 }
 0x599   :  { %7414 = vmatmul.msk.f32.gmra.mxu1 %vm614_vm14, %v1157_v48 }
 0x5a0   :  { %v1160_v52 = vpop.f32.mrf.mxu2 }
 0x5a1   :  { %7415 = vmatmul.msk.f32.gmra.mxu1 %vm614_vm14, %v1160_v52  ;;  %v9419_v53 = vpop.f32.mrf.mxu3 }
 0x5a9   :  { %7436 = vmatmul.msk.f32.vlgmr.msrb.gmra.mxu1 %vm614_vm14, %v9348_v37  ;;  %v9423_v21 = vpop.f32.mrf.mxu3 }
 0x5aa   :  { %1998 = vmatpush.msrb.mxu1 %v7786_v46 }
 0x5b1   :  { %7437 = vmatmul.msk.f32.gmra.mxu1 %vm614_vm14, %v9362_v17  ;;  %v9427_v26 = vpop.f32.mrf.mxu3 }
 0x5b9   :  { %7438 = vmatmul.msk.f32.gmra.mxu1 %vm614_vm14, %v9343_v5  ;;  %v9431_v15 = vpop.f32.mrf.mxu3 }
 0x5c1   :  { %7439 = vmatmul.msk.f32.gmra.mxu1 %vm614_vm14, %v9333_v29  ;;  %v1261_v7 = vpop.f32.mrf.mxu3 }
 0x5c2   :  { %v1273_v23 = vsel %vm332_vm0, %v1261_v7, -inf }
 0x5c3   :  { %1274 = vmax.xlane.f32.xlu2 %v1273_v23  ;;  %v9440_v2 = vpop.f32.mrf.mxu1 }
 0x5c9   :  { %v1264_v9 = vpop.f32.mrf.mxu3 }
 0x5ca   :  { %v1276_v19 = vsel %vm332_vm0, %v1264_v9, -inf }
 0x5cb   :  { %1277 = vmax.xlane.f32.xlu1 %v1276_v19  ;;  %v9448_v40 = vpop.f32.mrf.mxu1 }
 0x5d1   :  { %v1267_v34 = vpop.f32.mrf.mxu3 }
 0x5d2   :  { %v1279_v30 = vsel %vm332_vm0, %v1267_v34, -inf }
 0x5d3   :  { %1280 = vmax.xlane.f32.xlu0 %v1279_v30  ;;  %v9452_v43 = vpop.f32.mrf.mxu1 }
 0x5d9   :  { %v1270_v51 = vpop.f32.mrf.mxu3 }
 0x5da   :  { %v1282_v38 = vsel %vm332_vm0, %v1270_v51, -inf }
 0x5db   :  { %1573 = vrot.lane.b32.xlu2 %v9348_v37, %s8739_s22  ;;  %v9454_v49 = vpop.f32.mrf.mxu1 }
 0x5e3   :  { %1575 = vrot.lane.b32.xlu2 %v9362_v17, %s8739_s22 }
 0x5e4   :  { %1577 = vrot.lane.b32.xlu1 %v9343_v5, %s8739_s22 }
 0x5e7   :  { %1581 = vrot.lane.b32.xlu0 %v9348_v37, %s8738_s0  ;;  %v9456_v59 = vpop.f32.mrf.mxu1 }
 0x5ec   :  { %1827 = vrot.lane.b32.xlu1 %v9333_v29, %s8740_s23 }
 0x608   :  { %v9459_v41 = vpop.f32.mrf.mxu1 }
 0x60c   :  { %1283 = vmax.xlane.f32.xlu2 %v1282_v38 }
 0x616   :  { %v9461_v1 = vpop.f32.mrf.mxu1 }
 0x61e   :  { %v9463_v31 = vpop.f32.mrf.mxu1 }
 0x626   :  { %v1464_v8 = vpop.f32.mrf.mxu1 }
 0x627   :  { %v1476_v14 = vsel %vm332_vm0, %v1464_v8, -inf }
 0x628   :  { %1477 = vmax.xlane.f32.xlu0 %v1476_v14 }
 0x62e   :  { %v9466_v18 = vpop.f32.mrf.mxu1 }
 0x62f   :  { %v1479_v28 = vsel %vm332_vm0, %v9466_v18, -inf }
 0x630   :  { %1480 = vmax.xlane.f32.xlu2 %v1479_v28 }
 0x636   :  { %v1275_v36 = vpop.xlane.xlu2 %1274  ;;  %v9484_v61 = vpop.f32.mrf.mxu1 }
 0x637   :  { %v1285_v25 = vsub.f32 %v1261_v7, %v1275_v36 }
 0x639   :  { %v1289_v54 = vmul.f32 1.442695, %v1285_v25 }
 0x63b   :  { %7993 = vpow2.f32 %v1289_v54 }
 0x63c   :  { %1579 = vrot.lane.b32.xlu0 %v9333_v29, %s8739_s22 }
 0x63e   :  { %v1278_v57 = vpop.xlane.xlu1 %1277  ;;  %v1473_v33 = vpop.f32.mrf.mxu1 }
 0x63f   :  { %v1286_v50 = vsub.f32 %v1264_v9, %v1278_v57  ;;  %v9488_v39 = vpop.permute.xlu2 %1573  ;;  %v1485_v11 = vsel %vm332_vm0, %v1473_v33, -inf }
 0x641   :  { %v7994_v24 = vpop.eup %7993  ;;  %v1291_v42 = vmul.f32 1.442695, %v1286_v50 }
 0x642   :  { %v1297_v35 = vsel %vm332_vm0, %v7994_v24, 0.0 }
 0x643   :  { %1298 = vadd.xlane.f32.xlu1 %v1297_v35  ;;  %7995 = vpow2.f32 %v1291_v42 }
 0x644   :  { %1821 = vrot.lane.b32.xlu0 %v9348_v37, %s8740_s23 }
 0x646   :  { %v1281_v46 = vpop.xlane.xlu0 %1280 }
 0x647   :  { %v1287_v55 = vsub.f32 %v1267_v34, %v1281_v46  ;;  %v9491_v44 = vpop.permute.xlu2 %1575 }
 0x648   :  { %1823 = vrot.lane.b32.xlu2 %v9362_v17, %s8740_s23 }
 0x649   :  { %v1293_v16 = vmul.f32 1.442695, %v1287_v55  ;;  %v7996_v0 = vpop.eup %7995 }
 0x64a   :  { %v1300_v58 = vsel %vm332_vm0, %v7996_v0, 0.0 }
 0x64b   :  { %7997 = vpow2.f32 %v1293_v16  ;;  %1301 = vadd.xlane.f32.xlu1 %v1300_v58 }
 0x650   :  { %1813 = vrot.lane.b32.xlu2 %v9348_v37, %s8741_s4 }
 0x651   :  { %v7998_v32 = vpop.eup %7997 }
 0x652   :  { %v1303_v60 = vsel %vm332_vm0, %v7998_v32, 0.0 }
 0x653   :  { %1304 = vadd.xlane.f32.xlu1 %v1303_v60  ;;  %v9522_v60 = vpack.i.bf16 %v9343_v5, %v9333_v29 }
 0x656   :  { %v1578_v34 = vpop.permute.xlu1 %1577 }
 0x658   :  { %1817 = vrot.lane.b32.xlu2 %v9343_v5, %s8741_s4 }
 0x659   :  { %v1582_v62 = vpop.permute.xlu0 %1581 }
 0x65a   :  { %7447 = vmatpush.xpose.msk.msrb.mxu0 %vm614_vm14, %v1582_v62 }
 0x65e   :  { %v1828_v38 = vpop.permute.xlu1 %1827 }
 0x660   :  { %1819 = vrot.lane.b32.xlu2 %v9333_v29, %s8741_s4 }
 0x66e   :  { %1486 = vmax.xlane.f32.xlu0 %v1485_v11 }
 0x67f   :  { %v1284_v45 = vpop.xlane.xlu2 %1283 }
 0x680   :  { %v1288_v47 = vsub.f32 %v1270_v51, %v1284_v45 }
 0x682   :  { %v1295_v48 = vmul.f32 1.442695, %v1288_v47  ;;  %7803 = vrot.lane.b32.xlu0 %v9495_v27, %s11703_s29 }
 0x684   :  { %7999 = vpow2.f32 %v1295_v48 }
 0x68a   :  { %v8000_v52 = vpop.eup %7999 }
 0x68b   :  { %v1306_v7 = vsel %vm332_vm0, %v8000_v52, 0.0 }
 0x68c   :  { %1307 = vadd.xlane.f32.xlu1 %v1306_v7 }
 0x69b   :  { %v1478_v23 = vpop.xlane.xlu0 %1477 }
 0x69c   :  { %v1488_v9 = vsub.f32 %v1464_v8, %v1478_v23 }
 0x69e   :  { %v1492_v19 = vmul.f32 1.442695, %v1488_v9  ;;  %v8297_v9 = vld [vmem:[#allocation4 + $0x18] sm:$0xff] }
 0x6a0   :  { %8001 = vpow2.f32 %v1492_v19 }
 0x6a5   :  { %1825 = vrot.lane.b32.xlu1 %v9343_v5, %s8740_s23 }
 0x6a6   :  { %v9502_v30 = vpop.eup %8001 }
 0x6a7   :  { %v1500_v51 = vsel %vm332_vm0, %v9502_v30, 0.0 }
 0x6a8   :  { %1501 = vadd.xlane.f32.xlu2 %v1500_v51 }
 0x6ae   :  { %v1580_v42 = vpop.permute.xlu0 %1579 }
 0x6b6   :  { %v1299_v14 = vpop.xlane.xlu1 %1298  ;;  %v1822_v46 = vpop.permute.xlu0 %1821 }
 0x6b7   :  { %8003 = vrcp.f32 %v1299_v14 }
 0x6bd   :  { %v8004_v28 = vpop.eup %8003 }
 0x6be   :  { %v1313_v36 = vmul.f32 %v8004_v28, %v7994_v24  ;;  %v1302_v25 = vpop.xlane.xlu1 %1301  ;;  %v1482_v24 = vsel %vm332_vm0, %v9484_v61, -inf }
 0x6bf   :  { %8005 = vrcp.f32 %v1302_v25 }
 0x6c0   :  { %2030 = vrot.lane.b32.xlu2 %v9333_v29, %s8744_s14  ;;  %7424 = vmatmul.msk.f32.vlgmr.msra.gmra.mxu0 %vm332_vm0, %v1313_v36 }
 0x6c1   :  { %7464 = vmatpush.xpose.msk.msra.mxu0 %vm614_vm14, %v1828_v38 }
 0x6c5   :  { %v8006_v8 = vpop.eup %8005 }
 0x6c6   :  { %v1305_v54 = vpop.xlane.xlu1 %1304  ;;  %v1314_v57 = vmul.f32 %v8006_v8, %v7996_v0 }
 0x6c7   :  { %8007 = vrcp.f32 %v1305_v54 }
 0x6c8   :  { %2028 = vrot.lane.b32.xlu2 %v9343_v5, %s8744_s14  ;;  %7425 = vmatmul.msk.f32.gmra.mxu0 %vm332_vm0, %v1314_v57 }
 0x6cd   :  { %v8008_v50 = vpop.eup %8007 }
 0x6ce   :  { %v1315_v35 = vmul.f32 %v8008_v50, %v7998_v32 }
 0x6cf   :  { %1483 = vmax.xlane.f32.xlu1 %v1482_v24 }
 0x6d0   :  { %7426 = vmatmul.msk.f32.gmra.mxu0 %vm332_vm0, %v1315_v35 }
 0x6e1   :  { %v1487_v55 = vpop.xlane.xlu0 %1486 }
 0x6e2   :  { %v1491_v16 = vsub.f32 %v1473_v33, %v1487_v55  ;;  %v1481_v33 = vpop.xlane.xlu2 %1480 }
 0x6e3   :  { %v1489_v47 = vsub.f32 %v9466_v18, %v1481_v33 }
 0x6e4   :  { %v1498_v58 = vmul.f32 1.442695, %v1491_v16 }
 0x6e5   :  { %v1494_v48 = vmul.f32 1.442695, %v1489_v47 }
 0x6e6   :  { %8009 = vpow2.f32 %v1498_v58 }
 0x6e8   :  { %1815 = vrot.lane.b32.xlu1 %v9362_v17, %s8741_s4 }
 0x6ec   :  { %v9518_v0 = vpop.eup %8009 }
 0x6ed   :  { %v1509_v32 = vsel %vm332_vm0, %v9518_v0, 0.0 }
 0x6f0   :  { %7798 = vrot.lane.b32.xlu1 %v9522_v60, %s11703_s29 }
 0x6f1   :  { %1510 = vadd.xlane.f32.xlu2 %v1509_v32 }
 0x6ff   :  { %v1308_v62 = vpop.xlane.xlu1 %1307 }
 0x700   :  { %8011 = vrcp.f32 %v1308_v62 }
 0x701   :  { %8013 = vpow2.f32 %v1494_v48 }
 0x706   :  { %v8012_v11 = vpop.eup %8011 }
 0x707   :  { %v1316_v45 = vmul.f32 %v8012_v11, %v8000_v52  ;;  %v9536_v7 = vpop.eup %8013  ;;  %v1824_v52 = vpop.permute.xlu2 %1823 }
 0x708   :  { %v1503_v18 = vsel %vm332_vm0, %v9536_v7, 0.0 }
 0x709   :  { %7813 = vrot.lane.b32.xlu2 %v9495_v27, %s8742_s20  ;;  %7427 = vmatmul.msk.f32.gmra.mxu0 %vm332_vm0, %v1316_v45 }
 0x711   :  { %2026 = vrot.lane.b32.xlu2 %v9362_v17, %s8744_s14  ;;  %7448 = vmatmul.msk.f32.vlgmr.msrb.gmra.mxu0 %vm614_vm14, %v9488_v39  ;;  %v1814_v39 = vpop.permute.xlu2 %1813 }
 0x717   :  { %v1826_v23 = vpop.permute.xlu1 %1825 }
 0x718   :  { %7465 = vmatpush.xpose.msk.msra.mxu0 %vm614_vm14, %v1826_v23 }
 0x719   :  { %7449 = vmatmul.msk.f32.gmra.mxu0 %vm614_vm14, %v9491_v44  ;;  %v1818_v44 = vpop.permute.xlu2 %1817 }
 0x71a   :  { %1504 = vadd.xlane.f32.xlu1 %v1503_v18 }
 0x71c   :  { %7466 = vmatpush.xpose.msk.msra.mxu0 %vm614_vm14, %v1824_v52 }
 0x720   :  { %7467 = vmatpush.xpose.msk.msra.mxu0 %vm614_vm14, %v1822_v46 }
 0x721   :  { %7450 = vmatmul.msk.f32.gmra.mxu0 %vm614_vm14, %v1578_v34  ;;  %v1820_v19 = vpop.permute.xlu2 %1819 }
 0x729   :  { %7451 = vmatmul.msk.f32.gmra.mxu0 %vm614_vm14, %v1580_v42  ;;  %v1502_v28 = vpop.xlane.xlu2 %1501 }
 0x731   :  { %7468 = vmatmul.msk.f32.vlgmr.msra.gmra.mxu0 %vm614_vm14, %v1814_v39  ;;  %v2031_v25 = vpop.permute.xlu2 %2030 }
 0x733   :  { %1371 = vrot.lane.b32.xlu1 %v8297_v9, %s8745_s5 }
 0x739   :  { %v2029_v54 = vpop.permute.xlu2 %2028 }
 0x73b   :  { %2024 = vrot.lane.b32.xlu1 %v9348_v37, %s8744_s14 }
 0x73d   :  { %v1358_v16 = vpop.f32.mrf.mxu0 }
 0x742   :  { %v1484_v51 = vpop.xlane.xlu1 %1483 }
 0x743   :  { %v1490_v38 = vsub.f32 %v9484_v61, %v1484_v51  ;;  %v7804_v61 = vpop.permute.xlu0 %7803 }
 0x744   :  { %v7805_v35 = vunpack.i.l.bf16 %v7804_v61  ;;  %v7806_v55 = vunpack.i.h.bf16 %v7804_v61 }
 0x745   :  { %v1496_v14 = vmul.f32 1.442695, %v1490_v38  ;;  %v1361_v62 = vpop.f32.mrf.mxu0 }
 0x747   :  { %8015 = vpow2.f32 %v1496_v14 }
 0x748   :  { %8017 = vrcp.f32 %v1502_v28 }
 0x74d   :  { %v9552_v34 = vpop.eup %8015 }
 0x74e   :  { %v1506_v36 = vsel %vm332_vm0, %v9552_v34, 0.0  ;;  %v8018_v46 = vpop.eup %8017 }
 0x74f   :  { %1507 = vadd.xlane.f32.xlu0 %v1506_v36  ;;  %v1516_v58 = vmul.f32 %v8018_v46, %v9502_v30 }
 0x75a   :  { %v1816_v8 = vpop.permute.xlu1 %1815 }
 0x75b   :  { %7469 = vmatmul.msk.f32.gmra.mxu0 %vm614_vm14, %v1816_v8 }
 0x762   :  { %v7799_v57 = vpop.permute.xlu1 %7798 }
 0x763   :  { %v7800_v50 = vunpack.i.l.bf16 %v7799_v57  ;;  %7470 = vmatmul.msk.f32.gmra.mxu0 %vm614_vm14, %v1818_v44  ;;  %7808 = vrot.lane.b32.xlu0 %v9522_v60, %s8742_s20  ;;  %v7801_v42 = vunpack.i.h.bf16 %v7799_v57 }
 0x764   :  { %v1511_v24 = vpop.xlane.xlu2 %1510 }
 0x765   :  { %1556 = vmatpush.msrb.mxu3 %v7800_v50 }
 0x767   :  { %1557 = vmatpush.msrb.mxu3 %v7801_v42 }
 0x769   :  { %1558 = vmatpush.msrb.mxu3 %v7805_v35 }
 0x76b   :  { %7471 = vmatmul.msk.f32.gmra.mxu0 %vm614_vm14, %v1820_v19  ;;  %2016 = vrot.lane.b32.xlu0 %v9348_v37, %s8746_s9  ;;  %v1364_v37 = vpop.f32.mrf.mxu0 }
 0x76c   :  { %v7814_v32 = vpop.permute.xlu2 %7813  ;;  %1559 = vmatpush.msrb.mxu3 %v7806_v55 }
 0x76d   :  { %7440 = vmatmul.msk.f32.vlgmr.msrb.gmra.mxu3 %vm332_vm0, %v1516_v58  ;;  %v7815_v61 = vunpack.i.l.bf16 %v7814_v32 }
 0x76e   :  { %1799 = vmatpush.msra.mxu3 %v9388_v56 }
 0x770   :  { %7480 = vmatpush.xpose.msk.msrb.mxu3 %vm614_vm14, %v2031_v25 }
 0x773   :  { %2018 = vrot.lane.b32.xlu0 %v9362_v17, %s8746_s9 }
 0x774   :  { %7481 = vmatpush.xpose.msk.msrb.mxu3 %vm614_vm14, %v2029_v54  ;;  %v2027_v30 = vpop.permute.xlu2 %2026 }
 0x778   :  { %7482 = vmatpush.xpose.msk.msrb.mxu3 %vm614_vm14, %v2027_v30 }
 0x77b   :  { %2020 = vrot.lane.b32.xlu0 %v9343_v5, %s8746_s9 }
 0x786   :  { %v1367_v33 = vpop.f32.mrf.mxu0 }
 0x78d   :  { %v1505_v11 = vpop.xlane.xlu1 %1504 }
 0x78e   :  { %8019 = vrcp.f32 %v1505_v11  ;;  %v1622_v45 = vpop.f32.mrf.mxu0 }
 0x78f   :  { %v1634_v56 = vsel %vm332_vm0, %v1622_v45, -inf }
 0x790   :  { %1635 = vmax.xlane.f32.xlu2 %v1634_v56 }
 0x794   :  { %v8020_v47 = vpop.eup %8019 }
 0x795   :  { %v1517_v48 = vmul.f32 %v8020_v47, %v9536_v7 }
 0x796   :  { %v1625_v23 = vpop.f32.mrf.mxu0 }
 0x797   :  { %7441 = vmatmul.msk.f32.gmra.mxu3 %vm332_vm0, %v1517_v48  ;;  %v1637_v17 = vsel %vm332_vm0, %v1625_v23, -inf }
 0x798   :  { %1638 = vmax.xlane.f32.xlu2 %v1637_v17 }
 0x79e   :  { %v1628_v18 = vpop.f32.mrf.mxu0 }
 0x79f   :  { %v1640_v5 = vsel %vm332_vm0, %v1628_v18, -inf }
 0x7a0   :  { %1641 = vmax.xlane.f32.xlu2 %v1640_v5 }
 0x7a5   :  { %v9578_v52 = vpop.permute.xlu1 %1371 }
 0x7a6   :  { %1401 = vmatpush.msrb.mxu2 %v9578_v52  ;;  %v9581_v39 = vpop.f32.mrf.mxu0 }
 0x7a7   :  { %7428 = vmatmul.msk.f32.vlgmr.msrb.gmra.mxu2 %vm614_vm14, %v1358_v16  ;;  %v1643_v7 = vsel %vm332_vm0, %v9581_v39, -inf }
 0x7a8   :  { %1644 = vmax.xlane.f32.xlu2 %v1643_v7 }
 0x7ad   :  { %v2025_v9 = vpop.permute.xlu1 %2024 }
 0x7ae   :  { %v9586_v44 = vpop.f32.mrf.mxu0  ;;  %7483 = vmatpush.xpose.msk.msrb.mxu3 %vm614_vm14, %v2025_v9 }
 0x7af   :  { %7429 = vmatmul.msk.f32.gmra.mxu2 %vm614_vm14, %v1361_v62  ;;  %v1874_v19 = vsel %vm332_vm0, %v9586_v44, -inf }
 0x7b0   :  { %1875 = vmax.xlane.f32.xlu0 %v1874_v19 }
 0x7b7   :  { %7430 = vmatmul.msk.f32.gmra.mxu2 %vm614_vm14, %v1364_v37 }
 0x7bf   :  { %7431 = vmatmul.msk.f32.gmra.mxu2 %vm614_vm14, %v1367_v33 }
 0x7c2   :  { %v1508_v51 = vpop.xlane.xlu0 %1507 }
 0x7c3   :  { %8021 = vrcp.f32 %v1508_v51 }
 0x7c4   :  { %8023 = vrcp.f32 %v1511_v24  ;;  %v7816_v24 = vunpack.i.h.bf16 %v7814_v32 }
 0x7c9   :  { %v8022_v38 = vpop.eup %8021 }
 0x7ca   :  { %v1518_v14 = vmul.f32 %v8022_v38, %v9552_v34  ;;  %v8024_v28 = vpop.eup %8023 }
 0x7cb   :  { %v1519_v36 = vmul.f32 %v8024_v28, %v9518_v0 }
 0x7cc   :  { %7442 = vmatmul.msk.f32.gmra.mxu3 %vm332_vm0, %v1518_v14 }
 0x7d4   :  { %7443 = vmatmul.msk.f32.gmra.mxu3 %vm332_vm0, %v1519_v36 }
 0x7d5   :  { %v7809_v25 = vpop.permute.xlu0 %7808 }
 0x7d6   :  { %v7810_v8 = vunpack.i.l.bf16 %v7809_v25  ;;  %v7811_v54 = vunpack.i.h.bf16 %v7809_v25 }
 0x7d8   :  { %1714 = vmatpush.msra.mxu2 %v7810_v8  ;;  %v1865_v57 = vpop.f32.mrf.mxu0 }
 0x7d9   :  { %v1877_v50 = vsel %vm332_vm0, %v1865_v57, -inf }
 0x7da   :  { %1878 = vmax.xlane.f32.xlu1 %v1877_v50  ;;  %1715 = vmatpush.msra.mxu2 %v7811_v54 }
 0x7dc   :  { %1716 = vmatpush.msra.mxu2 %v7815_v61 }
 0x7dd   :  { %v2017_v32 = vpop.permute.xlu0 %2016 }
 0x7de   :  { %1717 = vmatpush.msra.mxu2 %v7816_v24 }
 0x7e0   :  { %v9599_v34 = vpop.f32.mrf.mxu0 }
 0x7e1   :  { %v1880_v0 = vsel %vm332_vm0, %v9599_v34, -inf }
 0x7e2   :  { %1881 = vmax.xlane.f32.xlu2 %v1880_v0 }
 0x7e5   :  { %v2019_v56 = vpop.permute.xlu0 %2018 }
 0x7e8   :  { %v9603_v42 = vpop.f32.mrf.mxu0 }
 0x7e9   :  { %v1883_v35 = vsel %vm332_vm0, %v9603_v42, -inf }
 0x7ea   :  { %1884 = vmax.xlane.f32.xlu0 %v1883_v35 }
 0x7ed   :  { %v2021_v7 = vpop.permute.xlu0 %2020 }
 0x7f0   :  { %v1561_v46 = vpop.f32.mrf.mxu3 }
 0x7f1   :  { %7460 = vmatmul.msk.f32.vlgmr.msra.gmra.mxu3 %vm614_vm14, %v1561_v46 }
 0x803   :  { %v1636_v55 = vpop.xlane.xlu2 %1635 }
 0x804   :  { %v1646_v16 = vsub.f32 %v1622_v45, %v1636_v55 }
 0x806   :  { %v1650_v58 = vmul.f32 1.442695, %v1646_v16 }
 0x808   :  { %8025 = vpow2.f32 %v1650_v58 }
 0x80b   :  { %v1639_v62 = vpop.xlane.xlu2 %1638 }
 0x80c   :  { %v1647_v30 = vsub.f32 %v1625_v23, %v1639_v62 }
 0x80e   :  { %v9608_v37 = vpop.eup %8025  ;;  %v1652_v33 = vmul.f32 1.442695, %v1647_v30 }
 0x80f   :  { %v1658_v11 = vsel %vm332_vm0, %v9608_v37, 0.0 }
 0x810   :  { %8027 = vpow2.f32 %v1652_v33  ;;  %1659 = vadd.xlane.f32.xlu0 %v1658_v11 }
 0x813   :  { %v1642_v47 = vpop.xlane.xlu2 %1641 }
 0x814   :  { %v1648_v48 = vsub.f32 %v1628_v18, %v1642_v47  ;;  %v8298_v47 = vld [vmem:[#allocation6] ss:$0 sm:$0xff] }
 0x816   :  { %v9612_v17 = vpop.eup %8027  ;;  %v1654_v5 = vmul.f32 1.442695, %v1648_v48 }
 0x817   :  { %v1661_v45 = vsel %vm332_vm0, %v9612_v17, 0.0 }
 0x818   :  { %8029 = vpow2.f32 %v1654_v5  ;;  %1662 = vadd.xlane.f32.xlu1 %v1661_v45 }
 0x81a   :  { %v1564_v23 = vpop.f32.mrf.mxu3 }
 0x81b   :  { %v1645_v9 = vpop.xlane.xlu2 %1644  ;;  %7461 = vmatmul.msk.f32.gmra.mxu3 %vm614_vm14, %v1564_v23 }
 0x81c   :  { %v1649_v19 = vsub.f32 %v9581_v39, %v1645_v9 }
 0x81e   :  { %v8030_v51 = vpop.eup %8029  ;;  %v1656_v38 = vmul.f32 1.442695, %v1649_v19 }
 0x81f   :  { %v1664_v14 = vsel %vm332_vm0, %v8030_v51, 0.0 }
 0x820   :  { %8031 = vpow2.f32 %v1656_v38  ;;  %1665 = vadd.xlane.f32.xlu2 %v1664_v14 }
 0x823   :  { %v1876_v18 = vpop.xlane.xlu0 %1875 }
 0x824   :  { %v1886_v28 = vsub.f32 %v9586_v44, %v1876_v18  ;;  %7823 = vrot.lane.b32.xlu0 %v9495_v27, %s8743_s13 }
 0x826   :  { %v8032_v36 = vpop.eup %8031  ;;  %v1890_v25 = vmul.f32 1.442695, %v1886_v28 }
 0x827   :  { %v1667_v8 = vsel %vm332_vm0, %v8032_v36, 0.0 }
 0x828   :  { %8033 = vpow2.f32 %v1890_v25  ;;  %1668 = vadd.xlane.f32.xlu1 %v1667_v8 }
 0x82e   :  { %v9623_v54 = vpop.eup %8033 }
 0x82f   :  { %v1898_v39 = vsel %vm332_vm0, %v9623_v54, 0.0 }
 0x830   :  { %1899 = vadd.xlane.f32.xlu2 %v1898_v39 }
 0x841   :  { %2022 = vrot.lane.b32.xlu1 %v9333_v29, %s8746_s9 }
 0x848   :  { %7818 = vrot.lane.b32.xlu2 %v9522_v60, %s8743_s13 }
 0x84d   :  { %v1879_v44 = vpop.xlane.xlu1 %1878 }
 0x84e   :  { %v1887_v50 = vsub.f32 %v1865_v57, %v1879_v44 }
 0x84f   :  { %v1567_v61 = vpop.f32.mrf.mxu3 }
 0x850   :  { %v1892_v24 = vmul.f32 1.442695, %v1887_v50  ;;  %7462 = vmatmul.msk.f32.gmra.mxu3 %vm614_vm14, %v1567_v61 }
 0x852   :  { %8035 = vpow2.f32 %v1892_v24 }
 0x855   :  { %v1882_v29 = vpop.xlane.xlu2 %1881 }
 0x856   :  { %v1888_v57 = vsub.f32 %v9599_v34, %v1882_v29 }
 0x857   :  { %v1570_v0 = vpop.f32.mrf.mxu3 }
 0x858   :  { %v9632_v35 = vpop.eup %8035  ;;  %7463 = vmatmul.msk.f32.gmra.mxu3 %vm614_vm14, %v1570_v0  ;;  %v1894_v62 = vmul.f32 1.442695, %v1888_v57 }
 0x859   :  { %v1901_v46 = vsel %vm332_vm0, %v9632_v35, 0.0 }
 0x85a   :  { %1902 = vadd.xlane.f32.xlu0 %v1901_v46 }
 0x85d   :  { %v1885_v55 = vpop.xlane.xlu0 %1884 }
 0x85e   :  { %v1889_v16 = vsub.f32 %v9603_v42, %v1885_v55  ;;  %v994_v55 = vadd.f32 %v9419_v53, %v9440_v2  ;;  %v1000_v53 = vadd.f32 %v9427_v26, %v9452_v43 }
 0x860   :  { %v1896_v58 = vmul.f32 1.442695, %v1889_v16  ;;  %7484 = vmatmul.msk.f32.vlgmr.msrb.gmra.mxu3 %vm614_vm14, %v2017_v32  ;;  %v1003_v16 = vadd.f32 %v9431_v15, %v9454_v49  ;;  %v1208_v57 = vadd.f32 %v9456_v59, %v994_v55 }
 0x862   :  { %8037 = vpow2.f32 %v1896_v58 }
 0x863   :  { %8039 = vpow2.f32 %v1894_v62  ;;  %v1211_v62 = vadd.f32 %v9463_v31, %v1003_v16 }
 0x868   :  { %v9640_v30 = vpop.eup %8037  ;;  %7485 = vmatmul.msk.f32.gmra.mxu3 %vm614_vm14, %v2019_v56 }
 0x869   :  { %v1907_v33 = vsel %vm332_vm0, %v9640_v30, 0.0  ;;  %v9645_v11 = vpop.eup %8039 }
 0x86a   :  { %v1904_v34 = vsel %vm332_vm0, %v9645_v11, 0.0 }
 0x86b   :  { %1908 = vadd.xlane.f32.xlu1 %v1907_v33 }
 0x86e   :  { %2227 = vrot.lane.b32.xlu0 %v8298_v47, %s8745_s5 }
 0x870   :  { %7486 = vmatmul.msk.f32.gmra.mxu3 %vm614_vm14, %v2021_v7 }
 0x871   :  { %1905 = vadd.xlane.f32.xlu2 %v1904_v34 }
 0x883   :  { %v1660_v42 = vpop.xlane.xlu0 %1659 }
 0x884   :  { %8041 = vrcp.f32 %v1660_v42 }
 0x88a   :  { %v8042_v32 = vpop.eup %8041 }
 0x88b   :  { %v1674_v56 = vmul.f32 %v8042_v32, %v9608_v37  ;;  %v1663_v48 = vpop.xlane.xlu1 %1662 }
 0x88c   :  { %8043 = vrcp.f32 %v1663_v48 }
 0x88d   :  { %7452 = vmatmul.msk.f32.vlgmr.msra.gmra.mxu2 %vm332_vm0, %v1674_v56 }
 0x892   :  { %v8044_v5 = vpop.eup %8043 }
 0x893   :  { %v1666_v45 = vpop.xlane.xlu2 %1665  ;;  %v1675_v23 = vmul.f32 %v8044_v5, %v9612_v17 }
 0x894   :  { %8045 = vrcp.f32 %v1666_v45 }
 0x895   :  { %7453 = vmatmul.msk.f32.gmra.mxu2 %vm332_vm0, %v1675_v23 }
 0x896   :  { %v7824_v25 = vpop.permute.xlu0 %7823 }
 0x897   :  { %v7825_v39 = vunpack.i.l.bf16 %v7824_v25  ;;  %v7826_v44 = vunpack.i.h.bf16 %v7824_v25 }
 0x89a   :  { %v8046_v7 = vpop.eup %8045 }
 0x89b   :  { %v1669_v9 = vpop.xlane.xlu1 %1668  ;;  %v1676_v19 = vmul.f32 %v8046_v7, %v8030_v51 }
 0x89c   :  { %8047 = vrcp.f32 %v1669_v9  ;;  %v9711_v9 = vpop.f32.mrf.mxu3 }
 0x89d   :  { %7454 = vmatmul.msk.f32.gmra.mxu2 %vm332_vm0, %v1676_v19 }
 0x8a2   :  { %v8048_v38 = vpop.eup %8047 }
 0x8a3   :  { %v1900_v14 = vpop.xlane.xlu2 %1899  ;;  %v1677_v37 = vmul.f32 %v8048_v38, %v8032_v36  ;;  %v1403_v36 = vpop.f32.mrf.mxu2 }
 0x8a4   :  { %8049 = vrcp.f32 %v1900_v14  ;;  %v1415_v33 = vadd.f32 %v1403_v36, %v1208_v57  ;;  %v9714_v19 = vpop.f32.mrf.mxu3 }
 0x8a5   :  { %7455 = vmatmul.msk.f32.gmra.mxu2 %vm332_vm0, %v1677_v37 }
 0x8a6   :  { %v2219_v2 = vadd.f32 %v1415_v33, %v8933_v6 }
 0x8aa   :  { %v8050_v17 = vpop.eup %8049 }
 0x8ab   :  { %v7819_v18 = vpop.permute.xlu2 %7818  ;;  %v1914_v51 = vmul.f32 %v8050_v17, %v9623_v54  ;;  %v1406_v61 = vpop.f32.mrf.mxu2  ;;  %v997_v54 = vadd.f32 %v9423_v21, %v9448_v40  ;;  %v1210_v21 = vadd.f32 %v9461_v1, %v1000_v53 }
 0x8ac   :  { %v7820_v28 = vunpack.i.l.bf16 %v7819_v18  ;;  %v7821_v8 = vunpack.i.h.bf16 %v7819_v18 }
 0x8ad   :  { %v1209_v58 = vadd.f32 %v9459_v41, %v997_v54 }
 0x8ae   :  { %1954 = vmatpush.msrb.mxu2 %v7820_v28 }
 0x8b0   :  { %1955 = vmatpush.msrb.mxu2 %v7821_v8 }
 0x8b2   :  { %1956 = vmatpush.msrb.mxu2 %v7825_v39 }
 0x8b3   :  { %v2023_v50 = vpop.permute.xlu1 %2022  ;;  %v1409_v0 = vpop.f32.mrf.mxu2 }
 0x8b4   :  { %1957 = vmatpush.msrb.mxu2 %v7826_v44  ;;  %7487 = vmatmul.msk.f32.gmra.mxu3 %vm614_vm14, %v2023_v50  ;;  %v1417_v59 = vadd.f32 %v1409_v0, %v1210_v21 }
 0x8b5   :  { %7472 = vmatmul.msk.f32.vlgmr.msrb.gmra.mxu2 %vm332_vm0, %v1914_v51 }
 0x8b6   :  { %2201 = vmatpush.msra.mxu2 %v9578_v52  ;;  %v2221_v43 = vadd.f32 %v1417_v59, %v8928_v3 }
 0x8bb   :  { %v1412_v52 = vpop.f32.mrf.mxu2 }
 0x8bc   :  { %v1418_v47 = vadd.f32 %v1412_v52, %v1211_v62 }
 0x8be   :  { %v2222_v40 = vadd.f32 %v1418_v47, %v8945_v12 }
 0x8cd   :  { %v1903_v24 = vpop.xlane.xlu0 %1902 }
 0x8ce   :  { %8051 = vrcp.f32 %v1903_v24 }
 0x8d4   :  { %v8052_v46 = vpop.eup %8051 }
 0x8d5   :  { %v1915_v29 = vmul.f32 %v8052_v46, %v9632_v35  ;;  %v1416_v35 = vadd.f32 %v1406_v61, %v1209_v58 }
 0x8d7   :  { %7473 = vmatmul.msk.f32.gmra.mxu2 %vm332_vm0, %v1915_v29  ;;  %v2220_v15 = vadd.f32 %v1416_v35, %v8947_v13 }
 0x8de   :  { %v1909_v42 = vpop.xlane.xlu1 %1908 }
 0x8e0   :  { %v9678_v49 = vpop.permute.xlu0 %2227 }
 0x8e1   :  { %v9681_v41 = vadd.f32 %v9678_v49, %v2220_v15  ;;  %v9684_v31 = vadd.f32 %v9678_v49, %v2219_v2  ;;  %v9687_v34 = vadd.f32 %v9678_v49, %v2222_v40  ;;  %v9697_v1 = vadd.f32 %v9678_v49, %v2221_v43  ;;  %v2432_v43 = vld [vmem:[#allocation9] sm:$0xff] }
 0x8e3   :  { %v2241_v26 = vsel %vm332_vm0, %v9681_v41, 0.0  ;;  %v2238_v6 = vsel %vm332_vm0, %v9684_v31, 0.0  ;;  %v2247_v12 = vsel %vm332_vm0, %v9687_v34, 0.0  ;;  %v2244_v56 = vsel %vm332_vm0, %v9697_v1, 0.0 }
 0x8e4   :  { %v1906_v13 = vpop.xlane.xlu2 %1905  ;;  %2242 = vadd.xlane.f32.xlu0 %v2241_v26  ;;  %2239 = vadd.xlane.f32.xlu2 %v2238_v6  ;;  %v2435_v6 = vld [vmem:[#allocation9 + $0x18] sm:$0xff] }
 0x8e5   :  { %8053 = vrcp.f32 %v1906_v13  ;;  %2248 = vadd.xlane.f32.xlu1 %v2247_v12  ;;  %v2434_v12 = vld [vmem:[#allocation9 + $0x10] sm:$0xff]  ;;  %v2433_v13 = vld [vmem:[#allocation9 + $0x8] sm:$0xff] }
 0x8e6   :  { %8055 = vrcp.f32 %v1909_v42 }
 0x8eb   :  { %v8054_v32 = vpop.eup %8053 }
 0x8ec   :  { %2245 = vadd.xlane.f32.xlu2 %v2244_v56  ;;  %v1916_v48 = vmul.f32 %v8054_v32, %v9645_v11  ;;  %v8056_v5 = vpop.eup %8055 }
 0x8ed   :  { %v1917_v45 = vmul.f32 %v8056_v5, %v9640_v30 }
 0x8ee   :  { %7474 = vmatmul.msk.f32.gmra.mxu2 %vm332_vm0, %v1916_v48 }
 0x8f6   :  { %7475 = vmatmul.msk.f32.gmra.mxu2 %vm332_vm0, %v1917_v45 }
 0x8f8   :  { %7828 = vrot.lane.b32.xlu0 %v9522_v60, %s8747_s17  ;;  %v9716_v60 = vpop.f32.mrf.mxu3 }
 0x900   :  { %v9718_v38 = vpop.f32.mrf.mxu3 }
 0x908   :  { %v9720_v18 = vpop.f32.mrf.mxu3 }
 0x909   :  { %v2077_v16 = vsel %vm332_vm0, %v9720_v18, -inf }
 0x910   :  { %v1719_v3 = vpop.f32.mrf.mxu2  ;;  %v9738_v46 = vpop.f32.mrf.mxu3 }
 0x911   :  { %7456 = vmatmul.msk.f32.vlgmr.msra.gmra.mxu1 %vm614_vm14, %v1719_v3  ;;  %v2080_v53 = vsel %vm332_vm0, %v9738_v46, -inf }
 0x912   :  { %2476 = vmatpush.msra.mxu1 %v2435_v6 }
 0x914   :  { %2477 = vmatpush.msra.mxu1 %v2434_v12 }
 0x916   :  { %2478 = vmatpush.msra.mxu1 %v2433_v13 }
 0x918   :  { %v1722_v23 = vpop.f32.mrf.mxu2  ;;  %v9754_v35 = vpop.f32.mrf.mxu3  ;;  %2479 = vmatpush.msra.mxu1 %v2432_v43 }
 0x919   :  { %7457 = vmatmul.msk.f32.gmra.mxu1 %vm614_vm14, %v1722_v23  ;;  %v2083_v40 = vsel %vm332_vm0, %v9754_v35, -inf }
 0x920   :  { %v1725_v7 = vpop.f32.mrf.mxu2 }
 0x921   :  { %7458 = vmatmul.msk.f32.gmra.mxu1 %vm614_vm14, %v1725_v7 }
 0x928   :  { %v1728_v11 = vpop.f32.mrf.mxu2 }
 0x929   :  { %7459 = vmatmul.msk.f32.gmra.mxu1 %vm614_vm14, %v1728_v11 }
 0x937   :  { %v9760_v15 = vpop.f32.mrf.mxu3 }
 0x938   :  { %v1959_v30 = vpop.f32.mrf.mxu2  ;;  %v2086_v59 = vsel %vm332_vm0, %v9760_v15, -inf }
 0x939   :  { %7476 = vmatmul.msk.f32.vlgmr.msrb.gmra.mxu1 %vm614_vm14, %v1959_v30 }
 0x957   :  { %v2243_v14 = vpop.xlane.xlu0 %2242  ;;  %v2240_v37 = vpop.xlane.xlu2 %2239 }
 0x958   :  { %v2263_v28 = vmul.f32 %v2243_v14, %v8953_v22  ;;  %v2262_v25 = vmul.f32 %v2240_v37, %v8953_v22  ;;  %v2249_v24 = vpop.xlane.xlu1 %2248 }
 0x959   :  { %v2265_v55 = vmul.f32 %v2249_v24, %v8953_v22 }
 0x95a   :  { %v9725_v8 = vsub.f32 %v9681_v41, %v2263_v28  ;;  %v9728_v17 = vsub.f32 %v9684_v31, %v2262_v25  ;;  %v1962_v39 = vpop.f32.mrf.mxu2 }
 0x95b   :  { %7477 = vmatmul.msk.f32.gmra.mxu1 %vm614_vm14, %v1962_v39  ;;  %v9750_v57 = vsub.f32 %v9687_v34, %v2265_v55 }
 0x95c   :  { %v2278_v44 = vmul.f32 %v9728_v17, %v9728_v17  ;;  %v2279_v51 = vmul.f32 %v9725_v8, %v9725_v8 }
 0x95d   :  { %v2281_v33 = vmul.f32 %v9750_v57, %v9750_v57 }
 0x95e   :  { %v2286_v50 = vsel %vm332_vm0, %v2278_v44, 0.0  ;;  %v2289_v36 = vsel %vm332_vm0, %v2279_v51, 0.0 }
 0x95f   :  { %2287 = vadd.xlane.f32.xlu2 %v2286_v50  ;;  %v2246_v61 = vpop.xlane.xlu2 %2245  ;;  %2290 = vadd.xlane.f32.xlu1 %v2289_v36  ;;  %v2295_v21 = vsel %vm332_vm0, %v2281_v33, 0.0 }
 0x960   :  { %v2264_v0 = vmul.f32 %v2246_v61, %v8953_v22 }
 0x962   :  { %v9741_v29 = vsub.f32 %v9697_v1, %v2264_v0 }
 0x964   :  { %v2280_v54 = vmul.f32 %v9741_v29, %v9741_v29 }
 0x966   :  { %v2292_v52 = vsel %vm332_vm0, %v2280_v54, 0.0 }
 0x967   :  { %2078 = vmax.xlane.f32.xlu2 %v2077_v16  ;;  %2293 = vadd.xlane.f32.xlu1 %v2292_v52 }
 0x96a   :  { %v7829_v58 = vpop.permute.xlu0 %7828 }
 0x96b   :  { %v7830_v62 = vunpack.i.l.bf16 %v7829_v58  ;;  %v7831_v47 = vunpack.i.h.bf16 %v7829_v58 }
 0x96d   :  { %2157 = vmatpush.msrb.mxu0 %v7830_v62 }
 0x96f   :  { %2158 = vmatpush.msrb.mxu0 %v7831_v47  ;;  %2081 = vmax.xlane.f32.xlu2 %v2080_v53  ;;  %v8299_v47 = vld [vmem:[#allocation7] sm:$0xf] }
 0x970   :  { %2296 = vadd.xlane.f32.xlu1 %v2295_v21  ;;  %v9779_v53 = vperm.slane %v8299_v47, 2 }
 0x971   :  { %v1965_v2 = vpop.f32.mrf.mxu2 }
 0x972   :  { %7478 = vmatmul.msk.f32.gmra.mxu1 %vm614_vm14, %v1965_v2 }
 0x977   :  { %2084 = vmax.xlane.f32.xlu2 %v2083_v40  ;;  %v9781_v40 = vperm.slane %v8299_v47, 3 }
 0x978   :  { %2087 = vmax.xlane.f32.xlu1 %v2086_v59 }
 0x979   :  { %v1968_v26 = vpop.f32.mrf.mxu2 }
 0x97a   :  { %7479 = vmatmul.msk.f32.gmra.mxu1 %vm614_vm14, %v1968_v26 }
 0x991   :  { %7833 = vrot.lane.b32.xlu1 %v9495_v27, %s8747_s17 }
 0x9d2   :  { %v2288_v42 = vpop.xlane.xlu2 %2287  ;;  %v2291_v32 = vpop.xlane.xlu1 %2290 }
 0x9d3   :  { %v2310_v56 = vmul.f32 %v2288_v42, %v8953_v22  ;;  %v2311_v48 = vmul.f32 %v2291_v32, %v8953_v22 }
 0x9d5   :  { %v2318_v5 = vadd.f32 1e-05, %v2310_v56  ;;  %v2319_v45 = vadd.f32 1e-05, %v2311_v48 }
 0x9d7   :  { %8057 = vrsqrt.f32 %v2318_v5  ;;  %vm2332_vm13 = vweird.f32 %v2318_v5  ;;  %vm2342_vm2 = vweird.f32 %v2319_v45 }
 0x9d8   :  { %8059 = vrsqrt.f32 %v2319_v45 }
 0x9da   :  { %v2079_v3 = vpop.xlane.xlu2 %2078  ;;  %v2294_v27 = vpop.xlane.xlu1 %2293 }
 0x9db   :  { %v2089_v23 = vsub.f32 %v9720_v18, %v2079_v3  ;;  %v2312_v7 = vmul.f32 %v2294_v27, %v8953_v22 }
 0x9dd   :  { %v8058_v11 = vpop.eup %8057  ;;  %v2093_v30 = vmul.f32 1.442695, %v2089_v23  ;;  %v2320_v14 = vadd.f32 1e-05, %v2312_v7 }
 0x9de   :  { %v8060_v37 = vpop.eup %8059  ;;  %v2327_v28 = vmul.f32 %v8058_v11, %v2318_v5  ;;  %vm2333_vm12 = vweird.f32 %v8058_v11 }
 0x9df   :  { %v2337_v25 = vmul.f32 %v8060_v37, %v2319_v45  ;;  %8061 = vpow2.f32 %v2093_v30  ;;  %vm2343_vm15 = vweird.f32 %v8060_v37  ;;  %vm2334_vm1 = vmor %vm2332_vm13, %vm2333_vm12  ;;  %vm2352_vm5 = vweird.f32 %v2320_v14 }
 0x9e0   :  { %v2328_v39 = vmul.f32 %v8058_v11, %v2327_v28  ;;  %8063 = vrsqrt.f32 %v2320_v14  ;;  %vm2344_vm3 = vmor %vm2342_vm2, %vm2343_vm15  ;;  %vm2869_vm2 = vcmask 523264  }
 0x9e1   :  { %v2338_v44 = vmul.f32 %v8060_v37, %v2337_v25 }
 0x9e2   :  { %v2329_v51 = vmul.f32 0.5, %v2328_v39  ;;  %v2082_v50 = vpop.xlane.xlu2 %2081 }
 0x9e3   :  { %v2339_v36 = vmul.f32 0.5, %v2338_v44  ;;  %v2090_v61 = vsub.f32 %v9738_v46, %v2082_v50  ;;  %v2297_v24 = vpop.xlane.xlu1 %2296 }
 0x9e4   :  { %v2330_v0 = vsub.f32 1.5, %v2329_v51  ;;  %v2313_v18 = vmul.f32 %v2297_v24, %v8953_v22 }
 0x9e5   :  { %v9775_v55 = vpop.eup %8061  ;;  %v2340_v54 = vsub.f32 1.5, %v2339_v36  ;;  %v2095_v16 = vmul.f32 1.442695, %v2090_v61 }
 0x9e6   :  { %v8064_v52 = vpop.eup %8063  ;;  %v2331_v58 = vmul.f32 %v8058_v11, %v2330_v0  ;;  %v2321_v62 = vadd.f32 1e-05, %v2313_v18  ;;  %v2101_v33 = vsel %vm332_vm0, %v9775_v55, 0.0 }
 0x9e7   :  { %v2341_v46 = vmul.f32 %v8060_v37, %v2340_v54  ;;  %v2347_v21 = vmul.f32 %v8064_v52, %v2320_v14  ;;  %8065 = vpow2.f32 %v2095_v16  ;;  %2102 = vadd.xlane.f32.xlu2 %v2101_v33  ;;  %vm2353_vm4 = vweird.f32 %v8064_v52 }
 0x9e8   :  { %v2335_v2 = vsel %vm2334_vm1, %v8058_v11, %v2331_v58  ;;  %8067 = vrsqrt.f32 %v2321_v62  ;;  %vm2354_vm6 = vmor %vm2352_vm5, %vm2353_vm4  ;;  %vm2362_vm8 = vweird.f32 %v2321_v62 }
 0x9e9   :  { %v2406_v59 = vmul.f32 %v2335_v2, %v9728_v17  ;;  %v2348_v26 = vmul.f32 %v8064_v52, %v2347_v21  ;;  %v2345_v6 = vsel %vm2344_vm3, %v8060_v37, %v2341_v46 }
 0x9ea   :  { %v2085_v12 = vpop.xlane.xlu2 %2084  ;;  %v2407_v45 = vmul.f32 %v2345_v6, %v9725_v8 }
 0x9eb   :  { %v2415_v13 = vmul.f32 %v9779_v53, %v2406_v59  ;;  %v2349_v43 = vmul.f32 0.5, %v2348_v26  ;;  %v2091_v42 = vsub.f32 %v9754_v35, %v2085_v12  ;;  %v2088_v32 = vpop.xlane.xlu1 %2087 }
 0x9ec   :  { %v2092_v56 = vsub.f32 %v9760_v15, %v2088_v32  ;;  %v2416_v8 = vmul.f32 %v9779_v53, %v2407_v45 }
 0x9ed   :  { %v9788_v48 = vpop.eup %8065  ;;  %v2424_v5 = vadd.f32 %v9781_v40, %v2415_v13  ;;  %v2350_v17 = vsub.f32 1.5, %v2349_v43  ;;  %v2097_v3 = vmul.f32 1.442695, %v2091_v42  ;;  %v9829_v42 = vld [vmem:[#allocation10] ss:$0 sm:$0xff] }
 0x9ee   :  { %v8068_v27 = vpop.eup %8067  ;;  %v2099_v23 = vmul.f32 1.442695, %v2092_v56  ;;  %v2104_v7 = vsel %vm332_vm0, %v9788_v48, 0.0  ;;  %v2425_v44 = vadd.f32 %v9781_v40, %v2416_v8 }
 0x9ef   :  { %v2351_v11 = vmul.f32 %v8064_v52, %v2350_v17  ;;  %v2357_v30 = vmul.f32 %v8068_v27, %v2321_v62  ;;  %8069 = vpow2.f32 %v2097_v3  ;;  %7496 = vmatmul.msk.f32.vlgmr.msra.gmra.mxu1 %vm332_vm0, %v2424_v5  ;;  %2105 = vadd.xlane.f32.xlu2 %v2104_v7  ;;  %vm2363_vm7 = vweird.f32 %v8068_v27  ;;  %v9811_v62 = vpop.f32.mrf.mxu1 }
 0x9f0   :  { %8071 = vpow2.f32 %v2099_v23  ;;  %vm2364_vm9 = vmor %vm2362_vm8, %vm2363_vm7 }
 0x9f1   :  { %v2358_v35 = vmul.f32 %v8068_v27, %v2357_v30  ;;  %v2355_v15 = vsel %vm2354_vm6, %v8064_v52, %v2351_v11 }
 0x9f2   :  { %v2408_v25 = vmul.f32 %v2355_v15, %v9741_v29 }
 0x9f3   :  { %v2359_v37 = vmul.f32 0.5, %v2358_v35 }
 0x9f4   :  { %v2417_v29 = vmul.f32 %v9779_v53, %v2408_v25 }
 0x9f5   :  { %v8070_v28 = vpop.eup %8069  ;;  %v2360_v39 = vsub.f32 1.5, %v2359_v37 }
 0x9f6   :  { %v9798_v51 = vpop.eup %8071  ;;  %v2107_v50 = vsel %vm332_vm0, %v8070_v28, 0.0  ;;  %v2426_v0 = vadd.f32 %v9781_v40, %v2417_v29 }
 0x9f7   :  { %v2361_v36 = vmul.f32 %v8068_v27, %v2360_v39  ;;  %2108 = vadd.xlane.f32.xlu2 %v2107_v50  ;;  %7497 = vmatmul.msk.f32.gmra.mxu1 %vm332_vm0, %v2425_v44  ;;  %v2110_v14 = vsel %vm332_vm0, %v9798_v51, 0.0  ;;  %v9813_v33 = vpop.f32.mrf.mxu1 }
 0x9f8   :  { %2111 = vadd.xlane.f32.xlu0 %v2110_v14  ;;  %v2863_v14 = vld [vmem:[%s11675_s7 + $0x30] sm:$0xff] }
 0x9f9   :  { %v2365_v61 = vsel %vm2364_vm9, %v8068_v27, %v2361_v36 }
 0x9fa   :  { %v2409_v24 = vmul.f32 %v2365_v61, %v9750_v57 }
 0x9fc   :  { %v2418_v18 = vmul.f32 %v9779_v53, %v2409_v24 }
 0x9fe   :  { %v2427_v52 = vadd.f32 %v9781_v40, %v2418_v18  ;;  %v2862_v18 = vld [vmem:[%s11675_s7 + $0x28] sm:$0xff] }
 0x9ff   :  { %7498 = vmatmul.msk.f32.gmra.mxu1 %vm332_vm0, %v2426_v0  ;;  %v9815_v57 = vpop.f32.mrf.mxu1 }
 0xa03   :  { %v7834_v54 = vpop.permute.xlu1 %7833 }
 0xa04   :  { %v7835_v16 = vunpack.i.l.bf16 %v7834_v54  ;;  %v7836_v58 = vunpack.i.h.bf16 %v7834_v54 }
 0xa06   :  { %2159 = vmatpush.msrb.mxu0 %v7835_v16 }
 0xa07   :  { %7499 = vmatmul.msk.f32.gmra.mxu1 %vm332_vm0, %v2427_v52  ;;  %v9817_v47 = vpop.f32.mrf.mxu1 }
 0xa08   :  { %2160 = vmatpush.msrb.mxu0 %v7836_v58 }
 0xa0f   :  { %v9819_v46 = vpop.f32.mrf.mxu1 }
 0xa17   :  { %v9821_v21 = vpop.f32.mrf.mxu1 }
 0xa1f   :  { %v9823_v2 = vpop.f32.mrf.mxu1 }
 0xa27   :  { %v9826_v13 = vpop.f32.mrf.mxu1 }
 0xa5a   :  { %v2103_v59 = vpop.xlane.xlu2 %2102 }
 0xa5b   :  { %8073 = vrcp.f32 %v2103_v59  ;;  %v2861_v59 = vld [vmem:[%s11675_s7 + $0x20] sm:$0xff] }
 0xa61   :  { %v8074_v26 = vpop.eup %8073 }
 0xa62   :  { %v2117_v6 = vmul.f32 %v8074_v26, %v9775_v55  ;;  %v2106_v12 = vpop.xlane.xlu2 %2105 }
 0xa63   :  { %8075 = vrcp.f32 %v2106_v12 }
 0xa64   :  { %7488 = vmatmul.msk.f32.vlgmr.msrb.gmra.mxu0 %vm332_vm0, %v2117_v6 }
 0xa69   :  { %v8076_v43 = vpop.eup %8075 }
 0xa6a   :  { %v2109_v32 = vpop.xlane.xlu2 %2108  ;;  %v2118_v56 = vmul.f32 %v8076_v43, %v9788_v48 }
 0xa6b   :  { %8077 = vrcp.f32 %v2109_v32  ;;  %v2112_v55 = vpop.xlane.xlu0 %2111 }
 0xa6c   :  { %7489 = vmatmul.msk.f32.gmra.mxu0 %vm332_vm0, %v2118_v56  ;;  %v2481_v5 = vpop.f32.mrf.mxu1  ;;  %8079 = vrcp.f32 %v2112_v55  ;;  %v2860_v56 = vld [vmem:[%s11675_s7 + $0x18] sm:$0xff] }
 0xa6d   :  { %v9834_v45 = vadd.f32 %v9829_v42, %v2481_v5 }
 0xa6f   :  { %v9837_v17 = vmul.f32 0.70710677, %v9834_v45 }
 0xa71   :  { %v8078_v3 = vpop.eup %8077  ;;  %v2521_v27 = vmul.f32 %v9837_v17, %v9837_v17 }
 0xa72   :  { %v2119_v23 = vmul.f32 %v8078_v3, %v8070_v28  ;;  %v8080_v8 = vpop.eup %8079  ;;  %v2864_v28 = vld [vmem:[%s11675_s7 + $0x38] sm:$0xff] }
 0xa73   :  { %v9841_v7 = vmin.f32 %v2521_v27, 16.0  ;;  %2902 = vmatpush.msra.mxu3 %v2864_v28  ;;  %v2120_v36 = vmul.f32 %v8080_v8, %v9798_v51 }
 0xa74   :  { %7490 = vmatmul.msk.f32.gmra.mxu0 %vm332_vm0, %v2119_v23  ;;  %v2484_v48 = vpop.f32.mrf.mxu1  ;;  %v2859_v23 = vld [vmem:[%s11675_s7 + $0x10] sm:$0xff] }
 0xa75   :  { %v2523_v11 = vmul.f32 2.1237322e-06, %v9841_v7  ;;  %v2534_v30 = vmul.f32 3.8918573e-05, %v9841_v7  ;;  %v9847_v35 = vadd.f32 %v9829_v42, %v2484_v48  ;;  %2903 = vmatpush.msra.mxu3 %v2863_v14  ;;  %v2857_v14 = vld [vmem:[%s11675_s7] sm:$0xff] }
 0xa77   :  { %v2524_v15 = vadd.f32 0.00028619796, %v2523_v11  ;;  %v2535_v37 = vadd.f32 0.001143296, %v2534_v30  ;;  %v9850_v25 = vmul.f32 0.70710677, %v9847_v35  ;;  %2904 = vmatpush.msra.mxu3 %v2862_v18 }
 0xa79   :  { %v2525_v39 = vmul.f32 %v2524_v15, %v9841_v7  ;;  %v2536_v44 = vmul.f32 %v2535_v37, %v9841_v7  ;;  %v2561_v50 = vmul.f32 %v9850_v25, %v9850_v25  ;;  %2905 = vmatpush.msra.mxu3 %v2861_v59  ;;  %v2858_v15 = vld [vmem:[%s11675_s7 + $0x8] sm:$0xff] }
 0xa7b   :  { %v2526_v29 = vadd.f32 0.0036580483, %v2525_v39  ;;  %v2537_v61 = vadd.f32 0.014752088, %v2536_v44  ;;  %v9863_v24 = vmin.f32 %v2561_v50, 16.0  ;;  %2906 = vmatpush.msra.mxu3 %v2860_v56 }
 0xa7c   :  { %7491 = vmatmul.msk.f32.gmra.mxu0 %vm332_vm0, %v2120_v36  ;;  %v2487_v0 = vpop.f32.mrf.mxu1 }
 0xa7d   :  { %v2538_v54 = vmul.f32 %v2537_v61, %v9841_v7  ;;  %v9871_v51 = vadd.f32 %v9829_v42, %v2487_v0  ;;  %v2527_v16 = vmul.f32 %v2526_v29, %v9841_v7  ;;  %v2563_v52 = vmul.f32 2.1237322e-06, %v9863_v24  ;;  %2907 = vmatpush.msra.mxu3 %v2859_v23 }
 0xa7e   :  { %v2574_v58 = vmul.f32 3.8918573e-05, %v9863_v24 }
 0xa7f   :  { %v2539_v26 = vadd.f32 0.112945676, %v2538_v54  ;;  %v2564_v6 = vadd.f32 0.00028619796, %v2563_v52  ;;  %v9880_v43 = vmul.f32 0.70710677, %v9871_v51  ;;  %2908 = vmatpush.msra.mxu3 %v2858_v15 }
 0xa80   :  { %v2575_v12 = vadd.f32 0.001143296, %v2574_v58  ;;  %v2528_v5 = vadd.f32 0.05243302, %v2527_v16 }
 0xa81   :  { %v2540_v32 = vmul.f32 %v2539_v26, %v9841_v7  ;;  %v2565_v55 = vmul.f32 %v2564_v6, %v9863_v24  ;;  %v2601_v27 = vmul.f32 %v9880_v43, %v9880_v43  ;;  %2909 = vmatpush.msra.mxu3 %v2857_v14 }
 0xa82   :  { %v2576_v3 = vmul.f32 %v2575_v12, %v9863_v24  ;;  %v2529_v44 = vmul.f32 %v2528_v5, %v9841_v7 }
 0xa83   :  { %v2541_v48 = vadd.f32 0.4994258, %v2540_v32  ;;  %v9893_v30 = vmin.f32 %v2601_v27, 16.0  ;;  %v2566_v28 = vadd.f32 0.0036580483, %v2565_v55 }
 0xa84   :  { %v2577_v11 = vadd.f32 0.014752088, %v2576_v3  ;;  %v2490_v8 = vpop.f32.mrf.mxu1  ;;  %v2530_v52 = vadd.f32 0.18741608, %v2529_v44 }
 0xa85   :  { %v2542_v37 = vmul.f32 %v2541_v48, %v9841_v7  ;;  %v9900_v39 = vadd.f32 %v9829_v42, %v2490_v8  ;;  %v2603_v36 = vmul.f32 2.1237322e-06, %v9893_v30  ;;  %v2614_v61 = vmul.f32 3.8918573e-05, %v9893_v30 }
 0xa86   :  { %v2578_v50 = vmul.f32 %v2577_v11, %v9863_v24  ;;  %v2567_v16 = vmul.f32 %v2566_v28, %v9863_v24  ;;  %v2531_v55 = vmul.f32 %v2530_v52, %v9841_v7 }
 0xa87   :  { %v2543_v29 = vadd.f32 1.0, %v2542_v37  ;;  %v9910_v0 = vmul.f32 0.70710677, %v9900_v39  ;;  %v2604_v54 = vadd.f32 0.00028619796, %v2603_v36 }
 0xa88   :  { %v2579_v18 = vadd.f32 0.112945676, %v2578_v50  ;;  %v2615_v26 = vadd.f32 0.001143296, %v2614_v61  ;;  %v2568_v32 = vadd.f32 0.05243302, %v2567_v16 }
 0xa89   :  { %8081 = vrcp.f32 %v2543_v29  ;;  %v2605_v59 = vmul.f32 %v2604_v54, %v9893_v30  ;;  %v2641_v6 = vmul.f32 %v9910_v0, %v9910_v0  ;;  %v2532_v14 = vadd.f32 1.1283791, %v2531_v55 }
 0xa8a   :  { %v2580_v58 = vmul.f32 %v2579_v18, %v9863_v24  ;;  %v2616_v56 = vmul.f32 %v2615_v26, %v9893_v30  ;;  %v2569_v28 = vmul.f32 %v2568_v32, %v9863_v24  ;;  %v2553_v61 = vand.u32 2147483647, %v2543_v29 }
 0xa8b   :  { %v9918_v5 = vmin.f32 %v2641_v6, 16.0  ;;  %v2606_v27 = vadd.f32 0.0036580483, %v2605_v59  ;;  %v2555_v18 = vand.u32 2147483648, %v2543_v29  ;;  %vm2549_vm11 = vweird.f32 %v2543_v29 }
 0xa8c   :  { %v2581_v12 = vadd.f32 0.4994258, %v2580_v58  ;;  %v2617_v48 = vadd.f32 0.014752088, %v2616_v56  ;;  %v2570_v26 = vadd.f32 0.18741608, %v2569_v28  ;;  %v2533_v56 = vmul.f32 %v2532_v14, %v9837_v17 }
 0xa8d   :  { %v2643_v11 = vmul.f32 2.1237322e-06, %v9918_v5  ;;  %v2654_v8 = vmul.f32 3.8918573e-05, %v9918_v5  ;;  %v2607_v54 = vmul.f32 %v2606_v27, %v9893_v30  ;;  %v2556_v55 = vor.u32 1.1754944e-38, %v2555_v18 }
 0xa8e   :  { %v2582_v3 = vmul.f32 %v2581_v12, %v9863_v24  ;;  %v2618_v44 = vmul.f32 %v2617_v48, %v9893_v30  ;;  %vm2554_vm13 = vcmp.eq.f32.partialorder %v2553_v61, 8.507059e+37  ;;  %v2571_v28 = vmul.f32 %v2570_v26, %v9863_v24 }
 0xa8f   :  { %v8082_v23 = vpop.eup %8081  ;;  %v2644_v50 = vadd.f32 0.00028619796, %v2643_v11  ;;  %v2655_v36 = vadd.f32 0.001143296, %v2654_v8 }
 0xa90   :  { %v2545_v15 = vmul.f32 %v8082_v23, %v2543_v29  ;;  %v9924_v37 = vadd.f32 1.0, %v2582_v3  ;;  %v2619_v16 = vadd.f32 0.112945676, %v2618_v44  ;;  %vm2550_vm10 = vweird.f32 %v8082_v23 }
 0xa91   :  { %v2645_v58 = vmul.f32 %v2644_v50, %v9918_v5  ;;  %v2656_v59 = vmul.f32 %v2655_v36, %v9918_v5  ;;  %vm2551_vm12 = vmor %vm2549_vm11, %vm2550_vm10  ;;  %v2608_v3 = vadd.f32 0.05243302, %v2607_v54 }
 0xa92   :  { %v2546_v7 = vsub.f32 1.0, %v2545_v15  ;;  %8083 = vrcp.f32 %v9924_v37  ;;  %v2620_v6 = vmul.f32 %v2619_v16, %v9893_v30  ;;  %v2595_v14 = vand.u32 2147483648, %v9924_v37 }
 0xa93   :  { %v2657_v32 = vadd.f32 0.014752088, %v2656_v59  ;;  %v2646_v8 = vadd.f32 0.0036580483, %v2645_v58  ;;  %v2609_v18 = vmul.f32 %v2608_v3, %v9893_v30  ;;  %v2593_v24 = vand.u32 2147483647, %v9924_v37 }
 0xa94   :  { %v2547_v52 = vmul.f32 %v8082_v23, %v2546_v7  ;;  %v2621_v48 = vadd.f32 0.4994258, %v2620_v6  ;;  %v2505_v59 = vmul.f32 0.5, %v9834_v45  ;;  %vm2589_vm1 = vweird.f32 %v9924_v37 }
 0xa95   :  { %v2658_v15 = vmul.f32 %v2657_v32, %v9918_v5  ;;  %v2647_v61 = vmul.f32 %v2646_v8, %v9918_v5  ;;  %vm2594_vm4 = vcmp.eq.f32.partialorder %v2593_v24, 8.507059e+37 }
 0xa96   :  { %v2548_v12 = vadd.f32 %v8082_v23, %v2547_v52  ;;  %v2622_v29 = vmul.f32 %v2621_v48, %v9893_v30  ;;  %v2572_v52 = vadd.f32 1.1283791, %v2571_v28 }
 0xa97   :  { %v2659_v7 = vadd.f32 0.112945676, %v2658_v15  ;;  %v2648_v3 = vadd.f32 0.05243302, %v2647_v61 }
 0xa98   :  { %v8084_v27 = vpop.eup %8083  ;;  %v2552_v11 = vsel %vm2551_vm12, %v8082_v23, %v2548_v12  ;;  %v2623_v23 = vadd.f32 1.0, %v2622_v29  ;;  %v2573_v48 = vmul.f32 %v2572_v52, %v9850_v25 }
 0xa99   :  { %v2557_v44 = vsel %vm2554_vm13, %v2556_v55, %v2552_v11  ;;  %v2585_v50 = vmul.f32 %v8084_v27, %v9924_v37  ;;  %v2660_v16 = vmul.f32 %v2659_v7, %v9918_v5  ;;  %vm2590_vm15 = vweird.f32 %v8084_v27 }
 0xa9a   :  { %v2558_v36 = vmul.f32 %v2557_v44, %v2533_v56  ;;  %8085 = vrcp.f32 %v2623_v23  ;;  %vm2591_vm3 = vmor %vm2589_vm1, %vm2590_vm15  ;;  %v2596_v56 = vor.u32 1.1754944e-38, %v2595_v14  ;;  %v2610_v55 = vadd.f32 0.18741608, %v2609_v18 }
 0xa9b   :  { %v2586_v17 = vsub.f32 1.0, %v2585_v50  ;;  %v2661_v12 = vadd.f32 0.4994258, %v2660_v16  ;;  %v2649_v50 = vmul.f32 %v2648_v3, %v9918_v5  ;;  %v2506_v7 = vmul.f32 0.5, %v9847_v35 }
 0xa9c   :  { %v7504_v54 = vclamps-f32 %v2558_v36, 1.0  ;;  %v2611_v37 = vmul.f32 %v2610_v55, %v9893_v30  ;;  %v2635_v14 = vand.u32 2147483648, %v2623_v23  ;;  %v2633_v16 = vand.u32 2147483647, %v2623_v23 }
 0xa9d   :  { %v2587_v58 = vmul.f32 %v8084_v27, %v2586_v17  ;;  %v2662_v8 = vmul.f32 %v2661_v12, %v9918_v5  ;;  %v2650_v18 = vadd.f32 0.18741608, %v2649_v50  ;;  %vm2629_vm6 = vweird.f32 %v2623_v23 }
 0xa9e   :  { %v2841_v26 = vadd.f32 1.0, %v7504_v54  ;;  %v2612_v17 = vadd.f32 1.1283791, %v2611_v37  ;;  %vm2634_vm8 = vcmp.eq.f32.partialorder %v2633_v16, 8.507059e+37 }
 0xa9f   :  { %v2588_v6 = vadd.f32 %v8084_v27, %v2587_v58  ;;  %v2663_v44 = vadd.f32 1.0, %v2662_v8  ;;  %v2636_v58 = vor.u32 1.1754944e-38, %v2635_v14  ;;  %v2651_v24 = vmul.f32 %v2650_v18, %v9918_v5 }
 0xaa0   :  { %v2849_v32 = vmul.f32 %v2841_v26, %v2505_v59  ;;  %v8086_v28 = vpop.eup %8085  ;;  %v2613_v35 = vmul.f32 %v2612_v17, %v9880_v43  ;;  %v9963_v17 = vld [vmem:[#allocation12] ss:$0 sm:$0xff] }
 0xaa1   :  { %v2592_v11 = vsel %vm2591_vm3, %v8084_v27, %v2588_v6  ;;  %v2625_v29 = vmul.f32 %v8086_v28, %v2623_v23  ;;  %8087 = vrcp.f32 %v2663_v44  ;;  %vm2630_vm5 = vweird.f32 %v8086_v28 }
 0xaa2   :  { %v2597_v15 = vsel %vm2594_vm4, %v2596_v56, %v2592_v11  ;;  %7512 = vmatmul.msk.f32.vlgmr.msra.gmra.mxu3 %vm2869_vm2, %v2849_v32  ;;  %vm2631_vm7 = vmor %vm2629_vm6, %vm2630_vm5  ;;  %v2652_v56 = vadd.f32 1.1283791, %v2651_v24  ;;  %v2675_v55 = vand.u32 2147483648, %v2663_v44  ;;  %v2673_v23 = vand.u32 2147483647, %v2663_v44 }
 0xaa3   :  { %v2598_v45 = vmul.f32 %v2597_v15, %v2573_v48  ;;  %v2626_v27 = vsub.f32 1.0, %v2625_v29  ;;  %v2507_v11 = vmul.f32 0.5, %v9871_v51  ;;  %vm2669_vm10 = vweird.f32 %v2663_v44 }
 0xaa4   :  { %v2676_v5 = vor.u32 1.1754944e-38, %v2675_v55  ;;  %vm2674_vm12 = vcmp.eq.f32.partialorder %v2673_v23, 8.507059e+37  ;;  %v2508_v29 = vmul.f32 0.5, %v9900_v39  ;;  %v1805_v24 = vadd.f32 %v9714_v19, %v9813_v33 }
 0xaa5   :  { %v7505_v36 = vclamps-f32 %v2598_v45, 1.0  ;;  %v2627_v61 = vmul.f32 %v8086_v28, %v2626_v27  ;;  %v2653_v45 = vmul.f32 %v2652_v56, %v9910_v0 }
 0xaa7   :  { %v2842_v25 = vadd.f32 1.0, %v7505_v36  ;;  %v2628_v52 = vadd.f32 %v8086_v28, %v2627_v61  ;;  %v8088_v30 = vpop.eup %8087  ;;  %v1802_v61 = vadd.f32 %v9711_v9, %v9811_v62 }
 0xaa8   :  { %v2665_v26 = vmul.f32 %v8088_v30, %v2663_v44  ;;  %vm2670_vm9 = vweird.f32 %v8088_v30 }
 0xaa9   :  { %v2850_v54 = vmul.f32 %v2842_v25, %v2506_v7  ;;  %v2632_v59 = vsel %vm2631_vm7, %v8086_v28, %v2628_v52  ;;  %vm2671_vm11 = vmor %vm2669_vm10, %vm2670_vm9  ;;  %v2012_v16 = vadd.f32 %v9819_v46, %v1802_v61  ;;  %v1808_v46 = vadd.f32 %v9716_v60, %v9815_v57 }
 0xaaa   :  { %v2637_v6 = vsel %vm2634_vm8, %v2636_v58, %v2632_v59  ;;  %v2666_v32 = vsub.f32 1.0, %v2665_v26 }
 0xaab   :  { %7513 = vmatmul.msk.f32.gmra.mxu3 %vm2869_vm2, %v2850_v54  ;;  %v2638_v12 = vmul.f32 %v2637_v6, %v2613_v35  ;;  %v2014_v19 = vadd.f32 %v9823_v2, %v1808_v46 }
 0xaac   :  { %v2667_v48 = vmul.f32 %v8088_v30, %v2666_v32 }
 0xaad   :  { %v7506_v3 = vclamps-f32 %v2638_v12, 1.0 }
 0xaae   :  { %v2668_v15 = vadd.f32 %v8088_v30, %v2667_v48 }
 0xaaf   :  { %v2843_v8 = vadd.f32 1.0, %v7506_v3 }
 0xab0   :  { %v2672_v28 = vsel %vm2671_vm11, %v8088_v30, %v2668_v15 }
 0xab1   :  { %v2851_v43 = vmul.f32 %v2843_v8, %v2507_v11  ;;  %v2677_v37 = vsel %vm2674_vm12, %v2676_v5, %v2672_v28 }
 0xab2   :  { %v2678_v50 = vmul.f32 %v2677_v37, %v2653_v45 }
 0xab3   :  { %7514 = vmatmul.msk.f32.gmra.mxu3 %vm2869_vm2, %v2851_v43 }
 0xab4   :  { %v7507_v36 = vclamps-f32 %v2678_v50, 1.0 }
 0xab6   :  { %v2844_v7 = vadd.f32 1.0, %v7507_v36 }
 0xab8   :  { %v2852_v25 = vmul.f32 %v2844_v7, %v2508_v29 }
 0xabb   :  { %7515 = vmatmul.msk.f32.gmra.mxu3 %vm2869_vm2, %v2852_v25 }
 0xae1   :  { %v2162_v51 = vpop.f32.mrf.mxu0 }
 0xae2   :  { %7492 = vmatmul.msk.f32.vlgmr.msra.gmra.mxu2 %vm614_vm14, %v2162_v51 }
 0xae9   :  { %v2165_v44 = vpop.f32.mrf.mxu0 }
 0xaea   :  { %7493 = vmatmul.msk.f32.gmra.mxu2 %vm614_vm14, %v2165_v44 }
 0xaf1   :  { %v2168_v0 = vpop.f32.mrf.mxu0 }
 0xaf2   :  { %7494 = vmatmul.msk.f32.gmra.mxu2 %vm614_vm14, %v2168_v0 }
 0xaf9   :  { %v2171_v27 = vpop.f32.mrf.mxu0 }
 0xafa   :  { %7495 = vmatmul.msk.f32.gmra.mxu2 %vm614_vm14, %v2171_v27 }
 0xb25   :  { %v2911_v14 = vpop.f32.mrf.mxu3 }
 0xb26   :  { %v2912_v39 = vadd.f32 %v9963_v17, %v2911_v14 }
 0xb28   :  { %v9967_v18 = vadd.f32 %v2912_v39, %v9684_v31  ;;  %v2013_v31 = vadd.f32 %v9821_v21, %v1805_v24 }
 0xb2a   :  { %v2952_v54 = vsel %vm332_vm0, %v9967_v18, 0.0 }
 0xb2b   :  { %2953 = vadd.xlane.f32.xlu1 %v2952_v54 }
 0xb2e   :  { %v2914_v21 = vpop.f32.mrf.mxu3 }
 0xb2f   :  { %v2915_v57 = vadd.f32 %v9963_v17, %v2914_v21 }
 0xb31   :  { %v10003_v23 = vadd.f32 %v2915_v57, %v9681_v41 }
 0xb36   :  { %v2917_v48 = vpop.f32.mrf.mxu3 }
 0xb3e   :  { %v2920_v41 = vpop.f32.mrf.mxu3 }
 0xb3f   :  { %v2921_v15 = vadd.f32 %v9963_v17, %v2920_v41 }
 0xb65   :  { %v2203_v52 = vpop.f32.mrf.mxu2 }
 0xb66   :  { %v2215_v30 = vadd.f32 %v2203_v52, %v2012_v16 }
 0xb68   :  { %v2223_v58 = vadd.f32 %v2215_v30, %v9003_v20 }
 0xb6a   :  { %v9978_v35 = vadd.f32 %v9678_v49, %v2223_v58 }
 0xb6c   :  { %v2250_v59 = vsel %vm332_vm0, %v9978_v35, 0.0 }
 0xb6d   :  { %2251 = vadd.xlane.f32.xlu2 %v2250_v59  ;;  %v2206_v26 = vpop.f32.mrf.mxu2 }
 0xb6e   :  { %v2216_v9 = vadd.f32 %v2206_v26, %v2013_v31 }
 0xb70   :  { %v2224_v62 = vadd.f32 %v2216_v9, %v9064_v10  ;;  %v1811_v10 = vadd.f32 %v9718_v38, %v9817_v47  ;;  %v2918_v47 = vadd.f32 %v9963_v17, %v2917_v48  ;;  %v2947_v48 = vld [vmem:[#allocation4 + $0x28] sm:$0xff] }
 0xb72   :  { %v9987_v20 = vadd.f32 %v9678_v49, %v2224_v62  ;;  %v2015_v60 = vadd.f32 %v9826_v13, %v1811_v10  ;;  %v2955_v13 = vsel %vm332_vm0, %v10003_v23, 0.0  ;;  %v10015_v8 = vadd.f32 %v2918_v47, %v9697_v1 }
 0xb74   :  { %v2253_v33 = vsel %vm332_vm0, %v9987_v20, 0.0 }
 0xb75   :  { %2254 = vadd.xlane.f32.xlu2 %v2253_v33  ;;  %v2209_v6 = vpop.f32.mrf.mxu2 }
 0xb76   :  { %v2217_v12 = vadd.f32 %v2209_v6, %v2014_v19 }
 0xb78   :  { %v2225_v32 = vadd.f32 %v2217_v12, %v9050_v63 }
 0xb7a   :  { %v9996_v56 = vadd.f32 %v9678_v49, %v2225_v32 }
 0xb7c   :  { %v2256_v2 = vsel %vm332_vm0, %v9996_v56, 0.0 }
 0xb7d   :  { %2257 = vadd.xlane.f32.xlu2 %v2256_v2  ;;  %v2212_v55 = vpop.f32.mrf.mxu2 }
 0xb7e   :  { %v2218_v3 = vadd.f32 %v2212_v55, %v2015_v60  ;;  %v2949_v55 = vld [vmem:[#allocation4 + $0x38] sm:$0xff] }
 0xb7f   :  { %3185 = vmatpush.msra.mxu0 %v2949_v55 }
 0xb80   :  { %v2226_v63 = vadd.f32 %v2218_v3, %v9057_v4  ;;  %v2958_v4 = vsel %vm332_vm0, %v10015_v8, 0.0  ;;  %v2948_v3 = vld [vmem:[#allocation4 + $0x30] sm:$0xff] }
 0xb81   :  { %3186 = vmatpush.msra.mxu0 %v2948_v3 }
 0xb82   :  { %v10007_v38 = vadd.f32 %v9678_v49, %v2226_v63  ;;  %v10021_v49 = vadd.f32 %v2921_v15, %v9687_v34  ;;  %v2946_v63 = vld [vmem:[#allocation4 + $0x20] sm:$0xff] }
 0xb83   :  { %3187 = vmatpush.msra.mxu0 %v2947_v48 }
 0xb84   :  { %v2259_v11 = vsel %vm332_vm0, %v10007_v38, 0.0  ;;  %v2961_v5 = vsel %vm332_vm0, %v10021_v49, 0.0 }
 0xb85   :  { %2956 = vadd.xlane.f32.xlu2 %v2955_v13  ;;  %2260 = vadd.xlane.f32.xlu0 %v2259_v11 }
 0xb86   :  { %3188 = vmatpush.msra.mxu0 %v2946_v63 }
 0xb8d   :  { %2959 = vadd.xlane.f32.xlu2 %v2958_v4 }
 0xb95   :  { %2962 = vadd.xlane.f32.xlu2 %v2961_v5 }
 0xb9e   :  { %v2954_v43 = vpop.xlane.xlu1 %2953 }
 0xb9f   :  { %v2976_v45 = vmul.f32 %v2954_v43, %v8953_v22  ;;  %v2944_v43 = vld [vmem:[#allocation7 + $0x4] sm:$0xf] }
 0xba1   :  { %v10027_v1 = vsub.f32 %v9967_v18, %v2976_v45 }
 0xba3   :  { %v2992_v28 = vmul.f32 %v10027_v1, %v10027_v1 }
 0xba5   :  { %v3000_v37 = vsel %vm332_vm0, %v2992_v28, 0.0 }
 0xba6   :  { %3001 = vadd.xlane.f32.xlu1 %v3000_v37  ;;  %v10082_v37 = vperm.slane %v2944_v43, 0 }
 0xbe0   :  { %v2252_v50 = vpop.xlane.xlu2 %2251 }
 0xbe1   :  { %v2266_v34 = vmul.f32 %v2252_v50, %v8953_v22 }
 0xbe3   :  { %v10034_v36 = vsub.f32 %v9978_v35, %v2266_v34  ;;  %v10084_v34 = vperm.slane %v2944_v43, 1 }
 0xbe5   :  { %v2282_v29 = vmul.f32 %v10034_v36, %v10034_v36 }
 0xbe7   :  { %v2298_v7 = vsel %vm332_vm0, %v2282_v29, 0.0 }
 0xbe8   :  { %v2255_v25 = vpop.xlane.xlu2 %2254  ;;  %2299 = vadd.xlane.f32.xlu0 %v2298_v7 }
 0xbe9   :  { %v2267_v51 = vmul.f32 %v2255_v25, %v8953_v22 }
 0xbeb   :  { %v10041_v44 = vsub.f32 %v9987_v20, %v2267_v51 }
 0xbed   :  { %v2283_v0 = vmul.f32 %v10041_v44, %v10041_v44 }
 0xbef   :  { %v2301_v27 = vsel %vm332_vm0, %v2283_v0, 0.0 }
 0xbf0   :  { %2302 = vadd.xlane.f32.xlu2 %v2301_v27  ;;  %v2258_v14 = vpop.xlane.xlu2 %2257 }
 0xbf1   :  { %v2268_v39 = vmul.f32 %v2258_v14, %v8953_v22 }
 0xbf3   :  { %v10048_v54 = vsub.f32 %v9996_v56, %v2268_v39 }
 0xbf5   :  { %v2284_v61 = vmul.f32 %v10048_v54, %v10048_v54 }
 0xbf7   :  { %v2304_v16 = vsel %vm332_vm0, %v2284_v61, 0.0 }
 0xbf8   :  { %2305 = vadd.xlane.f32.xlu1 %v2304_v16  ;;  %v2957_v52 = vpop.xlane.xlu2 %2956  ;;  %v2261_v30 = vpop.xlane.xlu0 %2260 }
 0xbf9   :  { %v2977_v58 = vmul.f32 %v2957_v52, %v8953_v22  ;;  %v2269_v31 = vmul.f32 %v2261_v30, %v8953_v22 }
 0xbfb   :  { %v10055_v24 = vsub.f32 %v10003_v23, %v2977_v58  ;;  %v10061_v26 = vsub.f32 %v10007_v38, %v2269_v31 }
 0xbfd   :  { %v2993_v59 = vmul.f32 %v10055_v24, %v10055_v24  ;;  %v2285_v33 = vmul.f32 %v10061_v26, %v10061_v26 }
 0xbff   :  { %v3003_v9 = vsel %vm332_vm0, %v2993_v59, 0.0  ;;  %v2307_v12 = vsel %vm332_vm0, %v2285_v33, 0.0 }
 0xc00   :  { %v2960_v62 = vpop.xlane.xlu2 %2959  ;;  %3004 = vadd.xlane.f32.xlu0 %v3003_v9 }
 0xc01   :  { %v2978_v46 = vmul.f32 %v2960_v62, %v8953_v22 }
 0xc03   :  { %v10066_v19 = vsub.f32 %v10015_v8, %v2978_v46 }
 0xc05   :  { %v2994_v21 = vmul.f32 %v10066_v19, %v10066_v19 }
 0xc07   :  { %v3006_v6 = vsel %vm332_vm0, %v2994_v21, 0.0 }
 0xc08   :  { %3007 = vadd.xlane.f32.xlu2 %v3006_v6  ;;  %v2963_v32 = vpop.xlane.xlu2 %2962  ;;  %2308 = vadd.xlane.f32.xlu0 %v2307_v12 }
 0xc09   :  { %v2979_v10 = vmul.f32 %v2963_v32, %v8953_v22 }
 0xc0b   :  { %v10076_v60 = vsub.f32 %v10021_v49, %v2979_v10 }
 0xc0d   :  { %v2995_v57 = vmul.f32 %v10076_v60, %v10076_v60 }
 0xc0f   :  { %v3009_v2 = vsel %vm332_vm0, %v2995_v57, 0.0 }
 0xc10   :  { %3010 = vadd.xlane.f32.xlu1 %v3009_v2 }
 0xc19   :  { %v3002_v47 = vpop.xlane.xlu1 %3001 }
 0xc1a   :  { %v3024_v13 = vmul.f32 %v3002_v47, %v8953_v22 }
 0xc1c   :  { %v3032_v11 = vadd.f32 1e-05, %v3024_v13 }
 0xc1e   :  { %8089 = vrsqrt.f32 %v3032_v11  ;;  %vm3046_vm15 = vweird.f32 %v3032_v11 }
 0xc24   :  { %v8090_v41 = vpop.eup %8089 }
 0xc25   :  { %v3041_v15 = vmul.f32 %v8090_v41, %v3032_v11  ;;  %vm3047_vm13 = vweird.f32 %v8090_v41 }
 0xc26   :  { %vm3048_vm1 = vmor %vm3046_vm15, %vm3047_vm13 }
 0xc27   :  { %v3042_v4 = vmul.f32 %v8090_v41, %v3041_v15 }
 0xc29   :  { %v3043_v5 = vmul.f32 0.5, %v3042_v4 }
 0xc2b   :  { %v3044_v45 = vsub.f32 1.5, %v3043_v5 }
 0xc2d   :  { %v3045_v28 = vmul.f32 %v8090_v41, %v3044_v45 }
 0xc2f   :  { %v3049_v50 = vsel %vm3048_vm1, %v8090_v41, %v3045_v28 }
 0xc30   :  { %v3120_v29 = vmul.f32 %v3049_v50, %v10027_v1 }
 0xc32   :  { %v3129_v7 = vmul.f32 %v10082_v37, %v3120_v29 }
 0xc34   :  { %v3138_v25 = vadd.f32 %v10084_v34, %v3129_v7 }
 0xc36   :  { %7520 = vmatmul.msk.f32.vlgmr.msra.gmra.mxu0 %vm332_vm0, %v3138_v25 }
 0xc5b   :  { %v2300_v51 = vpop.xlane.xlu0 %2299 }
 0xc5c   :  { %v2314_v0 = vmul.f32 %v2300_v51, %v8953_v22 }
 0xc5e   :  { %v2322_v27 = vadd.f32 1e-05, %v2314_v0 }
 0xc60   :  { %8091 = vrsqrt.f32 %v2322_v27  ;;  %vm2372_vm4 = vweird.f32 %v2322_v27 }
 0xc63   :  { %v2303_v14 = vpop.xlane.xlu2 %2302 }
 0xc64   :  { %v2315_v39 = vmul.f32 %v2303_v14, %v8953_v22 }
 0xc66   :  { %v8092_v61 = vpop.eup %8091  ;;  %v2323_v16 = vadd.f32 1e-05, %v2315_v39 }
 0xc67   :  { %v2367_v52 = vmul.f32 %v8092_v61, %v2322_v27  ;;  %vm2373_vm3 = vweird.f32 %v8092_v61 }
 0xc68   :  { %8093 = vrsqrt.f32 %v2323_v16  ;;  %vm2374_vm5 = vmor %vm2372_vm4, %vm2373_vm3  ;;  %vm2382_vm7 = vweird.f32 %v2323_v16 }
 0xc69   :  { %v2368_v30 = vmul.f32 %v8092_v61, %v2367_v52 }
 0xc6b   :  { %v2369_v1 = vmul.f32 0.5, %v2368_v30  ;;  %v2306_v58 = vpop.xlane.xlu1 %2305 }
 0xc6c   :  { %v2316_v31 = vmul.f32 %v2306_v58, %v8953_v22 }
 0xc6d   :  { %v2370_v59 = vsub.f32 1.5, %v2369_v1 }
 0xc6e   :  { %v8094_v9 = vpop.eup %8093  ;;  %v2324_v62 = vadd.f32 1e-05, %v2316_v31 }
 0xc6f   :  { %v2371_v46 = vmul.f32 %v8092_v61, %v2370_v59  ;;  %v2377_v33 = vmul.f32 %v8094_v9, %v2323_v16  ;;  %vm2383_vm6 = vweird.f32 %v8094_v9 }
 0xc70   :  { %8095 = vrsqrt.f32 %v2324_v62  ;;  %vm2384_vm8 = vmor %vm2382_vm7, %vm2383_vm6  ;;  %vm2392_vm10 = vweird.f32 %v2324_v62 }
 0xc71   :  { %v2375_v21 = vsel %vm2374_vm5, %v8092_v61, %v2371_v46  ;;  %v2378_v6 = vmul.f32 %v8094_v9, %v2377_v33 }
 0xc72   :  { %v2410_v12 = vmul.f32 %v2375_v21, %v10034_v36 }
 0xc73   :  { %v2379_v32 = vmul.f32 0.5, %v2378_v6  ;;  %v3005_v10 = vpop.xlane.xlu0 %3004 }
 0xc74   :  { %v3025_v57 = vmul.f32 %v3005_v10, %v8953_v22  ;;  %v2419_v2 = vmul.f32 %v9779_v53, %v2410_v12 }
 0xc75   :  { %v2380_v55 = vsub.f32 1.5, %v2379_v32 }
 0xc76   :  { %v8096_v3 = vpop.eup %8095  ;;  %v3033_v48 = vadd.f32 1e-05, %v3025_v57  ;;  %v2428_v63 = vadd.f32 %v9781_v40, %v2419_v2 }
 0xc77   :  { %v2381_v47 = vmul.f32 %v8094_v9, %v2380_v55  ;;  %v2387_v13 = vmul.f32 %v8096_v3, %v2324_v62  ;;  %vm2393_vm9 = vweird.f32 %v8096_v3 }
 0xc78   :  { %8097 = vrsqrt.f32 %v3033_v48  ;;  %7500 = vmatmul.msk.f32.gmra.mxu1 %vm332_vm0, %v2428_v63  ;;  %vm2394_vm11 = vmor %vm2392_vm10, %vm2393_vm9  ;;  %vm3056_vm13 = vweird.f32 %v3033_v48 }
 0xc79   :  { %v2385_v36 = vsel %vm2384_vm8, %v8094_v9, %v2381_v47  ;;  %v2388_v11 = vmul.f32 %v8096_v3, %v2387_v13 }
 0xc7a   :  { %v2411_v41 = vmul.f32 %v2385_v36, %v10041_v44 }
 0xc7b   :  { %v2389_v15 = vmul.f32 0.5, %v2388_v11  ;;  %v3008_v4 = vpop.xlane.xlu2 %3007  ;;  %v2309_v5 = vpop.xlane.xlu0 %2308 }
 0xc7c   :  { %v3026_v43 = vmul.f32 %v3008_v4, %v8953_v22  ;;  %v2317_v45 = vmul.f32 %v2309_v5, %v8953_v22  ;;  %v2420_v28 = vmul.f32 %v9779_v53, %v2411_v41 }
 0xc7d   :  { %v2390_v50 = vsub.f32 1.5, %v2389_v15 }
 0xc7e   :  { %v8098_v29 = vpop.eup %8097  ;;  %v3034_v7 = vadd.f32 1e-05, %v3026_v43  ;;  %v2325_v25 = vadd.f32 1e-05, %v2317_v45  ;;  %v2429_v51 = vadd.f32 %v9781_v40, %v2420_v28 }
 0xc7f   :  { %v2391_v0 = vmul.f32 %v8096_v3, %v2390_v50  ;;  %v3051_v27 = vmul.f32 %v8098_v29, %v3033_v48  ;;  %vm3057_vm12 = vweird.f32 %v8098_v29 }
 0xc80   :  { %8099 = vrsqrt.f32 %v3034_v7  ;;  %7501 = vmatmul.msk.f32.gmra.mxu1 %vm332_vm0, %v2429_v51  ;;  %vm3058_vm15 = vmor %vm3056_vm13, %vm3057_vm12  ;;  %vm3066_vm4 = vweird.f32 %v3034_v7  ;;  %vm2402_vm6 = vweird.f32 %v2325_v25 }
 0xc81   :  { %v2395_v44 = vsel %vm2394_vm11, %v8096_v3, %v2391_v0  ;;  %v3052_v14 = vmul.f32 %v8098_v29, %v3051_v27  ;;  %8101 = vrsqrt.f32 %v2325_v25 }
 0xc82   :  { %v2412_v39 = vmul.f32 %v2395_v44, %v10048_v54 }
 0xc83   :  { %v3053_v61 = vmul.f32 0.5, %v3052_v14  ;;  %v3011_v16 = vpop.xlane.xlu1 %3010 }
 0xc84   :  { %v3027_v52 = vmul.f32 %v3011_v16, %v8953_v22  ;;  %v2421_v30 = vmul.f32 %v9779_v53, %v2412_v39 }
 0xc85   :  { %v3054_v1 = vsub.f32 1.5, %v3053_v61 }
 0xc86   :  { %v8100_v58 = vpop.eup %8099  ;;  %v3035_v31 = vadd.f32 1e-05, %v3027_v52  ;;  %v2430_v59 = vadd.f32 %v9781_v40, %v2421_v30 }
 0xc87   :  { %v8102_v9 = vpop.eup %8101  ;;  %v3055_v62 = vmul.f32 %v8098_v29, %v3054_v1  ;;  %v3061_v46 = vmul.f32 %v8100_v58, %v3034_v7  ;;  %vm3067_vm1 = vweird.f32 %v8100_v58 }
 0xc88   :  { %v2397_v33 = vmul.f32 %v8102_v9, %v2325_v25  ;;  %8103 = vrsqrt.f32 %v3035_v31  ;;  %7502 = vmatmul.msk.f32.gmra.mxu1 %vm332_vm0, %v2430_v59  ;;  %vm2403_vm3 = vweird.f32 %v8102_v9  ;;  %vm3068_vm5 = vmor %vm3066_vm4, %vm3067_vm1  ;;  %vm3076_vm9 = vweird.f32 %v3035_v31 }
 0xc89   :  { %v3059_v54 = vsel %vm3058_vm15, %v8098_v29, %v3055_v62  ;;  %v3062_v21 = vmul.f32 %v8100_v58, %v3061_v46  ;;  %vm2404_vm7 = vmor %vm2402_vm6, %vm2403_vm3 }
 0xc8a   :  { %v3121_v6 = vmul.f32 %v3059_v54, %v10055_v24  ;;  %v2398_v12 = vmul.f32 %v8102_v9, %v2397_v33 }
 0xc8b   :  { %v3063_v32 = vmul.f32 0.5, %v3062_v21 }
 0xc8c   :  { %v2399_v10 = vmul.f32 0.5, %v2398_v12  ;;  %v3130_v57 = vmul.f32 %v10082_v37, %v3121_v6 }
 0xc8d   :  { %v3064_v2 = vsub.f32 1.5, %v3063_v32 }
 0xc8e   :  { %v8104_v55 = vpop.eup %8103  ;;  %v2400_v3 = vsub.f32 1.5, %v2399_v10  ;;  %v3139_v48 = vadd.f32 %v10084_v34, %v3130_v57 }
 0xc8f   :  { %v3065_v63 = vmul.f32 %v8100_v58, %v3064_v2  ;;  %v3071_v47 = vmul.f32 %v8104_v55, %v3035_v31  ;;  %vm3077_vm8 = vweird.f32 %v8104_v55 }
 0xc90   :  { %v2401_v13 = vmul.f32 %v8102_v9, %v2400_v3  ;;  %7521 = vmatmul.msk.f32.gmra.mxu0 %vm332_vm0, %v3139_v48  ;;  %vm3078_vm10 = vmor %vm3076_vm9, %vm3077_vm8 }
 0xc91   :  { %v3069_v24 = vsel %vm3068_vm5, %v8100_v58, %v3065_v63  ;;  %v3072_v36 = vmul.f32 %v8104_v55, %v3071_v47  ;;  %v7920_v47 = vld [vmem:[#allocation6 + $0x1] ss:$0 sm:$0xff] }
 0xc92   :  { %v3122_v11 = vmul.f32 %v3069_v24, %v10066_v19  ;;  %v2405_v41 = vsel %vm2404_vm7, %v8102_v9, %v2401_v13 }
 0xc93   :  { %v2413_v15 = vmul.f32 %v2405_v41, %v10061_v26  ;;  %v3073_v4 = vmul.f32 0.5, %v3072_v36 }
 0xc94   :  { %v3131_v5 = vmul.f32 %v10082_v37, %v3122_v11 }
 0xc95   :  { %v3074_v43 = vsub.f32 1.5, %v3073_v4  ;;  %v2422_v45 = vmul.f32 %v9779_v53, %v2413_v15 }
 0xc96   :  { %v3140_v28 = vadd.f32 %v10084_v34, %v3131_v5 }
 0xc97   :  { %v3075_v50 = vmul.f32 %v8104_v55, %v3074_v43  ;;  %v2431_v29 = vadd.f32 %v9781_v40, %v2422_v45 }
 0xc98   :  { %7522 = vmatmul.msk.f32.gmra.mxu0 %vm332_vm0, %v3140_v28 }
 0xc99   :  { %v3079_v19 = vsel %vm3078_vm10, %v8104_v55, %v3075_v50  ;;  %7503 = vmatmul.msk.f32.gmra.mxu1 %vm332_vm0, %v2431_v29 }
 0xc9a   :  { %v3123_v26 = vmul.f32 %v3079_v19, %v10076_v60 }
 0xc9c   :  { %v3132_v7 = vmul.f32 %v10082_v37, %v3123_v26 }
 0xc9e   :  { %v3141_v25 = vadd.f32 %v10084_v34, %v3132_v7 }
 0xca0   :  { %7523 = vmatmul.msk.f32.gmra.mxu0 %vm332_vm0, %v3141_v25 }
 0xcb3   :  { %v10141_v9 = vpop.f32.mrf.mxu0 }
 0xcf5   :  { %v2493_v53 = vpop.f32.mrf.mxu1 }
 0xcf6   :  { %v10126_v51 = vadd.f32 %v9829_v42, %v2493_v53 }
 0xcf8   :  { %v10129_v40 = vmul.f32 0.70710677, %v10126_v51 }
 0xcfa   :  { %v2681_v0 = vmul.f32 %v10129_v40, %v10129_v40 }
 0xcfc   :  { %v2682_v27 = vmin.f32 %v2681_v0, 16.0 }
 0xcfd   :  { %v2496_v44 = vpop.f32.mrf.mxu1 }
 0xcfe   :  { %v2683_v14 = vmul.f32 2.1237322e-06, %v2682_v27  ;;  %v2694_v60 = vmul.f32 3.8918573e-05, %v2682_v27  ;;  %v10134_v39 = vadd.f32 %v9829_v42, %v2496_v44 }
 0xd00   :  { %v2684_v61 = vadd.f32 0.00028619796, %v2683_v14  ;;  %v2695_v16 = vadd.f32 0.001143296, %v2694_v60  ;;  %v10137_v52 = vmul.f32 0.70710677, %v10134_v39 }
 0xd02   :  { %v2685_v30 = vmul.f32 %v2684_v61, %v2682_v27  ;;  %v2696_v1 = vmul.f32 %v2695_v16, %v2682_v27  ;;  %v2721_v58 = vmul.f32 %v10137_v52, %v10137_v52 }
 0xd04   :  { %v2686_v31 = vadd.f32 0.0036580483, %v2685_v30  ;;  %v2697_v59 = vadd.f32 0.014752088, %v2696_v1  ;;  %v10143_v62 = vmin.f32 %v2721_v58, 16.0 }
 0xd05   :  { %v2499_v46 = vpop.f32.mrf.mxu1 }
 0xd06   :  { %v2687_v33 = vmul.f32 %v2686_v31, %v2682_v27  ;;  %v2698_v54 = vmul.f32 %v2697_v59, %v2682_v27  ;;  %v10146_v21 = vadd.f32 %v9829_v42, %v2499_v46  ;;  %v2723_v6 = vmul.f32 2.1237322e-06, %v10143_v62  ;;  %v8300_v31 = vld [vmem:[#allocation10] ss:$0 sm:$0xff] }
 0xd07   :  { %v2734_v12 = vmul.f32 3.8918573e-05, %v10143_v62 }
 0xd08   :  { %v2699_v32 = vadd.f32 0.112945676, %v2698_v54  ;;  %v2724_v10 = vadd.f32 0.00028619796, %v2723_v6  ;;  %v10151_v2 = vmul.f32 0.70710677, %v10146_v21 }
 0xd09   :  { %v2735_v57 = vadd.f32 0.001143296, %v2734_v12  ;;  %v2688_v55 = vadd.f32 0.05243302, %v2687_v33 }
 0xd0a   :  { %v2700_v3 = vmul.f32 %v2699_v32, %v2682_v27  ;;  %v2725_v48 = vmul.f32 %v2724_v10, %v10143_v62  ;;  %v2761_v42 = vmul.f32 %v10151_v2, %v10151_v2 }
 0xd0b   :  { %v2736_v63 = vmul.f32 %v2735_v57, %v10143_v62  ;;  %v2689_v15 = vmul.f32 %v2688_v55, %v2682_v27 }
 0xd0c   :  { %v2701_v13 = vadd.f32 0.4994258, %v2700_v3  ;;  %v2726_v24 = vadd.f32 0.0036580483, %v2725_v48  ;;  %v10157_v11 = vmin.f32 %v2761_v42, 16.0 }
 0xd0d   :  { %v2737_v36 = vadd.f32 0.014752088, %v2736_v63  ;;  %v3193_v41 = vpop.f32.mrf.mxu0  ;;  %v2690_v7 = vadd.f32 0.18741608, %v2689_v15  ;;  %v10191_v15 = vadd.f32 %v7920_v47, %v10141_v9 }
 0xd0e   :  { %v2702_v4 = vmul.f32 %v2701_v13, %v2682_v27  ;;  %v10159_v5 = vadd.f32 %v7920_v47, %v3193_v41  ;;  %v2763_v45 = vmul.f32 2.1237322e-06, %v10157_v11  ;;  %v2727_v50 = vmul.f32 %v2726_v24, %v10143_v62 }
 0xd0f   :  { %v2738_v43 = vmul.f32 %v2737_v36, %v10143_v62  ;;  %v2774_v29 = vmul.f32 3.8918573e-05, %v10157_v11  ;;  %v2691_v61 = vmul.f32 %v2690_v7, %v2682_v27 }
 0xd10   :  { %v2703_v28 = vadd.f32 1.0, %v2702_v4  ;;  %3378 = vrot.lane.b32.xlu1 %v10159_v5, %s8738_s0  ;;  %v2764_v26 = vadd.f32 0.00028619796, %v2763_v45  ;;  %v2728_v53 = vadd.f32 0.05243302, %v2727_v50 }
 0xd11   :  { %v2739_v19 = vadd.f32 0.112945676, %v2738_v43  ;;  %v2775_v44 = vadd.f32 0.001143296, %v2774_v29  ;;  %v2692_v32 = vadd.f32 1.1283791, %v2691_v61 }
 0xd12   :  { %8105 = vrcp.f32 %v2703_v28  ;;  %v2765_v0 = vmul.f32 %v2764_v26, %v10157_v11  ;;  %v2729_v33 = vmul.f32 %v2728_v53, %v10143_v62  ;;  %v2715_v3 = vand.u32 2147483648, %v2703_v28 }
 0xd13   :  { %v2740_v25 = vmul.f32 %v2739_v19, %v10143_v62  ;;  %v2776_v16 = vmul.f32 %v2775_v44, %v10157_v11  ;;  %v2713_v24 = vand.u32 2147483647, %v2703_v28  ;;  %v2693_v4 = vmul.f32 %v2692_v32, %v10129_v40 }
 0xd14   :  { %v2766_v54 = vadd.f32 0.0036580483, %v2765_v0  ;;  %v2730_v48 = vadd.f32 0.18741608, %v2729_v33  ;;  %vm2709_vm12 = vweird.f32 %v2703_v28  ;;  %v2716_v19 = vor.u32 1.1754944e-38, %v2715_v3 }
 0xd15   :  { %v2741_v14 = vadd.f32 0.4994258, %v2740_v25  ;;  %v3196_v60 = vpop.f32.mrf.mxu0  ;;  %v2777_v6 = vadd.f32 0.014752088, %v2776_v16  ;;  %vm2714_vm15 = vcmp.eq.f32.partialorder %v2713_v24, 8.507059e+37  ;;  %v2509_v32 = vmul.f32 0.5, %v10126_v51 }
 0xd16   :  { %v2502_v30 = vpop.f32.mrf.mxu1  ;;  %v10170_v1 = vadd.f32 %v7920_v47, %v3196_v60  ;;  %v2767_v63 = vmul.f32 %v2766_v54, %v10157_v11  ;;  %v2731_v26 = vmul.f32 %v2730_v48, %v10143_v62 }
 0xd17   :  { %v2742_v58 = vmul.f32 %v2741_v14, %v10143_v62  ;;  %v10173_v59 = vadd.f32 %v8300_v31, %v2502_v30  ;;  %v2778_v10 = vmul.f32 %v2777_v6, %v10157_v11 }
 0xd18   :  { %v8106_v46 = vpop.eup %8105  ;;  %3380 = vrot.lane.b32.xlu0 %v10170_v1, %s8738_s0  ;;  %3372 = vrot.lane.b32.xlu1 %v10170_v1, %s8739_s22  ;;  %v2768_v7 = vadd.f32 0.05243302, %v2767_v63  ;;  %v2732_v61 = vadd.f32 1.1283791, %v2731_v26 }
 0xd19   :  { %v2705_v27 = vmul.f32 %v8106_v46, %v2703_v28  ;;  %v10180_v12 = vadd.f32 1.0, %v2742_v58  ;;  %v10184_v57 = vmul.f32 0.70710677, %v10173_v59  ;;  %v2779_v42 = vadd.f32 0.112945676, %v2778_v10 }
 0xd1a   :  { %vm2710_vm11 = vweird.f32 %v8106_v46  ;;  %v2769_v30 = vmul.f32 %v2768_v7, %v10157_v11 }
 0xd1b   :  { %v2706_v55 = vsub.f32 1.0, %v2705_v27  ;;  %8107 = vrcp.f32 %v10180_v12  ;;  %v2801_v36 = vmul.f32 %v10184_v57, %v10184_v57  ;;  %v2780_v43 = vmul.f32 %v2779_v42, %v10157_v11  ;;  %vm2711_vm13 = vmor %vm2709_vm12, %vm2710_vm11 }
 0xd1c   :  { %v2755_v31 = vand.u32 2147483648, %v10180_v12  ;;  %v2753_v6 = vand.u32 2147483647, %v10180_v12  ;;  %vm2749_vm3 = vweird.f32 %v10180_v12  ;;  %v2770_v3 = vadd.f32 0.18741608, %v2769_v30 }
 0xd1d   :  { %v2707_v13 = vmul.f32 %v8106_v46, %v2706_v55  ;;  %v3199_v41 = vpop.f32.mrf.mxu0  ;;  %v10195_v50 = vmin.f32 %v2801_v36, 16.0  ;;  %v2781_v25 = vadd.f32 0.4994258, %v2780_v43  ;;  %v2733_v42 = vmul.f32 %v2732_v61, %v10137_v52 }
 0xd1e   :  { %v10197_v29 = vadd.f32 %v7920_v47, %v3199_v41  ;;  %vm2754_vm5 = vcmp.eq.f32.partialorder %v2753_v6, 8.507059e+37 }
 0xd1f   :  { %v2708_v45 = vadd.f32 %v8106_v46, %v2707_v13  ;;  %v2803_v40 = vmul.f32 2.1237322e-06, %v10195_v50  ;;  %v2814_v28 = vmul.f32 3.8918573e-05, %v10195_v50  ;;  %v2782_v44 = vmul.f32 %v2781_v25, %v10157_v11 }
 0xd20   :  { %3368 = vrot.lane.b32.xlu0 %v10191_v15, %s8739_s22  ;;  %3382 = vrot.lane.b32.xlu2 %v10197_v29, %s8738_s0  ;;  %v2756_v13 = vor.u32 1.1754944e-38, %v2755_v31  ;;  %v2510_v25 = vmul.f32 0.5, %v10134_v39 }
 0xd21   :  { %v8108_v9 = vpop.eup %8107  ;;  %v2712_v53 = vsel %vm2711_vm13, %v8106_v46, %v2708_v45  ;;  %3374 = vrot.lane.b32.xlu1 %v10197_v29, %s8739_s22  ;;  %v2804_v14 = vadd.f32 0.00028619796, %v2803_v40  ;;  %v2815_v60 = vadd.f32 0.001143296, %v2814_v28  ;;  %v2783_v46 = vadd.f32 1.0, %v2782_v44 }
 0xd22   :  { %v2717_v47 = vsel %vm2714_vm15, %v2716_v19, %v2712_v53  ;;  %v2745_v62 = vmul.f32 %v8108_v9, %v10180_v12  ;;  %vm2750_vm1 = vweird.f32 %v8108_v9 }
 0xd23   :  { %v2718_v0 = vmul.f32 %v2717_v47, %v2693_v4  ;;  %v2816_v33 = vmul.f32 %v2815_v60, %v10195_v50  ;;  %v2805_v27 = vmul.f32 %v2804_v14, %v10195_v50  ;;  %8109 = vrcp.f32 %v2783_v46  ;;  %vm2751_vm4 = vmor %vm2749_vm3, %vm2750_vm1 }
 0xd24   :  { %v2746_v16 = vsub.f32 1.0, %v2745_v62  ;;  %v2771_v4 = vmul.f32 %v2770_v3, %v10157_v11  ;;  %v2793_v28 = vand.u32 2147483647, %v2783_v46  ;;  %v2795_v47 = vand.u32 2147483648, %v2783_v46 }
 0xd25   :  { %v7508_v58 = vclamps-f32 %v2718_v0, 1.0  ;;  %v2817_v48 = vadd.f32 0.014752088, %v2816_v33  ;;  %v2806_v24 = vadd.f32 0.0036580483, %v2805_v27  ;;  %vm2789_vm7 = vweird.f32 %v2783_v46 }
 0xd26   :  { %v2747_v54 = vmul.f32 %v8108_v9, %v2746_v16  ;;  %v2772_v53 = vadd.f32 1.1283791, %v2771_v4  ;;  %v2796_v60 = vor.u32 1.1754944e-38, %v2795_v47  ;;  %vm2794_vm9 = vcmp.eq.f32.partialorder %v2793_v28, 8.507059e+37 }
 0xd27   :  { %v2845_v10 = vadd.f32 1.0, %v7508_v58  ;;  %v2818_v12 = vmul.f32 %v2817_v48, %v10195_v50  ;;  %v2807_v26 = vmul.f32 %v2806_v24, %v10195_v50  ;;  %v2512_v4 = vmul.f32 0.5, %v10173_v59 }
 0xd28   :  { %v2748_v55 = vadd.f32 %v8108_v9, %v2747_v54  ;;  %3630 = vrot.lane.b32.xlu0 %v10197_v29, %s8740_s23  ;;  %3376 = vrot.lane.b32.xlu2 %v10191_v15, %s8738_s0  ;;  %v2773_v16 = vmul.f32 %v2772_v53, %v10151_v2  ;;  %v2511_v2 = vmul.f32 0.5, %v10146_v21 }
 0xd29   :  { %v2853_v63 = vmul.f32 %v2845_v10, %v2509_v32  ;;  %3616 = vrot.lane.b32.xlu1 %v10191_v15, %s8741_s4  ;;  %v2819_v52 = vadd.f32 0.112945676, %v2818_v12  ;;  %v8110_v43 = vpop.eup %8109  ;;  %v2808_v44 = vadd.f32 0.05243302, %v2807_v26 }
 0xd2a   :  { %v2752_v51 = vsel %vm2751_vm4, %v8108_v9, %v2748_v55  ;;  %v2785_v19 = vmul.f32 %v8110_v43, %v2783_v46  ;;  %vm2790_vm6 = vweird.f32 %v8110_v43 }
 0xd2b   :  { %v2757_v36 = vsel %vm2754_vm5, %v2756_v13, %v2752_v51  ;;  %7516 = vmatmul.msk.f32.gmra.mxu3 %vm2869_vm2, %v2853_v63  ;;  %v2820_v7 = vmul.f32 %v2819_v52, %v10195_v50  ;;  %vm2791_vm8 = vmor %vm2789_vm7, %vm2790_vm6  ;;  %v2809_v58 = vmul.f32 %v2808_v44, %v10195_v50 }
 0xd2c   :  { %v2758_v41 = vmul.f32 %v2757_v36, %v2733_v42  ;;  %v2786_v40 = vsub.f32 1.0, %v2785_v19 }
 0xd2d   :  { %v2821_v62 = vadd.f32 0.4994258, %v2820_v7  ;;  %v2810_v54 = vadd.f32 0.18741608, %v2809_v58 }
 0xd2e   :  { %v7509_v45 = vclamps-f32 %v2758_v41, 1.0  ;;  %v2787_v0 = vmul.f32 %v8110_v43, %v2786_v40 }
 0xd2f   :  { %v2822_v39 = vmul.f32 %v2821_v62, %v10195_v50  ;;  %v2811_v10 = vmul.f32 %v2810_v54, %v10195_v50 }
 0xd30   :  { %v2846_v9 = vadd.f32 1.0, %v7509_v45  ;;  %3626 = vrot.lane.b32.xlu0 %v10159_v5, %s8740_s23  ;;  %3370 = vrot.lane.b32.xlu2 %v10159_v5, %s8739_s22  ;;  %v2788_v14 = vadd.f32 %v8110_v43, %v2787_v0 }
 0xd31   :  { %3622 = vrot.lane.b32.xlu1 %v10197_v29, %s8741_s4  ;;  %v2823_v61 = vadd.f32 1.0, %v2822_v39  ;;  %v2812_v63 = vadd.f32 1.1283791, %v2811_v10 }
 0xd32   :  { %v2854_v11 = vmul.f32 %v2846_v9, %v2510_v25  ;;  %v2792_v30 = vsel %vm2791_vm8, %v8110_v43, %v2788_v14 }
 0xd33   :  { %v2797_v31 = vsel %vm2794_vm9, %v2796_v60, %v2792_v30  ;;  %8111 = vrcp.f32 %v2823_v61  ;;  %v2835_v48 = vand.u32 2147483648, %v2823_v61  ;;  %v2833_v21 = vand.u32 2147483647, %v2823_v61 }
 0xd34   :  { %7517 = vmatmul.msk.f32.gmra.mxu3 %vm2869_vm2, %v2854_v11  ;;  %v2798_v33 = vmul.f32 %v2797_v31, %v2773_v16  ;;  %vm2829_vm11 = vweird.f32 %v2823_v61  ;;  %v2813_v50 = vmul.f32 %v2812_v63, %v10184_v57  ;;  %v8301_v31 = vld [vmem:[#allocation12] ss:$0 sm:$0xff] }
 0xd35   :  { %v2836_v51 = vor.u32 1.1754944e-38, %v2835_v48  ;;  %vm2834_vm13 = vcmp.eq.f32.partialorder %v2833_v21, 8.507059e+37 }
 0xd36   :  { %v7510_v46 = vclamps-f32 %v2798_v33, 1.0 }
 0xd38   :  { %3618 = vrot.lane.b32.xlu0 %v10159_v5, %s8741_s4  ;;  %3628 = vrot.lane.b32.xlu2 %v10170_v1, %s8740_s23  ;;  %v2847_v6 = vadd.f32 1.0, %v7510_v46 }
 0xd39   :  { %3220 = vrot.lane.b32.xlu1 %v10159_v5, %s8737_s1  ;;  %v8112_v27 = vpop.eup %8111 }
 0xd3a   :  { %v2855_v32 = vmul.f32 %v2847_v6, %v2511_v2  ;;  %v2825_v55 = vmul.f32 %v8112_v27, %v2823_v61  ;;  %vm2830_vm10 = vweird.f32 %v8112_v27 }
 0xd3b   :  { %vm2831_vm12 = vmor %vm2829_vm11, %vm2830_vm10 }
 0xd3c   :  { %v2826_v3 = vsub.f32 1.0, %v2825_v55  ;;  %7518 = vmatmul.msk.f32.gmra.mxu3 %vm2869_vm2, %v2855_v32 }
 0xd3e   :  { %v2827_v42 = vmul.f32 %v8112_v27, %v2826_v3 }
 0xd40   :  { %3224 = vrot.lane.b32.xlu0 %v10197_v29, %s8737_s1  ;;  %3624 = vrot.lane.b32.xlu2 %v10191_v15, %s8740_s23  ;;  %v2828_v13 = vadd.f32 %v8112_v27, %v2827_v42 }
 0xd42   :  { %v2832_v24 = vsel %vm2831_vm12, %v8112_v27, %v2828_v13 }
 0xd43   :  { %v2837_v12 = vsel %vm2834_vm13, %v2836_v51, %v2832_v24 }
 0xd44   :  { %v2838_v36 = vmul.f32 %v2837_v12, %v2813_v50 }
 0xd46   :  { %v7511_v41 = vclamps-f32 %v2838_v36, 1.0 }
 0xd48   :  { %3218 = vrot.lane.b32.xlu0 %v10191_v15, %s8737_s1  ;;  %3620 = vrot.lane.b32.xlu2 %v10170_v1, %s8741_s4  ;;  %v2848_v52 = vadd.f32 1.0, %v7511_v41 }
 0xd4a   :  { %v2856_v43 = vmul.f32 %v2848_v52, %v2512_v4 }
 0xd4c   :  { %7519 = vmatmul.msk.f32.gmra.mxu3 %vm2869_vm2, %v2856_v43 }
 0xd50   :  { %3222 = vrot.lane.b32.xlu2 %v10170_v1, %s8737_s1 }
 0xd7a   :  { %v3383_v57 = vpop.permute.xlu2 %3382 }
 0xd7b   :  { %7540 = vmatpush.xpose.msk.msrb.mxu1 %vm614_vm14, %v3383_v57 }
 0xd82   :  { %v3377_v45 = vpop.permute.xlu2 %3376  ;;  %v3379_v19 = vpop.permute.xlu1 %3378 }
 0xd8a   :  { %v3381_v26 = vpop.permute.xlu0 %3380  ;;  %v3371_v7 = vpop.permute.xlu2 %3370 }
 0xd8b   :  { %7541 = vmatpush.xpose.msk.msrb.mxu1 %vm614_vm14, %v3381_v26  ;;  %v3373_v25 = vpop.permute.xlu1 %3372 }
 0xd8f   :  { %7542 = vmatpush.xpose.msk.msrb.mxu1 %vm614_vm14, %v3379_v19 }
 0xd92   :  { %v3369_v59 = vpop.permute.xlu0 %3368  ;;  %v3629_v9 = vpop.permute.xlu2 %3628 }
 0xd93   :  { %7543 = vmatpush.xpose.msk.msrb.mxu1 %vm614_vm14, %v3377_v45  ;;  %v3375_v40 = vpop.permute.xlu1 %3374 }
 0xd96   :  { %7544 = vmatmul.msk.f32.vlgmr.msrb.gmra.mxu1 %vm614_vm14, %v3369_v59 }
 0xd9a   :  { %v3631_v53 = vpop.permute.xlu0 %3630  ;;  %v3625_v28 = vpop.permute.xlu2 %3624 }
 0xd9b   :  { %7560 = vmatpush.xpose.msk.msra.mxu1 %vm614_vm14, %v3631_v53  ;;  %v3617_v62 = vpop.permute.xlu1 %3616 }
 0xd9e   :  { %7545 = vmatmul.msk.f32.gmra.mxu1 %vm614_vm14, %v3371_v7 }
 0xd9f   :  { %7561 = vmatpush.xpose.msk.msra.mxu1 %vm614_vm14, %v3629_v9 }
 0xda2   :  { %v3627_v47 = vpop.permute.xlu0 %3626  ;;  %v3621_v0 = vpop.permute.xlu2 %3620 }
 0xda3   :  { %7562 = vmatpush.xpose.msk.msra.mxu1 %vm614_vm14, %v3627_v47  ;;  %v3623_v14 = vpop.permute.xlu1 %3622 }
 0xda6   :  { %7546 = vmatmul.msk.f32.gmra.mxu1 %vm614_vm14, %v3373_v25 }
 0xda7   :  { %7563 = vmatpush.xpose.msk.msra.mxu1 %vm614_vm14, %v3625_v28 }
 0xdaa   :  { %v3619_v11 = vpop.permute.xlu0 %3618  ;;  %v3223_v30 = vpop.permute.xlu2 %3222 }
 0xdae   :  { %v2923_v44 = vpop.f32.mrf.mxu3  ;;  %7547 = vmatmul.msk.f32.gmra.mxu1 %vm614_vm14, %v3375_v40 }
 0xdaf   :  { %v2924_v39 = vadd.f32 %v9963_v17, %v2923_v44  ;;  %v3221_v17 = vpop.permute.xlu1 %3220  ;;  %v10360_v44 = vpack.i.bf16 %v10191_v15, %v10159_v5 }
 0xdb1   :  { %v10276_v60 = vadd.f32 %v2924_v39, %v9978_v35 }
 0xdb2   :  { %v3225_v61 = vpop.permute.xlu0 %3224 }
 0xdb3   :  { %7528 = vmatpush.xpose.msk.msrb.mxu2 %vm614_vm14, %v3225_v61  ;;  %v2964_v16 = vsel %vm332_vm0, %v10276_v60, 0.0 }
 0xdb4   :  { %2965 = vadd.xlane.f32.xlu2 %v2964_v16 }
 0xdb6   :  { %7564 = vmatmul.msk.f32.vlgmr.msra.gmra.mxu1 %vm614_vm14, %v3617_v62 }
 0xdb7   :  { %v2926_v58 = vpop.f32.mrf.mxu3  ;;  %7529 = vmatpush.xpose.msk.msrb.mxu2 %vm614_vm14, %v3223_v30  ;;  %v10374_v30 = vpack.i.bf16 %v10170_v1, %v10197_v29 }
 0xdb8   :  { %v2927_v33 = vadd.f32 %v8301_v31, %v2926_v58 }
 0xdba   :  { %v10284_v46 = vadd.f32 %v2927_v33, %v9987_v20  ;;  %v3219_v54 = vpop.permute.xlu0 %3218 }
 0xdbb   :  { %7530 = vmatpush.xpose.msk.msrb.mxu2 %vm614_vm14, %v3221_v17 }
 0xdbc   :  { %v2967_v35 = vsel %vm332_vm0, %v10284_v46, 0.0 }
 0xdbd   :  { %2968 = vadd.xlane.f32.xlu1 %v2967_v35 }
 0xdbe   :  { %7565 = vmatmul.msk.f32.gmra.mxu1 %vm614_vm14, %v3619_v11 }
 0xdbf   :  { %7531 = vmatpush.xpose.msk.msrb.mxu2 %vm614_vm14, %v3219_v54  ;;  %v2929_v2 = vpop.f32.mrf.mxu3 }
 0xdc0   :  { %v2930_v6 = vadd.f32 %v8301_v31, %v2929_v2 }
 0xdc2   :  { %7532 = vmatmul.msk.f32.vlgmr.msrb.gmra.mxu2 %vm614_vm14, %v10191_v15  ;;  %v10294_v27 = vadd.f32 %v2930_v6, %v9996_v56 }
 0xdc4   :  { %v2970_v20 = vsel %vm332_vm0, %v10294_v27, 0.0 }
 0xdc5   :  { %2971 = vadd.xlane.f32.xlu0 %v2970_v20 }
 0xdc6   :  { %7566 = vmatmul.msk.f32.gmra.mxu1 %vm614_vm14, %v3621_v0 }
 0xdca   :  { %7533 = vmatmul.msk.f32.gmra.mxu2 %vm614_vm14, %v10159_v5 }
 0xdce   :  { %7567 = vmatmul.msk.f32.gmra.mxu1 %vm614_vm14, %v3623_v14 }
 0xdcf   :  { %v2932_v32 = vpop.f32.mrf.mxu3 }
 0xdd0   :  { %v2933_v10 = vadd.f32 %v8301_v31, %v2932_v32 }
 0xdd2   :  { %7534 = vmatmul.msk.f32.gmra.mxu2 %vm614_vm14, %v10170_v1  ;;  %v10305_v55 = vadd.f32 %v2933_v10, %v10007_v38 }
 0xdd4   :  { %v2973_v56 = vsel %vm332_vm0, %v10305_v55, 0.0 }
 0xdd5   :  { %2974 = vadd.xlane.f32.xlu2 %v2973_v56 }
 0xdda   :  { %7535 = vmatmul.msk.f32.gmra.mxu2 %vm614_vm14, %v10197_v29 }
 0xe13   :  { %v3417_v3 = vpop.f32.mrf.mxu1 }
 0xe14   :  { %v3429_v41 = vsel %vm332_vm0, %v3417_v3, -inf }
 0xe1b   :  { %v10311_v48 = vpop.f32.mrf.mxu1 }
 0xe1c   :  { %v3432_v59 = vsel %vm332_vm0, %v10311_v48, -inf }
 0xe23   :  { %v10319_v13 = vpop.f32.mrf.mxu1 }
 0xe24   :  { %v3435_v19 = vsel %vm332_vm0, %v10319_v13, -inf }
 0xe27   :  { %v2966_v63 = vpop.xlane.xlu2 %2965 }
 0xe28   :  { %v2980_v42 = vmul.f32 %v2966_v63, %v8953_v22 }
 0xe2a   :  { %v10315_v21 = vsub.f32 %v10276_v60, %v2980_v42 }
 0xe2b   :  { %v10330_v52 = vpop.f32.mrf.mxu1 }
 0xe2c   :  { %v2996_v38 = vmul.f32 %v10315_v21, %v10315_v21  ;;  %v3438_v11 = vsel %vm332_vm0, %v10330_v52, -inf }
 0xe2e   :  { %v3012_v51 = vsel %vm332_vm0, %v2996_v38, 0.0 }
 0xe2f   :  { %3013 = vadd.xlane.f32.xlu1 %v3012_v51 }
 0xe30   :  { %v2969_v50 = vpop.xlane.xlu1 %2968 }
 0xe31   :  { %v2981_v24 = vmul.f32 %v2969_v50, %v8953_v22 }
 0xe33   :  { %v10324_v12 = vsub.f32 %v10284_v46, %v2981_v24  ;;  %v10340_v7 = vpop.f32.mrf.mxu1 }
 0xe34   :  { %v3677_v39 = vsel %vm332_vm0, %v10340_v7, -inf }
 0xe35   :  { %v2997_v36 = vmul.f32 %v10324_v12, %v10324_v12 }
 0xe37   :  { %v3015_v4 = vsel %vm332_vm0, %v2997_v36, 0.0  ;;  %3430 = vmax.xlane.f32.xlu1 %v3429_v41 }
 0xe38   :  { %3016 = vadd.xlane.f32.xlu2 %v3015_v4  ;;  %v2972_v43 = vpop.xlane.xlu0 %2971 }
 0xe39   :  { %v2982_v57 = vmul.f32 %v2972_v43, %v8953_v22 }
 0xe3b   :  { %v10334_v45 = vsub.f32 %v10294_v27, %v2982_v57  ;;  %v10345_v9 = vpop.f32.mrf.mxu1 }
 0xe3c   :  { %v3680_v58 = vsel %vm332_vm0, %v10345_v9, -inf }
 0xe3d   :  { %v2998_v26 = vmul.f32 %v10334_v45, %v10334_v45 }
 0xe3f   :  { %v3018_v25 = vsel %vm332_vm0, %v2998_v26, 0.0 }
 0xe40   :  { %3436 = vmax.xlane.f32.xlu2 %v3435_v19  ;;  %3019 = vadd.xlane.f32.xlu0 %v3018_v25 }
 0xe43   :  { %v10356_v0 = vpop.f32.mrf.mxu1 }
 0xe44   :  { %v3683_v14 = vsel %vm332_vm0, %v10356_v0, -inf }
 0xe48   :  { %v2975_v53 = vpop.xlane.xlu2 %2974  ;;  %3433 = vmax.xlane.f32.xlu0 %v3432_v59 }
 0xe49   :  { %v2983_v40 = vmul.f32 %v2975_v53, %v8953_v22 }
 0xe4b   :  { %v10349_v28 = vsub.f32 %v10305_v55, %v2983_v40  ;;  %v10368_v61 = vpop.f32.mrf.mxu1 }
 0xe4c   :  { %v3686_v16 = vsel %vm332_vm0, %v10368_v61, -inf }
 0xe4d   :  { %v2999_v47 = vmul.f32 %v10349_v28, %v10349_v28 }
 0xe4f   :  { %v3021_v62 = vsel %vm332_vm0, %v2999_v47, 0.0 }
 0xe50   :  { %3022 = vadd.xlane.f32.xlu1 %v3021_v62  ;;  %3439 = vmax.xlane.f32.xlu0 %v3438_v11 }
 0xe58   :  { %7843 = vrot.lane.b32.xlu2 %v10360_v44, %s8742_s20  ;;  %3678 = vmax.xlane.f32.xlu1 %v3677_v39 }
 0xe59   :  { %3684 = vmax.xlane.f32.xlu0 %v3683_v14 }
 0xe61   :  { %3687 = vmax.xlane.f32.xlu0 %v3686_v16 }
 0xe71   :  { %7838 = vrot.lane.b32.xlu1 %v10374_v30, %s8742_s20 }
 0xe81   :  { %3681 = vmax.xlane.f32.xlu2 %v3680_v58 }
 0xea2   :  { %v3014_v31 = vpop.xlane.xlu1 %3013 }
 0xea3   :  { %v3028_v33 = vmul.f32 %v3014_v31, %v8953_v22 }
 0xea5   :  { %v3036_v17 = vadd.f32 1e-05, %v3028_v33 }
 0xea7   :  { %8113 = vrsqrt.f32 %v3036_v17  ;;  %vm3086_vm1 = vweird.f32 %v3036_v17 }
 0xeaa   :  { %v3431_v35 = vpop.xlane.xlu1 %3430 }
 0xeab   :  { %v3017_v54 = vpop.xlane.xlu2 %3016  ;;  %v3441_v2 = vsub.f32 %v3417_v3, %v3431_v35 }
 0xeac   :  { %v3029_v6 = vmul.f32 %v3017_v54, %v8953_v22 }
 0xead   :  { %v8114_v20 = vpop.eup %8113  ;;  %v3445_v32 = vmul.f32 1.442695, %v3441_v2 }
 0xeae   :  { %v3081_v10 = vmul.f32 %v8114_v20, %v3036_v17  ;;  %v3037_v56 = vadd.f32 1e-05, %v3029_v6  ;;  %vm3087_vm15 = vweird.f32 %v8114_v20 }
 0xeaf   :  { %8115 = vpow2.f32 %v3445_v32  ;;  %vm3088_vm3 = vmor %vm3086_vm1, %vm3087_vm15 }
 0xeb0   :  { %v3082_v63 = vmul.f32 %v8114_v20, %v3081_v10  ;;  %8117 = vrsqrt.f32 %v3037_v56  ;;  %vm3096_vm5 = vweird.f32 %v3037_v56 }
 0xeb2   :  { %v3083_v42 = vmul.f32 0.5, %v3082_v63 }
 0xeb3   :  { %v3020_v41 = vpop.xlane.xlu0 %3019  ;;  %v3437_v62 = vpop.xlane.xlu2 %3436 }
 0xeb4   :  { %v3084_v38 = vsub.f32 1.5, %v3083_v42  ;;  %v3030_v43 = vmul.f32 %v3020_v41, %v8953_v22  ;;  %v3443_v58 = vsub.f32 %v10319_v13, %v3437_v62 }
 0xeb5   :  { %v10382_v51 = vpop.eup %8115 }
 0xeb6   :  { %v8118_v50 = vpop.eup %8117  ;;  %v3085_v24 = vmul.f32 %v8114_v20, %v3084_v38  ;;  %v3453_v3 = vsel %vm332_vm0, %v10382_v51, 0.0  ;;  %v3038_v26 = vadd.f32 1e-05, %v3030_v43  ;;  %v3449_v54 = vmul.f32 1.442695, %v3443_v58 }
 0xeb7   :  { %v3091_v36 = vmul.f32 %v8118_v50, %v3037_v56  ;;  %3454 = vadd.xlane.f32.xlu2 %v3453_v3  ;;  %vm3097_vm4 = vweird.f32 %v8118_v50 }
 0xeb8   :  { %v3089_v4 = vsel %vm3088_vm3, %v8114_v20, %v3085_v24  ;;  %8119 = vrsqrt.f32 %v3038_v26  ;;  %vm3098_vm6 = vmor %vm3096_vm5, %vm3097_vm4  ;;  %vm3106_vm8 = vweird.f32 %v3038_v26 }
 0xeb9   :  { %v3124_v57 = vmul.f32 %v3089_v4, %v10315_v21  ;;  %v3092_v19 = vmul.f32 %v8118_v50, %v3091_v36 }
 0xebb   :  { %v3093_v25 = vmul.f32 0.5, %v3092_v19  ;;  %v3133_v59 = vmul.f32 %v10082_v37, %v3124_v57  ;;  %v3434_v11 = vpop.xlane.xlu0 %3433 }
 0xebc   :  { %v3442_v39 = vsub.f32 %v10311_v48, %v3434_v11 }
 0xebd   :  { %v3094_v53 = vsub.f32 1.5, %v3093_v25  ;;  %v3142_v40 = vadd.f32 %v10084_v34, %v3133_v59 }
 0xebe   :  { %v8120_v14 = vpop.eup %8119  ;;  %v3447_v31 = vmul.f32 1.442695, %v3442_v39 }
 0xebf   :  { %v3095_v47 = vmul.f32 %v8118_v50, %v3094_v53  ;;  %7524 = vmatmul.msk.f32.gmra.mxu0 %vm332_vm0, %v3142_v40  ;;  %v3101_v33 = vmul.f32 %v8120_v14, %v3038_v26  ;;  %vm3107_vm7 = vweird.f32 %v8120_v14 }
 0xec0   :  { %8121 = vpow2.f32 %v3447_v31  ;;  %vm3108_vm9 = vmor %vm3106_vm8, %vm3107_vm7 }
 0xec1   :  { %v3099_v21 = vsel %vm3098_vm6, %v8118_v50, %v3095_v47  ;;  %v3102_v35 = vmul.f32 %v8120_v14, %v3101_v33  ;;  %8123 = vpow2.f32 %v3449_v54 }
 0xec2   :  { %v3125_v16 = vmul.f32 %v3099_v21, %v10324_v12 }
 0xec3   :  { %v3103_v6 = vmul.f32 0.5, %v3102_v35  ;;  %v3023_v20 = vpop.xlane.xlu1 %3022  ;;  %v3440_v32 = vpop.xlane.xlu0 %3439 }
 0xec4   :  { %v3134_v17 = vmul.f32 %v10082_v37, %v3125_v16  ;;  %v3031_v48 = vmul.f32 %v3023_v20, %v8953_v22  ;;  %v3444_v10 = vsub.f32 %v10330_v52, %v3440_v32  ;;  %v10425_v16 = vpop.f32.mrf.mxu2  ;;  %v7844_v20 = vpop.permute.xlu2 %7843 }
 0xec5   :  { %v3104_v12 = vsub.f32 1.5, %v3103_v6 }
 0xec6   :  { %v3143_v2 = vadd.f32 %v10084_v34, %v3134_v17  ;;  %v10399_v13 = vpop.eup %8121  ;;  %v3039_v56 = vadd.f32 1e-05, %v3031_v48  ;;  %v3451_v63 = vmul.f32 1.442695, %v3444_v10 }
 0xec7   :  { %v3105_v42 = vmul.f32 %v8120_v14, %v3104_v12  ;;  %v3456_v38 = vsel %vm332_vm0, %v10399_v13, 0.0  ;;  %v10408_v36 = vpop.eup %8123 }
 0xec8   :  { %7525 = vmatmul.msk.f32.gmra.mxu0 %vm332_vm0, %v3143_v2  ;;  %8125 = vrsqrt.f32 %v3039_v56  ;;  %3457 = vadd.xlane.f32.xlu0 %v3456_v38  ;;  %vm3116_vm11 = vweird.f32 %v3039_v56 }
 0xec9   :  { %v3109_v50 = vsel %vm3108_vm9, %v8120_v14, %v3105_v42  ;;  %8127 = vpow2.f32 %v3451_v63 }
 0xeca   :  { %v3126_v52 = vmul.f32 %v3109_v50, %v10334_v45  ;;  %v3459_v45 = vsel %vm332_vm0, %v10408_v36, 0.0 }
 0xecb   :  { %v3679_v24 = vpop.xlane.xlu1 %3678 }
 0xecc   :  { %v10404_v3 = vpop.xlane.xlu0 %3684  ;;  %v3689_v41 = vsub.f32 %v10340_v7, %v3679_v24  ;;  %v3135_v4 = vmul.f32 %v10082_v37, %v3126_v52  ;;  %v10435_v54 = vpop.f32.mrf.mxu2 }
 0xecd   :  { %v3691_v50 = vsub.f32 %v10356_v0, %v10404_v3  ;;  %v3274_v52 = vsel %vm332_vm0, %v10435_v54, -inf }
 0xece   :  { %v8126_v43 = vpop.eup %8125  ;;  %v3693_v57 = vmul.f32 1.442695, %v3689_v41  ;;  %v3144_v19 = vadd.f32 %v10084_v34, %v3135_v4 }
 0xecf   :  { %7848 = vrot.lane.b32.xlu2 %v10374_v30, %s8743_s13  ;;  %v10413_v26 = vpop.eup %8127  ;;  %v3111_v25 = vmul.f32 %v8126_v43, %v3039_v56  ;;  %vm3117_vm10 = vweird.f32 %v8126_v43  ;;  %v3697_v24 = vmul.f32 1.442695, %v3691_v50 }
 0xed0   :  { %8129 = vpow2.f32 %v3693_v57  ;;  %7526 = vmatmul.msk.f32.gmra.mxu0 %vm332_vm0, %v3144_v19  ;;  %3460 = vadd.xlane.f32.xlu0 %v3459_v45  ;;  %v3462_v59 = vsel %vm332_vm0, %v10413_v26, 0.0  ;;  %vm3118_vm12 = vmor %vm3116_vm11, %vm3117_vm10 }
 0xed1   :  { %v3112_v7 = vmul.f32 %v8126_v43, %v3111_v25  ;;  %3463 = vadd.xlane.f32.xlu1 %v3462_v59 }
 0xed3   :  { %v3113_v53 = vmul.f32 0.5, %v3112_v7 }
 0xed4   :  { %v3688_v40 = vpop.xlane.xlu0 %3687  ;;  %v10439_v48 = vpop.f32.mrf.mxu2 }
 0xed5   :  { %v3692_v47 = vsub.f32 %v10368_v61, %v3688_v40  ;;  %v3114_v62 = vsub.f32 1.5, %v3113_v53  ;;  %v3277_v10 = vsel %vm332_vm0, %v10439_v48, -inf }
 0xed6   :  { %v10421_v11 = vpop.eup %8129 }
 0xed7   :  { %v3699_v39 = vmul.f32 1.442695, %v3692_v47  ;;  %v3115_v21 = vmul.f32 %v8126_v43, %v3114_v62  ;;  %v3701_v14 = vsel %vm332_vm0, %v10421_v11, 0.0 }
 0xed8   :  { %3702 = vadd.xlane.f32.xlu0 %v3701_v14 }
 0xed9   :  { %8131 = vpow2.f32 %v3699_v39  ;;  %v3119_v58 = vsel %vm3118_vm12, %v8126_v43, %v3115_v21 }
 0xeda   :  { %v3127_v31 = vmul.f32 %v3119_v58, %v10349_v28  ;;  %v7845_v28 = vunpack.i.l.bf16 %v7844_v20 }
 0xedc   :  { %v3136_v61 = vmul.f32 %v10082_v37, %v3127_v31  ;;  %v3271_v37 = vsel %vm332_vm0, %v10425_v16, -inf  ;;  %v10454_v41 = vpop.f32.mrf.mxu2 }
 0xede   :  { %v3145_v17 = vadd.f32 %v10084_v34, %v3136_v61  ;;  %v7846_v34 = vunpack.i.h.bf16 %v7844_v20 }
 0xedf   :  { %v10429_v33 = vpop.eup %8131 }
 0xee0   :  { %v3710_v35 = vsel %vm332_vm0, %v10429_v33, 0.0  ;;  %7527 = vmatmul.msk.f32.gmra.mxu0 %vm332_vm0, %v3145_v17 }
 0xee1   :  { %3711 = vadd.xlane.f32.xlu1 %v3710_v35 }
 0xee3   :  { %v7839_v2 = vpop.permute.xlu1 %7838 }
 0xee4   :  { %v7840_v6 = vunpack.i.l.bf16 %v7839_v2  ;;  %v7841_v32 = vunpack.i.h.bf16 %v7839_v2 }
 0xee6   :  { %3509 = vmatpush.msrb.mxu3 %v7840_v6 }
 0xee8   :  { %3510 = vmatpush.msrb.mxu3 %v7841_v32 }
 0xee9   :  { %3272 = vmax.xlane.f32.xlu1 %v3271_v37 }
 0xeea   :  { %3511 = vmatpush.msrb.mxu3 %v7845_v28 }
 0xeec   :  { %3512 = vmatpush.msrb.mxu3 %v7846_v34  ;;  %7853 = vrot.lane.b32.xlu0 %v10360_v44, %s8743_s13 }
 0xef1   :  { %3278 = vmax.xlane.f32.xlu1 %v3277_v10 }
 0xef4   :  { %v3682_v12 = vpop.xlane.xlu2 %3681 }
 0xef5   :  { %v3690_v56 = vsub.f32 %v10345_v9, %v3682_v12  ;;  %v3280_v9 = vsel %vm332_vm0, %v10454_v41, -inf }
 0xef7   :  { %v3695_v63 = vmul.f32 1.442695, %v3690_v56 }
 0xef9   :  { %8133 = vpow2.f32 %v3695_v63 }
 0xefa   :  { %8135 = vpow2.f32 %v3697_v24  ;;  %v8302_v24 = vld [vmem:[#allocation6 + $0x1] ss:$0 sm:$0xff] }
 0xeff   :  { %v10446_v42 = vpop.eup %8133 }
 0xf00   :  { %v3704_v38 = vsel %vm332_vm0, %v10446_v42, 0.0  ;;  %v10458_v4 = vpop.eup %8135 }
 0xf01   :  { %3705 = vadd.xlane.f32.xlu2 %v3704_v38  ;;  %v3707_v43 = vsel %vm332_vm0, %v10458_v4, 0.0 }
 0xf09   :  { %3275 = vmax.xlane.f32.xlu2 %v3274_v52 }
 0xf11   :  { %3281 = vmax.xlane.f32.xlu2 %v3280_v9 }
 0xf16   :  { %3708 = vadd.xlane.f32.xlu0 %v3707_v43 }
 0xf29   :  { %7858 = vrot.lane.b32.xlu2 %v10374_v30, %s11703_s29 }
 0xf2a   :  { %v3455_v0 = vpop.xlane.xlu2 %3454  ;;  %7863 = vrot.lane.b32.xlu0 %v10360_v44, %s11703_s29 }
 0xf2b   :  { %8137 = vrcp.f32 %v3455_v0 }
 0xf31   :  { %v8138_v3 = vpop.eup %8137 }
 0xf32   :  { %v3469_v57 = vmul.f32 %v8138_v3, %v10382_v51  ;;  %v7849_v19 = vpop.permute.xlu2 %7848 }
 0xf33   :  { %v7850_v25 = vunpack.i.l.bf16 %v7849_v19  ;;  %v7851_v45 = vunpack.i.h.bf16 %v7849_v19 }
 0xf34   :  { %7548 = vmatmul.msk.f32.vlgmr.msrb.gmra.mxu3 %vm332_vm0, %v3469_v57 }
 0xf35   :  { %3757 = vmatpush.msra.mxu3 %v7850_v25 }
 0xf37   :  { %3758 = vmatpush.msra.mxu3 %v7851_v45 }
 0xf3b   :  { %v3458_v59 = vpop.xlane.xlu0 %3457 }
 0xf3c   :  { %8139 = vrcp.f32 %v3458_v59  ;;  %v3202_v38 = vpop.f32.mrf.mxu0 }
 0xf3d   :  { %v10490_v9 = vadd.f32 %v8302_v24, %v3202_v38 }
 0xf42   :  { %v8140_v7 = vpop.eup %8139 }
 0xf43   :  { %v3461_v53 = vpop.xlane.xlu0 %3460  ;;  %v3470_v40 = vmul.f32 %v8140_v7, %v10399_v13 }
 0xf44   :  { %8141 = vrcp.f32 %v3461_v53  ;;  %v3464_v47 = vpop.xlane.xlu1 %3463 }
 0xf45   :  { %7549 = vmatmul.msk.f32.gmra.mxu3 %vm332_vm0, %v3470_v40  ;;  %8143 = vrcp.f32 %v3464_v47 }
 0xf4a   :  { %v8142_v62 = vpop.eup %8141 }
 0xf4b   :  { %v3471_v51 = vmul.f32 %v8142_v62, %v10408_v36  ;;  %v8144_v39 = vpop.eup %8143  ;;  %v3703_v58 = vpop.xlane.xlu0 %3702  ;;  %v8303_v62 = vld [vmem:[#allocation4 + $0x28] sm:$0xff] }
 0xf4c   :  { %v3472_v14 = vmul.f32 %v8144_v39, %v10413_v26  ;;  %8145 = vrcp.f32 %v3703_v58 }
 0xf4d   :  { %7550 = vmatmul.msk.f32.gmra.mxu3 %vm332_vm0, %v3471_v51  ;;  %v3205_v51 = vpop.f32.mrf.mxu0 }
 0xf52   :  { %v8146_v35 = vpop.eup %8145 }
 0xf53   :  { %v3717_v36 = vmul.f32 %v8146_v35, %v10421_v11 }
 0xf54   :  { %v3712_v21 = vpop.xlane.xlu1 %3711 }
 0xf55   :  { %7551 = vmatmul.msk.f32.gmra.mxu3 %vm332_vm0, %v3472_v14 }
 0xf5c   :  { %v3273_v31 = vpop.xlane.xlu1 %3272 }
 0xf5d   :  { %v3283_v13 = vsub.f32 %v10425_v16, %v3273_v31  ;;  %v10522_v31 = vadd.f32 %v8302_v24, %v3205_v51 }
 0xf5e   :  { %v7854_v17 = vpop.permute.xlu0 %7853 }
 0xf5f   :  { %v3287_v61 = vmul.f32 1.442695, %v3283_v13  ;;  %v7855_v2 = vunpack.i.l.bf16 %v7854_v17  ;;  %v7856_v6 = vunpack.i.h.bf16 %v7854_v17 }
 0xf61   :  { %8147 = vpow2.f32 %v3287_v61  ;;  %3759 = vmatpush.msra.mxu3 %v7855_v2 }
 0xf63   :  { %3760 = vmatpush.msra.mxu3 %v7856_v6 }
 0xf64   :  { %v3279_v20 = vpop.xlane.xlu1 %3278  ;;  %7568 = vmatmul.msk.f32.vlgmr.msra.gmra.mxu3 %vm332_vm0, %v3717_v36 }
 0xf65   :  { %v3285_v26 = vsub.f32 %v10439_v48, %v3279_v20 }
 0xf67   :  { %v10478_v32 = vpop.eup %8147  ;;  %v3291_v37 = vmul.f32 1.442695, %v3285_v26 }
 0xf68   :  { %v3295_v16 = vsel %vm332_vm0, %v10478_v32, 0.0 }
 0xf69   :  { %8149 = vpow2.f32 %v3291_v37  ;;  %3296 = vadd.xlane.f32.xlu1 %v3295_v16 }
 0xf6f   :  { %v10482_v28 = vpop.eup %8149 }
 0xf70   :  { %v3301_v34 = vsel %vm332_vm0, %v10482_v28, 0.0 }
 0xf71   :  { %3302 = vadd.xlane.f32.xlu0 %v3301_v34 }
 0xf74   :  { %v3706_v11 = vpop.xlane.xlu2 %3705 }
 0xf75   :  { %8151 = vrcp.f32 %v3706_v11 }
 0xf7b   :  { %v8152_v10 = vpop.eup %8151 }
 0xf7c   :  { %v3276_v48 = vpop.xlane.xlu2 %3275  ;;  %v3718_v12 = vmul.f32 %v8152_v10, %v10446_v42 }
 0xf7d   :  { %v3284_v56 = vsub.f32 %v10435_v54, %v3276_v48 }
 0xf7e   :  { %7569 = vmatmul.msk.f32.gmra.mxu3 %vm332_vm0, %v3718_v12 }
 0xf7f   :  { %v3289_v63 = vmul.f32 1.442695, %v3284_v56 }
 0xf81   :  { %8153 = vpow2.f32 %v3289_v63 }
 0xf84   :  { %v3282_v50 = vpop.xlane.xlu2 %3281 }
 0xf85   :  { %v3286_v52 = vsub.f32 %v10454_v41, %v3282_v50  ;;  %4034 = vrot.lane.b32.xlu0 %v10490_v9, %s8737_s1 }
 0xf87   :  { %v8154_v43 = vpop.eup %8153  ;;  %v3293_v0 = vmul.f32 1.442695, %v3286_v52 }
 0xf88   :  { %v3298_v42 = vsel %vm332_vm0, %v8154_v43, 0.0 }
 0xf89   :  { %8155 = vpow2.f32 %v3293_v0  ;;  %3299 = vadd.xlane.f32.xlu1 %v3298_v42  ;;  %v3709_v3 = vpop.xlane.xlu0 %3708 }
 0xf8a   :  { %8157 = vrcp.f32 %v3709_v3 }
 0xf8b   :  { %8159 = vrcp.f32 %v3712_v21  ;;  %v8305_v21 = vld [vmem:[#allocation4 + $0x30] sm:$0xff] }
 0xf8c   :  { %v7859_v54 = vpop.permute.xlu2 %7858 }
 0xf8d   :  { %v7860_v57 = vunpack.i.l.bf16 %v7859_v54  ;;  %v7861_v25 = vunpack.i.h.bf16 %v7859_v54  ;;  %3833 = vrot.lane.b32.xlu0 %v10159_v5, %s8744_s14 }
 0xf8f   :  { %v10495_v19 = vpop.eup %8155  ;;  %3351 = vmatpush.msra.mxu2 %v7860_v57 }
 0xf90   :  { %v3304_v41 = vsel %vm332_vm0, %v10495_v19, 0.0  ;;  %v8158_v45 = vpop.eup %8157 }
 0xf91   :  { %3305 = vadd.xlane.f32.xlu2 %v3304_v41  ;;  %3352 = vmatpush.msra.mxu2 %v7861_v25  ;;  %v3719_v59 = vmul.f32 %v8158_v45, %v10458_v4  ;;  %v8160_v7 = vpop.eup %8159  ;;  %v8304_v4 = vld [vmem:[#allocation4 + $0x20] sm:$0xff] }
 0xf92   :  { %v3720_v53 = vmul.f32 %v8160_v7, %v10429_v33 }
 0xf93   :  { %7570 = vmatmul.msk.f32.gmra.mxu3 %vm332_vm0, %v3719_v59 }
 0xf95   :  { %3825 = vrot.lane.b32.xlu0 %v10159_v5, %s8746_s9  ;;  %v3208_v5 = vpop.f32.mrf.mxu0 }
 0xf96   :  { %v10510_v14 = vadd.f32 %v8302_v24, %v3208_v5 }
 0xf9b   :  { %7571 = vmatmul.msk.f32.gmra.mxu3 %vm332_vm0, %v3720_v53 }
 0xf9c   :  { %v7864_v40 = vpop.permute.xlu0 %7863 }
 0xf9d   :  { %v7865_v47 = vunpack.i.l.bf16 %v7864_v40  ;;  %v7866_v39 = vunpack.i.h.bf16 %v7864_v40  ;;  %v3211_v33 = vpop.f32.mrf.mxu0 }
 0xf9e   :  { %v10516_v58 = vadd.f32 %v8302_v24, %v3211_v33 }
 0xf9f   :  { %3353 = vmatpush.msra.mxu2 %v7865_v47 }
 0xfa1   :  { %3354 = vmatpush.msra.mxu2 %v7866_v39 }
 0xfa2   :  { %3527 = vrot.lane.b32.xlu1 %v8303_v62, %s8745_s5 }
 0xfa9   :  { %3572 = vrot.lane.b32.xlu2 %v8304_v4, %s8745_s5 }
 0xfaa   :  { %3775 = vrot.lane.b32.xlu1 %v8305_v21, %s8745_s5 }
 0xfb1   :  { %3823 = vrot.lane.b32.xlu2 %v10191_v15, %s8746_s9 }
 0xfb2   :  { %4038 = vrot.lane.b32.xlu1 %v10510_v14, %s8737_s1 }
 0xfb7   :  { %v3514_v26 = vpop.f32.mrf.mxu3 }
 0xfb9   :  { %3829 = vrot.lane.b32.xlu2 %v10197_v29, %s8746_s9 }
 0xfba   :  { %4040 = vrot.lane.b32.xlu1 %v10516_v58, %s8737_s1 }
 0xfc2   :  { %4036 = vrot.lane.b32.xlu1 %v10522_v31, %s8737_s1 }
 0xfc8   :  { %v3517_v34 = vpop.f32.mrf.mxu3 }
 0xfca   :  { %3837 = vrot.lane.b32.xlu1 %v10197_v29, %s8744_s14 }
 0xfd2   :  { %3835 = vrot.lane.b32.xlu1 %v10170_v1, %s8744_s14 }
 0xfda   :  { %3831 = vrot.lane.b32.xlu1 %v10191_v15, %s8744_s14 }
 0xfdc   :  { %v3297_v13 = vpop.xlane.xlu1 %3296 }
 0xfdd   :  { %8161 = vrcp.f32 %v3297_v13 }
 0xfe2   :  { %3827 = vrot.lane.b32.xlu1 %v10170_v1, %s8746_s9 }
 0xfe3   :  { %v8162_v61 = vpop.eup %8161 }
 0xfe4   :  { %v3311_v17 = vmul.f32 %v8162_v61, %v10478_v32  ;;  %v3303_v2 = vpop.xlane.xlu0 %3302 }
 0xfe6   :  { %7536 = vmatmul.msk.f32.vlgmr.msra.gmra.mxu2 %vm332_vm0, %v3311_v17 }
 0xff7   :  { %v4035_v38 = vpop.permute.xlu0 %4034 }
 0xffc   :  { %v3300_v35 = vpop.xlane.xlu1 %3299 }
 0xffd   :  { %8163 = vrcp.f32 %v3300_v35 }
 0xffe   :  { %8165 = vrcp.f32 %v3303_v2 }
 0xfff   :  { %v3834_v0 = vpop.permute.xlu0 %3833 }
0x1003   :  { %v8164_v29 = vpop.eup %8163 }
0x1004   :  { %v3306_v6 = vpop.xlane.xlu2 %3305  ;;  %v3312_v36 = vmul.f32 %v8164_v29, %v8154_v43  ;;  %v8166_v15 = vpop.eup %8165 }
0x1005   :  { %8167 = vrcp.f32 %v3306_v6  ;;  %v3313_v1 = vmul.f32 %v8166_v15, %v10482_v28  ;;  %v3520_v28 = vpop.f32.mrf.mxu3  ;;  %v10598_v6 = vpack.i.bf16 %v10510_v14, %v10516_v58 }
0x1006   :  { %7537 = vmatmul.msk.f32.gmra.mxu2 %vm332_vm0, %v3312_v36  ;;  %v10604_v36 = vpack.i.bf16 %v10490_v9, %v10522_v31 }
0x1007   :  { %v3826_v53 = vpop.permute.xlu0 %3825 }
0x100b   :  { %v8168_v32 = vpop.eup %8167 }
0x100c   :  { %v10537_v20 = vpop.permute.xlu2 %3572  ;;  %v3314_v16 = vmul.f32 %v8168_v32, %v10495_v19 }
0x100d   :  { %3602 = vmatpush.msrb.mxu2 %v10537_v20  ;;  %v3523_v48 = vpop.f32.mrf.mxu3 }
0x100e   :  { %7538 = vmatmul.msk.f32.gmra.mxu2 %vm332_vm0, %v3313_v1 }
0x1014   :  { %v3528_v37 = vpop.permute.xlu1 %3527  ;;  %v3824_v59 = vpop.permute.xlu2 %3823 }
0x1015   :  { %3557 = vmatpush.msrb.mxu0 %v3528_v37  ;;  %v3762_v56 = vpop.f32.mrf.mxu3 }
0x1016   :  { %7539 = vmatmul.msk.f32.gmra.mxu2 %vm332_vm0, %v3314_v16  ;;  %7552 = vmatmul.msk.f32.vlgmr.msrb.gmra.mxu0 %vm614_vm14, %v3514_v26 }
0x101c   :  { %v3776_v11 = vpop.permute.xlu1 %3775  ;;  %v3830_v51 = vpop.permute.xlu2 %3829 }
0x101d   :  { %3805 = vmatpush.msra.mxu0 %v3776_v11  ;;  %v3765_v50 = vpop.f32.mrf.mxu3 }
0x101e   :  { %7553 = vmatmul.msk.f32.gmra.mxu0 %vm614_vm14, %v3517_v34 }
0x1024   :  { %v4039_v10 = vpop.permute.xlu1 %4038 }
0x1025   :  { %v3768_v24 = vpop.f32.mrf.mxu3 }
0x1026   :  { %7554 = vmatmul.msk.f32.gmra.mxu0 %vm614_vm14, %v3520_v28 }
0x102c   :  { %v4041_v12 = vpop.permute.xlu1 %4040 }
0x102d   :  { %7592 = vmatpush.xpose.msk.msrb.mxu0 %vm614_vm14, %v4041_v12  ;;  %v3771_v54 = vpop.f32.mrf.mxu3 }
0x102e   :  { %7555 = vmatmul.msk.f32.gmra.mxu0 %vm614_vm14, %v3523_v48 }
0x1031   :  { %7593 = vmatpush.xpose.msk.msrb.mxu0 %vm614_vm14, %v4039_v10 }
0x1034   :  { %v4037_v63 = vpop.permute.xlu1 %4036 }
0x1035   :  { %7594 = vmatpush.xpose.msk.msrb.mxu0 %vm614_vm14, %v4037_v63 }
0x1036   :  { %7572 = vmatmul.msk.f32.vlgmr.msra.gmra.mxu0 %vm614_vm14, %v3762_v56 }
0x1039   :  { %7595 = vmatpush.xpose.msk.msrb.mxu0 %vm614_vm14, %v4035_v38 }
0x103c   :  { %v3838_v52 = vpop.permute.xlu1 %3837 }
0x103d   :  { %4369 = vmatpush.msra.mxu0 %v3528_v37  ;;  %7576 = vmatpush.xpose.msk.msra.mxu2 %vm614_vm14, %v3838_v52 }
0x103e   :  { %7573 = vmatmul.msk.f32.gmra.mxu0 %vm614_vm14, %v3765_v50 }
0x1044   :  { %v3836_v43 = vpop.permute.xlu1 %3835 }
0x1045   :  { %7577 = vmatpush.xpose.msk.msra.mxu2 %vm614_vm14, %v3836_v43 }
0x1046   :  { %7574 = vmatmul.msk.f32.gmra.mxu0 %vm614_vm14, %v3768_v24 }
0x1049   :  { %7578 = vmatpush.xpose.msk.msra.mxu2 %vm614_vm14, %v3834_v0 }
0x104c   :  { %v3832_v42 = vpop.permute.xlu1 %3831 }
0x104d   :  { %7579 = vmatpush.xpose.msk.msra.mxu2 %vm614_vm14, %v3832_v42 }
0x104e   :  { %7575 = vmatmul.msk.f32.gmra.mxu0 %vm614_vm14, %v3771_v54 }
0x1054   :  { %v3828_v47 = vpop.permute.xlu1 %3827 }
0x1056   :  { %7596 = vmatmul.msk.f32.vlgmr.msrb.gmra.mxu0 %vm614_vm14, %v10490_v9 }
0x1057   :  { %4609 = vmatpush.msrb.mxu0 %v3776_v11 }
0x105e   :  { %7597 = vmatmul.msk.f32.gmra.mxu0 %vm614_vm14, %v10522_v31 }
0x1066   :  { %7598 = vmatmul.msk.f32.gmra.mxu0 %vm614_vm14, %v10510_v14 }
0x1069   :  { %v3356_v3 = vpop.f32.mrf.mxu2 }
0x106a   :  { %7556 = vmatmul.msk.f32.vlgmr.msrb.gmra.mxu2 %vm614_vm14, %v3356_v3 }
0x106e   :  { %7599 = vmatmul.msk.f32.gmra.mxu0 %vm614_vm14, %v10516_v58 }
0x1089   :  { %v3359_v57 = vpop.f32.mrf.mxu2 }
0x108a   :  { %7557 = vmatmul.msk.f32.gmra.mxu2 %vm614_vm14, %v3359_v57 }
0x1091   :  { %v3362_v19 = vpop.f32.mrf.mxu2 }
0x1092   :  { %7558 = vmatmul.msk.f32.gmra.mxu2 %vm614_vm14, %v3362_v19 }
0x1093   :  { %v10571_v25 = vpop.f32.mrf.mxu0 }
0x1099   :  { %v3365_v41 = vpop.f32.mrf.mxu2 }
0x109a   :  { %7559 = vmatmul.msk.f32.gmra.mxu2 %vm614_vm14, %v3365_v41 }
0x109b   :  { %v10574_v45 = vpop.f32.mrf.mxu0 }
0x10a2   :  { %7580 = vmatmul.msk.f32.vlgmr.msra.gmra.mxu2 %vm614_vm14, %v3824_v59 }
0x10a3   :  { %v10577_v7 = vpop.f32.mrf.mxu0 }
0x10aa   :  { %7581 = vmatmul.msk.f32.gmra.mxu2 %vm614_vm14, %v3826_v53 }
0x10ab   :  { %v10580_v40 = vpop.f32.mrf.mxu0 }
0x10b2   :  { %7582 = vmatmul.msk.f32.gmra.mxu2 %vm614_vm14, %v3828_v47 }
0x10b3   :  { %v10583_v62 = vpop.f32.mrf.mxu0 }
0x10ba   :  { %7583 = vmatmul.msk.f32.gmra.mxu2 %vm614_vm14, %v3830_v51 }
0x10bb   :  { %v10586_v39 = vpop.f32.mrf.mxu0 }
0x10c3   :  { %v10588_v4 = vpop.f32.mrf.mxu0 }
0x10cb   :  { %v10590_v21 = vpop.f32.mrf.mxu0 }
0x10d3   :  { %v4075_v5 = vpop.f32.mrf.mxu0 }
0x10d4   :  { %v4087_v33 = vsel %vm332_vm0, %v4075_v5, -inf }
0x10d5   :  { %4088 = vmax.xlane.f32.xlu0 %v4087_v33 }
0x10db   :  { %v4078_v13 = vpop.f32.mrf.mxu0 }
0x10dc   :  { %v4090_v61 = vsel %vm332_vm0, %v4078_v13, -inf }
0x10dd   :  { %4091 = vmax.xlane.f32.xlu1 %v4090_v61 }
0x10e3   :  { %v4081_v17 = vpop.f32.mrf.mxu0 }
0x10e4   :  { %v4093_v35 = vsel %vm332_vm0, %v4081_v17, -inf }
0x10e5   :  { %4094 = vmax.xlane.f32.xlu2 %v4093_v35 }
0x10eb   :  { %v4084_v2 = vpop.f32.mrf.mxu0 }
0x10ec   :  { %v4096_v29 = vsel %vm332_vm0, %v4084_v2, -inf }
0x10ed   :  { %4097 = vmax.xlane.f32.xlu0 %v4096_v29  ;;  %v10608_v15 = vpop.f32.mrf.mxu2 }
0x10fd   :  { %7868 = vrot.lane.b32.xlu2 %v10598_v6, %s11703_s29 }
0x1101   :  { %7873 = vrot.lane.b32.xlu0 %v10604_v36, %s11703_s29 }
0x110d   :  { %v10610_v1 = vpop.f32.mrf.mxu2 }
0x1115   :  { %v10612_v26 = vpop.f32.mrf.mxu2 }
0x111d   :  { %v10614_v32 = vpop.f32.mrf.mxu2 }
0x1125   :  { %v10616_v37 = vpop.f32.mrf.mxu2 }
0x1126   :  { %v3884_v16 = vsel %vm332_vm0, %v10616_v37, -inf }
0x112b   :  { %3885 = vmax.xlane.f32.xlu0 %v3884_v16 }
0x112d   :  { %v10620_v34 = vpop.f32.mrf.mxu2 }
0x112e   :  { %v3887_v11 = vsel %vm332_vm0, %v10620_v34, -inf }
0x112f   :  { %3888 = vmax.xlane.f32.xlu2 %v3887_v11 }
0x113f   :  { %7883 = vrot.lane.b32.xlu0 %v10360_v44, %s8747_s17 }
0x1147   :  { %4196 = vrot.lane.b32.xlu0 %v10510_v14, %s8738_s0 }
0x1148   :  { %v4089_v28 = vpop.xlane.xlu0 %4088 }
0x1149   :  { %v4099_v10 = vsub.f32 %v4075_v5, %v4089_v28  ;;  %v3878_v5 = vpop.f32.mrf.mxu2 }
0x114a   :  { %v3890_v61 = vsel %vm332_vm0, %v3878_v5, -inf }
0x114b   :  { %v4103_v48 = vmul.f32 1.442695, %v4099_v10 }
0x114d   :  { %8169 = vpow2.f32 %v4103_v48 }
0x114f   :  { %4194 = vrot.lane.b32.xlu0 %v10522_v31, %s8738_s0 }
0x1150   :  { %v4092_v12 = vpop.xlane.xlu1 %4091 }
0x1151   :  { %v4100_v56 = vsub.f32 %v4078_v13, %v4092_v12  ;;  %v3881_v35 = vpop.f32.mrf.mxu2 }
0x1153   :  { %v10630_v63 = vpop.eup %8169  ;;  %v4105_v38 = vmul.f32 1.442695, %v4100_v56 }
0x1154   :  { %v4111_v50 = vsel %vm332_vm0, %v10630_v63, 0.0 }
0x1155   :  { %8171 = vpow2.f32 %v4105_v38  ;;  %4112 = vadd.xlane.f32.xlu1 %v4111_v50 }
0x1157   :  { %4192 = vrot.lane.b32.xlu0 %v10490_v9, %s8738_s0 }
0x1158   :  { %v4095_v44 = vpop.xlane.xlu2 %4094 }
0x1159   :  { %v4101_v52 = vsub.f32 %v4081_v17, %v4095_v44 }
0x115b   :  { %v10636_v24 = vpop.eup %8171  ;;  %v4107_v43 = vmul.f32 1.442695, %v4101_v52 }
0x115c   :  { %v4114_v0 = vsel %vm332_vm0, %v10636_v24, 0.0 }
0x115d   :  { %8173 = vpow2.f32 %v4107_v43  ;;  %4115 = vadd.xlane.f32.xlu1 %v4114_v0 }
0x115f   :  { %4186 = vrot.lane.b32.xlu0 %v10522_v31, %s8739_s22 }
0x1160   :  { %v7869_v42 = vpop.permute.xlu2 %7868  ;;  %v4098_v54 = vpop.xlane.xlu0 %4097 }
0x1161   :  { %v7870_v3 = vunpack.i.l.bf16 %v7869_v42  ;;  %v4102_v57 = vsub.f32 %v4084_v2, %v4098_v54  ;;  %v7871_v41 = vunpack.i.h.bf16 %v7869_v42  ;;  %v3893_v2 = vsel %vm332_vm0, %v3881_v35, -inf }
0x1163   :  { %v8174_v19 = vpop.eup %8173  ;;  %v4109_v59 = vmul.f32 1.442695, %v4102_v57  ;;  %4167 = vmatpush.msrb.mxu2 %v7870_v3 }
0x1164   :  { %v4117_v53 = vsel %vm332_vm0, %v8174_v19, 0.0 }
0x1165   :  { %8175 = vpow2.f32 %v4109_v59  ;;  %4118 = vadd.xlane.f32.xlu1 %v4117_v53  ;;  %4168 = vmatpush.msrb.mxu2 %v7871_v41 }
0x1167   :  { %4188 = vrot.lane.b32.xlu0 %v10510_v14, %s8739_s22 }
0x116b   :  { %v8176_v47 = vpop.eup %8175 }
0x116c   :  { %v4120_v51 = vsel %vm332_vm0, %v8176_v47, 0.0 }
0x116d   :  { %4121 = vadd.xlane.f32.xlu1 %v4120_v51 }
0x116f   :  { %4436 = vrot.lane.b32.xlu0 %v10510_v14, %s8740_s23 }
0x1173   :  { %v7874_v33 = vpop.permute.xlu0 %7873 }
0x1174   :  { %v7875_v13 = vunpack.i.l.bf16 %v7874_v33  ;;  %v7876_v17 = vunpack.i.h.bf16 %v7874_v33 }
0x1175   :  { %3891 = vmax.xlane.f32.xlu1 %v3890_v61 }
0x1176   :  { %4169 = vmatpush.msrb.mxu2 %v7875_v13 }
0x1177   :  { %4190 = vrot.lane.b32.xlu0 %v10516_v58, %s8739_s22 }
0x1178   :  { %4170 = vmatpush.msrb.mxu2 %v7876_v17  ;;  %v8306_v17 = vld [vmem:[#allocation4 + $0x38] sm:$0xff] }
0x117a   :  { %4410 = vmatpush.msra.mxu2 %v10537_v20 }
0x117d   :  { %3894 = vmax.xlane.f32.xlu1 %v3893_v2 }
0x117f   :  { %4635 = vrot.lane.b32.xlu0 %v10490_v9, %s8744_s14 }
0x1187   :  { %4424 = vrot.lane.b32.xlu0 %v10490_v9, %s8741_s4 }
0x118f   :  { %4631 = vrot.lane.b32.xlu0 %v10510_v14, %s8746_s9 }
0x1197   :  { %4430 = vrot.lane.b32.xlu0 %v10516_v58, %s8741_s4 }
0x119e   :  { %v3886_v29 = vpop.xlane.xlu0 %3885 }
0x119f   :  { %v3896_v16 = vsub.f32 %v10616_v37, %v3886_v29  ;;  %7888 = vrot.lane.b32.xlu0 %v10598_v6, %s8742_s20 }
0x11a1   :  { %v3900_v20 = vmul.f32 1.442695, %v3896_v16 }
0x11a2   :  { %v3889_v11 = vpop.xlane.xlu2 %3888 }
0x11a3   :  { %8177 = vpow2.f32 %v3900_v20  ;;  %v3897_v28 = vsub.f32 %v10620_v34, %v3889_v11 }
0x11a5   :  { %v3902_v10 = vmul.f32 1.442695, %v3897_v28 }
0x11a7   :  { %8179 = vpow2.f32 %v3902_v10 }
0x11a9   :  { %v10665_v48 = vpop.eup %8177 }
0x11aa   :  { %v3908_v12 = vsel %vm332_vm0, %v10665_v48, 0.0 }
0x11ab   :  { %3909 = vadd.xlane.f32.xlu1 %v3908_v12 }
0x11ad   :  { %v10669_v56 = vpop.eup %8179 }
0x11ae   :  { %v3911_v37 = vsel %vm332_vm0, %v10669_v56, 0.0 }
0x11af   :  { %3912 = vadd.xlane.f32.xlu2 %v3911_v37 }
0x11c4   :  { %7878 = vrot.lane.b32.xlu1 %v10374_v30, %s8747_s17 }
0x11c8   :  { %v4113_v38 = vpop.xlane.xlu1 %4112 }
0x11c9   :  { %8181 = vrcp.f32 %v4113_v38 }
0x11cf   :  { %v8182_v34 = vpop.eup %8181 }
0x11d0   :  { %v4127_v50 = vmul.f32 %v8182_v34, %v10630_v63  ;;  %v4116_v44 = vpop.xlane.xlu1 %4115 }
0x11d1   :  { %8183 = vrcp.f32 %v4116_v44 }
0x11d2   :  { %7600 = vmatmul.msk.f32.vlgmr.msrb.gmra.mxu2 %vm332_vm0, %v4127_v50 }
0x11d7   :  { %v8184_v52 = vpop.eup %8183 }
0x11d8   :  { %v4119_v43 = vpop.xlane.xlu1 %4118  ;;  %v4128_v0 = vmul.f32 %v8184_v52, %v10636_v24 }
0x11d9   :  { %8185 = vrcp.f32 %v4119_v43 }
0x11da   :  { %7601 = vmatmul.msk.f32.gmra.mxu2 %vm332_vm0, %v4128_v0 }
0x11df   :  { %v8186_v42 = vpop.eup %8185 }
0x11e0   :  { %v4122_v54 = vpop.xlane.xlu1 %4121  ;;  %v4129_v3 = vmul.f32 %v8186_v42, %v8174_v19 }
0x11e1   :  { %8187 = vrcp.f32 %v4122_v54 }
0x11e2   :  { %7602 = vmatmul.msk.f32.gmra.mxu2 %vm332_vm0, %v4129_v3 }
0x11e7   :  { %v8188_v30 = vpop.eup %8187 }
0x11e8   :  { %v3892_v57 = vpop.xlane.xlu1 %3891  ;;  %v4130_v63 = vmul.f32 %v8188_v30, %v8176_v47  ;;  %v7884_v47 = vpop.permute.xlu0 %7883 }
0x11e9   :  { %v3898_v41 = vsub.f32 %v3878_v5, %v3892_v57  ;;  %v7885_v28 = vunpack.i.l.bf16 %v7884_v47  ;;  %v7886_v10 = vunpack.i.h.bf16 %v7884_v47 }
0x11ea   :  { %7603 = vmatmul.msk.f32.gmra.mxu2 %vm332_vm0, %v4130_v63 }
0x11eb   :  { %v3904_v59 = vmul.f32 1.442695, %v3898_v41 }
0x11ed   :  { %8189 = vpow2.f32 %v3904_v59 }
0x11f0   :  { %v3895_v53 = vpop.xlane.xlu1 %3894  ;;  %v4197_v2 = vpop.permute.xlu0 %4196 }
0x11f1   :  { %v3899_v51 = vsub.f32 %v3881_v35, %v3895_v53 }
0x11f3   :  { %v8190_v24 = vpop.eup %8189  ;;  %v3906_v33 = vmul.f32 1.442695, %v3899_v51 }
0x11f4   :  { %v3914_v13 = vsel %vm332_vm0, %v8190_v24, 0.0 }
0x11f5   :  { %8191 = vpow2.f32 %v3906_v33  ;;  %3915 = vadd.xlane.f32.xlu2 %v3914_v13 }
0x11f8   :  { %v4195_v12 = vpop.permute.xlu0 %4194 }
0x11fb   :  { %v10682_v19 = vpop.eup %8191 }
0x11fc   :  { %v3917_v61 = vsel %vm332_vm0, %v10682_v19, 0.0 }
0x11fd   :  { %3918 = vadd.xlane.f32.xlu1 %v3917_v61 }
0x1200   :  { %v4193_v34 = vpop.permute.xlu0 %4192 }
0x120d   :  { %4198 = vrot.lane.b32.xlu2 %v10516_v58, %s8738_s0 }
0x1215   :  { %4184 = vrot.lane.b32.xlu2 %v10490_v9, %s8739_s22 }
0x1216   :  { %4438 = vrot.lane.b32.xlu1 %v10516_v58, %s8740_s23 }
0x121d   :  { %4641 = vrot.lane.b32.xlu2 %v10516_v58, %s8744_s14 }
0x121e   :  { %4627 = vrot.lane.b32.xlu1 %v10490_v9, %s8746_s9  ;;  %v3910_v5 = vpop.xlane.xlu1 %3909 }
0x121f   :  { %8193 = vrcp.f32 %v3910_v5 }
0x1222   :  { %v3913_v20 = vpop.xlane.xlu2 %3912 }
0x1223   :  { %8195 = vrcp.f32 %v3913_v20 }
0x1225   :  { %4639 = vrot.lane.b32.xlu2 %v10510_v14, %s8744_s14  ;;  %v8194_v11 = vpop.eup %8193 }
0x1226   :  { %4629 = vrot.lane.b32.xlu1 %v10522_v31, %s8746_s9 }
0x1229   :  { %v8196_v37 = vpop.eup %8195 }
0x122a   :  { %v3925_v38 = vmul.f32 %v8196_v37, %v10669_v56 }
0x122d   :  { %4637 = vrot.lane.b32.xlu2 %v10522_v31, %s8744_s14 }
0x122e   :  { %4428 = vrot.lane.b32.xlu1 %v10510_v14, %s8741_s4  ;;  %v3924_v14 = vmul.f32 %v8194_v11, %v10665_v48 }
0x1235   :  { %4434 = vrot.lane.b32.xlu2 %v10522_v31, %s8740_s23 }
0x1236   :  { %3982 = vrot.lane.b32.xlu1 %v8306_v17, %s8745_s5  ;;  %v7879_v35 = vpop.permute.xlu1 %7878 }
0x1237   :  { %v7880_v29 = vunpack.i.l.bf16 %v7879_v35  ;;  %v7881_v16 = vunpack.i.h.bf16 %v7879_v35 }
0x1239   :  { %3964 = vmatpush.msrb.mxu1 %v7880_v29 }
0x123b   :  { %3965 = vmatpush.msrb.mxu1 %v7881_v16 }
0x123d   :  { %4432 = vrot.lane.b32.xlu2 %v10490_v9, %s8740_s23  ;;  %3966 = vmatpush.msrb.mxu1 %v7885_v28  ;;  %v4187_v9 = vpop.permute.xlu0 %4186 }
0x123f   :  { %3967 = vmatpush.msrb.mxu1 %v7886_v10 }
0x1240   :  { %7584 = vmatmul.msk.f32.vlgmr.msrb.gmra.mxu1 %vm332_vm0, %v3924_v14 }
0x1245   :  { %4426 = vrot.lane.b32.xlu2 %v10522_v31, %s8741_s4  ;;  %v4189_v44 = vpop.permute.xlu0 %4188 }
0x1248   :  { %7585 = vmatmul.msk.f32.gmra.mxu1 %vm332_vm0, %v3925_v38 }
0x124d   :  { %4633 = vrot.lane.b32.xlu2 %v10516_v58, %s8746_s9  ;;  %v4437_v43 = vpop.permute.xlu0 %4436 }
0x1255   :  { %v4172_v50 = vpop.f32.mrf.mxu2  ;;  %v4191_v3 = vpop.permute.xlu0 %4190 }
0x1256   :  { %7620 = vmatmul.msk.f32.vlgmr.msra.gmra.mxu2 %vm614_vm14, %v4172_v50 }
0x125d   :  { %v4175_v48 = vpop.f32.mrf.mxu2  ;;  %v4636_v41 = vpop.permute.xlu0 %4635 }
0x125e   :  { %7621 = vmatmul.msk.f32.gmra.mxu2 %vm614_vm14, %v4175_v48 }
0x1265   :  { %v4178_v52 = vpop.f32.mrf.mxu2  ;;  %v4425_v53 = vpop.permute.xlu0 %4424 }
0x1266   :  { %7622 = vmatmul.msk.f32.gmra.mxu2 %vm614_vm14, %v4178_v52 }
0x1268   :  { %v3916_v31 = vpop.xlane.xlu2 %3915 }
0x1269   :  { %8197 = vrcp.f32 %v3916_v31 }
0x126d   :  { %v4181_v56 = vpop.f32.mrf.mxu2 }
0x126e   :  { %7623 = vmatmul.msk.f32.gmra.mxu2 %vm614_vm14, %v4181_v56 }
0x126f   :  { %v8198_v0 = vpop.eup %8197 }
0x1270   :  { %v4199_v42 = vpop.permute.xlu2 %4198  ;;  %v3919_v58 = vpop.xlane.xlu1 %3918  ;;  %v3926_v54 = vmul.f32 %v8198_v0, %v8190_v24 }
0x1271   :  { %8199 = vrcp.f32 %v3919_v58  ;;  %7604 = vmatpush.xpose.msk.msra.mxu1 %vm614_vm14, %v4199_v42 }
0x1272   :  { %7586 = vmatmul.msk.f32.gmra.mxu1 %vm332_vm0, %v3926_v54 }
0x1275   :  { %7605 = vmatpush.xpose.msk.msra.mxu1 %vm614_vm14, %v4197_v2 }
0x1277   :  { %v8200_v30 = vpop.eup %8199 }
0x1278   :  { %v4185_v57 = vpop.permute.xlu2 %4184  ;;  %v3927_v63 = vmul.f32 %v8200_v30, %v10682_v19  ;;  %v4632_v19 = vpop.permute.xlu0 %4631 }
0x1279   :  { %7606 = vmatpush.xpose.msk.msra.mxu1 %vm614_vm14, %v4195_v12 }
0x127a   :  { %7587 = vmatmul.msk.f32.gmra.mxu1 %vm332_vm0, %v3927_v63 }
0x127d   :  { %7607 = vmatpush.xpose.msk.msra.mxu1 %vm614_vm14, %v4193_v34 }
0x1280   :  { %v4642_v59 = vpop.permute.xlu2 %4641  ;;  %v4431_v5 = vpop.permute.xlu0 %4430 }
0x1281   :  { %7640 = vmatpush.xpose.msk.msrb.mxu2 %vm614_vm14, %v4642_v59 }
0x1282   :  { %7608 = vmatmul.msk.f32.vlgmr.msra.gmra.mxu1 %vm614_vm14, %v4185_v57 }
0x1288   :  { %v4640_v51 = vpop.permute.xlu2 %4639  ;;  %v4439_v24 = vpop.permute.xlu1 %4438 }
0x1289   :  { %7624 = vmatpush.xpose.msk.msrb.mxu1 %vm614_vm14, %v4439_v24  ;;  %7641 = vmatpush.xpose.msk.msrb.mxu2 %vm614_vm14, %v4640_v51  ;;  %v7889_v2 = vpop.permute.xlu0 %7888 }
0x128a   :  { %7609 = vmatmul.msk.f32.gmra.mxu1 %vm614_vm14, %v4187_v9  ;;  %v7890_v29 = vunpack.i.l.bf16 %v7889_v2  ;;  %v7891_v11 = vunpack.i.h.bf16 %v7889_v2 }
0x128d   :  { %7625 = vmatpush.xpose.msk.msrb.mxu1 %vm614_vm14, %v4437_v43 }
0x1290   :  { %v4638_v33 = vpop.permute.xlu2 %4637  ;;  %v4628_v13 = vpop.permute.xlu1 %4627 }
0x1291   :  { %7642 = vmatpush.xpose.msk.msrb.mxu2 %vm614_vm14, %v4638_v33 }
0x1292   :  { %7610 = vmatmul.msk.f32.gmra.mxu1 %vm614_vm14, %v4189_v44 }
0x1295   :  { %7643 = vmatpush.xpose.msk.msrb.mxu2 %vm614_vm14, %v4636_v41 }
0x1298   :  { %v4435_v61 = vpop.permute.xlu2 %4434  ;;  %v4630_v47 = vpop.permute.xlu1 %4629  ;;  %7644 = vmatmul.msk.f32.vlgmr.msrb.gmra.mxu2 %vm614_vm14, %v4628_v13 }
0x1299   :  { %7626 = vmatpush.xpose.msk.msrb.mxu1 %vm614_vm14, %v4435_v61 }
0x129a   :  { %7611 = vmatmul.msk.f32.gmra.mxu1 %vm614_vm14, %v4191_v3 }
0x12a0   :  { %v4433_v17 = vpop.permute.xlu2 %4432  ;;  %v4429_v35 = vpop.permute.xlu1 %4428  ;;  %7645 = vmatmul.msk.f32.gmra.mxu2 %vm614_vm14, %v4630_v47 }
0x12a1   :  { %7627 = vmatpush.xpose.msk.msrb.mxu1 %vm614_vm14, %v4433_v17 }
0x12a4   :  { %7628 = vmatmul.msk.f32.vlgmr.msrb.gmra.mxu1 %vm614_vm14, %v4425_v53 }
0x12a8   :  { %v4427_v16 = vpop.permute.xlu2 %4426  ;;  %v10743_v20 = vpop.permute.xlu1 %3982  ;;  %7646 = vmatmul.msk.f32.gmra.mxu2 %vm614_vm14, %v4632_v19 }
0x12a9   :  { %4012 = vmatpush.msrb.mxu3 %v10743_v20 }
0x12ab   :  { %4325 = vmatpush.msra.mxu3 %v7890_v29 }
0x12ac   :  { %7629 = vmatmul.msk.f32.gmra.mxu1 %vm614_vm14, %v4427_v16 }
0x12ad   :  { %4326 = vmatpush.msra.mxu3 %v7891_v11 }
0x12b0   :  { %v4634_v28 = vpop.permute.xlu2 %4633 }
0x12b1   :  { %7647 = vmatmul.msk.f32.gmra.mxu2 %vm614_vm14, %v4634_v28 }
0x12b4   :  { %7630 = vmatmul.msk.f32.gmra.mxu1 %vm614_vm14, %v4429_v35 }
0x12bc   :  { %7631 = vmatmul.msk.f32.gmra.mxu1 %vm614_vm14, %v4431_v5 }
0x12bd   :  { %v3969_v10 = vpop.f32.mrf.mxu1 }
0x12be   :  { %7588 = vmatmul.msk.f32.vlgmr.msrb.gmra.mxu3 %vm614_vm14, %v3969_v10 }
0x12c5   :  { %v3972_v14 = vpop.f32.mrf.mxu1 }
0x12c6   :  { %7589 = vmatmul.msk.f32.gmra.mxu3 %vm614_vm14, %v3972_v14 }
0x12d9   :  { %v10758_v52 = vpop.f32.mrf.mxu2 }
0x12e1   :  { %v10761_v56 = vpop.f32.mrf.mxu2 }
0x12e9   :  { %v10764_v58 = vpop.f32.mrf.mxu2 }
0x12ef   :  { %v3975_v12 = vpop.f32.mrf.mxu1 }
0x12f0   :  { %7590 = vmatmul.msk.f32.gmra.mxu3 %vm614_vm14, %v3975_v12 }
0x12f1   :  { %v10767_v30 = vpop.f32.mrf.mxu2 }
0x12f7   :  { %v3978_v37 = vpop.f32.mrf.mxu1 }
0x12f8   :  { %7591 = vmatmul.msk.f32.gmra.mxu3 %vm614_vm14, %v3978_v37 }
0x12ff   :  { %v4233_v38 = vpop.f32.mrf.mxu1 }
0x1300   :  { %v4245_v34 = vsel %vm332_vm0, %v4233_v38, -inf }
0x1301   :  { %4246 = vmax.xlane.f32.xlu1 %v4245_v34 }
0x1307   :  { %v4236_v9 = vpop.f32.mrf.mxu1 }
0x1308   :  { %v4248_v50 = vsel %vm332_vm0, %v4236_v9, -inf }
0x1309   :  { %4249 = vmax.xlane.f32.xlu2 %v4248_v50 }
0x130f   :  { %v4239_v48 = vpop.f32.mrf.mxu1 }
0x1310   :  { %v4251_v44 = vsel %vm332_vm0, %v4239_v48, -inf }
0x1311   :  { %4252 = vmax.xlane.f32.xlu0 %v4251_v44 }
0x1317   :  { %v4242_v31 = vpop.f32.mrf.mxu1 }
0x1318   :  { %v4254_v43 = vsel %vm332_vm0, %v4242_v31, -inf }
0x1319   :  { %4255 = vmax.xlane.f32.xlu2 %v4254_v43 }
0x131b   :  { %v10773_v41 = vpop.f32.mrf.mxu2 }
0x131c   :  { %v4688_v51 = vsel %vm332_vm0, %v10773_v41, -inf }
0x1321   :  { %v4473_v0 = vpop.f32.mrf.mxu1 }
0x1322   :  { %v4485_v42 = vsel %vm332_vm0, %v4473_v0, -inf }
0x1323   :  { %4486 = vmax.xlane.f32.xlu0 %v4485_v42  ;;  %v10781_v24 = vpop.f32.mrf.mxu2 }
0x1324   :  { %v4691_v33 = vsel %vm332_vm0, %v10781_v24, -inf }
0x1329   :  { %v4476_v54 = vpop.f32.mrf.mxu1 }
0x132a   :  { %v4488_v3 = vsel %vm332_vm0, %v4476_v54, -inf }
0x132b   :  { %4489 = vmax.xlane.f32.xlu0 %v4488_v3  ;;  %v10785_v13 = vpop.f32.mrf.mxu2 }
0x132c   :  { %v4694_v19 = vsel %vm332_vm0, %v10785_v13, -inf }
0x1331   :  { %v10769_v57 = vpop.f32.mrf.mxu1 }
0x1332   :  { %v4491_v63 = vsel %vm332_vm0, %v10769_v57, -inf }
0x1333   :  { %4492 = vmax.xlane.f32.xlu0 %v4491_v63 }
0x1334   :  { %v10789_v61 = vpop.f32.mrf.mxu2 }
0x1335   :  { %v4697_v47 = vsel %vm332_vm0, %v10789_v61, -inf }
0x1339   :  { %v10775_v59 = vpop.f32.mrf.mxu1 }
0x133a   :  { %v4494_v53 = vsel %vm332_vm0, %v10775_v59, -inf }
0x133b   :  { %4495 = vmax.xlane.f32.xlu2 %v4494_v53 }
0x1343   :  { %4689 = vmax.xlane.f32.xlu2 %v4688_v51 }
0x134b   :  { %4692 = vmax.xlane.f32.xlu2 %v4691_v33 }
0x1353   :  { %4695 = vmax.xlane.f32.xlu2 %v4694_v19 }
0x135b   :  { %4698 = vmax.xlane.f32.xlu2 %v4697_v47 }
0x1373   :  { %7893 = vrot.lane.b32.xlu2 %v10604_v36, %s8742_s20 }
0x1374   :  { %v4247_v5 = vpop.xlane.xlu1 %4246 }
0x1375   :  { %v4257_v17 = vsub.f32 %v4233_v38, %v4247_v5 }
0x1377   :  { %v4261_v35 = vmul.f32 1.442695, %v4257_v17 }
0x1379   :  { %8201 = vpow2.f32 %v4261_v35 }
0x137c   :  { %v4250_v2 = vpop.xlane.xlu2 %4249 }
0x137d   :  { %v4258_v29 = vsub.f32 %v4236_v9, %v4250_v2 }
0x137f   :  { %v10795_v16 = vpop.eup %8201  ;;  %v4263_v11 = vmul.f32 1.442695, %v4258_v29 }
0x1380   :  { %v4269_v28 = vsel %vm332_vm0, %v10795_v16, 0.0 }
0x1381   :  { %8203 = vpow2.f32 %v4263_v11  ;;  %4270 = vadd.xlane.f32.xlu1 %v4269_v28 }
0x1384   :  { %v4253_v10 = vpop.xlane.xlu0 %4252 }
0x1385   :  { %v4259_v14 = vsub.f32 %v4239_v48, %v4253_v10 }
0x1387   :  { %v10799_v12 = vpop.eup %8203  ;;  %v4265_v37 = vmul.f32 1.442695, %v4259_v14 }
0x1388   :  { %v4272_v38 = vsel %vm332_vm0, %v10799_v12, 0.0 }
0x1389   :  { %8205 = vpow2.f32 %v4265_v37  ;;  %4273 = vadd.xlane.f32.xlu0 %v4272_v38 }
0x138c   :  { %v4256_v34 = vpop.xlane.xlu2 %4255 }
0x138d   :  { %v4260_v9 = vsub.f32 %v4242_v31, %v4256_v34 }
0x138f   :  { %v10803_v50 = vpop.eup %8205  ;;  %v4267_v44 = vmul.f32 1.442695, %v4260_v9 }
0x1390   :  { %v4275_v43 = vsel %vm332_vm0, %v10803_v50, 0.0 }
0x1391   :  { %4276 = vadd.xlane.f32.xlu1 %v4275_v43  ;;  %8207 = vpow2.f32 %v4267_v44 }
0x1396   :  { %v4487_v42 = vpop.xlane.xlu0 %4486 }
0x1397   :  { %v4497_v48 = vsub.f32 %v4473_v0, %v4487_v42  ;;  %v10807_v3 = vpop.eup %8207 }
0x1398   :  { %v4278_v53 = vsel %vm332_vm0, %v10807_v3, 0.0 }
0x1399   :  { %v4501_v63 = vmul.f32 1.442695, %v4497_v48 }
0x139b   :  { %8209 = vpow2.f32 %v4501_v63 }
0x139c   :  { %4279 = vadd.xlane.f32.xlu2 %v4278_v53 }
0x139d   :  { %7898 = vrot.lane.b32.xlu0 %v10598_v6, %s8743_s13 }
0x139e   :  { %v4490_v31 = vpop.xlane.xlu0 %4489 }
0x139f   :  { %v4498_v51 = vsub.f32 %v4476_v54, %v4490_v31 }
0x13a1   :  { %v10813_v33 = vpop.eup %8209  ;;  %v4503_v19 = vmul.f32 1.442695, %v4498_v51 }
0x13a2   :  { %v4509_v47 = vsel %vm332_vm0, %v10813_v33, 0.0 }
0x13a3   :  { %8211 = vpow2.f32 %v4503_v19  ;;  %4510 = vadd.xlane.f32.xlu1 %v4509_v47 }
0x13a5   :  { %7908 = vrot.lane.b32.xlu0 %v10604_v36, %s8743_s13 }
0x13a6   :  { %v4493_v0 = vpop.xlane.xlu0 %4492 }
0x13a7   :  { %v4499_v5 = vsub.f32 %v10769_v57, %v4493_v0 }
0x13a9   :  { %v10820_v17 = vpop.eup %8211  ;;  %v4505_v35 = vmul.f32 1.442695, %v4499_v5 }
0x13aa   :  { %v4512_v54 = vsel %vm332_vm0, %v10820_v17, 0.0 }
0x13ab   :  { %8213 = vpow2.f32 %v4505_v35  ;;  %4513 = vadd.xlane.f32.xlu2 %v4512_v54 }
0x13ae   :  { %v4496_v2 = vpop.xlane.xlu2 %4495 }
0x13af   :  { %v4500_v29 = vsub.f32 %v10775_v59, %v4496_v2 }
0x13b1   :  { %v10825_v11 = vpop.eup %8213  ;;  %v4507_v28 = vmul.f32 1.442695, %v4500_v29 }
0x13b2   :  { %v4515_v10 = vsel %vm332_vm0, %v10825_v11, 0.0 }
0x13b3   :  { %8215 = vpow2.f32 %v4507_v28  ;;  %4516 = vadd.xlane.f32.xlu2 %v4515_v10 }
0x13b6   :  { %v4690_v57 = vpop.xlane.xlu2 %4689 }
0x13b7   :  { %v4700_v53 = vsub.f32 %v10773_v41, %v4690_v57  ;;  %v8307_v41 = vld [vmem:[#allocation6 + $0x1] ss:$0 sm:$0xff] }
0x13b9   :  { %v10829_v14 = vpop.eup %8215  ;;  %v4704_v51 = vmul.f32 1.442695, %v4700_v53 }
0x13ba   :  { %v4518_v37 = vsel %vm332_vm0, %v10829_v14, 0.0 }
0x13bb   :  { %4519 = vadd.xlane.f32.xlu2 %v4518_v37 }
0x13bc   :  { %7903 = vrot.lane.b32.xlu1 %v10598_v6, %s8747_s17 }
0x13be   :  { %v4693_v38 = vpop.xlane.xlu2 %4692 }
0x13bf   :  { %v4701_v59 = vsub.f32 %v10781_v24, %v4693_v38 }
0x13c1   :  { %v4706_v34 = vmul.f32 1.442695, %v4701_v59 }
0x13c3   :  { %8217 = vpow2.f32 %v4706_v34 }
0x13c6   :  { %v4696_v9 = vpop.xlane.xlu2 %4695 }
0x13c9   :  { %v10836_v44 = vpop.eup %8217 }
0x13ca   :  { %v4715_v42 = vsel %vm332_vm0, %v10836_v44, 0.0 }
0x13ce   :  { %v4699_v43 = vpop.xlane.xlu2 %4698 }
0x13cf   :  { %v4703_v48 = vsub.f32 %v10789_v61, %v4699_v43  ;;  %4716 = vadd.xlane.f32.xlu0 %v4715_v42  ;;  %v4702_v43 = vsub.f32 %v10785_v13, %v4696_v9 }
0x13d1   :  { %v4710_v63 = vmul.f32 1.442695, %v4703_v48 }
0x13d3   :  { %8219 = vpow2.f32 %v4710_v63 }
0x13d4   :  { %8221 = vpow2.f32 %v4704_v51 }
0x13d6   :  { %v7894_v6 = vpop.permute.xlu2 %7893 }
0x13d7   :  { %v7895_v31 = vunpack.i.l.bf16 %v7894_v6  ;;  %v7896_v19 = vunpack.i.h.bf16 %v7894_v6 }
0x13d9   :  { %v10842_v24 = vpop.eup %8219  ;;  %4327 = vmatpush.msra.mxu3 %v7895_v31 }
0x13da   :  { %v4721_v47 = vsel %vm332_vm0, %v10842_v24, 0.0  ;;  %v10846_v0 = vpop.eup %8221 }
0x13db   :  { %4722 = vadd.xlane.f32.xlu2 %v4721_v47  ;;  %4328 = vmatpush.msra.mxu3 %v7896_v19  ;;  %v4712_v61 = vsel %vm332_vm0, %v10846_v0, 0.0 }
0x13e6   :  { %4713 = vadd.xlane.f32.xlu1 %v4712_v61 }
0x13f3   :  { %4838 = vrot.lane.b32.xlu2 %v8307_v41, %s8745_s5 }
0x13f4   :  { %v4271_v5 = vpop.xlane.xlu1 %4270 }
0x13f5   :  { %8223 = vrcp.f32 %v4271_v5 }
0x13fb   :  { %v8224_v35 = vpop.eup %8223 }
0x13fc   :  { %v4285_v54 = vmul.f32 %v8224_v35, %v10795_v16  ;;  %v4274_v2 = vpop.xlane.xlu0 %4273 }
0x13fd   :  { %8225 = vrcp.f32 %v4274_v2 }
0x13fe   :  { %7612 = vmatmul.msk.f32.vlgmr.msra.gmra.mxu3 %vm332_vm0, %v4285_v54  ;;  %v4014_v54 = vpop.f32.mrf.mxu3 }
0x13ff   :  { %7913 = vrot.lane.b32.xlu1 %v10604_v36, %s8747_s17 }
0x1403   :  { %v8226_v29 = vpop.eup %8225 }
0x1404   :  { %v4277_v28 = vpop.xlane.xlu1 %4276  ;;  %v4286_v10 = vmul.f32 %v8226_v29, %v10799_v12 }
0x1405   :  { %8227 = vrcp.f32 %v4277_v28 }
0x1406   :  { %7613 = vmatmul.msk.f32.gmra.mxu3 %vm332_vm0, %v4286_v10  ;;  %v4017_v29 = vpop.f32.mrf.mxu3  ;;  %v3605_v10 = vadd.f32 %v10608_v15, %v10571_v25 }
0x140b   :  { %v8228_v57 = vpop.eup %8227 }
0x140c   :  { %v4287_v37 = vmul.f32 %v8228_v57, %v10803_v50  ;;  %v4708_v50 = vmul.f32 1.442695, %v4702_v43  ;;  %v3614_v57 = vadd.f32 %v10614_v32, %v10580_v40 }
0x140e   :  { %7614 = vmatmul.msk.f32.gmra.mxu3 %vm332_vm0, %v4287_v37  ;;  %v4020_v28 = vpop.f32.mrf.mxu3 }
0x140f   :  { %v7899_v16 = vpop.permute.xlu0 %7898  ;;  %v4280_v38 = vpop.xlane.xlu2 %4279 }
0x1410   :  { %v7900_v59 = vunpack.i.l.bf16 %v7899_v16  ;;  %8229 = vrcp.f32 %v4280_v38  ;;  %v7901_v34 = vunpack.i.h.bf16 %v7899_v16  ;;  %v3819_v38 = vadd.f32 %v10583_v62, %v3605_v10 }
0x1412   :  { %4565 = vmatpush.msrb.mxu3 %v7900_v59 }
0x1414   :  { %4566 = vmatpush.msrb.mxu3 %v7901_v34  ;;  %v3611_v34 = vadd.f32 %v10612_v26, %v10577_v7 }
0x1416   :  { %v8230_v36 = vpop.eup %8229  ;;  %v4511_v42 = vpop.xlane.xlu1 %4510  ;;  %v3821_v40 = vadd.f32 %v10588_v4, %v3611_v34 }
0x1417   :  { %8231 = vrcp.f32 %v4511_v42  ;;  %v7909_v12 = vpop.permute.xlu0 %7908  ;;  %v4288_v48 = vmul.f32 %v8230_v36, %v10807_v3  ;;  %v4023_v37 = vpop.f32.mrf.mxu3  ;;  %v4026_v36 = vadd.f32 %v4014_v54, %v3819_v38 }
0x1418   :  { %v7910_v63 = vunpack.i.l.bf16 %v7909_v12  ;;  %v7911_v53 = vunpack.i.h.bf16 %v7909_v12  ;;  %8233 = vpow2.f32 %v4708_v50  ;;  %v4028_v62 = vadd.f32 %v4020_v28, %v3821_v40 }
0x1419   :  { %7615 = vmatmul.msk.f32.gmra.mxu3 %vm332_vm0, %v4288_v48  ;;  %v4830_v15 = vadd.f32 %v4026_v36, %v9967_v18 }
0x141a   :  { %4567 = vmatpush.msrb.mxu3 %v7910_v63  ;;  %v4832_v4 = vadd.f32 %v4028_v62, %v10015_v8 }
0x141c   :  { %4568 = vmatpush.msrb.mxu3 %v7911_v53 }
0x141d   :  { %v8232_v6 = vpop.eup %8231 }
0x141e   :  { %4812 = vmatpush.msra.mxu3 %v10743_v20  ;;  %v4525_v31 = vmul.f32 %v8232_v6, %v10813_v33  ;;  %v4514_v51 = vpop.xlane.xlu2 %4513  ;;  %v10865_v13 = vpop.eup %8233 }
0x141f   :  { %8235 = vrcp.f32 %v4514_v51  ;;  %v4718_v47 = vsel %vm332_vm0, %v10865_v13, 0.0 }
0x1421   :  { %7632 = vmatmul.msk.f32.vlgmr.msrb.gmra.mxu3 %vm332_vm0, %v4525_v31 }
0x1425   :  { %v8236_v3 = vpop.eup %8235 }
0x1426   :  { %v4517_v9 = vpop.xlane.xlu2 %4516  ;;  %v4526_v19 = vmul.f32 %v8236_v3, %v10820_v17 }
0x1427   :  { %8237 = vrcp.f32 %v4517_v9 }
0x1429   :  { %4719 = vadd.xlane.f32.xlu1 %v4718_v47  ;;  %7633 = vmatmul.msk.f32.gmra.mxu3 %vm332_vm0, %v4526_v19 }
0x142d   :  { %v8238_v20 = vpop.eup %8237 }
0x142e   :  { %v7904_v61 = vpop.permute.xlu1 %7903  ;;  %v4520_v33 = vpop.xlane.xlu2 %4519  ;;  %v4527_v41 = vmul.f32 %v8238_v20, %v10825_v11  ;;  %v3608_v11 = vadd.f32 %v10610_v1, %v10574_v45 }
0x142f   :  { %v7905_v5 = vunpack.i.l.bf16 %v7904_v61  ;;  %8239 = vrcp.f32 %v4520_v33  ;;  %v7906_v35 = vunpack.i.h.bf16 %v7904_v61 }
0x1430   :  { %v3820_v59 = vadd.f32 %v10586_v39, %v3608_v11 }
0x1431   :  { %7634 = vmatmul.msk.f32.gmra.mxu3 %vm332_vm0, %v4527_v41  ;;  %4768 = vmatpush.msra.mxu1 %v7905_v5 }
0x1432   :  { %v4027_v43 = vadd.f32 %v4017_v29, %v3820_v59 }
0x1433   :  { %4769 = vmatpush.msra.mxu1 %v7906_v35 }
0x1434   :  { %v4831_v45 = vadd.f32 %v4027_v43, %v10003_v23 }
0x1435   :  { %v8240_v17 = vpop.eup %8239 }
0x1436   :  { %v4528_v2 = vmul.f32 %v8240_v17, %v10829_v14  ;;  %v3822_v14 = vadd.f32 %v10590_v21, %v3614_v57 }
0x1438   :  { %v4029_v25 = vadd.f32 %v4023_v37, %v3822_v14 }
0x1439   :  { %7635 = vmatmul.msk.f32.gmra.mxu3 %vm332_vm0, %v4528_v2 }
0x143a   :  { %v4833_v1 = vadd.f32 %v4029_v25, %v10021_v49 }
0x1442   :  { %v4717_v48 = vpop.xlane.xlu0 %4716 }
0x144e   :  { %v4723_v16 = vpop.xlane.xlu2 %4722 }
0x1456   :  { %v10890_v32 = vpop.permute.xlu2 %4838 }
0x1457   :  { %v10893_v39 = vadd.f32 %v10890_v32, %v4831_v45  ;;  %v10896_v21 = vadd.f32 %v10890_v32, %v4830_v15  ;;  %v10899_v7 = vadd.f32 %v10890_v32, %v4833_v1  ;;  %v10909_v26 = vadd.f32 %v10890_v32, %v4832_v4 }
0x1459   :  { %v4852_v18 = vsel %vm332_vm0, %v10893_v39, 0.0  ;;  %v4849_v23 = vsel %vm332_vm0, %v10896_v21, 0.0  ;;  %v4858_v49 = vsel %vm332_vm0, %v10899_v7, 0.0  ;;  %v4855_v42 = vsel %vm332_vm0, %v10909_v26, 0.0  ;;  %v4714_v12 = vpop.xlane.xlu1 %4713 }
0x145a   :  { %4853 = vadd.xlane.f32.xlu1 %v4852_v18  ;;  %4850 = vadd.xlane.f32.xlu0 %v4849_v23  ;;  %8241 = vrcp.f32 %v4714_v12 }
0x145b   :  { %4859 = vadd.xlane.f32.xlu2 %v4858_v49  ;;  %8243 = vrcp.f32 %v4717_v48 }
0x1460   :  { %v8242_v50 = vpop.eup %8241 }
0x1461   :  { %v4728_v31 = vmul.f32 %v8242_v50, %v10846_v0  ;;  %v8244_v8 = vpop.eup %8243 }
0x1462   :  { %4856 = vadd.xlane.f32.xlu0 %v4855_v42  ;;  %v4729_v51 = vmul.f32 %v8244_v8, %v10836_v44 }
0x1471   :  { %v7914_v63 = vpop.permute.xlu1 %7913 }
0x1472   :  { %v7915_v53 = vunpack.i.l.bf16 %v7914_v63  ;;  %v7916_v6 = vunpack.i.h.bf16 %v7914_v63 }
0x1474   :  { %4770 = vmatpush.msra.mxu1 %v7915_v53 }
0x1476   :  { %4771 = vmatpush.msra.mxu1 %v7916_v6 }
0x1477   :  { %7648 = vmatmul.msk.f32.vlgmr.msra.gmra.mxu1 %vm332_vm0, %v4728_v31 }
0x147f   :  { %7649 = vmatmul.msk.f32.gmra.mxu1 %vm332_vm0, %v4729_v51 }
0x1481   :  { %v4330_v3 = vpop.f32.mrf.mxu3 }
0x1482   :  { %7616 = vmatmul.msk.f32.vlgmr.msra.gmra.mxu0 %vm614_vm14, %v4330_v3 }
0x1489   :  { %v4333_v9 = vpop.f32.mrf.mxu3 }
0x148a   :  { %7617 = vmatmul.msk.f32.gmra.mxu0 %vm614_vm14, %v4333_v9 }
0x1491   :  { %v4336_v19 = vpop.f32.mrf.mxu3 }
0x1492   :  { %7618 = vmatmul.msk.f32.gmra.mxu0 %vm614_vm14, %v4336_v19 }
0x149c   :  { %v4720_v47 = vpop.xlane.xlu1 %4719  ;;  %v4339_v20 = vpop.f32.mrf.mxu3 }
0x149d   :  { %8245 = vrcp.f32 %v4720_v47  ;;  %7619 = vmatmul.msk.f32.gmra.mxu0 %vm614_vm14, %v4339_v20 }
0x149e   :  { %8247 = vrcp.f32 %v4723_v16 }
0x14a3   :  { %v8246_v0 = vpop.eup %8245 }
0x14a4   :  { %v4570_v61 = vpop.f32.mrf.mxu3  ;;  %v4730_v44 = vmul.f32 %v8246_v0, %v10865_v13  ;;  %v8248_v33 = vpop.eup %8247 }
0x14a5   :  { %7636 = vmatmul.msk.f32.vlgmr.msrb.gmra.mxu0 %vm614_vm14, %v4570_v61  ;;  %v4731_v5 = vmul.f32 %v8248_v33, %v10842_v24 }
0x14a6   :  { %7650 = vmatmul.msk.f32.gmra.mxu1 %vm332_vm0, %v4730_v44 }
0x14ac   :  { %v4573_v41 = vpop.f32.mrf.mxu3 }
0x14ad   :  { %7637 = vmatmul.msk.f32.gmra.mxu0 %vm614_vm14, %v4573_v41 }
0x14ae   :  { %7651 = vmatmul.msk.f32.gmra.mxu1 %vm332_vm0, %v4731_v5 }
0x14b4   :  { %v4576_v35 = vpop.f32.mrf.mxu3 }
0x14b5   :  { %7638 = vmatmul.msk.f32.gmra.mxu0 %vm614_vm14, %v4576_v35 }
0x14bc   :  { %v4579_v54 = vpop.f32.mrf.mxu3 }
0x14bd   :  { %7639 = vmatmul.msk.f32.gmra.mxu0 %vm614_vm14, %v4579_v54 }
0x14cd   :  { %v4851_v38 = vpop.xlane.xlu0 %4850  ;;  %v4854_v1 = vpop.xlane.xlu1 %4853 }
0x14ce   :  { %v4873_v34 = vmul.f32 %v4851_v38, %v8953_v22  ;;  %v4874_v23 = vmul.f32 %v4854_v1, %v8953_v22  ;;  %v4860_v41 = vpop.xlane.xlu2 %4859  ;;  %v5044_v38 = vld [vmem:[#allocation9 + $0x20] sm:$0xff] }
0x14d0   :  { %v10941_v45 = vsub.f32 %v10896_v21, %v4873_v34  ;;  %v10953_v4 = vsub.f32 %v10893_v39, %v4874_v23 }
0x14d5   :  { %v4857_v48 = vpop.xlane.xlu0 %4856 }
0x14d6   :  { %v4875_v63 = vmul.f32 %v4857_v48, %v8953_v22 }
0x14d8   :  { %v10962_v50 = vsub.f32 %v10909_v26, %v4875_v63 }
0x14da   :  { %v4891_v6 = vmul.f32 %v10962_v50, %v10962_v50 }
0x14dc   :  { %v4903_v31 = vsel %vm332_vm0, %v4891_v6, 0.0  ;;  %v8308_v6 = vld [vmem:[#allocation7 + $0x4] sm:$0xf] }
0x14f4   :  { %v4773_v17 = vpop.f32.mrf.mxu1 }
0x14f5   :  { %7652 = vmatmul.msk.f32.vlgmr.msra.gmra.mxu3 %vm614_vm14, %v4773_v17 }
0x14fc   :  { %v4776_v13 = vpop.f32.mrf.mxu1 }
0x14fd   :  { %7653 = vmatmul.msk.f32.gmra.mxu3 %vm614_vm14, %v4776_v13 }
0x14ff   :  { %v4371_v29 = vpop.f32.mrf.mxu0 }
0x1500   :  { %v4413_v37 = vadd.f32 %v10758_v52, %v4371_v29 }
0x1507   :  { %v4374_v28 = vpop.f32.mrf.mxu0 }
0x1508   :  { %v4416_v25 = vadd.f32 %v10761_v56, %v4374_v28  ;;  %v4889_v56 = vmul.f32 %v10941_v45, %v10941_v45  ;;  %v5046_v28 = vld [vmem:[#allocation9 + $0x30] sm:$0xff] }
0x150a   :  { %v4897_v42 = vsel %vm332_vm0, %v4889_v56, 0.0 }
0x150f   :  { %v4377_v10 = vpop.f32.mrf.mxu0 }
0x1510   :  { %v4419_v51 = vadd.f32 %v10764_v58, %v4377_v10  ;;  %v4876_v58 = vmul.f32 %v4860_v41, %v8953_v22 }
0x151a   :  { %v4380_v11 = vpop.f32.mrf.mxu0 }
0x151b   :  { %v4422_v0 = vadd.f32 %v10767_v30, %v4380_v11  ;;  %v10982_v30 = vsub.f32 %v10899_v7, %v4876_v58  ;;  %v5045_v11 = vld [vmem:[#allocation9 + $0x28] sm:$0xff] }
0x151d   :  { %v4892_v13 = vmul.f32 %v10982_v30, %v10982_v30 }
0x1522   :  { %v4611_v57 = vpop.f32.mrf.mxu0 }
0x1523   :  { %v4779_v2 = vpop.f32.mrf.mxu1  ;;  %v4623_v16 = vadd.f32 %v4611_v57, %v4413_v37 }
0x1524   :  { %7654 = vmatmul.msk.f32.gmra.mxu3 %vm614_vm14, %v4779_v2  ;;  %v4906_v2 = vsel %vm332_vm0, %v4892_v13, 0.0 }
0x152a   :  { %v4614_v43 = vpop.f32.mrf.mxu0 }
0x152b   :  { %v4782_v24 = vpop.f32.mrf.mxu1  ;;  %v4624_v40 = vadd.f32 %v4614_v43, %v4416_v25 }
0x152c   :  { %7655 = vmatmul.msk.f32.gmra.mxu3 %vm614_vm14, %v4782_v24 }
0x1532   :  { %v4617_v8 = vpop.f32.mrf.mxu0 }
0x1533   :  { %v4625_v3 = vadd.f32 %v4617_v8, %v4419_v51 }
0x153a   :  { %v4620_v20 = vpop.f32.mrf.mxu0 }
0x153b   :  { %v4626_v44 = vadd.f32 %v4620_v20, %v4422_v0 }
0x1578   :  { %v4814_v59 = vpop.f32.mrf.mxu3 }
0x1579   :  { %v4826_v14 = vadd.f32 %v4814_v59, %v4623_v16 }
0x157b   :  { %v4834_v36 = vadd.f32 %v4826_v14, %v10276_v60 }
0x157d   :  { %v10938_v15 = vadd.f32 %v10890_v32, %v4834_v36 }
0x157f   :  { %v4861_v52 = vsel %vm332_vm0, %v10938_v15, 0.0 }
0x1580   :  { %v4817_v62 = vpop.f32.mrf.mxu3  ;;  %4862 = vadd.xlane.f32.xlu1 %v4861_v52 }
0x1581   :  { %v4827_v18 = vadd.f32 %v4817_v62, %v4624_v40 }
0x1583   :  { %v4835_v60 = vadd.f32 %v4827_v18, %v10284_v46  ;;  %v4890_v46 = vmul.f32 %v10953_v4, %v10953_v4 }
0x1585   :  { %v10950_v49 = vadd.f32 %v10890_v32, %v4835_v60  ;;  %v4900_v53 = vsel %vm332_vm0, %v4890_v46, 0.0 }
0x1587   :  { %v4864_v12 = vsel %vm332_vm0, %v10950_v49, 0.0 }
0x1588   :  { %4898 = vadd.xlane.f32.xlu1 %v4897_v42  ;;  %4865 = vadd.xlane.f32.xlu0 %v4864_v12 }
0x1590   :  { %4901 = vadd.xlane.f32.xlu1 %v4900_v53 }
0x1598   :  { %4904 = vadd.xlane.f32.xlu1 %v4903_v31  ;;  %v11006_v31 = vperm.slane %v8308_v6, 2 }
0x15a7   :  { %v4820_v9 = vpop.f32.mrf.mxu3 }
0x15a8   :  { %v4828_v19 = vadd.f32 %v4820_v9, %v4625_v3  ;;  %v11008_v3 = vperm.slane %v8308_v6, 3 }
0x15aa   :  { %v4836_v47 = vadd.f32 %v4828_v19, %v10294_v27 }
0x15ac   :  { %v10972_v61 = vadd.f32 %v10890_v32, %v4836_v47 }
0x15ae   :  { %v4867_v33 = vsel %vm332_vm0, %v10972_v61, 0.0 }
0x15af   :  { %v4823_v5 = vpop.f32.mrf.mxu3  ;;  %4868 = vadd.xlane.f32.xlu0 %v4867_v33 }
0x15b0   :  { %v4829_v35 = vadd.f32 %v4823_v5, %v4626_v44 }
0x15b2   :  { %v4837_v54 = vadd.f32 %v4829_v35, %v10305_v55  ;;  %v5047_v55 = vld [vmem:[#allocation9 + $0x38] sm:$0xff] }
0x15b3   :  { %5089 = vmatpush.msra.mxu0 %v5047_v55 }
0x15b4   :  { %v10979_v27 = vadd.f32 %v10890_v32, %v4837_v54 }
0x15b5   :  { %5090 = vmatpush.msra.mxu0 %v5046_v28 }
0x15b6   :  { %v4870_v17 = vsel %vm332_vm0, %v10979_v27, 0.0 }
0x15b7   :  { %4871 = vadd.xlane.f32.xlu0 %v4870_v17  ;;  %5091 = vmatpush.msra.mxu0 %v5045_v11 }
0x15b9   :  { %5092 = vmatpush.msra.mxu0 %v5044_v38 }
0x15bf   :  { %4907 = vadd.xlane.f32.xlu0 %v4906_v2 }
0x15f3   :  { %v4863_v24 = vpop.xlane.xlu1 %4862 }
0x15f4   :  { %v4877_v29 = vmul.f32 %v4863_v24, %v8953_v22 }
0x15f6   :  { %v10991_v32 = vsub.f32 %v10938_v15, %v4877_v29 }
0x15f8   :  { %v4893_v10 = vmul.f32 %v10991_v32, %v10991_v32 }
0x15fa   :  { %v4909_v57 = vsel %vm332_vm0, %v4893_v10, 0.0 }
0x15fb   :  { %4910 = vadd.xlane.f32.xlu1 %v4909_v57  ;;  %v4899_v37 = vpop.xlane.xlu1 %4898  ;;  %v4866_v16 = vpop.xlane.xlu0 %4865 }
0x15fc   :  { %v4921_v59 = vmul.f32 %v4899_v37, %v8953_v22  ;;  %v4878_v14 = vmul.f32 %v4866_v16, %v8953_v22 }
0x15fe   :  { %v4929_v34 = vadd.f32 1e-05, %v4921_v59  ;;  %v10999_v36 = vsub.f32 %v10950_v49, %v4878_v14 }
0x1600   :  { %8249 = vrsqrt.f32 %v4929_v34  ;;  %v4894_v43 = vmul.f32 %v10999_v36, %v10999_v36  ;;  %vm4943_vm15 = vweird.f32 %v4929_v34 }
0x1602   :  { %v4912_v25 = vsel %vm332_vm0, %v4894_v43, 0.0 }
0x1603   :  { %v4902_v40 = vpop.xlane.xlu1 %4901  ;;  %4913 = vadd.xlane.f32.xlu0 %v4912_v25 }
0x1604   :  { %v4922_v52 = vmul.f32 %v4902_v40, %v8953_v22 }
0x1606   :  { %v8250_v1 = vpop.eup %8249  ;;  %v4930_v62 = vadd.f32 1e-05, %v4922_v52 }
0x1607   :  { %v4938_v18 = vmul.f32 %v8250_v1, %v4929_v34  ;;  %vm4944_vm13 = vweird.f32 %v8250_v1 }
0x1608   :  { %8251 = vrsqrt.f32 %v4930_v62  ;;  %vm4945_vm1 = vmor %vm4943_vm15, %vm4944_vm13  ;;  %vm4953_vm4 = vweird.f32 %v4930_v62 }
0x1609   :  { %v4939_v23 = vmul.f32 %v8250_v1, %v4938_v18 }
0x160b   :  { %v4940_v60 = vmul.f32 0.5, %v4939_v23  ;;  %v4905_v56 = vpop.xlane.xlu1 %4904 }
0x160c   :  { %v4923_v42 = vmul.f32 %v4905_v56, %v8953_v22 }
0x160d   :  { %v4941_v12 = vsub.f32 1.5, %v4940_v60 }
0x160e   :  { %v8252_v48 = vpop.eup %8251  ;;  %v4931_v63 = vadd.f32 1e-05, %v4923_v42 }
0x160f   :  { %v4942_v46 = vmul.f32 %v8250_v1, %v4941_v12  ;;  %v4948_v53 = vmul.f32 %v8252_v48, %v4930_v62  ;;  %vm4954_vm3 = vweird.f32 %v8252_v48 }
0x1610   :  { %8253 = vrsqrt.f32 %v4931_v63  ;;  %vm4955_vm5 = vmor %vm4953_vm4, %vm4954_vm3  ;;  %vm4963_vm7 = vweird.f32 %v4931_v63 }
0x1611   :  { %v4946_v8 = vsel %vm4945_vm1, %v8250_v1, %v4942_v46  ;;  %v4949_v51 = vmul.f32 %v8252_v48, %v4948_v53 }
0x1612   :  { %v5017_v9 = vmul.f32 %v4946_v8, %v10941_v45 }
0x1613   :  { %v4950_v19 = vmul.f32 0.5, %v4949_v51 }
0x1614   :  { %v5026_v47 = vmul.f32 %v11006_v31, %v5017_v9 }
0x1615   :  { %v4951_v20 = vsub.f32 1.5, %v4950_v19 }
0x1616   :  { %v8254_v0 = vpop.eup %8253  ;;  %v5035_v44 = vadd.f32 %v11008_v3, %v5026_v47 }
0x1617   :  { %v4952_v33 = vmul.f32 %v8252_v48, %v4951_v20  ;;  %v4958_v41 = vmul.f32 %v8254_v0, %v4931_v63  ;;  %vm4964_vm6 = vweird.f32 %v8254_v0 }
0x1618   :  { %7656 = vmatmul.msk.f32.vlgmr.msra.gmra.mxu0 %vm332_vm0, %v5035_v44  ;;  %vm4965_vm8 = vmor %vm4963_vm7, %vm4964_vm6 }
0x1619   :  { %v4956_v5 = vsel %vm4955_vm5, %v8252_v48, %v4952_v33  ;;  %v4959_v35 = vmul.f32 %v8254_v0, %v4958_v41 }
0x161a   :  { %v5018_v58 = vmul.f32 %v4956_v5, %v10953_v4 }
0x161b   :  { %v4960_v54 = vmul.f32 0.5, %v4959_v35 }
0x161c   :  { %v5027_v45 = vmul.f32 %v11006_v31, %v5018_v58 }
0x161d   :  { %v4961_v17 = vsub.f32 1.5, %v4960_v54 }
0x161e   :  { %v5036_v13 = vadd.f32 %v11008_v3, %v5027_v45 }
0x161f   :  { %v4962_v2 = vmul.f32 %v8254_v0, %v4961_v17 }
0x1620   :  { %7657 = vmatmul.msk.f32.gmra.mxu0 %vm332_vm0, %v5036_v13 }
0x1621   :  { %v4966_v24 = vsel %vm4965_vm8, %v8254_v0, %v4962_v2 }
0x1622   :  { %v5019_v29 = vmul.f32 %v4966_v24, %v10962_v50  ;;  %v4869_v55 = vpop.xlane.xlu0 %4868 }
0x1623   :  { %v4879_v28 = vmul.f32 %v4869_v55, %v8953_v22 }
0x1624   :  { %v5028_v4 = vmul.f32 %v11006_v31, %v5019_v29 }
0x1625   :  { %v11022_v10 = vsub.f32 %v10972_v61, %v4879_v28 }
0x1626   :  { %v5037_v11 = vadd.f32 %v11008_v3, %v5028_v4 }
0x1627   :  { %v4895_v57 = vmul.f32 %v11022_v10, %v11022_v10 }
0x1628   :  { %7658 = vmatmul.msk.f32.gmra.mxu0 %vm332_vm0, %v5037_v11 }
0x1629   :  { %v4915_v37 = vsel %vm332_vm0, %v4895_v57, 0.0 }
0x162a   :  { %v4872_v16 = vpop.xlane.xlu0 %4871  ;;  %4916 = vadd.xlane.f32.xlu2 %v4915_v37 }
0x162b   :  { %v4880_v50 = vmul.f32 %v4872_v16, %v8953_v22 }
0x162d   :  { %v11031_v38 = vsub.f32 %v10979_v27, %v4880_v50 }
0x162f   :  { %v4896_v59 = vmul.f32 %v11031_v38, %v11031_v38 }
0x1631   :  { %v4918_v14 = vsel %vm332_vm0, %v4896_v59, 0.0 }
0x1632   :  { %4919 = vadd.xlane.f32.xlu1 %v4918_v14  ;;  %v4908_v34 = vpop.xlane.xlu0 %4907 }
0x1633   :  { %v4924_v43 = vmul.f32 %v4908_v34, %v8953_v22 }
0x1635   :  { %v4932_v25 = vadd.f32 1e-05, %v4924_v43 }
0x1637   :  { %8255 = vrsqrt.f32 %v4932_v25  ;;  %vm4973_vm10 = vweird.f32 %v4932_v25 }
0x163d   :  { %v8256_v40 = vpop.eup %8255 }
0x163e   :  { %v4968_v52 = vmul.f32 %v8256_v40, %v4932_v25  ;;  %vm4974_vm9 = vweird.f32 %v8256_v40 }
0x163f   :  { %vm4975_vm11 = vmor %vm4973_vm10, %vm4974_vm9 }
0x1640   :  { %v4969_v1 = vmul.f32 %v8256_v40, %v4968_v52  ;;  %v7679_v52 = vld [vmem:[%s11675_s7 + $0x78] sm:$0xff] }
0x1641   :  { %5516 = vmatpush.msra.mxu2 %v7679_v52 }
0x1642   :  { %v4970_v62 = vmul.f32 0.5, %v4969_v1 }
0x1644   :  { %v4971_v18 = vsub.f32 1.5, %v4970_v62 }
0x1646   :  { %v4972_v23 = vmul.f32 %v8256_v40, %v4971_v18 }
0x1648   :  { %v4976_v60 = vsel %vm4975_vm11, %v8256_v40, %v4972_v23  ;;  %v7678_v23 = vld [vmem:[%s11675_s7 + $0x70] sm:$0xff] }
0x1649   :  { %v5020_v56 = vmul.f32 %v4976_v60, %v10982_v30  ;;  %5517 = vmatpush.msra.mxu2 %v7678_v23 }
0x164b   :  { %v5029_v42 = vmul.f32 %v11006_v31, %v5020_v56 }
0x164d   :  { %v5038_v12 = vadd.f32 %v11008_v3, %v5029_v42 }
0x164f   :  { %7659 = vmatmul.msk.f32.gmra.mxu0 %vm332_vm0, %v5038_v12 }
0x166e   :  { %v4911_v48 = vpop.xlane.xlu1 %4910 }
0x166f   :  { %v4925_v63 = vmul.f32 %v4911_v48, %v8953_v22 }
0x1671   :  { %v4933_v46 = vadd.f32 1e-05, %v4925_v63  ;;  %v7677_v63 = vld [vmem:[%s11675_s7 + $0x68] sm:$0xff] }
0x1672   :  { %5518 = vmatpush.msra.mxu2 %v7677_v63 }
0x1673   :  { %8257 = vrsqrt.f32 %v4933_v46  ;;  %vm4983_vm13 = vweird.f32 %v4933_v46 }
0x1676   :  { %v4914_v53 = vpop.xlane.xlu0 %4913 }
0x1677   :  { %v4926_v6 = vmul.f32 %v4914_v53, %v8953_v22 }
0x1679   :  { %v8258_v8 = vpop.eup %8257  ;;  %v4934_v51 = vadd.f32 1e-05, %v4926_v6 }
0x167a   :  { %v4978_v9 = vmul.f32 %v8258_v8, %v4933_v46  ;;  %vm4984_vm12 = vweird.f32 %v8258_v8 }
0x167b   :  { %8259 = vrsqrt.f32 %v4934_v51  ;;  %vm4985_vm15 = vmor %vm4983_vm13, %vm4984_vm12  ;;  %vm4993_vm3 = vweird.f32 %v4934_v51 }
0x167c   :  { %v4979_v19 = vmul.f32 %v8258_v8, %v4978_v9 }
0x167e   :  { %v4980_v30 = vmul.f32 0.5, %v4979_v19  ;;  %v7676_v19 = vld [vmem:[%s11675_s7 + $0x60] sm:$0xff] }
0x167f   :  { %5519 = vmatpush.msra.mxu2 %v7676_v19 }
0x1680   :  { %v4981_v47 = vsub.f32 1.5, %v4980_v30 }
0x1681   :  { %v8260_v20 = vpop.eup %8259 }
0x1682   :  { %v4982_v0 = vmul.f32 %v8258_v8, %v4981_v47  ;;  %v4988_v44 = vmul.f32 %v8260_v20, %v4934_v51  ;;  %vm4994_vm1 = vweird.f32 %v8260_v20 }
0x1683   :  { %vm4995_vm4 = vmor %vm4993_vm3, %vm4994_vm1 }
0x1684   :  { %v4986_v33 = vsel %vm4985_vm15, %v8258_v8, %v4982_v0  ;;  %v4989_v41 = vmul.f32 %v8260_v20, %v4988_v44 }
0x1685   :  { %v5021_v5 = vmul.f32 %v4986_v33, %v10991_v32  ;;  %v11050_v32 = vld [vmem:[#allocation10 + $0x1] ss:$0 sm:$0xff] }
0x1686   :  { %v4990_v35 = vmul.f32 0.5, %v4989_v41 }
0x1687   :  { %v5030_v58 = vmul.f32 %v11006_v31, %v5021_v5 }
0x1688   :  { %v4991_v54 = vsub.f32 1.5, %v4990_v35  ;;  %v7675_v35 = vld [vmem:[%s11675_s7 + $0x58] sm:$0xff] }
0x1689   :  { %v5039_v45 = vadd.f32 %v11008_v3, %v5030_v58  ;;  %5520 = vmatpush.msra.mxu2 %v7675_v35 }
0x168a   :  { %v4992_v17 = vmul.f32 %v8260_v20, %v4991_v54 }
0x168b   :  { %7660 = vmatmul.msk.f32.gmra.mxu0 %vm332_vm0, %v5039_v45 }
0x168c   :  { %v4996_v13 = vsel %vm4995_vm4, %v8260_v20, %v4992_v17 }
0x168d   :  { %v5022_v2 = vmul.f32 %v4996_v13, %v10999_v36  ;;  %v7674_v13 = vld [vmem:[%s11675_s7 + $0x50] sm:$0xff] }
0x168e   :  { %5521 = vmatpush.msra.mxu2 %v7674_v13 }
0x168f   :  { %v5031_v24 = vmul.f32 %v11006_v31, %v5022_v2 }
0x1691   :  { %v5040_v29 = vadd.f32 %v11008_v3, %v5031_v24 }
0x1693   :  { %7661 = vmatmul.msk.f32.gmra.mxu0 %vm332_vm0, %v5040_v29 }
0x1695   :  { %v5094_v55 = vpop.f32.mrf.mxu0 }
0x1696   :  { %v11054_v28 = vadd.f32 %v11050_v32, %v5094_v55 }
0x1698   :  { %v11057_v4 = vmul.f32 0.70710677, %v11054_v28 }
0x169a   :  { %v5134_v11 = vmul.f32 %v11057_v4, %v11057_v4 }
0x169c   :  { %v11061_v57 = vmin.f32 %v5134_v11, 16.0  ;;  %v7673_v11 = vld [vmem:[%s11675_s7 + $0x48] sm:$0xff] }
0x169d   :  { %v5097_v36 = vpop.f32.mrf.mxu0  ;;  %v4917_v37 = vpop.xlane.xlu2 %4916  ;;  %5522 = vmatpush.msra.mxu2 %v7673_v11 }
0x169e   :  { %v5136_v16 = vmul.f32 2.1237322e-06, %v11061_v57  ;;  %v5147_v50 = vmul.f32 3.8918573e-05, %v11061_v57  ;;  %v11066_v59 = vadd.f32 %v11050_v32, %v5097_v36  ;;  %v4927_v14 = vmul.f32 %v4917_v37, %v8953_v22 }
0x16a0   :  { %v5137_v34 = vadd.f32 0.00028619796, %v5136_v16  ;;  %v5148_v43 = vadd.f32 0.001143296, %v5147_v50  ;;  %v11070_v25 = vmul.f32 0.70710677, %v11066_v59 }
0x16a1   :  { %v11072_v40 = vadd.f32 1e-05, %v4927_v14 }
0x16a2   :  { %v5138_v1 = vmul.f32 %v5137_v34, %v11061_v57  ;;  %v5149_v62 = vmul.f32 %v5148_v43, %v11061_v57  ;;  %v5174_v18 = vmul.f32 %v11070_v25, %v11070_v25  ;;  %v7672_v43 = vld [vmem:[%s11675_s7 + $0x40] sm:$0xff] }
0x16a3   :  { %8261 = vrsqrt.f32 %v11072_v40  ;;  %5523 = vmatpush.msra.mxu2 %v7672_v43  ;;  %vm5003_vm6 = vweird.f32 %v11072_v40 }
0x16a4   :  { %v5139_v60 = vadd.f32 0.0036580483, %v5138_v1  ;;  %v5150_v56 = vadd.f32 0.014752088, %v5149_v62  ;;  %v11085_v42 = vmin.f32 %v5174_v18, 16.0 }
0x16a5   :  { %v5100_v12 = vpop.f32.mrf.mxu0  ;;  %v4920_v48 = vpop.xlane.xlu1 %4919 }
0x16a6   :  { %v5140_v46 = vmul.f32 %v5139_v60, %v11061_v57  ;;  %v5151_v53 = vmul.f32 %v5150_v56, %v11061_v57  ;;  %v11093_v6 = vadd.f32 %v11050_v32, %v5100_v12  ;;  %v5176_v8 = vmul.f32 2.1237322e-06, %v11085_v42 }
0x16a7   :  { %v5187_v51 = vmul.f32 3.8918573e-05, %v11085_v42  ;;  %v4928_v9 = vmul.f32 %v4920_v48, %v8953_v22 }
0x16a8   :  { %v5152_v30 = vadd.f32 0.112945676, %v5151_v53  ;;  %v5177_v20 = vadd.f32 0.00028619796, %v5176_v8  ;;  %v11102_v44 = vmul.f32 0.70710677, %v11093_v6 }
0x16a9   :  { %v8262_v47 = vpop.eup %8261  ;;  %v5188_v0 = vadd.f32 0.001143296, %v5187_v51  ;;  %v5141_v33 = vadd.f32 0.05243302, %v5140_v46  ;;  %v11113_v17 = vadd.f32 1e-05, %v4928_v9 }
0x16aa   :  { %v5153_v41 = vmul.f32 %v5152_v30, %v11061_v57  ;;  %v4998_v5 = vmul.f32 %v8262_v47, %v11072_v40  ;;  %v5178_v58 = vmul.f32 %v5177_v20, %v11085_v42  ;;  %v5214_v45 = vmul.f32 %v11102_v44, %v11102_v44 }
0x16ab   :  { %v5189_v54 = vmul.f32 %v5188_v0, %v11085_v42  ;;  %8263 = vrsqrt.f32 %v11113_v17  ;;  %v5142_v50 = vmul.f32 %v5141_v33, %v11061_v57  ;;  %vm5004_vm5 = vweird.f32 %v8262_v47 }
0x16ac   :  { %v5154_v2 = vadd.f32 0.4994258, %v5153_v41  ;;  %v4999_v24 = vmul.f32 %v8262_v47, %v4998_v5  ;;  %v11118_v55 = vmin.f32 %v5214_v45, 16.0  ;;  %v5179_v37 = vadd.f32 0.0036580483, %v5178_v58  ;;  %vm5005_vm7 = vmor %vm5003_vm6, %vm5004_vm5 }
0x16ad   :  { %v5190_v29 = vadd.f32 0.014752088, %v5189_v54  ;;  %v5143_v12 = vadd.f32 0.18741608, %v5142_v50  ;;  %vm5013_vm9 = vweird.f32 %v11113_v17 }
0x16ae   :  { %v5155_v36 = vmul.f32 %v5154_v2, %v11061_v57  ;;  %v5000_v16 = vmul.f32 0.5, %v4999_v24  ;;  %v5216_v34 = vmul.f32 2.1237322e-06, %v11118_v55  ;;  %v5227_v62 = vmul.f32 3.8918573e-05, %v11118_v55 }
0x16af   :  { %v5191_v14 = vmul.f32 %v5190_v29, %v11085_v42  ;;  %v5180_v60 = vmul.f32 %v5179_v37, %v11085_v42  ;;  %v5144_v33 = vmul.f32 %v5143_v12, %v11061_v57 }
0x16b0   :  { %v11131_v52 = vadd.f32 1.0, %v5155_v36  ;;  %v5001_v1 = vsub.f32 1.5, %v5000_v16  ;;  %v5217_v23 = vadd.f32 0.00028619796, %v5216_v34  ;;  %v5228_v46 = vadd.f32 0.001143296, %v5227_v62 }
0x16b1   :  { %v5192_v18 = vadd.f32 0.112945676, %v5191_v14  ;;  %v8264_v56 = vpop.eup %8263  ;;  %v5181_v19 = vadd.f32 0.05243302, %v5180_v60  ;;  %v5145_v57 = vadd.f32 1.1283791, %v5144_v33 }
0x16b2   :  { %8265 = vrcp.f32 %v11131_v52  ;;  %v5002_v63 = vmul.f32 %v8262_v47, %v5001_v1  ;;  %v5008_v53 = vmul.f32 %v8264_v56, %v11113_v17  ;;  %v5218_v9 = vmul.f32 %v5217_v23, %v11118_v55 }
0x16b3   :  { %v5193_v48 = vmul.f32 %v5192_v18, %v11085_v42  ;;  %v5229_v20 = vmul.f32 %v5228_v46, %v11118_v55  ;;  %v5182_v13 = vmul.f32 %v5181_v19, %v11085_v42  ;;  %vm5014_vm8 = vweird.f32 %v8264_v56 }
0x16b4   :  { %v5006_v51 = vsel %vm5005_vm7, %v8262_v47, %v5002_v63  ;;  %v5009_v0 = vmul.f32 %v8264_v56, %v5008_v53  ;;  %v5219_v45 = vadd.f32 0.0036580483, %v5218_v9  ;;  %v5166_v11 = vand.u32 2147483647, %v11131_v52  ;;  %vm5015_vm11 = vmor %vm5013_vm9, %vm5014_vm8 }
0x16b5   :  { %v5194_v8 = vadd.f32 0.4994258, %v5193_v48  ;;  %v5023_v30 = vmul.f32 %v5006_v51, %v11022_v10  ;;  %v5230_v40 = vadd.f32 0.014752088, %v5229_v20  ;;  %v5168_v36 = vand.u32 2147483648, %v11131_v52 }
0x16b6   :  { %v5010_v35 = vmul.f32 0.5, %v5009_v0  ;;  %v5220_v50 = vmul.f32 %v5219_v45, %v11118_v55  ;;  %v5183_v34 = vadd.f32 0.18741608, %v5182_v13  ;;  %vm5162_vm12 = vweird.f32 %v11131_v52 }
0x16b7   :  { %v5195_v41 = vmul.f32 %v5194_v8, %v11085_v42  ;;  %v5032_v58 = vmul.f32 %v11006_v31, %v5023_v30  ;;  %v5231_v10 = vmul.f32 %v5230_v40, %v11118_v55  ;;  %v5169_v18 = vor.u32 1.1754944e-38, %v5168_v36 }
0x16b8   :  { %v8266_v5 = vpop.eup %8265  ;;  %v5011_v2 = vsub.f32 1.5, %v5010_v35  ;;  %v5146_v12 = vmul.f32 %v5145_v57, %v11057_v4  ;;  %vm5167_vm15 = vcmp.eq.f32.partialorder %v5166_v11, 8.507059e+37  ;;  %v5221_v63 = vadd.f32 0.05243302, %v5220_v50 }
0x16b9   :  { %v5158_v54 = vmul.f32 %v8266_v5, %v11131_v52  ;;  %v11146_v47 = vadd.f32 1.0, %v5195_v41  ;;  %v5041_v24 = vadd.f32 %v11008_v3, %v5032_v58  ;;  %v5232_v37 = vadd.f32 0.112945676, %v5231_v10 }
0x16ba   :  { %vm5163_vm10 = vweird.f32 %v8266_v5  ;;  %v5012_v14 = vmul.f32 %v8264_v56, %v5011_v2  ;;  %v5184_v53 = vmul.f32 %v5183_v34, %v11085_v42  ;;  %v5222_v30 = vmul.f32 %v5221_v63, %v11118_v55 }
0x16bb   :  { %v5159_v29 = vsub.f32 1.0, %v5158_v54  ;;  %8267 = vrcp.f32 %v11146_v47  ;;  %7662 = vmatmul.msk.f32.gmra.mxu0 %vm332_vm0, %v5041_v24  ;;  %v5233_v43 = vmul.f32 %v5232_v37, %v11118_v55  ;;  %vm5164_vm13 = vmor %vm5162_vm12, %vm5163_vm10  ;;  %v5208_v19 = vand.u32 2147483648, %v11146_v47 }
0x16bc   :  { %v5016_v62 = vsel %vm5015_vm11, %v8264_v56, %v5012_v14  ;;  %v5185_v0 = vadd.f32 1.1283791, %v5184_v53  ;;  %v5206_v42 = vand.u32 2147483647, %v11146_v47  ;;  %v5118_v41 = vmul.f32 0.5, %v11054_v28 }
0x16bd   :  { %v5160_v16 = vmul.f32 %v8266_v5, %v5159_v29  ;;  %v5234_v23 = vadd.f32 0.4994258, %v5233_v43  ;;  %v5024_v17 = vmul.f32 %v5016_v62, %v11031_v38  ;;  %vm5202_vm3 = vweird.f32 %v11146_v47 }
0x16be   :  { %v5209_v35 = vor.u32 1.1754944e-38, %v5208_v19  ;;  %v5223_v58 = vadd.f32 0.18741608, %v5222_v30  ;;  %vm5207_vm5 = vcmp.eq.f32.partialorder %v5206_v42, 8.507059e+37  ;;  %v5119_v11 = vmul.f32 0.5, %v11066_v59 }
0x16bf   :  { %v5161_v1 = vadd.f32 %v8266_v5, %v5160_v16  ;;  %v5235_v52 = vmul.f32 %v5234_v23, %v11118_v55  ;;  %v5033_v56 = vmul.f32 %v11006_v31, %v5024_v17 }
0x16c0   :  { %v5224_v2 = vmul.f32 %v5223_v58, %v11118_v55 }
0x16c1   :  { %v8268_v60 = vpop.eup %8267  ;;  %v5165_v48 = vsel %vm5164_vm13, %v8266_v5, %v5161_v1  ;;  %v5236_v4 = vadd.f32 1.0, %v5235_v52  ;;  %v5042_v20 = vadd.f32 %v11008_v3, %v5033_v56  ;;  %v5186_v3 = vmul.f32 %v5185_v0, %v11070_v25 }
0x16c2   :  { %v5170_v46 = vsel %vm5167_vm15, %v5169_v18, %v5165_v48  ;;  %v5198_v8 = vmul.f32 %v8268_v60, %v11146_v47  ;;  %vm5203_vm1 = vweird.f32 %v8268_v60  ;;  %v5225_v37 = vadd.f32 1.1283791, %v5224_v2 }
0x16c3   :  { %v5171_v51 = vmul.f32 %v5170_v46, %v5146_v12  ;;  %8269 = vrcp.f32 %v5236_v4  ;;  %7663 = vmatmul.msk.f32.gmra.mxu0 %vm332_vm0, %v5042_v20  ;;  %vm5204_vm4 = vmor %vm5202_vm3, %vm5203_vm1  ;;  %v5248_v16 = vand.u32 2147483648, %v5236_v4  ;;  %v5246_v43 = vand.u32 2147483647, %v5236_v4 }
0x16c4   :  { %v5199_v9 = vsub.f32 1.0, %v5198_v8  ;;  %vm5242_vm7 = vweird.f32 %v5236_v4  ;;  %v5226_v59 = vmul.f32 %v5225_v37, %v11102_v44  ;;  %v5120_v52 = vmul.f32 0.5, %v11093_v6 }
0x16c5   :  { %v7664_v38 = vclamps-f32 %v5171_v51, 1.0  ;;  %v5249_v62 = vor.u32 1.1754944e-38, %v5248_v16  ;;  %vm5247_vm9 = vcmp.eq.f32.partialorder %v5246_v43, 8.507059e+37 }
0x16c6   :  { %v5200_v33 = vmul.f32 %v8268_v60, %v5199_v9 }
0x16c7   :  { %v5454_v5 = vadd.f32 1.0, %v7664_v38 }
0x16c8   :  { %v5201_v31 = vadd.f32 %v8268_v60, %v5200_v33 }
0x16c9   :  { %v5462_v40 = vmul.f32 %v5454_v5, %v5118_v41  ;;  %v8270_v10 = vpop.eup %8269 }
0x16ca   :  { %v5205_v54 = vsel %vm5204_vm4, %v8268_v60, %v5201_v31  ;;  %v5238_v57 = vmul.f32 %v8270_v10, %v5236_v4  ;;  %vm5243_vm6 = vweird.f32 %v8270_v10 }
0x16cb   :  { %v5210_v45 = vsel %vm5207_vm5, %v5209_v35, %v5205_v54  ;;  %7680 = vmatmul.msk.f32.vlgmr.msra.gmra.mxu2 %vm2869_vm2, %v5462_v40  ;;  %vm5244_vm8 = vmor %vm5242_vm7, %vm5243_vm6 }
0x16cc   :  { %v5211_v13 = vmul.f32 %v5210_v45, %v5186_v3  ;;  %v5103_v28 = vpop.f32.mrf.mxu0  ;;  %v5239_v36 = vsub.f32 1.0, %v5238_v57 }
0x16cd   :  { %v11176_v24 = vadd.f32 %v11050_v32, %v5103_v28 }
0x16ce   :  { %v7665_v47 = vclamps-f32 %v5211_v13, 1.0  ;;  %v5240_v34 = vmul.f32 %v8270_v10, %v5239_v36 }
0x16cf   :  { %v5129_v29 = vmul.f32 0.70710677, %v11176_v24 }
0x16d0   :  { %v5455_v25 = vadd.f32 1.0, %v7665_v47  ;;  %v5241_v55 = vadd.f32 %v8270_v10, %v5240_v34 }
0x16d1   :  { %v5254_v50 = vmul.f32 %v5129_v29, %v5129_v29 }
0x16d2   :  { %v5463_v14 = vmul.f32 %v5455_v25, %v5119_v11  ;;  %v5245_v17 = vsel %vm5244_vm8, %v8270_v10, %v5241_v55  ;;  %v5121_v25 = vmul.f32 0.5, %v11176_v24 }
0x16d3   :  { %v5255_v1 = vmin.f32 %v5254_v50, 16.0  ;;  %v5250_v60 = vsel %vm5247_vm9, %v5249_v62, %v5245_v17 }
0x16d4   :  { %7681 = vmatmul.msk.f32.gmra.mxu2 %vm2869_vm2, %v5463_v14  ;;  %v5251_v63 = vmul.f32 %v5250_v60, %v5226_v59 }
0x16d5   :  { %v5256_v18 = vmul.f32 2.1237322e-06, %v5255_v1  ;;  %v5267_v23 = vmul.f32 3.8918573e-05, %v5255_v1 }
0x16d6   :  { %v7666_v8 = vclamps-f32 %v5251_v63, 1.0 }
0x16d7   :  { %v5257_v12 = vadd.f32 0.00028619796, %v5256_v18  ;;  %v5268_v48 = vadd.f32 0.001143296, %v5267_v23 }
0x16d8   :  { %v5456_v56 = vadd.f32 1.0, %v7666_v8 }
0x16d9   :  { %v5258_v46 = vmul.f32 %v5257_v12, %v5255_v1  ;;  %v5269_v53 = vmul.f32 %v5268_v48, %v5255_v1 }
0x16da   :  { %v5464_v38 = vmul.f32 %v5456_v56, %v5120_v52 }
0x16db   :  { %v5270_v51 = vadd.f32 0.014752088, %v5269_v53  ;;  %v5259_v9 = vadd.f32 0.0036580483, %v5258_v46 }
0x16dc   :  { %7682 = vmatmul.msk.f32.gmra.mxu2 %vm2869_vm2, %v5464_v38 }
0x16dd   :  { %v5271_v19 = vmul.f32 %v5270_v51, %v5255_v1  ;;  %v5260_v4 = vmul.f32 %v5259_v9, %v5255_v1 }
0x16df   :  { %v5272_v30 = vadd.f32 0.112945676, %v5271_v19  ;;  %v5261_v0 = vadd.f32 0.05243302, %v5260_v4 }
0x16e1   :  { %v5273_v44 = vmul.f32 %v5272_v30, %v5255_v1  ;;  %v5262_v41 = vmul.f32 %v5261_v0, %v5255_v1 }
0x16e3   :  { %v5274_v20 = vadd.f32 0.4994258, %v5273_v44  ;;  %v5263_v5 = vadd.f32 0.18741608, %v5262_v41 }
0x16e5   :  { %v5275_v33 = vmul.f32 %v5274_v20, %v5255_v1  ;;  %v5264_v40 = vmul.f32 %v5263_v5, %v5255_v1 }
0x16e7   :  { %v5276_v42 = vadd.f32 1.0, %v5275_v33  ;;  %v5265_v3 = vadd.f32 1.1283791, %v5264_v40 }
0x16e9   :  { %8271 = vrcp.f32 %v5276_v42  ;;  %v5288_v58 = vand.u32 2147483648, %v5276_v42  ;;  %v5286_v45 = vand.u32 2147483647, %v5276_v42  ;;  %vm5282_vm11 = vweird.f32 %v5276_v42 }
0x16ea   :  { %v5266_v10 = vmul.f32 %v5265_v3, %v5129_v29 }
0x16eb   :  { %v5289_v28 = vor.u32 1.1754944e-38, %v5288_v58  ;;  %vm5287_vm13 = vcmp.eq.f32.partialorder %v5286_v45, 8.507059e+37 }
0x16ef   :  { %v8272_v31 = vpop.eup %8271 }
0x16f0   :  { %v5278_v35 = vmul.f32 %v8272_v31, %v5276_v42  ;;  %vm5283_vm10 = vweird.f32 %v8272_v31 }
0x16f1   :  { %vm5284_vm12 = vmor %vm5282_vm11, %vm5283_vm10 }
0x16f2   :  { %v5279_v6 = vsub.f32 1.0, %v5278_v35 }
0x16f4   :  { %v5280_v54 = vmul.f32 %v8272_v31, %v5279_v6 }
0x16f6   :  { %v5281_v13 = vadd.f32 %v8272_v31, %v5280_v54 }
0x16f8   :  { %v5285_v2 = vsel %vm5284_vm12, %v8272_v31, %v5281_v13 }
0x16f9   :  { %v5290_v47 = vsel %vm5287_vm13, %v5289_v28, %v5285_v2 }
0x16fa   :  { %v5291_v57 = vmul.f32 %v5290_v47, %v5266_v10 }
0x16fc   :  { %v7667_v11 = vclamps-f32 %v5291_v57, 1.0 }
0x16fe   :  { %v5457_v36 = vadd.f32 1.0, %v7667_v11 }
0x1700   :  { %v5465_v37 = vmul.f32 %v5457_v36, %v5121_v25 }
0x1702   :  { %7683 = vmatmul.msk.f32.gmra.mxu2 %vm2869_vm2, %v5465_v37 }
0x1708   :  { %v5106_v16 = vpop.f32.mrf.mxu0 }
0x1709   :  { %v11187_v50 = vadd.f32 %v11050_v32, %v5106_v16 }
0x170b   :  { %v5130_v14 = vmul.f32 0.70710677, %v11187_v50 }
0x170d   :  { %v5294_v34 = vmul.f32 %v5130_v14, %v5130_v14 }
0x170f   :  { %v5295_v43 = vmin.f32 %v5294_v34, 16.0 }
0x1710   :  { %v5109_v29 = vpop.f32.mrf.mxu0 }
0x1711   :  { %v5296_v1 = vmul.f32 2.1237322e-06, %v5295_v43  ;;  %v5307_v55 = vmul.f32 3.8918573e-05, %v5295_v43  ;;  %v11191_v62 = vadd.f32 %v11050_v32, %v5109_v29 }
0x1713   :  { %v5297_v18 = vadd.f32 0.00028619796, %v5296_v1  ;;  %v5308_v24 = vadd.f32 0.001143296, %v5307_v55  ;;  %v11194_v23 = vmul.f32 0.70710677, %v11191_v62 }
0x1715   :  { %v5298_v59 = vmul.f32 %v5297_v18, %v5295_v43  ;;  %v5309_v17 = vmul.f32 %v5308_v24, %v5295_v43  ;;  %v5334_v60 = vmul.f32 %v11194_v23, %v11194_v23 }
0x1717   :  { %v5310_v12 = vadd.f32 0.014752088, %v5309_v17  ;;  %v5299_v48 = vadd.f32 0.0036580483, %v5298_v59  ;;  %v5335_v63 = vmin.f32 %v5334_v60, 16.0 }
0x1719   :  { %v5311_v46 = vmul.f32 %v5310_v12, %v5295_v43  ;;  %v5336_v53 = vmul.f32 2.1237322e-06, %v5335_v63  ;;  %v5347_v8 = vmul.f32 3.8918573e-05, %v5335_v63  ;;  %v5300_v52 = vmul.f32 %v5299_v48, %v5295_v43 }
0x171b   :  { %v5312_v51 = vadd.f32 0.112945676, %v5311_v46  ;;  %v5337_v56 = vadd.f32 0.00028619796, %v5336_v53  ;;  %v5348_v9 = vadd.f32 0.001143296, %v5347_v8 }
0x171c   :  { %v5301_v44 = vadd.f32 0.05243302, %v5300_v52 }
0x171d   :  { %v5313_v19 = vmul.f32 %v5312_v51, %v5295_v43  ;;  %v5338_v38 = vmul.f32 %v5337_v56, %v5335_v63  ;;  %v5349_v30 = vmul.f32 %v5348_v9, %v5335_v63  ;;  %v5122_v51 = vmul.f32 0.5, %v11187_v50 }
0x171e   :  { %v5302_v5 = vmul.f32 %v5301_v44, %v5295_v43 }
0x171f   :  { %v5314_v4 = vadd.f32 0.4994258, %v5313_v19  ;;  %v5350_v20 = vadd.f32 0.014752088, %v5349_v30  ;;  %v5339_v33 = vadd.f32 0.0036580483, %v5338_v38 }
0x1720   :  { %v5303_v6 = vadd.f32 0.18741608, %v5302_v5 }
0x1721   :  { %v5315_v0 = vmul.f32 %v5314_v4, %v5295_v43  ;;  %v5351_v42 = vmul.f32 %v5350_v20, %v5335_v63  ;;  %v5340_v40 = vmul.f32 %v5339_v33, %v5335_v63 }
0x1722   :  { %v5304_v13 = vmul.f32 %v5303_v6, %v5295_v43 }
0x1723   :  { %v5316_v41 = vadd.f32 1.0, %v5315_v0  ;;  %v5352_v31 = vadd.f32 0.112945676, %v5351_v42  ;;  %v5341_v3 = vadd.f32 0.05243302, %v5340_v40 }
0x1724   :  { %v5305_v11 = vadd.f32 1.1283791, %v5304_v13 }
0x1725   :  { %8273 = vrcp.f32 %v5316_v41  ;;  %v5353_v35 = vmul.f32 %v5352_v31, %v5335_v63  ;;  %v5342_v2 = vmul.f32 %v5341_v3, %v5335_v63  ;;  %v5328_v57 = vand.u32 2147483648, %v5316_v41 }
0x1726   :  { %v5326_v36 = vand.u32 2147483647, %v5316_v41  ;;  %vm5322_vm1 = vweird.f32 %v5316_v41  ;;  %v5306_v1 = vmul.f32 %v5305_v11, %v5130_v14 }
0x1727   :  { %v5354_v58 = vadd.f32 0.4994258, %v5353_v35  ;;  %v5343_v37 = vadd.f32 0.18741608, %v5342_v2  ;;  %v5329_v34 = vor.u32 1.1754944e-38, %v5328_v57 }
0x1728   :  { %vm5327_vm4 = vcmp.eq.f32.partialorder %v5326_v36, 8.507059e+37 }
0x1729   :  { %v5355_v54 = vmul.f32 %v5354_v58, %v5335_v63  ;;  %v5344_v18 = vmul.f32 %v5343_v37, %v5335_v63 }
0x172b   :  { %v8274_v45 = vpop.eup %8273  ;;  %v5356_v10 = vadd.f32 1.0, %v5355_v54  ;;  %v5345_v48 = vadd.f32 1.1283791, %v5344_v18 }
0x172c   :  { %v5318_v28 = vmul.f32 %v8274_v45, %v5316_v41  ;;  %vm5323_vm15 = vweird.f32 %v8274_v45  ;;  %v5123_v41 = vmul.f32 0.5, %v11191_v62 }
0x172d   :  { %8275 = vrcp.f32 %v5356_v10  ;;  %vm5324_vm3 = vmor %vm5322_vm1, %vm5323_vm15  ;;  %v5368_v12 = vand.u32 2147483648, %v5356_v10  ;;  %v5366_v53 = vand.u32 2147483647, %v5356_v10  ;;  %vm5362_vm6 = vweird.f32 %v5356_v10 }
0x172e   :  { %v5319_v47 = vsub.f32 1.0, %v5318_v28  ;;  %v5346_v38 = vmul.f32 %v5345_v48, %v11194_v23 }
0x172f   :  { %v5369_v63 = vor.u32 1.1754944e-38, %v5368_v12  ;;  %vm5367_vm8 = vcmp.eq.f32.partialorder %v5366_v53, 8.507059e+37 }
0x1730   :  { %v5320_v25 = vmul.f32 %v8274_v45, %v5319_v47 }
0x1732   :  { %v5321_v16 = vadd.f32 %v8274_v45, %v5320_v25 }
0x1733   :  { %v8276_v29 = vpop.eup %8275 }
0x1734   :  { %v5325_v55 = vsel %vm5324_vm3, %v8274_v45, %v5321_v16  ;;  %v5358_v24 = vmul.f32 %v8276_v29, %v5356_v10  ;;  %vm5363_vm5 = vweird.f32 %v8276_v29 }
0x1735   :  { %v5330_v43 = vsel %vm5327_vm4, %v5329_v34, %v5325_v55  ;;  %vm5364_vm7 = vmor %vm5362_vm6, %vm5363_vm5 }
0x1736   :  { %v5331_v59 = vmul.f32 %v5330_v43, %v5306_v1  ;;  %v5359_v17 = vsub.f32 1.0, %v5358_v24 }
0x1738   :  { %v7668_v60 = vclamps-f32 %v5331_v59, 1.0  ;;  %v5360_v46 = vmul.f32 %v8276_v29, %v5359_v17  ;;  %v5112_v8 = vpop.f32.mrf.mxu0 }
0x1739   :  { %v11200_v56 = vadd.f32 %v11050_v32, %v5112_v8 }
0x173a   :  { %v5458_v52 = vadd.f32 1.0, %v7668_v60  ;;  %v5361_v14 = vadd.f32 %v8276_v29, %v5360_v46 }
0x173b   :  { %v11203_v19 = vmul.f32 0.70710677, %v11200_v56 }
0x173c   :  { %v5466_v9 = vmul.f32 %v5458_v52, %v5122_v51  ;;  %v5365_v30 = vsel %vm5364_vm7, %v8276_v29, %v5361_v14 }
0x173d   :  { %v5370_v4 = vsel %vm5367_vm8, %v5369_v63, %v5365_v30  ;;  %v5374_v50 = vmul.f32 %v11203_v19, %v11203_v19 }
0x173e   :  { %7684 = vmatmul.msk.f32.gmra.mxu2 %vm2869_vm2, %v5466_v9  ;;  %v5371_v44 = vmul.f32 %v5370_v4, %v5346_v38 }
0x173f   :  { %v5375_v20 = vmin.f32 %v5374_v50, 16.0 }
0x1740   :  { %v7669_v0 = vclamps-f32 %v5371_v44, 1.0  ;;  %v5115_v35 = vpop.f32.mrf.mxu0 }
0x1741   :  { %v5376_v33 = vmul.f32 2.1237322e-06, %v5375_v20  ;;  %v5387_v42 = vmul.f32 3.8918573e-05, %v5375_v20  ;;  %v11211_v6 = vadd.f32 %v11050_v32, %v5115_v35 }
0x1742   :  { %v5459_v5 = vadd.f32 1.0, %v7669_v0 }
0x1743   :  { %v5377_v31 = vadd.f32 0.00028619796, %v5376_v33  ;;  %v5388_v40 = vadd.f32 0.001143296, %v5387_v42  ;;  %v11214_v54 = vmul.f32 0.70710677, %v11211_v6 }
0x1744   :  { %v5467_v23 = vmul.f32 %v5459_v5, %v5123_v41 }
0x1745   :  { %v5378_v58 = vmul.f32 %v5377_v31, %v5375_v20  ;;  %v5389_v3 = vmul.f32 %v5388_v40, %v5375_v20  ;;  %v5414_v62 = vmul.f32 %v11214_v54, %v11214_v54 }
0x1746   :  { %7685 = vmatmul.msk.f32.gmra.mxu2 %vm2869_vm2, %v5467_v23 }
0x1747   :  { %v5379_v45 = vadd.f32 0.0036580483, %v5378_v58  ;;  %v5390_v13 = vadd.f32 0.014752088, %v5389_v3  ;;  %v5415_v10 = vmin.f32 %v5414_v62, 16.0 }
0x1749   :  { %v5391_v28 = vmul.f32 %v5390_v13, %v5375_v20  ;;  %v5380_v2 = vmul.f32 %v5379_v45, %v5375_v20  ;;  %v5416_v57 = vmul.f32 2.1237322e-06, %v5415_v10  ;;  %v5427_v11 = vmul.f32 3.8918573e-05, %v5415_v10 }
0x174a   :  { %v5124_v45 = vmul.f32 0.5, %v11200_v56 }
0x174b   :  { %v5392_v47 = vadd.f32 0.112945676, %v5391_v28  ;;  %v5417_v25 = vadd.f32 0.00028619796, %v5416_v57  ;;  %v5428_v36 = vadd.f32 0.001143296, %v5427_v11 }
0x174c   :  { %v5381_v37 = vadd.f32 0.05243302, %v5380_v2 }
0x174d   :  { %v5393_v32 = vmul.f32 %v5392_v47, %v5375_v20  ;;  %v5418_v34 = vmul.f32 %v5417_v25, %v5415_v10  ;;  %v5429_v29 = vmul.f32 %v5428_v36, %v5415_v10 }
0x174e   :  { %v5382_v43 = vmul.f32 %v5381_v37, %v5375_v20  ;;  %v5125_v37 = vmul.f32 0.5, %v11211_v6 }
0x174f   :  { %v5394_v16 = vadd.f32 0.4994258, %v5393_v32  ;;  %v5430_v55 = vadd.f32 0.014752088, %v5429_v29  ;;  %v5419_v24 = vadd.f32 0.0036580483, %v5418_v34  ;;  %v5525_v29 = vpop.f32.mrf.mxu2 }
0x1750   :  { %v5383_v60 = vadd.f32 0.18741608, %v5382_v43 }
0x1751   :  { %v5395_v1 = vmul.f32 %v5394_v16, %v5375_v20  ;;  %v5431_v59 = vmul.f32 %v5430_v55, %v5415_v10  ;;  %v5420_v12 = vmul.f32 %v5419_v24, %v5415_v10  ;;  %v7922_v24 = vld [vmem:[#allocation12 + $0x1] ss:$0 sm:$0xff] }
0x1752   :  { %v5384_v8 = vmul.f32 %v5383_v60, %v5375_v20 }
0x1753   :  { %v5396_v18 = vadd.f32 1.0, %v5395_v1  ;;  %v5432_v17 = vadd.f32 0.112945676, %v5431_v59  ;;  %v5421_v51 = vadd.f32 0.05243302, %v5420_v12 }
0x1754   :  { %v5385_v38 = vadd.f32 1.1283791, %v5384_v8 }
0x1755   :  { %8277 = vrcp.f32 %v5396_v18  ;;  %v5433_v48 = vmul.f32 %v5432_v17, %v5415_v10  ;;  %v5408_v30 = vand.u32 2147483648, %v5396_v18  ;;  %v5422_v4 = vmul.f32 %v5421_v51, %v5415_v10 }
0x1756   :  { %v5406_v44 = vand.u32 2147483647, %v5396_v18  ;;  %vm5402_vm10 = vweird.f32 %v5396_v18  ;;  %v5386_v41 = vmul.f32 %v5385_v38, %v11203_v19 }
0x1757   :  { %v5434_v46 = vadd.f32 0.4994258, %v5433_v48  ;;  %v5409_v33 = vor.u32 1.1754944e-38, %v5408_v30  ;;  %v5423_v42 = vadd.f32 0.18741608, %v5422_v4  ;;  %v5528_v1 = vpop.f32.mrf.mxu2 }
0x1758   :  { %vm5407_vm12 = vcmp.eq.f32.partialorder %v5406_v44, 8.507059e+37 }
0x1759   :  { %v5435_v14 = vmul.f32 %v5434_v46, %v5415_v10  ;;  %v5424_v35 = vmul.f32 %v5423_v42, %v5415_v10 }
0x175b   :  { %v8278_v53 = vpop.eup %8277  ;;  %v5436_v63 = vadd.f32 1.0, %v5435_v14  ;;  %v5425_v28 = vadd.f32 1.1283791, %v5424_v35 }
0x175c   :  { %v5398_v52 = vmul.f32 %v8278_v53, %v5396_v18  ;;  %vm5403_vm9 = vweird.f32 %v8278_v53 }
0x175d   :  { %8279 = vrcp.f32 %v5436_v63  ;;  %vm5404_vm11 = vmor %vm5402_vm10, %vm5403_vm9  ;;  %v5448_v62 = vand.u32 2147483648, %v5436_v63  ;;  %v5446_v47 = vand.u32 2147483647, %v5436_v63  ;;  %vm5442_vm15 = vweird.f32 %v5436_v63 }
0x175e   :  { %v5399_v9 = vsub.f32 1.0, %v5398_v52  ;;  %v5426_v10 = vmul.f32 %v5425_v28, %v11214_v54 }
0x175f   :  { %v5449_v19 = vor.u32 1.1754944e-38, %v5448_v62  ;;  %vm5447_vm3 = vcmp.eq.f32.partialorder %v5446_v47, 8.507059e+37  ;;  %v5531_v55 = vpop.f32.mrf.mxu2 }
0x1760   :  { %v5400_v50 = vmul.f32 %v8278_v53, %v5399_v9  ;;  %v5532_v60 = vadd.f32 %v7922_v24, %v5531_v55 }
0x1762   :  { %v5401_v0 = vadd.f32 %v8278_v53, %v5400_v50  ;;  %v5551_v6 = vadd.f32 %v5532_v60, %v10909_v26 }
0x1763   :  { %v8280_v31 = vpop.eup %8279 }
0x1764   :  { %v5405_v20 = vsel %vm5404_vm11, %v8278_v53, %v5401_v0  ;;  %v5438_v23 = vmul.f32 %v8280_v31, %v5436_v63  ;;  %vm5443_vm13 = vweird.f32 %v8280_v31  ;;  %v5565_v48 = vsel %vm332_vm0, %v5551_v6, 0.0 }
0x1765   :  { %v5410_v5 = vsel %vm5407_vm12, %v5409_v33, %v5405_v20  ;;  %vm5444_vm1 = vmor %vm5442_vm15, %vm5443_vm13  ;;  %v5526_v63 = vadd.f32 %v7922_v24, %v5525_v29 }
0x1766   :  { %v5411_v40 = vmul.f32 %v5410_v5, %v5386_v41  ;;  %v5439_v3 = vsub.f32 1.0, %v5438_v23 }
0x1767   :  { %v5549_v50 = vadd.f32 %v5526_v63, %v10896_v21 }
0x1768   :  { %v7670_v58 = vclamps-f32 %v5411_v40, 1.0  ;;  %v5440_v2 = vmul.f32 %v8280_v31, %v5439_v3 }
0x1769   :  { %v5559_v44 = vsel %vm332_vm0, %v5549_v50, 0.0 }
0x176a   :  { %v5460_v13 = vadd.f32 1.0, %v7670_v58  ;;  %v5441_v11 = vadd.f32 %v8280_v31, %v5440_v2 }
0x176c   :  { %v5468_v57 = vmul.f32 %v5460_v13, %v5124_v45  ;;  %v5445_v32 = vsel %vm5444_vm1, %v8280_v31, %v5441_v11 }
0x176d   :  { %v5450_v25 = vsel %vm5447_vm3, %v5449_v19, %v5445_v32 }
0x176e   :  { %7686 = vmatmul.msk.f32.gmra.mxu2 %vm2869_vm2, %v5468_v57  ;;  %v5451_v36 = vmul.f32 %v5450_v25, %v5426_v10 }
0x1770   :  { %v7671_v56 = vclamps-f32 %v5451_v36, 1.0 }
0x1772   :  { %v5461_v16 = vadd.f32 1.0, %v7671_v56 }
0x1774   :  { %v5469_v34 = vmul.f32 %v5461_v16, %v5125_v37 }
0x1776   :  { %7687 = vmatmul.msk.f32.gmra.mxu2 %vm2869_vm2, %v5469_v34 }
0x1785   :  { %v5534_v43 = vpop.f32.mrf.mxu2 }
0x1786   :  { %v5535_v51 = vadd.f32 %v7922_v24, %v5534_v43 }
0x1788   :  { %v5552_v14 = vadd.f32 %v5535_v51, %v10899_v7  ;;  %v5529_v7 = vadd.f32 %v7922_v24, %v5528_v1 }
0x178a   :  { %v5568_v38 = vsel %vm332_vm0, %v5552_v14, 0.0  ;;  %v5550_v33 = vadd.f32 %v5529_v7, %v10893_v39 }
0x17c1   :  { %v5537_v18 = vpop.f32.mrf.mxu2 }
0x17c2   :  { %v5538_v30 = vadd.f32 %v7922_v24, %v5537_v18 }
0x17c9   :  { %v5540_v59 = vpop.f32.mrf.mxu2 }
0x17ca   :  { %v5541_v17 = vadd.f32 %v7922_v24, %v5540_v59 }
0x17cc   :  { %v5554_v54 = vadd.f32 %v5541_v17, %v10950_v49 }
0x17ce   :  { %v5574_v12 = vsel %vm332_vm0, %v5554_v54, 0.0 }
0x17cf   :  { %5575 = vadd.xlane.f32.xlu1 %v5574_v12 }
0x17d7   :  { %5566 = vadd.xlane.f32.xlu1 %v5565_v48 }
0x17f1   :  { %v5543_v46 = vpop.f32.mrf.mxu2 }
0x17f2   :  { %v5544_v53 = vadd.f32 %v7922_v24, %v5543_v46 }
0x17f4   :  { %v5555_v8 = vadd.f32 %v5544_v53, %v10972_v61  ;;  %v5553_v61 = vadd.f32 %v5538_v30, %v10938_v15 }
0x17f6   :  { %v5577_v52 = vsel %vm332_vm0, %v5555_v8, 0.0  ;;  %v5571_v0 = vsel %vm332_vm0, %v5553_v61, 0.0 }
0x17f7   :  { %5578 = vadd.xlane.f32.xlu2 %v5577_v52 }
0x17f9   :  { %v5546_v49 = vpop.f32.mrf.mxu2 }
0x17fa   :  { %v5547_v9 = vadd.f32 %v7922_v24, %v5546_v49 }
0x17fc   :  { %v5556_v26 = vadd.f32 %v5547_v9, %v10979_v27  ;;  %v5562_v27 = vsel %vm332_vm0, %v5550_v33, 0.0 }
0x17fe   :  { %v5580_v4 = vsel %vm332_vm0, %v5556_v26, 0.0 }
0x17ff   :  { %5569 = vadd.xlane.f32.xlu2 %v5568_v38  ;;  %5581 = vadd.xlane.f32.xlu0 %v5580_v4 }
0x1807   :  { %5560 = vadd.xlane.f32.xlu2 %v5559_v44  ;;  %5572 = vadd.xlane.f32.xlu0 %v5571_v0 }
0x180f   :  { %5563 = vadd.xlane.f32.xlu0 %v5562_v27 }
0x1842   :  { %v5576_v42 = vpop.xlane.xlu1 %5575 }
0x1843   :  { %v5588_v41 = vmul.f32 %v5576_v42, %v8953_v22 }
0x1845   :  { %v11242_v20 = vsub.f32 %v5554_v54, %v5588_v41 }
0x1847   :  { %v5604_v21 = vmul.f32 %v11242_v20, %v11242_v20 }
0x1849   :  { %v5622_v15 = vsel %vm332_vm0, %v5604_v21, 0.0 }
0x184a   :  { %v5567_v5 = vpop.xlane.xlu1 %5566  ;;  %5623 = vadd.xlane.f32.xlu2 %v5622_v15 }
0x184b   :  { %v5585_v31 = vmul.f32 %v5567_v5, %v8953_v22 }
0x184d   :  { %v11248_v40 = vsub.f32 %v5551_v6, %v5585_v31 }
0x184f   :  { %v5601_v39 = vmul.f32 %v11248_v40, %v11248_v40 }
0x1851   :  { %v5613_v35 = vsel %vm332_vm0, %v5601_v39, 0.0 }
0x1852   :  { %5614 = vadd.xlane.f32.xlu2 %v5613_v35 }
0x186a   :  { %v5579_v23 = vpop.xlane.xlu2 %5578 }
0x186b   :  { %v5589_v58 = vmul.f32 %v5579_v23, %v8953_v22 }
0x186d   :  { %v11254_v3 = vsub.f32 %v5555_v8, %v5589_v58 }
0x186f   :  { %v5605_v45 = vmul.f32 %v11254_v3, %v11254_v3 }
0x1871   :  { %v5625_v13 = vsel %vm332_vm0, %v5605_v45, 0.0 }
0x1872   :  { %5626 = vadd.xlane.f32.xlu0 %v5625_v13  ;;  %v5570_v62 = vpop.xlane.xlu2 %5569  ;;  %v5582_v2 = vpop.xlane.xlu0 %5581 }
0x1873   :  { %v5586_v28 = vmul.f32 %v5570_v62, %v8953_v22  ;;  %v5590_v57 = vmul.f32 %v5582_v2, %v8953_v22 }
0x1875   :  { %v11260_v47 = vsub.f32 %v5552_v14, %v5586_v28  ;;  %v11265_v19 = vsub.f32 %v5556_v26, %v5590_v57 }
0x1877   :  { %v5602_v11 = vmul.f32 %v11260_v47, %v11260_v47  ;;  %v5606_v32 = vmul.f32 %v11265_v19, %v11265_v19 }
0x1879   :  { %v5616_v10 = vsel %vm332_vm0, %v5602_v11, 0.0  ;;  %v5628_v56 = vsel %vm332_vm0, %v5606_v32, 0.0 }
0x187a   :  { %5617 = vadd.xlane.f32.xlu0 %v5616_v10  ;;  %v5561_v25 = vpop.xlane.xlu2 %5560  ;;  %5629 = vadd.xlane.f32.xlu1 %v5628_v56  ;;  %v5573_v37 = vpop.xlane.xlu0 %5572 }
0x187b   :  { %v5583_v36 = vmul.f32 %v5561_v25, %v8953_v22  ;;  %v5587_v34 = vmul.f32 %v5573_v37, %v8953_v22 }
0x187d   :  { %v11272_v16 = vsub.f32 %v5549_v50, %v5583_v36  ;;  %v11277_v1 = vsub.f32 %v5553_v61, %v5587_v34 }
0x187f   :  { %v5599_v29 = vmul.f32 %v11272_v16, %v11272_v16  ;;  %v5603_v43 = vmul.f32 %v11277_v1, %v11277_v1 }
0x1881   :  { %v5607_v55 = vsel %vm332_vm0, %v5599_v29, 0.0  ;;  %v5619_v18 = vsel %vm332_vm0, %v5603_v43, 0.0 }
0x1882   :  { %5608 = vadd.xlane.f32.xlu0 %v5607_v55  ;;  %5620 = vadd.xlane.f32.xlu1 %v5619_v18  ;;  %v5564_v24 = vpop.xlane.xlu0 %5563  ;;  %v5755_v18 = vld [vmem:[#allocation15 + $0x10] sm:$0xff] }
0x1883   :  { %v5584_v59 = vmul.f32 %v5564_v24, %v8953_v22 }
0x1885   :  { %v11284_v17 = vsub.f32 %v5550_v33, %v5584_v59 }
0x1887   :  { %v5600_v54 = vmul.f32 %v11284_v17, %v11284_v17 }
0x1889   :  { %v5610_v60 = vsel %vm332_vm0, %v5600_v54, 0.0 }
0x188a   :  { %5611 = vadd.xlane.f32.xlu1 %v5610_v60 }
0x18bd   :  { %v5624_v12 = vpop.xlane.xlu2 %5623 }
0x18be   :  { %v5636_v6 = vmul.f32 %v5624_v12, %v8953_v22 }
0x18c0   :  { %v5644_v48 = vadd.f32 1e-05, %v5636_v6 }
0x18c2   :  { %8281 = vrsqrt.f32 %v5644_v48  ;;  %vm5703_vm7 = vweird.f32 %v5644_v48 }
0x18c5   :  { %v5615_v46 = vpop.xlane.xlu2 %5614 }
0x18c6   :  { %v5633_v51 = vmul.f32 %v5615_v46, %v8953_v22 }
0x18c8   :  { %v11292_v14 = vadd.f32 1e-05, %v5633_v51  ;;  %v11294_v49 = vpop.eup %8281 }
0x18c9   :  { %v5698_v38 = vmul.f32 %v11294_v49, %v5644_v48  ;;  %vm5704_vm5 = vweird.f32 %v11294_v49 }
0x18ca   :  { %vm11333_vm9 = vmor %vm5703_vm7, %vm5704_vm5  ;;  %vm5673_vm3 = vweird.f32 %v11292_v14 }
0x18cb   :  { %v5699_v44 = vmul.f32 %v11294_v49, %v5698_v38  ;;  %v7923_v38 = vld [vmem:[#allocation13] ss:$0 sm:$0xff] }
0x18cd   :  { %v5700_v21 = vmul.f32 0.5, %v5699_v44 }
0x18cf   :  { %v5701_v13 = vsub.f32 1.5, %v5700_v21 }
0x18d1   :  { %v5702_v25 = vmul.f32 %v11294_v49, %v5701_v13 }
0x18d3   :  { %v5706_v12 = vsel %vm11333_vm9, %v11294_v49, %v5702_v25 }
0x18e5   :  { %v5627_v53 = vpop.xlane.xlu0 %5626 }
0x18e6   :  { %v5637_v8 = vmul.f32 %v5627_v53, %v8953_v22 }
0x18e8   :  { %v5645_v52 = vadd.f32 1e-05, %v5637_v8 }
0x18ea   :  { %8283 = vrsqrt.f32 %v5645_v52  ;;  %vm5713_vm6 = vweird.f32 %v5645_v52 }
0x18eb   :  { %8285 = vrsqrt.f32 %v11292_v14 }
0x18ed   :  { %v5618_v9 = vpop.xlane.xlu0 %5617  ;;  %v5630_v30 = vpop.xlane.xlu1 %5629 }
0x18ee   :  { %v5634_v63 = vmul.f32 %v5618_v9, %v8953_v22  ;;  %v5638_v61 = vmul.f32 %v5630_v30, %v8953_v22 }
0x18f0   :  { %v8284_v26 = vpop.eup %8283  ;;  %v11299_v4 = vadd.f32 1e-05, %v5634_v63  ;;  %v5646_v0 = vadd.f32 1e-05, %v5638_v61 }
0x18f1   :  { %v5708_v50 = vmul.f32 %v8284_v26, %v5645_v52  ;;  %v11304_v33 = vpop.eup %8285  ;;  %vm5714_vm4 = vweird.f32 %v8284_v26 }
0x18f2   :  { %8287 = vrsqrt.f32 %v11299_v4  ;;  %v5668_v5 = vmul.f32 %v11304_v33, %v11292_v14  ;;  %vm11326_vm8 = vmor %vm5713_vm6, %vm5714_vm4  ;;  %vm5723_vm11 = vweird.f32 %v5646_v0  ;;  %vm5674_vm15 = vweird.f32 %v11304_v33 }
0x18f3   :  { %v5709_v7 = vmul.f32 %v8284_v26, %v5708_v50  ;;  %8289 = vrsqrt.f32 %v5646_v0  ;;  %vm5683_vm1 = vweird.f32 %v11299_v4  ;;  %vm11362_vm6 = vmor %vm5673_vm3, %vm5674_vm15 }
0x18f4   :  { %v5669_v2 = vmul.f32 %v11304_v33, %v5668_v5 }
0x18f5   :  { %v5609_v27 = vpop.xlane.xlu0 %5608  ;;  %v5710_v42 = vmul.f32 0.5, %v5709_v7  ;;  %v5621_v31 = vpop.xlane.xlu1 %5620 }
0x18f6   :  { %v5631_v41 = vmul.f32 %v5609_v27, %v8953_v22  ;;  %v5635_v23 = vmul.f32 %v5621_v31, %v8953_v22  ;;  %v5670_v56 = vmul.f32 0.5, %v5669_v2  ;;  %v6034_v27 = vld [vmem:[#allocation16 + $0x100] sm:$0xff] }
0x18f7   :  { %v5711_v58 = vsub.f32 1.5, %v5710_v42 }
0x18f8   :  { %v11307_v15 = vpop.eup %8287  ;;  %v11311_v39 = vadd.f32 1e-05, %v5631_v41  ;;  %v11318_v28 = vadd.f32 1e-05, %v5635_v23  ;;  %v5671_v46 = vsub.f32 1.5, %v5670_v56 }
0x18f9   :  { %v5678_v35 = vmul.f32 %v11307_v15, %v11299_v4  ;;  %v8290_v45 = vpop.eup %8289  ;;  %v5712_v11 = vmul.f32 %v8284_v26, %v5711_v58  ;;  %vm5684_vm13 = vweird.f32 %v11307_v15 }
0x18fa   :  { %8291 = vrsqrt.f32 %v11311_v39  ;;  %v5718_v57 = vmul.f32 %v8290_v45, %v5646_v0  ;;  %vm5724_vm10 = vweird.f32 %v8290_v45  ;;  %v5672_v30 = vmul.f32 %v11304_v33, %v5671_v46  ;;  %vm11355_vm4 = vmor %vm5683_vm1, %vm5684_vm13  ;;  %v5841_v46 = vld [vmem:[#allocation16 + $0x78] sm:$0xff] }
0x18fb   :  { %v5679_v62 = vmul.f32 %v11307_v15, %v5678_v35  ;;  %8293 = vrsqrt.f32 %v11318_v28  ;;  %v5716_v24 = vsel %vm11326_vm8, %v8284_v26, %v5712_v11  ;;  %vm5725_vm12 = vmor %vm5723_vm11, %vm5724_vm10  ;;  %v5732_v26 = vmul.f32 %v5706_v12, %v11242_v20  ;;  %v5838_v12 = vld [vmem:[#allocation16 + $0x60] sm:$0xff] }
0x18fc   :  { %v5719_v10 = vmul.f32 %v8290_v45, %v5718_v57  ;;  %v5733_v8 = vmul.f32 %v5716_v24, %v11254_v3  ;;  %v5676_v41 = vsel %vm11362_vm6, %v11304_v33, %v5672_v30  ;;  %vm5693_vm7 = vweird.f32 %v11318_v28  ;;  %v5758_v24 = vld [vmem:[#allocation15 + $0x28] sm:$0xff]  ;;  %v5984_v3 = vld [vmem:[#allocation16 + $0xd8] sm:$0xff] }
0x18fd   :  { %v5680_v32 = vmul.f32 0.5, %v5679_v62  ;;  %v5612_v34 = vpop.xlane.xlu1 %5611  ;;  %v5741_v42 = vmul.f32 %v7923_v38, %v5732_v26  ;;  %v5729_v33 = vmul.f32 %v5676_v41, %v11248_v40  ;;  %vm5653_vm10 = vweird.f32 %v11311_v39  ;;  %v5828_v26 = vld [vmem:[#allocation16 + $0x10] sm:$0xff]  ;;  %v5986_v30 = vld [vmem:[#allocation16 + $0xe8] sm:$0xff] }
0x18fe   :  { %v5720_v37 = vmul.f32 0.5, %v5719_v10  ;;  %v5632_v43 = vmul.f32 %v5612_v34, %v8953_v22  ;;  %v5742_v44 = vmul.f32 %v7923_v38, %v5733_v8  ;;  %v5835_v8 = vld [vmem:[#allocation16 + $0x48] sm:$0xff] }
0x18ff   :  { %v5681_v54 = vsub.f32 1.5, %v5680_v32  ;;  %v5738_v10 = vmul.f32 %v7923_v38, %v5729_v33  ;;  %v5827_v41 = vld [vmem:[#allocation16 + $0x8] sm:$0xff]  ;;  %v6140_v33 = vld [vmem:[#allocation16 + $0x180] sm:$0xff] }
0x1900   :  { %v11324_v36 = vpop.eup %8291  ;;  %v5721_v59 = vsub.f32 1.5, %v5720_v37  ;;  %v5640_v48 = vadd.f32 1e-05, %v5632_v43  ;;  %v5754_v43 = vld [vmem:[#allocation15 + $0x8] sm:$0xff] }
0x1901   :  { %v5648_v55 = vmul.f32 %v11324_v36, %v11311_v39  ;;  %v8294_v60 = vpop.eup %8293  ;;  %v5682_v52 = vmul.f32 %v11307_v15, %v5681_v54  ;;  %vm5654_vm9 = vweird.f32 %v11324_v36  ;;  %v5760_v54 = vld [vmem:[#allocation15 + $0x38] sm:$0xff] }
0x1902   :  { %v5722_v22 = vmul.f32 %v8290_v45, %v5721_v59  ;;  %v5688_v53 = vmul.f32 %v8294_v60, %v11318_v28  ;;  %8295 = vrsqrt.f32 %v5640_v48  ;;  %vm5694_vm5 = vweird.f32 %v8294_v60  ;;  %vm5655_vm11 = vmor %vm5653_vm10, %vm5654_vm9  ;;  %v5759_v59 = vld [vmem:[#allocation15 + $0x30] sm:$0xff] }
0x1903   :  { %v5649_v6 = vmul.f32 %v11324_v36, %v5648_v55  ;;  %v5686_v20 = vsel %vm11355_vm4, %v11307_v15, %v5682_v52  ;;  %vm5695_vm8 = vmor %vm5693_vm7, %vm5694_vm5  ;;  %vm5663_vm13 = vweird.f32 %v5640_v48  ;;  %v5753_v55 = vld [vmem:[#allocation15] sm:$0xff]  ;;  %v5832_v52 = vld [vmem:[#allocation16 + $0x30] sm:$0xff] }
0x1904   :  { %v5726_v51 = vsel %vm5725_vm12, %v8290_v45, %v5722_v22  ;;  %v5689_v9 = vmul.f32 %v8294_v60, %v5688_v53  ;;  %v5730_v31 = vmul.f32 %v5686_v20, %v11260_v47  ;;  %v5839_v22 = vld [vmem:[#allocation16 + $0x68] sm:$0xff]  ;;  %v5837_v53 = vld [vmem:[#allocation16 + $0x58] sm:$0xff] }
0x1905   :  { %v5650_v63 = vmul.f32 0.5, %v5649_v6  ;;  %v5734_v49 = vmul.f32 %v5726_v51, %v11265_v19  ;;  %v7924_v19 = vld [vmem:[#allocation13 + $0x1] ss:$0 sm:$0xff]  ;;  %v5836_v6 = vld [vmem:[#allocation16 + $0x50] sm:$0xff]  ;;  %v5831_v20 = vld [vmem:[#allocation16 + $0x28] sm:$0xff] }
0x1906   :  { %v5690_v50 = vmul.f32 0.5, %v5689_v9  ;;  %v5751_v15 = vadd.f32 %v7924_v19, %v5742_v44  ;;  %v5750_v45 = vadd.f32 %v7924_v19, %v5741_v42  ;;  %v5739_v2 = vmul.f32 %v7923_v38, %v5730_v31  ;;  %v5982_v44 = vld [vmem:[#allocation16 + $0xc8] sm:$0xff]  ;;  %v6146_v42 = vld [vmem:[#allocation16 + $0x1b0] sm:$0xff]  ;;  %v6091_v31 = vld [vmem:[#allocation16 + $0x160] sm:$0xff] }
0x1907   :  { %v5743_v61 = vmul.f32 %v7923_v38, %v5734_v49  ;;  %v5651_v0 = vsub.f32 1.5, %v5650_v63  ;;  %v5747_v39 = vadd.f32 %v7924_v19, %v5738_v10  ;;  %v5830_v63 = vld [vmem:[#allocation16 + $0x20] sm:$0xff]  ;;  %v5988_v49 = vld [vmem:[#allocation16 + $0xf8] sm:$0xff] }
0x1908   :  { %v5691_v7 = vsub.f32 1.5, %v5690_v50  ;;  %v8296_v4 = vpop.eup %8295  ;;  %6024 = vmatpush.msrb.mxu0 %v5988_v49  ;;  %v5826_v50 = vld [vmem:[#allocation16] sm:$0xff]  ;;  %v6090_v10 = vld [vmem:[#allocation16 + $0x158] sm:$0xff] }
0x1909   :  { %v5752_v14 = vadd.f32 %v7924_v19, %v5743_v61  ;;  %v5658_v5 = vmul.f32 %v8296_v4, %v5640_v48  ;;  %v5652_v23 = vmul.f32 %v11324_v36, %v5651_v0  ;;  %vm5664_vm12 = vweird.f32 %v8296_v4  ;;  %v5834_v48 = vld [vmem:[#allocation16 + $0x40] sm:$0xff]  ;;  %v5833_v61 = vld [vmem:[#allocation16 + $0x38] sm:$0xff]  ;;  %v6036_v0 = vld [vmem:[#allocation16 + $0x110] sm:$0xff] }
0x190a   :  { %v5692_v21 = vmul.f32 %v8294_v60, %v5691_v7  ;;  %vm5665_vm15 = vmor %vm5663_vm13, %vm5664_vm12  ;;  %6025 = vmatpush.msrb.mxu0 %v5986_v30  ;;  %v6038_v7 = vld [vmem:[#allocation16 + $0x120] sm:$0xff]  ;;  %v6439_v30 = vld [vmem:[#allocation21 + $0x468] sm:$0xff] }
0x190b   :  { %5793 = vmatpush.msrb.mxu1 %v5752_v14  ;;  %v5659_v58 = vmul.f32 %v8296_v4, %v5658_v5  ;;  %v5656_v47 = vsel %vm5655_vm11, %v11324_v36, %v5652_v23  ;;  %v6093_v14 = vld [vmem:[#allocation16 + $0x170] sm:$0xff] }
0x190c   :  { %v5696_v35 = vsel %vm5695_vm8, %v8294_v60, %v5692_v21  ;;  %v5727_v40 = vmul.f32 %v5656_v47, %v11272_v16  ;;  %v5756_v16 = vld [vmem:[#allocation15 + $0x18] sm:$0xff]  ;;  %v5840_v60 = vld [vmem:[#allocation16 + $0x70] sm:$0xff]  ;;  %6026 = vmatpush.msrb.mxu0 %v5984_v3  ;;  %v6092_v47 = vld [vmem:[#allocation16 + $0x168] sm:$0xff] }
0x190d   :  { %5794 = vmatpush.msrb.mxu1 %v5751_v15  ;;  %v5731_v13 = vmul.f32 %v5696_v35, %v11277_v1  ;;  %v5660_v62 = vmul.f32 0.5, %v5659_v58  ;;  %v5748_v1 = vadd.f32 %v7924_v19, %v5739_v2  ;;  %5857 = vmatpush.msrb.mxu3 %v5840_v60  ;;  %v5934_v21 = vld [vmem:[#allocation16 + $0xb0] sm:$0xff]  ;;  %v5932_v15 = vld [vmem:[#allocation16 + $0xa0] sm:$0xff]  ;;  %v6039_v60 = vld [vmem:[#allocation16 + $0x128] sm:$0xff] }
0x190e   :  { %v5736_v34 = vmul.f32 %v7923_v38, %v5727_v40  ;;  %6027 = vmatpush.msrb.mxu0 %v5982_v44  ;;  %v6144_v35 = vld [vmem:[#allocation16 + $0x1a0] sm:$0xff]  ;;  %v6089_v23 = vld [vmem:[#allocation16 + $0x150] sm:$0xff] }
0x190f   :  { %5795 = vmatpush.msrb.mxu1 %v5750_v45  ;;  %v5740_v28 = vmul.f32 %v7923_v38, %v5731_v13  ;;  %v5661_v57 = vsub.f32 1.5, %v5660_v62  ;;  %5858 = vmatpush.msrb.mxu3 %v5838_v12  ;;  %v6142_v58 = vld [vmem:[#allocation16 + $0x190] sm:$0xff]  ;;  %v6087_v13 = vld [vmem:[#allocation16 + $0x140] sm:$0xff]  ;;  %v6037_v12 = vld [vmem:[#allocation16 + $0x118] sm:$0xff] }
0x1910   :  { %v5745_v29 = vadd.f32 %v7924_v19, %v5736_v34  ;;  %6110 = vmatpush.msra.mxu0 %v6093_v14  ;;  %v5930_v45 = vld [vmem:[#allocation16 + $0x90] sm:$0xff]  ;;  %v5928_v2 = vld [vmem:[#allocation16 + $0x80] sm:$0xff] }
0x1911   :  { %v5749_v11 = vadd.f32 %v7924_v19, %v5740_v28  ;;  %v5662_v32 = vmul.f32 %v8296_v4, %v5661_v57  ;;  %5859 = vmatpush.msrb.mxu3 %v5836_v6  ;;  %v6199_v62 = vld [vmem:[#allocation16 + $0x1f0] sm:$0xff]  ;;  %v6094_v28 = vld [vmem:[#allocation16 + $0x178] sm:$0xff]  ;;  %v6035_v6 = vld [vmem:[#allocation16 + $0x108] sm:$0xff] }
0x1912   :  { %6111 = vmatpush.msra.mxu0 %v6091_v31  ;;  %v5935_v57 = vld [vmem:[#allocation16 + $0xb8] sm:$0xff]  ;;  %v6195_v40 = vld [vmem:[#allocation16 + $0x1d0] sm:$0xff]  ;;  %v6421_v31 = vld [vmem:[#allocation21 + $0x3d8] sm:$0xff] }
0x1913   :  { %5796 = vmatpush.msrb.mxu1 %v5749_v11  ;;  %v5666_v25 = vsel %vm5665_vm15, %v8296_v4, %v5662_v32  ;;  %5860 = vmatpush.msrb.mxu3 %v5834_v48  ;;  %v5829_v4 = vld [vmem:[#allocation16 + $0x18] sm:$0xff]  ;;  %v5933_v32 = vld [vmem:[#allocation16 + $0xa8] sm:$0xff]  ;;  %v5987_v34 = vld [vmem:[#allocation16 + $0xf0] sm:$0xff] }
0x1914   :  { %v5728_v56 = vmul.f32 %v5666_v25, %v11284_v17  ;;  %v5757_v17 = vld [vmem:[#allocation15 + $0x20] sm:$0xff]  ;;  %6112 = vmatpush.msra.mxu0 %v6089_v23  ;;  %v6088_v25 = vld [vmem:[#allocation16 + $0x148] sm:$0xff]  ;;  %v6147_v48 = vld [vmem:[#allocation16 + $0x1b8] sm:$0xff] }
0x1915   :  { %5797 = vmatpush.msrb.mxu1 %v5748_v1  ;;  %5877 = vmatpush.msra.mxu3 %v5841_v46  ;;  %v6197_v1 = vld [vmem:[#allocation16 + $0x1e0] sm:$0xff] }
0x1916   :  { %v5737_v37 = vmul.f32 %v7923_v38, %v5728_v56  ;;  %v6040_v38 = vld [vmem:[#allocation16 + $0x130] sm:$0xff]  ;;  %6113 = vmatpush.msra.mxu0 %v6087_v13  ;;  %v6193_v56 = vld [vmem:[#allocation16 + $0x1c0] sm:$0xff] }
0x1917   :  { %5798 = vmatpush.msrb.mxu1 %v5747_v39  ;;  %5878 = vmatpush.msra.mxu3 %v5839_v22  ;;  %v5931_v39 = vld [vmem:[#allocation16 + $0x98] sm:$0xff]  ;;  %v6145_v22 = vld [vmem:[#allocation16 + $0x1a8] sm:$0xff]  ;;  %v11419_v13 = vld [vmem:[#allocation18] sm:$0x3] }
0x1918   :  { %v5746_v36 = vadd.f32 %v7924_v19, %v5737_v37  ;;  %6057 = vmatpush.msrb.mxu2 %v6040_v38  ;;  %v5929_v37 = vld [vmem:[#allocation16 + $0x88] sm:$0xff] }
0x1919   :  { %5879 = vmatpush.msra.mxu3 %v5837_v53  ;;  %v6143_v53 = vld [vmem:[#allocation16 + $0x198] sm:$0xff] }
0x191a   :  { %5799 = vmatpush.msrb.mxu1 %v5746_v36  ;;  %6058 = vmatpush.msrb.mxu2 %v6038_v7 }
0x191b   :  { %5880 = vmatpush.msra.mxu3 %v5835_v8  ;;  %v6141_v8 = vld [vmem:[#allocation16 + $0x188] sm:$0xff] }
0x191c   :  { %5800 = vmatpush.msrb.mxu1 %v5745_v29  ;;  %6059 = vmatpush.msrb.mxu2 %v6036_v0  ;;  %v5985_v29 = vld [vmem:[#allocation16 + $0xe0] sm:$0xff] }
0x191d   :  { %7688 = vmatmul.msk.f32.vlgmr.msrb.gmra.mxu1 %vm2869_vm2, %v5753_v55  ;;  %v6200_v55 = vld [vmem:[#allocation16 + $0x1f8] sm:$0xff] }
0x191e   :  { %6060 = vmatpush.msrb.mxu2 %v6034_v27  ;;  %6130 = vmatpush.msra.mxu1 %v6094_v28  ;;  %v6484_v0 = vld [vmem:[#allocation21 + $0x5d0] sm:$0xff]  ;;  %v6481_v27 = vld [vmem:[#allocation21 + $0x5b8] sm:$0xff] }
0x1920   :  { %6163 = vmatpush.msra.mxu2 %v6146_v42  ;;  %6131 = vmatpush.msra.mxu1 %v6092_v47  ;;  %v6478_v42 = vld [vmem:[#allocation21 + $0x5a0] sm:$0xff] }
0x1922   :  { %6164 = vmatpush.msra.mxu2 %v6144_v35  ;;  %6132 = vmatpush.msra.mxu1 %v6090_v10  ;;  %v6248_v10 = vperm.slane %v11419_v13, 0 }
0x1924   :  { %6165 = vmatpush.msra.mxu2 %v6142_v58  ;;  %6133 = vmatpush.msra.mxu1 %v6088_v25  ;;  %v6472_v58 = vld [vmem:[#allocation21 + $0x570] sm:$0xff] }
0x1925   :  { %7689 = vmatmul.msk.f32.gmra.mxu1 %vm2869_vm2, %v5754_v43  ;;  %v6198_v43 = vld [vmem:[#allocation16 + $0x1e8] sm:$0xff]  ;;  %v6412_v25 = vld [vmem:[#allocation21 + $0x390] sm:$0xff] }
0x1926   :  { %6166 = vmatpush.msra.mxu2 %v6140_v33  ;;  %6236 = vmatpush.msrb.mxu1 %v6200_v55  ;;  %v6418_v33 = vld [vmem:[#allocation21 + $0x3c0] sm:$0xff]  ;;  %v6254_v55 = vld [vmem:[#allocation19] sm:$0xff] }
0x1928   :  { %6237 = vmatpush.msrb.mxu1 %v6198_v43  ;;  %v6460_v43 = vld [vmem:[#allocation21 + $0x510] sm:$0xff] }
0x192d   :  { %7690 = vmatmul.msk.f32.gmra.mxu1 %vm2869_vm2, %v5755_v18  ;;  %v5983_v18 = vld [vmem:[#allocation16 + $0xd0] sm:$0xff] }
0x1935   :  { %7691 = vmatmul.msk.f32.gmra.mxu1 %vm2869_vm2, %v5756_v16  ;;  %v6196_v16 = vld [vmem:[#allocation16 + $0x1d8] sm:$0xff] }
0x1936   :  { %6238 = vmatpush.msrb.mxu1 %v6196_v16  ;;  %v6406_v16 = vld [vmem:[#allocation21 + $0x360] sm:$0xff] }
0x193d   :  { %7692 = vmatmul.msk.f32.gmra.mxu1 %vm2869_vm2, %v5757_v17  ;;  %v5981_v17 = vld [vmem:[#allocation16 + $0xc0] sm:$0xff] }
0x1945   :  { %7693 = vmatmul.msk.f32.gmra.mxu1 %vm2869_vm2, %v5758_v24  ;;  %v6041_v24 = vld [vmem:[#allocation16 + $0x138] sm:$0xff] }
0x194d   :  { %7694 = vmatmul.msk.f32.gmra.mxu1 %vm2869_vm2, %v5759_v59  ;;  %v6194_v59 = vld [vmem:[#allocation16 + $0x1c8] sm:$0xff] }
0x194e   :  { %6239 = vmatpush.msrb.mxu1 %v6194_v59  ;;  %v6403_v59 = vld [vmem:[#allocation21 + $0x348] sm:$0xff] }
0x1955   :  { %7695 = vmatmul.msk.f32.gmra.mxu1 %vm2869_vm2, %v5760_v54 }
0x199a   :  { %v11387_v51 = vpop.f32.mrf.mxu1 }
0x19a2   :  { %v5805_v9 = vpop.f32.mrf.mxu1 }
0x19a3   :  { %7696 = vmatmul.msk.f32.vlgmr.msrb.gmra.mxu3 %vm332_vm0, %v5805_v9 }
0x19a4   :  { %5900 = vmatpush.msrb.mxu3 %v5832_v52 }
0x19a6   :  { %5901 = vmatpush.msrb.mxu3 %v5830_v63 }
0x19a8   :  { %5902 = vmatpush.msrb.mxu3 %v5828_v26 }
0x19aa   :  { %5903 = vmatpush.msrb.mxu3 %v5826_v50  ;;  %v11390_v19 = vpop.f32.mrf.mxu1  ;;  %v6436_v50 = vld [vmem:[#allocation21 + $0x450] sm:$0xff] }
0x19ab   :  { %7697 = vmatmul.msk.f32.vlgmr.msra.gmra.mxu3 %vm332_vm0, %v5805_v9 }
0x19ac   :  { %5920 = vmatpush.msra.mxu3 %v5833_v61  ;;  %v6433_v61 = vld [vmem:[#allocation21 + $0x438] sm:$0xff] }
0x19ae   :  { %5921 = vmatpush.msra.mxu3 %v5831_v20  ;;  %v6430_v20 = vld [vmem:[#allocation21 + $0x420] sm:$0xff] }
0x19b0   :  { %5922 = vmatpush.msra.mxu3 %v5829_v4  ;;  %v6427_v4 = vld [vmem:[#allocation21 + $0x408] sm:$0xff] }
0x19b2   :  { %5923 = vmatpush.msra.mxu3 %v5827_v41  ;;  %v11393_v5 = vpop.f32.mrf.mxu1 }
0x19b3   :  { %7698 = vmatmul.msk.f32.vlgmr.msrb.gmra.mxu3 %vm332_vm0, %v11387_v51  ;;  %7703 = vmatmul.msk.f32.vlgmr.msrb.gmra.mxu0 %vm332_vm0, %v11393_v5 }
0x19b4   :  { %5951 = vmatpush.msrb.mxu3 %v5934_v21  ;;  %6216 = vmatpush.msrb.mxu0 %v6199_v62  ;;  %v6424_v21 = vld [vmem:[#allocation21 + $0x3f0] sm:$0xff] }
0x19b6   :  { %5952 = vmatpush.msrb.mxu3 %v5932_v15  ;;  %6217 = vmatpush.msrb.mxu0 %v6197_v1  ;;  %v6475_v15 = vld [vmem:[#allocation21 + $0x588] sm:$0xff] }
0x19b8   :  { %5953 = vmatpush.msrb.mxu3 %v5930_v45  ;;  %6218 = vmatpush.msrb.mxu0 %v6195_v40 }
0x19ba   :  { %5954 = vmatpush.msrb.mxu3 %v5928_v2  ;;  %v11399_v11 = vpop.f32.mrf.mxu1  ;;  %6219 = vmatpush.msrb.mxu0 %v6193_v56  ;;  %v6469_v2 = vld [vmem:[#allocation21 + $0x558] sm:$0xff] }
0x19bb   :  { %7699 = vmatmul.msk.f32.vlgmr.msra.gmra.mxu3 %vm332_vm0, %v11387_v51  ;;  %7704 = vmatmul.msk.f32.vlgmr.msrb.gmra.mxu2 %vm332_vm0, %v11399_v11 }
0x19bc   :  { %5971 = vmatpush.msra.mxu3 %v5935_v57  ;;  %v6415_v57 = vld [vmem:[#allocation21 + $0x3a8] sm:$0xff] }
0x19be   :  { %5972 = vmatpush.msra.mxu3 %v5933_v32  ;;  %v6466_v32 = vld [vmem:[#allocation21 + $0x540] sm:$0xff] }
0x19c0   :  { %5973 = vmatpush.msra.mxu3 %v5931_v39 }
0x19c2   :  { %5974 = vmatpush.msra.mxu3 %v5929_v37  ;;  %v5817_v36 = vpop.f32.mrf.mxu1  ;;  %v6463_v37 = vld [vmem:[#allocation21 + $0x528] sm:$0xff] }
0x19c3   :  { %7700 = vmatmul.msk.f32.vlgmr.msrb.gmra.mxu3 %vm332_vm0, %v11390_v19  ;;  %7706 = vmatmul.msk.f32.vlgmr.msra.gmra.mxu0 %vm332_vm0, %v5817_v36 }
0x19c4   :  { %6004 = vmatpush.msrb.mxu3 %v5987_v34  ;;  %7707 = vmatmul.msk.f32.vlgmr.msra.gmra.mxu1 %vm332_vm0, %v5817_v36  ;;  %v6409_v34 = vld [vmem:[#allocation21 + $0x378] sm:$0xff] }
0x19c5   :  { %6496 = vmatpush.msra.mxu0 %v6439_v30  ;;  %v6425_v30 = vld [vmem:[#allocation21 + $0x3f8] sm:$0xff] }
0x19c6   :  { %6005 = vmatpush.msrb.mxu3 %v5985_v29 }
0x19c7   :  { %6497 = vmatpush.msra.mxu0 %v6436_v50  ;;  %v6488_v50 = vld [vmem:[#allocation21 + $0x5f0] sm:$0xff] }
0x19c8   :  { %6006 = vmatpush.msrb.mxu3 %v5983_v18  ;;  %v6440_v18 = vld [vmem:[#allocation21 + $0x470] sm:$0xff] }
0x19c9   :  { %6498 = vmatpush.msra.mxu0 %v6433_v61  ;;  %v6445_v61 = vld [vmem:[#allocation21 + $0x498] sm:$0xff] }
0x19ca   :  { %6007 = vmatpush.msrb.mxu3 %v5981_v17  ;;  %v5820_v54 = vpop.f32.mrf.mxu1  ;;  %v6457_v17 = vld [vmem:[#allocation21 + $0x4f8] sm:$0xff] }
0x19cb   :  { %7701 = vmatmul.msk.f32.vlgmr.msra.gmra.mxu3 %vm332_vm0, %v11390_v19  ;;  %7708 = vmatmul.msk.f32.vlgmr.msra.gmra.mxu2 %vm332_vm0, %v5820_v54  ;;  %v6487_v19 = vld [vmem:[#allocation21 + $0x5e8] sm:$0xff] }
0x19cc   :  { %6077 = vmatpush.msra.mxu3 %v6041_v24  ;;  %6516 = vmatpush.msra.mxu1 %v6487_v19  ;;  %v6437_v24 = vld [vmem:[#allocation21 + $0x458] sm:$0xff]  ;;  %v6422_v19 = vld [vmem:[#allocation21 + $0x3e0] sm:$0xff] }
0x19cd   :  { %6499 = vmatpush.msra.mxu0 %v6430_v20  ;;  %v6438_v20 = vld [vmem:[#allocation21 + $0x460] sm:$0xff] }
0x19ce   :  { %6078 = vmatpush.msra.mxu3 %v6039_v60  ;;  %6517 = vmatpush.msra.mxu1 %v6484_v0  ;;  %v6454_v60 = vld [vmem:[#allocation21 + $0x4e0] sm:$0xff]  ;;  %v6419_v0 = vld [vmem:[#allocation21 + $0x3c8] sm:$0xff] }
0x19cf   :  { %6500 = vmatpush.msra.mxu0 %v6427_v4  ;;  %v6482_v4 = vld [vmem:[#allocation21 + $0x5c0] sm:$0xff] }
0x19d0   :  { %6079 = vmatpush.msra.mxu3 %v6037_v12  ;;  %6518 = vmatpush.msra.mxu1 %v6481_v27  ;;  %v6435_v27 = vld [vmem:[#allocation21 + $0x448] sm:$0xff] }
0x19d1   :  { %6501 = vmatpush.msra.mxu0 %v6424_v21  ;;  %v6432_v21 = vld [vmem:[#allocation21 + $0x430] sm:$0xff] }
0x19d2   :  { %6080 = vmatpush.msra.mxu3 %v6035_v6  ;;  %v5823_v46 = vpop.f32.mrf.mxu1  ;;  %6519 = vmatpush.msra.mxu1 %v6478_v42  ;;  %v6416_v42 = vld [vmem:[#allocation21 + $0x3b0] sm:$0xff] }
0x19d3   :  { %7702 = vmatmul.msk.f32.vlgmr.msrb.gmra.mxu3 %vm332_vm0, %v11393_v5  ;;  %7710 = vmatmul.msk.f32.vlgmr.msrb.gmra.mxu0 %vm332_vm0, %v5823_v46 }
0x19d4   :  { %6183 = vmatpush.msrb.mxu3 %v6147_v48  ;;  %7711 = vmatmul.msk.f32.vlgmr.msrb.gmra.mxu1 %vm332_vm0, %v5823_v46  ;;  %v6434_v48 = vld [vmem:[#allocation21 + $0x440] sm:$0xff]  ;;  %v6400_v46 = vld [vmem:[#allocation21 + $0x330] sm:$0xff] }
0x19d5   :  { %6520 = vmatpush.msra.mxu1 %v6475_v15  ;;  %6502 = vmatpush.msra.mxu0 %v6421_v31  ;;  %v6413_v15 = vld [vmem:[#allocation21 + $0x398] sm:$0xff]  ;;  %v6476_v31 = vld [vmem:[#allocation21 + $0x590] sm:$0xff] }
0x19d6   :  { %6184 = vmatpush.msrb.mxu3 %v6145_v22 }
0x19d7   :  { %6521 = vmatpush.msra.mxu1 %v6472_v58  ;;  %6503 = vmatpush.msra.mxu0 %v6418_v33  ;;  %v6410_v58 = vld [vmem:[#allocation21 + $0x380] sm:$0xff]  ;;  %v6480_v33 = vld [vmem:[#allocation21 + $0x5b0] sm:$0xff] }
0x19d8   :  { %6185 = vmatpush.msrb.mxu3 %v6143_v53  ;;  %v6249_v53 = vperm.slane %v11419_v13, 1  ;;  %v6426_v13 = vld [vmem:[#allocation21 + $0x400] sm:$0xff] }
0x19d9   :  { %6522 = vmatpush.msra.mxu1 %v6469_v2  ;;  %6504 = vmatpush.msra.mxu0 %v6415_v57  ;;  %v6423_v2 = vld [vmem:[#allocation21 + $0x3e8] sm:$0xff]  ;;  %v6404_v57 = vld [vmem:[#allocation21 + $0x350] sm:$0xff] }
0x19da   :  { %6186 = vmatpush.msrb.mxu3 %v6141_v8  ;;  %v6451_v8 = vld [vmem:[#allocation21 + $0x4c8] sm:$0xff] }
0x19db   :  { %7705 = vmatmul.msk.f32.vlgmr.msra.gmra.mxu3 %vm332_vm0, %v11399_v11  ;;  %6523 = vmatpush.msra.mxu1 %v6466_v32  ;;  %v6474_v32 = vld [vmem:[#allocation21 + $0x580] sm:$0xff] }
0x19dc   :  { %6505 = vmatpush.msra.mxu0 %v6412_v25  ;;  %v6417_v25 = vld [vmem:[#allocation21 + $0x3b8] sm:$0xff] }
0x19dd   :  { %6524 = vmatpush.msra.mxu1 %v6463_v37  ;;  %v6461_v37 = vld [vmem:[#allocation21 + $0x518] sm:$0xff] }
0x19de   :  { %6506 = vmatpush.msra.mxu0 %v6409_v34  ;;  %v6414_v34 = vld [vmem:[#allocation21 + $0x3a0] sm:$0xff] }
0x19df   :  { %6525 = vmatpush.msra.mxu1 %v6460_v43  ;;  %v6343_v43 = vld [vmem:[#allocation21 + $0x168] sm:$0xff] }
0x19e0   :  { %6507 = vmatpush.msra.mxu0 %v6406_v16  ;;  %v6455_v16 = vld [vmem:[#allocation21 + $0x4e8] sm:$0xff] }
0x19e1   :  { %6526 = vmatpush.msra.mxu1 %v6457_v17  ;;  %v6465_v17 = vld [vmem:[#allocation21 + $0x538] sm:$0xff] }
0x19e2   :  { %6508 = vmatpush.msra.mxu0 %v6403_v59  ;;  %v6408_v59 = vld [vmem:[#allocation21 + $0x370] sm:$0xff] }
0x19e3   :  { %7709 = vmatmul.msk.f32.vlgmr.msrb.gmra.mxu3 %vm332_vm0, %v5820_v54  ;;  %6527 = vmatpush.msra.mxu1 %v6454_v60  ;;  %v6337_v60 = vld [vmem:[#allocation21 + $0x138] sm:$0xff]  ;;  %vm7321_vm0 = vcmask 785408  }
0x19e4   :  { %6509 = vmatpush.msra.mxu0 %v6400_v46  ;;  %v6402_v46 = vld [vmem:[#allocation21 + $0x340] sm:$0xff] }
0x19e5   :  { %6528 = vmatpush.msra.mxu1 %v6451_v8  ;;  %v6443_v8 = vld [vmem:[#allocation21 + $0x488] sm:$0xff] }
0x1a26   :  { %v5862_v51 = vpop.f32.mrf.mxu3 }
0x1a2e   :  { %v5882_v52 = vpop.f32.mrf.mxu3 }
0x1a30   :  { %v6029_v38 = vpop.f32.mrf.mxu0 }
0x1a36   :  { %v5905_v9 = vpop.f32.mrf.mxu3 }
0x1a37   :  { %v5906_v7 = vadd.f32 %v5905_v9, %v5862_v51  ;;  %v6431_v51 = vld [vmem:[#allocation21 + $0x428] sm:$0xff] }
0x1a3e   :  { %v5925_v63 = vpop.f32.mrf.mxu3  ;;  %v6062_v3 = vpop.f32.mrf.mxu2 }
0x1a3f   :  { %v5926_v35 = vadd.f32 %v5925_v63, %v5882_v52  ;;  %v6397_v52 = vld [vmem:[#allocation21 + $0x318] sm:$0xff]  ;;  %v6448_v63 = vld [vmem:[#allocation21 + $0x4b0] sm:$0xff] }
0x1a40   :  { %v6115_v44 = vpop.f32.mrf.mxu0  ;;  %6510 = vmatpush.msra.mxu0 %v6397_v52  ;;  %6529 = vmatpush.msra.mxu1 %v6448_v63  ;;  %v6391_v52 = vld [vmem:[#allocation21 + $0x2e8] sm:$0xff]  ;;  %v6388_v63 = vld [vmem:[#allocation21 + $0x2d0] sm:$0xff] }
0x1a41   :  { %v6135_v40 = vpop.f32.mrf.mxu1 }
0x1a42   :  { %6530 = vmatpush.msra.mxu1 %v6445_v61  ;;  %v6313_v61 = vld [vmem:[#allocation21 + $0x78] sm:$0xff] }
0x1a46   :  { %v5956_v49 = vpop.f32.mrf.mxu3 }
0x1a47   :  { %v5979_v14 = vadd.f32 %v5956_v49, %v5906_v7  ;;  %v6428_v49 = vld [vmem:[#allocation21 + $0x410] sm:$0xff]  ;;  %v6442_v7 = vld [vmem:[#allocation21 + $0x480] sm:$0xff] }
0x1a48   :  { %6531 = vmatpush.msra.mxu1 %v6442_v7  ;;  %v6307_v7 = vld [vmem:[#allocation21 + $0x48] sm:$0xff] }
0x1a4e   :  { %v5976_v26 = vpop.f32.mrf.mxu3  ;;  %v6168_v45 = vpop.f32.mrf.mxu2 }
0x1a4f   :  { %v5980_v62 = vadd.f32 %v5976_v26, %v5926_v35  ;;  %v6394_v26 = vld [vmem:[#allocation21 + $0x300] sm:$0xff]  ;;  %v6429_v35 = vld [vmem:[#allocation21 + $0x418] sm:$0xff] }
0x1a50   :  { %v6221_v47 = vpop.f32.mrf.mxu0  ;;  %6511 = vmatpush.msra.mxu0 %v6394_v26  ;;  %v6319_v26 = vld [vmem:[#allocation21 + $0xa8] sm:$0xff] }
0x1a51   :  { %v6033_v39 = vadd.f32 %v6029_v38, %v5980_v62  ;;  %v6241_v6 = vpop.f32.mrf.mxu1  ;;  %v6407_v62 = vld [vmem:[#allocation21 + $0x368] sm:$0xff] }
0x1a56   :  { %v6009_v41 = vpop.f32.mrf.mxu3 }
0x1a57   :  { %v6032_v5 = vadd.f32 %v6009_v41, %v5979_v14  ;;  %v6489_v14 = vld [vmem:[#allocation21 + $0x5f8] sm:$0xff]  ;;  %v6479_v41 = vld [vmem:[#allocation21 + $0x5a8] sm:$0xff] }
0x1a58   :  { %6596 = vmatpush.msrb.mxu1 %v6489_v14  ;;  %v6399_v14 = vld [vmem:[#allocation21 + $0x328] sm:$0xff] }
0x1a59   :  { %v6085_v23 = vadd.f32 %v6062_v3, %v6032_v5  ;;  %v6441_v3 = vld [vmem:[#allocation21 + $0x478] sm:$0xff]  ;;  %v6486_v5 = vld [vmem:[#allocation21 + $0x5e0] sm:$0xff] }
0x1a5a   :  { %6576 = vmatpush.msrb.mxu0 %v6441_v3  ;;  %6597 = vmatpush.msrb.mxu1 %v6486_v5  ;;  %v6379_v3 = vld [vmem:[#allocation21 + $0x288] sm:$0xff]  ;;  %v6396_v5 = vld [vmem:[#allocation21 + $0x310] sm:$0xff] }
0x1a5b   :  { %v6138_v28 = vadd.f32 %v6115_v44, %v6085_v23  ;;  %v6485_v44 = vld [vmem:[#allocation21 + $0x5d8] sm:$0xff]  ;;  %v6483_v23 = vld [vmem:[#allocation21 + $0x5c8] sm:$0xff] }
0x1a5c   :  { %6577 = vmatpush.msrb.mxu0 %v6438_v20  ;;  %6598 = vmatpush.msrb.mxu1 %v6483_v23  ;;  %v6373_v20 = vld [vmem:[#allocation21 + $0x258] sm:$0xff]  ;;  %v6456_v23 = vld [vmem:[#allocation21 + $0x4f0] sm:$0xff] }
0x1a5d   :  { %v6191_v11 = vadd.f32 %v6168_v45, %v6138_v28  ;;  %v6473_v45 = vld [vmem:[#allocation21 + $0x578] sm:$0xff]  ;;  %v6470_v28 = vld [vmem:[#allocation21 + $0x560] sm:$0xff] }
0x1a5e   :  { %v6082_v1 = vpop.f32.mrf.mxu3  ;;  %6578 = vmatpush.msrb.mxu0 %v6435_v27  ;;  %6599 = vmatpush.msrb.mxu1 %v6480_v33  ;;  %v6367_v27 = vld [vmem:[#allocation21 + $0x228] sm:$0xff]  ;;  %v6450_v33 = vld [vmem:[#allocation21 + $0x4c0] sm:$0xff] }
0x1a5f   :  { %v6244_v56 = vadd.f32 %v6221_v47, %v6191_v11  ;;  %v6086_v36 = vadd.f32 %v6082_v1, %v6033_v39  ;;  %v6477_v47 = vld [vmem:[#allocation21 + $0x598] sm:$0xff]  ;;  %v6467_v11 = vld [vmem:[#allocation21 + $0x548] sm:$0xff] }
0x1a60   :  { %6579 = vmatpush.msrb.mxu0 %v6432_v21  ;;  %v6401_v1 = vld [vmem:[#allocation21 + $0x338] sm:$0xff]  ;;  %6600 = vmatpush.msrb.mxu1 %v6477_v47  ;;  %v6471_v39 = vld [vmem:[#allocation21 + $0x568] sm:$0xff]  ;;  %v6364_v21 = vld [vmem:[#allocation21 + $0x210] sm:$0xff] }
0x1a61   :  { %v6252_v29 = vadd.f32 %v6248_v10, %v6244_v56  ;;  %v6139_v54 = vadd.f32 %v6135_v40, %v6086_v36  ;;  %v6420_v10 = vld [vmem:[#allocation21 + $0x3d0] sm:$0xff]  ;;  %v6398_v56 = vld [vmem:[#allocation21 + $0x320] sm:$0xff] }
0x1a62   :  { %6580 = vmatpush.msrb.mxu0 %v6429_v35  ;;  %v6464_v40 = vld [vmem:[#allocation21 + $0x530] sm:$0xff]  ;;  %6601 = vmatpush.msrb.mxu1 %v6474_v32  ;;  %v6361_v35 = vld [vmem:[#allocation21 + $0x1f8] sm:$0xff] }
0x1a63   :  { %6273 = vmatpush.msrb.mxu2 %v6252_v29  ;;  %v6468_v36 = vld [vmem:[#allocation21 + $0x550] sm:$0xff]  ;;  %v6395_v29 = vld [vmem:[#allocation21 + $0x308] sm:$0xff] }
0x1a64   :  { %7712 = vmatmul.msk.f32.vlgmr.msrb.gmra.mxu2 %vm614_vm14, %v6254_v55  ;;  %6581 = vmatpush.msrb.mxu0 %v6426_v13  ;;  %v6355_v13 = vld [vmem:[#allocation21 + $0x1c8] sm:$0xff]  ;;  %v6444_v47 = vld [vmem:[#allocation21 + $0x490] sm:$0xff] }
0x1a65   :  { %6536 = vmatpush.msra.mxu2 %v6440_v18  ;;  %6602 = vmatpush.msrb.mxu1 %v6471_v39  ;;  %v6411_v18 = vld [vmem:[#allocation21 + $0x388] sm:$0xff]  ;;  %v6344_v32 = vld [vmem:[#allocation21 + $0x170] sm:$0xff]  ;;  %v6338_v39 = vld [vmem:[#allocation21 + $0x140] sm:$0xff] }
0x1a66   :  { %v6188_v12 = vpop.f32.mrf.mxu3  ;;  %6582 = vmatpush.msrb.mxu0 %v6423_v2  ;;  %v6349_v2 = vld [vmem:[#allocation21 + $0x198] sm:$0xff] }
0x1a67   :  { %v6192_v22 = vadd.f32 %v6188_v12, %v6139_v54  ;;  %6537 = vmatpush.msra.mxu2 %v6437_v24  ;;  %6603 = vmatpush.msrb.mxu1 %v6468_v36  ;;  %v6340_v24 = vld [vmem:[#allocation21 + $0x150] sm:$0xff]  ;;  %v6405_v12 = vld [vmem:[#allocation21 + $0x358] sm:$0xff] }
0x1a68   :  { %6583 = vmatpush.msrb.mxu0 %v6420_v10  ;;  %v6452_v54 = vld [vmem:[#allocation21 + $0x4d0] sm:$0xff] }
0x1a69   :  { %v6245_v9 = vadd.f32 %v6241_v6, %v6192_v22  ;;  %6538 = vmatpush.msra.mxu2 %v6434_v48  ;;  %6604 = vmatpush.msrb.mxu1 %v6465_v17  ;;  %v6449_v6 = vld [vmem:[#allocation21 + $0x4b8] sm:$0xff]  ;;  %v6334_v48 = vld [vmem:[#allocation21 + $0x120] sm:$0xff]  ;;  %v6332_v36 = vld [vmem:[#allocation21 + $0x110] sm:$0xff] }
0x1a6a   :  { %6584 = vmatpush.msrb.mxu0 %v6417_v25  ;;  %v6446_v22 = vld [vmem:[#allocation21 + $0x4a0] sm:$0xff] }
0x1a6b   :  { %v6253_v38 = vadd.f32 %v6249_v53, %v6245_v9  ;;  %6539 = vmatpush.msra.mxu2 %v6431_v51  ;;  %v6331_v53 = vld [vmem:[#allocation21 + $0x108] sm:$0xff]  ;;  %v6328_v51 = vld [vmem:[#allocation21 + $0xf0] sm:$0xff]  ;;  %v6325_v9 = vld [vmem:[#allocation21 + $0xd8] sm:$0xff] }
0x1a6c   :  { %6585 = vmatpush.msrb.mxu0 %v6414_v34  ;;  %v6342_v25 = vld [vmem:[#allocation21 + $0x160] sm:$0xff]  ;;  %v6336_v34 = vld [vmem:[#allocation21 + $0x130] sm:$0xff] }
0x1a6d   :  { %6293 = vmatpush.msra.mxu3 %v6253_v38  ;;  %6540 = vmatpush.msra.mxu2 %v6428_v49  ;;  %v6322_v49 = vld [vmem:[#allocation21 + $0xc0] sm:$0xff]  ;;  %v6385_v38 = vld [vmem:[#allocation21 + $0x2b8] sm:$0xff] }
0x1a6e   :  { %7713 = vmatmul.msk.f32.vlgmr.msra.gmra.mxu3 %vm614_vm14, %v6254_v55  ;;  %v6458_v55 = vld [vmem:[#allocation21 + $0x500] sm:$0xff]  ;;  %6586 = vmatpush.msrb.mxu0 %v6411_v18  ;;  %v6329_v18 = vld [vmem:[#allocation21 + $0xf8] sm:$0xff]  ;;  %vm7345_vm14 = vcmask 140288  }
0x1a6f   :  { %6541 = vmatpush.msra.mxu2 %v6425_v30  ;;  %6556 = vmatpush.msrb.mxu3 %v6488_v50  ;;  %v6382_v30 = vld [vmem:[#allocation21 + $0x2a0] sm:$0xff]  ;;  %v6316_v50 = vld [vmem:[#allocation21 + $0x90] sm:$0xff] }
0x1a70   :  { %6587 = vmatpush.msrb.mxu0 %v6408_v59  ;;  %v6330_v17 = vld [vmem:[#allocation21 + $0x100] sm:$0xff] }
0x1a71   :  { %6542 = vmatpush.msra.mxu2 %v6422_v19  ;;  %6557 = vmatpush.msrb.mxu3 %v6485_v44  ;;  %v6376_v19 = vld [vmem:[#allocation21 + $0x270] sm:$0xff]  ;;  %v6310_v44 = vld [vmem:[#allocation21 + $0x60] sm:$0xff] }
0x1a72   :  { %6588 = vmatpush.msrb.mxu0 %v6405_v12  ;;  %v6326_v59 = vld [vmem:[#allocation21 + $0xe0] sm:$0xff] }
0x1a73   :  { %6543 = vmatpush.msra.mxu2 %v6419_v0  ;;  %6558 = vmatpush.msrb.mxu3 %v6482_v4  ;;  %v6370_v0 = vld [vmem:[#allocation21 + $0x240] sm:$0xff]  ;;  %v6304_v4 = vld [vmem:[#allocation21 + $0x30] sm:$0xff] }
0x1a74   :  { %6589 = vmatpush.msrb.mxu0 %v6402_v46  ;;  %v6390_v12 = vld [vmem:[#allocation21 + $0x2e0] sm:$0xff]  ;;  %v6324_v46 = vld [vmem:[#allocation21 + $0xd0] sm:$0xff] }
0x1a75   :  { %6544 = vmatpush.msra.mxu2 %v6416_v42  ;;  %6559 = vmatpush.msrb.mxu3 %v6479_v41  ;;  %v6462_v42 = vld [vmem:[#allocation21 + $0x520] sm:$0xff]  ;;  %v6301_v41 = vld [vmem:[#allocation21 + $0x18] sm:$0xff] }
0x1a76   :  { %6590 = vmatpush.msrb.mxu0 %v6399_v14  ;;  %6605 = vmatpush.msrb.mxu1 %v6462_v42  ;;  %v6305_v14 = vld [vmem:[#allocation21 + $0x38] sm:$0xff]  ;;  %v6368_v42 = vld [vmem:[#allocation21 + $0x230] sm:$0xff] }
0x1a77   :  { %6545 = vmatpush.msra.mxu2 %v6413_v15  ;;  %6560 = vmatpush.msrb.mxu3 %v6476_v31  ;;  %v6459_v15 = vld [vmem:[#allocation21 + $0x508] sm:$0xff]  ;;  %v6298_v31 = vld [vmem:[#allocation21] sm:$0xff] }
0x1a78   :  { %6591 = vmatpush.msrb.mxu0 %v6396_v5  ;;  %6606 = vmatpush.msrb.mxu1 %v6459_v15  ;;  %v6302_v5 = vld [vmem:[#allocation21 + $0x20] sm:$0xff]  ;;  %v6365_v15 = vld [vmem:[#allocation21 + $0x218] sm:$0xff] }
0x1a79   :  { %6546 = vmatpush.msra.mxu2 %v6410_v58  ;;  %6561 = vmatpush.msrb.mxu3 %v6473_v45  ;;  %v6358_v58 = vld [vmem:[#allocation21 + $0x1e0] sm:$0xff]  ;;  %v6453_v45 = vld [vmem:[#allocation21 + $0x4d8] sm:$0xff] }
0x1a7a   :  { %6607 = vmatpush.msrb.mxu1 %v6456_v23  ;;  %v6299_v23 = vld [vmem:[#allocation21 + $0x8] sm:$0xff] }
0x1a7b   :  { %6547 = vmatpush.msra.mxu2 %v6407_v62  ;;  %6562 = vmatpush.msrb.mxu3 %v6470_v28  ;;  %v6352_v62 = vld [vmem:[#allocation21 + $0x1b0] sm:$0xff]  ;;  %v6447_v28 = vld [vmem:[#allocation21 + $0x4a8] sm:$0xff] }
0x1a7c   :  { %6608 = vmatpush.msrb.mxu1 %v6453_v45  ;;  %v6300_v45 = vld [vmem:[#allocation21 + $0x10] sm:$0xff] }
0x1a7d   :  { %6548 = vmatpush.msra.mxu2 %v6404_v57  ;;  %6563 = vmatpush.msrb.mxu3 %v6467_v11  ;;  %v6346_v57 = vld [vmem:[#allocation21 + $0x180] sm:$0xff] }
0x1a7e   :  { %6609 = vmatpush.msrb.mxu1 %v6450_v33  ;;  %v6781_v33 = vld [vmem:[#allocation21 + $0x768] sm:$0xff] }
0x1a7f   :  { %6549 = vmatpush.msra.mxu2 %v6401_v1  ;;  %6564 = vmatpush.msrb.mxu3 %v6464_v40  ;;  %v6345_v1 = vld [vmem:[#allocation21 + $0x178] sm:$0xff] }
0x1a80   :  { %6610 = vmatpush.msrb.mxu1 %v6447_v28  ;;  %v6341_v40 = vld [vmem:[#allocation21 + $0x158] sm:$0xff]  ;;  %v6359_v28 = vld [vmem:[#allocation21 + $0x1e8] sm:$0xff] }
0x1a81   :  { %6550 = vmatpush.msra.mxu2 %v6398_v56  ;;  %6565 = vmatpush.msrb.mxu3 %v6461_v37  ;;  %v6339_v56 = vld [vmem:[#allocation21 + $0x148] sm:$0xff] }
0x1a82   :  { %6611 = vmatpush.msrb.mxu1 %v6444_v47  ;;  %v6335_v37 = vld [vmem:[#allocation21 + $0x128] sm:$0xff]  ;;  %v6778_v47 = vld [vmem:[#allocation21 + $0x750] sm:$0xff] }
0x1a83   :  { %6551 = vmatpush.msra.mxu2 %v6395_v29  ;;  %6566 = vmatpush.msrb.mxu3 %v6458_v55  ;;  %v6333_v29 = vld [vmem:[#allocation21 + $0x118] sm:$0xff] }
0x1a85   :  { %6616 = vmatpush.msrb.mxu2 %v6343_v43  ;;  %6567 = vmatpush.msrb.mxu3 %v6455_v16  ;;  %v6392_v16 = vld [vmem:[#allocation21 + $0x2f0] sm:$0xff] }
0x1a87   :  { %6617 = vmatpush.msrb.mxu2 %v6340_v24  ;;  %6568 = vmatpush.msrb.mxu3 %v6452_v54  ;;  %v6393_v24 = vld [vmem:[#allocation21 + $0x2f8] sm:$0xff] }
0x1a88   :  { %v6389_v54 = vld [vmem:[#allocation21 + $0x2d8] sm:$0xff] }
0x1a89   :  { %6618 = vmatpush.msrb.mxu2 %v6337_v60  ;;  %6569 = vmatpush.msrb.mxu3 %v6449_v6  ;;  %v6327_v60 = vld [vmem:[#allocation21 + $0xe8] sm:$0xff] }
0x1a8a   :  { %v6323_v6 = vld [vmem:[#allocation21 + $0xc8] sm:$0xff] }
0x1a8b   :  { %6619 = vmatpush.msrb.mxu2 %v6334_v48  ;;  %6570 = vmatpush.msrb.mxu3 %v6446_v22  ;;  %v6386_v48 = vld [vmem:[#allocation21 + $0x2c0] sm:$0xff]  ;;  %v6387_v22 = vld [vmem:[#allocation21 + $0x2c8] sm:$0xff] }
0x1a8d   :  { %6620 = vmatpush.msrb.mxu2 %v6331_v53  ;;  %6571 = vmatpush.msrb.mxu3 %v6443_v8  ;;  %v6320_v53 = vld [vmem:[#allocation21 + $0xb0] sm:$0xff]  ;;  %v6383_v8 = vld [vmem:[#allocation21 + $0x2a8] sm:$0xff] }
0x1a8f   :  { %6621 = vmatpush.msrb.mxu2 %v6328_v51  ;;  %6636 = vmatpush.msra.mxu3 %v6391_v52  ;;  %v6321_v51 = vld [vmem:[#allocation21 + $0xb8] sm:$0xff]  ;;  %v6384_v52 = vld [vmem:[#allocation21 + $0x2b0] sm:$0xff] }
0x1a91   :  { %6622 = vmatpush.msrb.mxu2 %v6325_v9  ;;  %6637 = vmatpush.msra.mxu3 %v6388_v63  ;;  %v6317_v9 = vld [vmem:[#allocation21 + $0x98] sm:$0xff]  ;;  %v6380_v63 = vld [vmem:[#allocation21 + $0x290] sm:$0xff] }
0x1a93   :  { %6623 = vmatpush.msrb.mxu2 %v6322_v49  ;;  %6638 = vmatpush.msra.mxu3 %v6385_v38  ;;  %v6318_v49 = vld [vmem:[#allocation21 + $0xa0] sm:$0xff]  ;;  %v6381_v38 = vld [vmem:[#allocation21 + $0x298] sm:$0xff] }
0x1a95   :  { %6624 = vmatpush.msrb.mxu2 %v6319_v26  ;;  %6639 = vmatpush.msra.mxu3 %v6382_v30  ;;  %v6314_v26 = vld [vmem:[#allocation21 + $0x80] sm:$0xff]  ;;  %v6377_v30 = vld [vmem:[#allocation21 + $0x278] sm:$0xff] }
0x1a97   :  { %6625 = vmatpush.msrb.mxu2 %v6316_v50  ;;  %6640 = vmatpush.msra.mxu3 %v6379_v3  ;;  %v6315_v50 = vld [vmem:[#allocation21 + $0x88] sm:$0xff]  ;;  %v6378_v3 = vld [vmem:[#allocation21 + $0x280] sm:$0xff] }
0x1a99   :  { %6626 = vmatpush.msrb.mxu2 %v6313_v61  ;;  %6641 = vmatpush.msra.mxu3 %v6376_v19  ;;  %v6311_v61 = vld [vmem:[#allocation21 + $0x68] sm:$0xff]  ;;  %v6374_v19 = vld [vmem:[#allocation21 + $0x260] sm:$0xff] }
0x1a9b   :  { %6627 = vmatpush.msrb.mxu2 %v6310_v44  ;;  %6642 = vmatpush.msra.mxu3 %v6373_v20  ;;  %v6312_v44 = vld [vmem:[#allocation21 + $0x70] sm:$0xff]  ;;  %v6375_v20 = vld [vmem:[#allocation21 + $0x268] sm:$0xff] }
0x1a9d   :  { %6628 = vmatpush.msrb.mxu2 %v6307_v7  ;;  %6643 = vmatpush.msra.mxu3 %v6370_v0  ;;  %v6308_v7 = vld [vmem:[#allocation21 + $0x50] sm:$0xff]  ;;  %v6371_v0 = vld [vmem:[#allocation21 + $0x248] sm:$0xff] }
0x1a9f   :  { %6629 = vmatpush.msrb.mxu2 %v6304_v4  ;;  %6644 = vmatpush.msra.mxu3 %v6367_v27  ;;  %v6309_v4 = vld [vmem:[#allocation21 + $0x58] sm:$0xff]  ;;  %v6372_v27 = vld [vmem:[#allocation21 + $0x250] sm:$0xff] }
0x1aa1   :  { %6630 = vmatpush.msrb.mxu2 %v6301_v41  ;;  %6645 = vmatpush.msra.mxu3 %v6364_v21  ;;  %v6306_v41 = vld [vmem:[#allocation21 + $0x40] sm:$0xff]  ;;  %v6369_v21 = vld [vmem:[#allocation21 + $0x238] sm:$0xff] }
0x1aa3   :  { %6631 = vmatpush.msrb.mxu2 %v6298_v31  ;;  %6646 = vmatpush.msra.mxu3 %v6361_v35  ;;  %v6303_v31 = vld [vmem:[#allocation21 + $0x28] sm:$0xff]  ;;  %v6366_v35 = vld [vmem:[#allocation21 + $0x220] sm:$0xff] }
0x1aa5   :  { %6647 = vmatpush.msra.mxu3 %v6358_v58  ;;  %v6362_v58 = vld [vmem:[#allocation21 + $0x200] sm:$0xff] }
0x1aa7   :  { %6648 = vmatpush.msra.mxu3 %v6355_v13  ;;  %v6363_v13 = vld [vmem:[#allocation21 + $0x208] sm:$0xff] }
0x1aa9   :  { %6649 = vmatpush.msra.mxu3 %v6352_v62  ;;  %v6782_v62 = vld [vmem:[#allocation21 + $0x770] sm:$0xff] }
0x1aab   :  { %6650 = vmatpush.msra.mxu3 %v6349_v2  ;;  %v6360_v2 = vld [vmem:[#allocation21 + $0x1f0] sm:$0xff] }
0x1aad   :  { %6651 = vmatpush.msra.mxu3 %v6346_v57  ;;  %v6779_v57 = vld [vmem:[#allocation21 + $0x758] sm:$0xff] }
0x1ae7   :  { %v11425_v11 = vpop.f32.mrf.mxu2 }
0x1ae8   :  { %v6492_v10 = vrot.slane %v11425_v11, 2 }
0x1aea   :  { %6512 = vmatmul.f32.vlgmr.msra.gmra.mxu0 %v6492_v10  ;;  %6552 = vmatmul.f32.vlgmr.msra.gmra.mxu2 %v6492_v10 }
0x1aeb   :  { %6656 = vmatpush.msra.mxu0 %v6344_v32  ;;  %6696 = vmatpush.msra.mxu2 %v6345_v1  ;;  %v6357_v32 = vld [vmem:[#allocation21 + $0x1d8] sm:$0xff] }
0x1aec   :  { %v6775_v1 = vld [vmem:[#allocation21 + $0x738] sm:$0xff] }
0x1aed   :  { %6657 = vmatpush.msra.mxu0 %v6341_v40  ;;  %6697 = vmatpush.msra.mxu2 %v6342_v25  ;;  %v6776_v40 = vld [vmem:[#allocation21 + $0x740] sm:$0xff]  ;;  %v6353_v25 = vld [vmem:[#allocation21 + $0x1b8] sm:$0xff] }
0x1aef   :  { %6658 = vmatpush.msra.mxu0 %v6338_v39  ;;  %6698 = vmatpush.msra.mxu2 %v6339_v56  ;;  %v6354_v39 = vld [vmem:[#allocation21 + $0x1c0] sm:$0xff] }
0x1af0   :  { %v6772_v56 = vld [vmem:[#allocation21 + $0x720] sm:$0xff] }
0x1af1   :  { %6659 = vmatpush.msra.mxu0 %v6335_v37  ;;  %6699 = vmatpush.msra.mxu2 %v6336_v34  ;;  %v11428_v55 = vpop.f32.mrf.mxu3  ;;  %v6773_v37 = vld [vmem:[#allocation21 + $0x728] sm:$0xff]  ;;  %v6350_v34 = vld [vmem:[#allocation21 + $0x1a0] sm:$0xff] }
0x1af2   :  { %v6493_v43 = vrot.slane %v11428_v55, 2  ;;  %6632 = vmatmul.f32.vlgmr.msrb.gmra.mxu2 %v11425_v11  ;;  %6592 = vmatmul.f32.vlgmr.msrb.gmra.mxu0 %v6492_v10  ;;  %v6356_v10 = vld [vmem:[#allocation21 + $0x1d0] sm:$0xff] }
0x1af3   :  { %6660 = vmatpush.msra.mxu0 %v6332_v36  ;;  %6700 = vmatpush.msra.mxu2 %v6333_v29  ;;  %v6351_v36 = vld [vmem:[#allocation21 + $0x1a8] sm:$0xff] }
0x1af4   :  { %6532 = vmatmul.f32.vlgmr.msra.gmra.mxu1 %v6493_v43  ;;  %6572 = vmatmul.f32.vlgmr.msrb.gmra.mxu3 %v6493_v43  ;;  %v6769_v29 = vld [vmem:[#allocation21 + $0x708] sm:$0xff] }
0x1af5   :  { %6661 = vmatpush.msra.mxu0 %v6329_v18  ;;  %6676 = vmatpush.msra.mxu1 %v6392_v16  ;;  %v6347_v18 = vld [vmem:[#allocation21 + $0x188] sm:$0xff]  ;;  %v6348_v16 = vld [vmem:[#allocation21 + $0x190] sm:$0xff] }
0x1af6   :  { %6701 = vmatpush.msra.mxu2 %v6330_v17  ;;  %6716 = vmatpush.msrb.mxu3 %v6393_v24  ;;  %v6766_v17 = vld [vmem:[#allocation21 + $0x6f0] sm:$0xff]  ;;  %v6829_v24 = vld [vmem:[#allocation21 + $0x8e8] sm:$0xff] }
0x1af7   :  { %6662 = vmatpush.msra.mxu0 %v6326_v59  ;;  %6677 = vmatpush.msra.mxu1 %v6389_v54  ;;  %v6767_v59 = vld [vmem:[#allocation21 + $0x6f8] sm:$0xff]  ;;  %v6830_v54 = vld [vmem:[#allocation21 + $0x8f0] sm:$0xff] }
0x1af8   :  { %6702 = vmatpush.msra.mxu2 %v6327_v60  ;;  %6717 = vmatpush.msrb.mxu3 %v6390_v12  ;;  %v6763_v60 = vld [vmem:[#allocation21 + $0x6d8] sm:$0xff]  ;;  %v6826_v12 = vld [vmem:[#allocation21 + $0x8d0] sm:$0xff] }
0x1af9   :  { %6663 = vmatpush.msra.mxu0 %v6323_v6  ;;  %6678 = vmatpush.msra.mxu1 %v6386_v48  ;;  %v6764_v6 = vld [vmem:[#allocation21 + $0x6e0] sm:$0xff]  ;;  %v6827_v48 = vld [vmem:[#allocation21 + $0x8d8] sm:$0xff] }
0x1afa   :  { %6703 = vmatpush.msra.mxu2 %v6324_v46  ;;  %6718 = vmatpush.msrb.mxu3 %v6387_v22  ;;  %v6760_v46 = vld [vmem:[#allocation21 + $0x6c0] sm:$0xff]  ;;  %v6823_v22 = vld [vmem:[#allocation21 + $0x8b8] sm:$0xff] }
0x1afb   :  { %6664 = vmatpush.msra.mxu0 %v6320_v53  ;;  %6679 = vmatpush.msra.mxu1 %v6383_v8  ;;  %v6761_v53 = vld [vmem:[#allocation21 + $0x6c8] sm:$0xff]  ;;  %v6824_v8 = vld [vmem:[#allocation21 + $0x8c0] sm:$0xff] }
0x1afc   :  { %6704 = vmatpush.msra.mxu2 %v6321_v51  ;;  %6719 = vmatpush.msrb.mxu3 %v6384_v52  ;;  %v6757_v51 = vld [vmem:[#allocation21 + $0x6a8] sm:$0xff]  ;;  %v6820_v52 = vld [vmem:[#allocation21 + $0x8a0] sm:$0xff] }
0x1afd   :  { %6652 = vmatmul.f32.vlgmr.msra.gmra.mxu3 %v11428_v55  ;;  %6665 = vmatpush.msra.mxu0 %v6317_v9  ;;  %v6758_v9 = vld [vmem:[#allocation21 + $0x6b0] sm:$0xff] }
0x1afe   :  { %6680 = vmatpush.msra.mxu1 %v6380_v63  ;;  %6705 = vmatpush.msra.mxu2 %v6318_v49  ;;  %v6821_v63 = vld [vmem:[#allocation21 + $0x8a8] sm:$0xff]  ;;  %v6754_v49 = vld [vmem:[#allocation21 + $0x690] sm:$0xff] }
0x1aff   :  { %6720 = vmatpush.msrb.mxu3 %v6381_v38  ;;  %6612 = vmatmul.f32.vlgmr.msrb.gmra.mxu1 %v6493_v43  ;;  %v6770_v43 = vld [vmem:[#allocation21 + $0x710] sm:$0xff]  ;;  %v6817_v38 = vld [vmem:[#allocation21 + $0x888] sm:$0xff] }
0x1b00   :  { %6666 = vmatpush.msra.mxu0 %v6314_v26  ;;  %6681 = vmatpush.msra.mxu1 %v6377_v30  ;;  %v6755_v26 = vld [vmem:[#allocation21 + $0x698] sm:$0xff]  ;;  %v6818_v30 = vld [vmem:[#allocation21 + $0x890] sm:$0xff] }
0x1b01   :  { %6706 = vmatpush.msra.mxu2 %v6315_v50  ;;  %6721 = vmatpush.msrb.mxu3 %v6378_v3  ;;  %v6751_v50 = vld [vmem:[#allocation21 + $0x678] sm:$0xff]  ;;  %v6814_v3 = vld [vmem:[#allocation21 + $0x870] sm:$0xff] }
0x1b02   :  { %6667 = vmatpush.msra.mxu0 %v6311_v61  ;;  %6682 = vmatpush.msra.mxu1 %v6374_v19  ;;  %v6752_v61 = vld [vmem:[#allocation21 + $0x680] sm:$0xff]  ;;  %v6815_v19 = vld [vmem:[#allocation21 + $0x878] sm:$0xff] }
0x1b03   :  { %6707 = vmatpush.msra.mxu2 %v6312_v44  ;;  %6722 = vmatpush.msrb.mxu3 %v6375_v20  ;;  %v6748_v44 = vld [vmem:[#allocation21 + $0x660] sm:$0xff]  ;;  %v6811_v20 = vld [vmem:[#allocation21 + $0x858] sm:$0xff] }
0x1b04   :  { %6668 = vmatpush.msra.mxu0 %v6308_v7  ;;  %6683 = vmatpush.msra.mxu1 %v6371_v0  ;;  %v6749_v7 = vld [vmem:[#allocation21 + $0x668] sm:$0xff]  ;;  %v6812_v0 = vld [vmem:[#allocation21 + $0x860] sm:$0xff] }
0x1b05   :  { %6708 = vmatpush.msra.mxu2 %v6309_v4  ;;  %6723 = vmatpush.msrb.mxu3 %v6372_v27  ;;  %v6745_v4 = vld [vmem:[#allocation21 + $0x648] sm:$0xff]  ;;  %v6808_v27 = vld [vmem:[#allocation21 + $0x840] sm:$0xff] }
0x1b06   :  { %6669 = vmatpush.msra.mxu0 %v6305_v14  ;;  %6684 = vmatpush.msra.mxu1 %v6368_v42  ;;  %v6746_v14 = vld [vmem:[#allocation21 + $0x650] sm:$0xff]  ;;  %v6809_v42 = vld [vmem:[#allocation21 + $0x848] sm:$0xff] }
0x1b07   :  { %6709 = vmatpush.msra.mxu2 %v6306_v41  ;;  %6724 = vmatpush.msrb.mxu3 %v6369_v21  ;;  %v6742_v41 = vld [vmem:[#allocation21 + $0x630] sm:$0xff]  ;;  %v6805_v21 = vld [vmem:[#allocation21 + $0x828] sm:$0xff] }
0x1b08   :  { %6670 = vmatpush.msra.mxu0 %v6302_v5  ;;  %6685 = vmatpush.msra.mxu1 %v6365_v15  ;;  %v6743_v5 = vld [vmem:[#allocation21 + $0x638] sm:$0xff]  ;;  %v6806_v15 = vld [vmem:[#allocation21 + $0x830] sm:$0xff] }
0x1b09   :  { %6710 = vmatpush.msra.mxu2 %v6303_v31  ;;  %6725 = vmatpush.msrb.mxu3 %v6366_v35  ;;  %v6739_v31 = vld [vmem:[#allocation21 + $0x618] sm:$0xff]  ;;  %v6802_v35 = vld [vmem:[#allocation21 + $0x810] sm:$0xff] }
0x1b0a   :  { %6671 = vmatpush.msra.mxu0 %v6299_v23  ;;  %6686 = vmatpush.msra.mxu1 %v6362_v58  ;;  %v6740_v23 = vld [vmem:[#allocation21 + $0x620] sm:$0xff]  ;;  %v6803_v58 = vld [vmem:[#allocation21 + $0x818] sm:$0xff] }
0x1b0b   :  { %6711 = vmatpush.msra.mxu2 %v6300_v45  ;;  %6726 = vmatpush.msrb.mxu3 %v6363_v13  ;;  %v6736_v45 = vld [vmem:[#allocation21 + $0x600] sm:$0xff]  ;;  %v6799_v13 = vld [vmem:[#allocation21 + $0x7f8] sm:$0xff] }
0x1b0c   :  { %6672 = vmatmul.f32.vlgmr.msra.gmra.mxu0 %v11425_v11  ;;  %6712 = vmatmul.f32.vlgmr.msra.gmra.mxu2 %v11425_v11 }
0x1b0d   :  { %6836 = vmatpush.msrb.mxu0 %v6781_v33  ;;  %6876 = vmatpush.msrb.mxu2 %v6782_v62  ;;  %v6737_v33 = vld [vmem:[#allocation21 + $0x608] sm:$0xff]  ;;  %v6800_v62 = vld [vmem:[#allocation21 + $0x800] sm:$0xff] }
0x1b0e   :  { %6687 = vmatpush.msra.mxu1 %v6359_v28  ;;  %6727 = vmatpush.msrb.mxu3 %v6360_v2  ;;  %v11438_v28 = vrot.slane %v11425_v11, 4  ;;  %v6783_v2 = vld [vmem:[#allocation21 + $0x778] sm:$0xff] }
0x1b0f   :  { %6837 = vmatpush.msrb.mxu0 %v6778_v47  ;;  %6877 = vmatpush.msrb.mxu2 %v6779_v57  ;;  %v7004_v47 = vld [vmem:[#allocation21 + $0xa68] sm:$0xff]  ;;  %v6796_v57 = vld [vmem:[#allocation21 + $0x7e0] sm:$0xff] }
0x1b10   :  { %6688 = vmatpush.msra.mxu1 %v6356_v10  ;;  %6728 = vmatpush.msrb.mxu3 %v6357_v32  ;;  %v6797_v10 = vld [vmem:[#allocation21 + $0x7e8] sm:$0xff]  ;;  %v6780_v32 = vld [vmem:[#allocation21 + $0x760] sm:$0xff] }
0x1b11   :  { %6838 = vmatpush.msrb.mxu0 %v6775_v1  ;;  %6878 = vmatpush.msrb.mxu2 %v6776_v40  ;;  %v7001_v1 = vld [vmem:[#allocation21 + $0xa50] sm:$0xff]  ;;  %v6793_v40 = vld [vmem:[#allocation21 + $0x7c8] sm:$0xff] }
0x1b12   :  { %6689 = vmatpush.msra.mxu1 %v6353_v25  ;;  %6729 = vmatpush.msrb.mxu3 %v6354_v39  ;;  %v6794_v25 = vld [vmem:[#allocation21 + $0x7d0] sm:$0xff]  ;;  %v6777_v39 = vld [vmem:[#allocation21 + $0x748] sm:$0xff] }
0x1b13   :  { %6839 = vmatpush.msrb.mxu0 %v6772_v56  ;;  %6879 = vmatpush.msrb.mxu2 %v6773_v37  ;;  %v6998_v56 = vld [vmem:[#allocation21 + $0xa38] sm:$0xff]  ;;  %v6790_v37 = vld [vmem:[#allocation21 + $0x7b0] sm:$0xff] }
0x1b14   :  { %6690 = vmatpush.msra.mxu1 %v6350_v34  ;;  %6730 = vmatpush.msrb.mxu3 %v6351_v36  ;;  %v6791_v34 = vld [vmem:[#allocation21 + $0x7b8] sm:$0xff]  ;;  %v6774_v36 = vld [vmem:[#allocation21 + $0x730] sm:$0xff] }
0x1b15   :  { %6840 = vmatpush.msrb.mxu0 %v6769_v29  ;;  %6880 = vmatpush.msrb.mxu2 %v6770_v43  ;;  %v6995_v29 = vld [vmem:[#allocation21 + $0xa20] sm:$0xff]  ;;  %v6787_v43 = vld [vmem:[#allocation21 + $0x798] sm:$0xff] }
0x1b16   :  { %6691 = vmatpush.msra.mxu1 %v6347_v18  ;;  %6731 = vmatpush.msrb.mxu3 %v6348_v16  ;;  %v6788_v18 = vld [vmem:[#allocation21 + $0x7a0] sm:$0xff]  ;;  %v6771_v16 = vld [vmem:[#allocation21 + $0x718] sm:$0xff] }
0x1b17   :  { %6692 = vmatmul.f32.vlgmr.msra.gmra.mxu1 %v11428_v55  ;;  %6732 = vmatmul.f32.vlgmr.msrb.gmra.mxu3 %v11428_v55 }
0x1b18   :  { %6841 = vmatpush.msrb.mxu0 %v6766_v17  ;;  %6856 = vmatpush.msrb.mxu1 %v6829_v24  ;;  %v6992_v17 = vld [vmem:[#allocation21 + $0xa08] sm:$0xff]  ;;  %v6784_v24 = vld [vmem:[#allocation21 + $0x780] sm:$0xff] }
0x1b19   :  { %6881 = vmatpush.msrb.mxu2 %v6767_v59  ;;  %6896 = vmatpush.msra.mxu3 %v6830_v54  ;;  %v6785_v59 = vld [vmem:[#allocation21 + $0x788] sm:$0xff]  ;;  %v11443_v54 = vrot.slane %v11428_v55, 4 }
0x1b1a   :  { %6842 = vmatpush.msrb.mxu0 %v6763_v60  ;;  %6857 = vmatpush.msrb.mxu1 %v6826_v12  ;;  %v6768_v60 = vld [vmem:[#allocation21 + $0x700] sm:$0xff]  ;;  %v6831_v12 = vld [vmem:[#allocation21 + $0x8f8] sm:$0xff] }
0x1b1b   :  { %6882 = vmatpush.msrb.mxu2 %v6764_v6  ;;  %6897 = vmatpush.msra.mxu3 %v6827_v48  ;;  %v6989_v6 = vld [vmem:[#allocation21 + $0x9f0] sm:$0xff]  ;;  %v7052_v48 = vld [vmem:[#allocation21 + $0xbe8] sm:$0xff] }
0x1b1c   :  { %6843 = vmatpush.msrb.mxu0 %v6760_v46  ;;  %6858 = vmatpush.msrb.mxu1 %v6823_v22  ;;  %v6765_v46 = vld [vmem:[#allocation21 + $0x6e8] sm:$0xff]  ;;  %v6828_v22 = vld [vmem:[#allocation21 + $0x8e0] sm:$0xff] }
0x1b1d   :  { %6883 = vmatpush.msrb.mxu2 %v6761_v53  ;;  %6898 = vmatpush.msra.mxu3 %v6824_v8  ;;  %v6986_v53 = vld [vmem:[#allocation21 + $0x9d8] sm:$0xff]  ;;  %v7049_v8 = vld [vmem:[#allocation21 + $0xbd0] sm:$0xff] }
0x1b1e   :  { %6844 = vmatpush.msrb.mxu0 %v6757_v51  ;;  %6859 = vmatpush.msrb.mxu1 %v6820_v52  ;;  %v6762_v51 = vld [vmem:[#allocation21 + $0x6d0] sm:$0xff]  ;;  %v6825_v52 = vld [vmem:[#allocation21 + $0x8c8] sm:$0xff] }
0x1b1f   :  { %6884 = vmatpush.msrb.mxu2 %v6758_v9  ;;  %6899 = vmatpush.msra.mxu3 %v6821_v63  ;;  %v6983_v9 = vld [vmem:[#allocation21 + $0x9c0] sm:$0xff]  ;;  %v7046_v63 = vld [vmem:[#allocation21 + $0xbb8] sm:$0xff] }
0x1b20   :  { %6845 = vmatpush.msrb.mxu0 %v6754_v49  ;;  %6860 = vmatpush.msrb.mxu1 %v6817_v38  ;;  %v6759_v49 = vld [vmem:[#allocation21 + $0x6b8] sm:$0xff]  ;;  %v6822_v38 = vld [vmem:[#allocation21 + $0x8b0] sm:$0xff] }
0x1b21   :  { %6885 = vmatpush.msrb.mxu2 %v6755_v26  ;;  %6900 = vmatpush.msra.mxu3 %v6818_v30  ;;  %v6980_v26 = vld [vmem:[#allocation21 + $0x9a8] sm:$0xff]  ;;  %v7043_v30 = vld [vmem:[#allocation21 + $0xba0] sm:$0xff] }
0x1b22   :  { %6846 = vmatpush.msrb.mxu0 %v6751_v50  ;;  %6861 = vmatpush.msrb.mxu1 %v6814_v3  ;;  %v6756_v50 = vld [vmem:[#allocation21 + $0x6a0] sm:$0xff]  ;;  %v6819_v3 = vld [vmem:[#allocation21 + $0x898] sm:$0xff] }
0x1b23   :  { %6886 = vmatpush.msrb.mxu2 %v6752_v61  ;;  %6901 = vmatpush.msra.mxu3 %v6815_v19  ;;  %v6977_v61 = vld [vmem:[#allocation21 + $0x990] sm:$0xff]  ;;  %v7040_v19 = vld [vmem:[#allocation21 + $0xb88] sm:$0xff] }
0x1b24   :  { %6847 = vmatpush.msrb.mxu0 %v6748_v44  ;;  %6862 = vmatpush.msrb.mxu1 %v6811_v20  ;;  %v6753_v44 = vld [vmem:[#allocation21 + $0x688] sm:$0xff]  ;;  %v6816_v20 = vld [vmem:[#allocation21 + $0x880] sm:$0xff] }
0x1b25   :  { %6887 = vmatpush.msrb.mxu2 %v6749_v7  ;;  %6902 = vmatpush.msra.mxu3 %v6812_v0  ;;  %v6974_v7 = vld [vmem:[#allocation21 + $0x978] sm:$0xff]  ;;  %v7037_v0 = vld [vmem:[#allocation21 + $0xb70] sm:$0xff] }
0x1b26   :  { %6848 = vmatpush.msrb.mxu0 %v6745_v4  ;;  %6863 = vmatpush.msrb.mxu1 %v6808_v27  ;;  %v6750_v4 = vld [vmem:[#allocation21 + $0x670] sm:$0xff]  ;;  %v6813_v27 = vld [vmem:[#allocation21 + $0x868] sm:$0xff] }
0x1b27   :  { %6888 = vmatpush.msrb.mxu2 %v6746_v14  ;;  %6903 = vmatpush.msra.mxu3 %v6809_v42  ;;  %v6971_v14 = vld [vmem:[#allocation21 + $0x960] sm:$0xff]  ;;  %v7034_v42 = vld [vmem:[#allocation21 + $0xb58] sm:$0xff] }
0x1b28   :  { %6849 = vmatpush.msrb.mxu0 %v6742_v41  ;;  %6864 = vmatpush.msrb.mxu1 %v6805_v21  ;;  %v6747_v41 = vld [vmem:[#allocation21 + $0x658] sm:$0xff]  ;;  %v6810_v21 = vld [vmem:[#allocation21 + $0x850] sm:$0xff] }
0x1b29   :  { %6889 = vmatpush.msrb.mxu2 %v6743_v5  ;;  %6904 = vmatpush.msra.mxu3 %v6806_v15  ;;  %v6968_v5 = vld [vmem:[#allocation21 + $0x948] sm:$0xff]  ;;  %v7031_v15 = vld [vmem:[#allocation21 + $0xb40] sm:$0xff] }
0x1b2a   :  { %6850 = vmatpush.msrb.mxu0 %v6739_v31  ;;  %6865 = vmatpush.msrb.mxu1 %v6802_v35  ;;  %v6744_v31 = vld [vmem:[#allocation21 + $0x640] sm:$0xff]  ;;  %v6807_v35 = vld [vmem:[#allocation21 + $0x838] sm:$0xff] }
0x1b2b   :  { %6890 = vmatpush.msrb.mxu2 %v6740_v23  ;;  %6905 = vmatpush.msra.mxu3 %v6803_v58  ;;  %v6965_v23 = vld [vmem:[#allocation21 + $0x930] sm:$0xff]  ;;  %v7028_v58 = vld [vmem:[#allocation21 + $0xb28] sm:$0xff] }
0x1b2c   :  { %6851 = vmatpush.msrb.mxu0 %v6736_v45  ;;  %6866 = vmatpush.msrb.mxu1 %v6799_v13  ;;  %v6741_v45 = vld [vmem:[#allocation21 + $0x628] sm:$0xff]  ;;  %v6804_v13 = vld [vmem:[#allocation21 + $0x820] sm:$0xff] }
0x1b2d   :  { %6891 = vmatpush.msrb.mxu2 %v6737_v33  ;;  %6906 = vmatpush.msra.mxu3 %v6800_v62  ;;  %v6962_v33 = vld [vmem:[#allocation21 + $0x918] sm:$0xff]  ;;  %v7025_v62 = vld [vmem:[#allocation21 + $0xb10] sm:$0xff] }
0x1b2e   :  { %6852 = vmatmul.f32.vlgmr.msrb.gmra.mxu0 %v11438_v28  ;;  %6892 = vmatmul.f32.vlgmr.msrb.gmra.mxu2 %v11438_v28 }
0x1b2f   :  { %6916 = vmatpush.msra.mxu0 %v6783_v2  ;;  %7059 = vmatpush.msra.mxu2 %v7004_v47  ;;  %v6738_v2 = vld [vmem:[#allocation21 + $0x610] sm:$0xff]  ;;  %v6801_v47 = vld [vmem:[#allocation21 + $0x808] sm:$0xff] }
0x1b30   :  { %6867 = vmatpush.msrb.mxu1 %v6796_v57  ;;  %6907 = vmatpush.msra.mxu3 %v6797_v10  ;;  %v6959_v57 = vld [vmem:[#allocation21 + $0x900] sm:$0xff]  ;;  %v7022_v10 = vld [vmem:[#allocation21 + $0xaf8] sm:$0xff] }
0x1b31   :  { %6917 = vmatpush.msra.mxu0 %v6780_v32  ;;  %7060 = vmatpush.msra.mxu2 %v7001_v1  ;;  %v11448_v32 = vrot.slane %v11425_v11, 6  ;;  %v7005_v1 = vld [vmem:[#allocation21 + $0xa70] sm:$0xff]  ;;  %v6999_v11 = vld [vmem:[#allocation21 + $0xa40] sm:$0xff] }
0x1b32   :  { %6868 = vmatpush.msrb.mxu1 %v6793_v40  ;;  %6908 = vmatpush.msra.mxu3 %v6794_v25  ;;  %v7006_v40 = vld [vmem:[#allocation21 + $0xa78] sm:$0xff]  ;;  %v6798_v25 = vld [vmem:[#allocation21 + $0x7f0] sm:$0xff] }
0x1b33   :  { %6918 = vmatpush.msra.mxu0 %v6777_v39  ;;  %7061 = vmatpush.msra.mxu2 %v6998_v56  ;;  %v7019_v39 = vld [vmem:[#allocation21 + $0xae0] sm:$0xff]  ;;  %v7002_v56 = vld [vmem:[#allocation21 + $0xa58] sm:$0xff] }
0x1b34   :  { %6869 = vmatpush.msrb.mxu1 %v6790_v37  ;;  %6909 = vmatpush.msra.mxu3 %v6791_v34  ;;  %v7003_v37 = vld [vmem:[#allocation21 + $0xa60] sm:$0xff]  ;;  %v6795_v34 = vld [vmem:[#allocation21 + $0x7d8] sm:$0xff] }
0x1b35   :  { %6919 = vmatpush.msra.mxu0 %v6774_v36  ;;  %7062 = vmatpush.msra.mxu2 %v6995_v29  ;;  %v7016_v36 = vld [vmem:[#allocation21 + $0xac8] sm:$0xff] }
0x1b36   :  { %6870 = vmatpush.msrb.mxu1 %v6787_v43  ;;  %6910 = vmatpush.msra.mxu3 %v6788_v18  ;;  %v7000_v29 = vld [vmem:[#allocation21 + $0xa48] sm:$0xff]  ;;  %v6792_v43 = vld [vmem:[#allocation21 + $0x7c0] sm:$0xff]  ;;  %v7013_v18 = vld [vmem:[#allocation21 + $0xab0] sm:$0xff] }
0x1b37   :  { %6920 = vmatpush.msra.mxu0 %v6771_v16  ;;  %7063 = vmatpush.msra.mxu2 %v6992_v17  ;;  %v6996_v16 = vld [vmem:[#allocation21 + $0xa28] sm:$0xff] }
0x1b38   :  { %6871 = vmatpush.msrb.mxu1 %v6784_v24  ;;  %6911 = vmatpush.msra.mxu3 %v6785_v59  ;;  %v6789_v17 = vld [vmem:[#allocation21 + $0x7a8] sm:$0xff]  ;;  %v7010_v24 = vld [vmem:[#allocation21 + $0xa98] sm:$0xff]  ;;  %v6993_v59 = vld [vmem:[#allocation21 + $0xa10] sm:$0xff] }
0x1b39   :  { %6872 = vmatmul.f32.vlgmr.msrb.gmra.mxu1 %v11443_v54  ;;  %6912 = vmatmul.f32.vlgmr.msra.gmra.mxu3 %v11443_v54 }
0x1b3a   :  { %6921 = vmatpush.msra.mxu0 %v6768_v60  ;;  %6936 = vmatpush.msra.mxu1 %v6831_v12  ;;  %v6994_v60 = vld [vmem:[#allocation21 + $0xa18] sm:$0xff]  ;;  %v6786_v12 = vld [vmem:[#allocation21 + $0x790] sm:$0xff] }
0x1b3b   :  { %7064 = vmatpush.msra.mxu2 %v6989_v6  ;;  %7079 = vmatpush.msrb.mxu3 %v7052_v48  ;;  %v7007_v6 = vld [vmem:[#allocation21 + $0xa80] sm:$0xff]  ;;  %v11453_v48 = vrot.slane %v11428_v55, 6  ;;  %v6984_v55 = vld [vmem:[#allocation21 + $0x9c8] sm:$0xff] }
0x1b3c   :  { %6922 = vmatpush.msra.mxu0 %v6765_v46  ;;  %6937 = vmatpush.msra.mxu1 %v6828_v22  ;;  %v6990_v46 = vld [vmem:[#allocation21 + $0x9f8] sm:$0xff]  ;;  %v7053_v22 = vld [vmem:[#allocation21 + $0xbf0] sm:$0xff] }
0x1b3d   :  { %7065 = vmatpush.msra.mxu2 %v6986_v53  ;;  %7080 = vmatpush.msrb.mxu3 %v7049_v8  ;;  %v6991_v53 = vld [vmem:[#allocation21 + $0xa00] sm:$0xff]  ;;  %v7054_v8 = vld [vmem:[#allocation21 + $0xbf8] sm:$0xff] }
0x1b3e   :  { %6923 = vmatpush.msra.mxu0 %v6762_v51  ;;  %6938 = vmatpush.msra.mxu1 %v6825_v52  ;;  %v6987_v51 = vld [vmem:[#allocation21 + $0x9e0] sm:$0xff]  ;;  %v7050_v52 = vld [vmem:[#allocation21 + $0xbd8] sm:$0xff] }
0x1b3f   :  { %7066 = vmatpush.msra.mxu2 %v6983_v9  ;;  %7081 = vmatpush.msrb.mxu3 %v7046_v63  ;;  %v6988_v9 = vld [vmem:[#allocation21 + $0x9e8] sm:$0xff]  ;;  %v7051_v63 = vld [vmem:[#allocation21 + $0xbe0] sm:$0xff] }
0x1b40   :  { %6924 = vmatpush.msra.mxu0 %v6759_v49  ;;  %6939 = vmatpush.msra.mxu1 %v6822_v38  ;;  %v7047_v49 = vld [vmem:[#allocation21 + $0xbc0] sm:$0xff]  ;;  %v6985_v38 = vld [vmem:[#allocation21 + $0x9d0] sm:$0xff] }
0x1b41   :  { %7067 = vmatpush.msra.mxu2 %v6980_v26  ;;  %7082 = vmatpush.msrb.mxu3 %v7043_v30  ;;  %v7048_v26 = vld [vmem:[#allocation21 + $0xbc8] sm:$0xff]  ;;  %v6981_v30 = vld [vmem:[#allocation21 + $0x9b0] sm:$0xff] }
0x1b42   :  { %6925 = vmatpush.msra.mxu0 %v6756_v50  ;;  %6940 = vmatpush.msra.mxu1 %v6819_v3  ;;  %v6982_v50 = vld [vmem:[#allocation21 + $0x9b8] sm:$0xff]  ;;  %v7045_v3 = vld [vmem:[#allocation21 + $0xbb0] sm:$0xff] }
0x1b43   :  { %7068 = vmatpush.msra.mxu2 %v6977_v61  ;;  %7083 = vmatpush.msrb.mxu3 %v7040_v19  ;;  %v6978_v61 = vld [vmem:[#allocation21 + $0x998] sm:$0xff]  ;;  %v7041_v19 = vld [vmem:[#allocation21 + $0xb90] sm:$0xff] }
0x1b44   :  { %6926 = vmatpush.msra.mxu0 %v6753_v44  ;;  %6941 = vmatpush.msra.mxu1 %v6816_v20  ;;  %v6979_v44 = vld [vmem:[#allocation21 + $0x9a0] sm:$0xff]  ;;  %v7042_v20 = vld [vmem:[#allocation21 + $0xb98] sm:$0xff] }
0x1b45   :  { %7069 = vmatpush.msra.mxu2 %v6974_v7  ;;  %7084 = vmatpush.msrb.mxu3 %v7037_v0  ;;  %v6975_v7 = vld [vmem:[#allocation21 + $0x980] sm:$0xff]  ;;  %v7038_v0 = vld [vmem:[#allocation21 + $0xb78] sm:$0xff] }
0x1b46   :  { %6927 = vmatpush.msra.mxu0 %v6750_v4  ;;  %6942 = vmatpush.msra.mxu1 %v6813_v27  ;;  %v6976_v4 = vld [vmem:[#allocation21 + $0x988] sm:$0xff]  ;;  %v7039_v27 = vld [vmem:[#allocation21 + $0xb80] sm:$0xff] }
0x1b47   :  { %7070 = vmatpush.msra.mxu2 %v6971_v14  ;;  %7085 = vmatpush.msrb.mxu3 %v7034_v42  ;;  %v6972_v14 = vld [vmem:[#allocation21 + $0x968] sm:$0xff]  ;;  %v7035_v42 = vld [vmem:[#allocation21 + $0xb60] sm:$0xff] }
0x1b48   :  { %6928 = vmatpush.msra.mxu0 %v6747_v41  ;;  %6943 = vmatpush.msra.mxu1 %v6810_v21  ;;  %v6973_v41 = vld [vmem:[#allocation21 + $0x970] sm:$0xff]  ;;  %v7036_v21 = vld [vmem:[#allocation21 + $0xb68] sm:$0xff] }
0x1b49   :  { %7071 = vmatpush.msra.mxu2 %v6968_v5  ;;  %7086 = vmatpush.msrb.mxu3 %v7031_v15  ;;  %v6969_v5 = vld [vmem:[#allocation21 + $0x950] sm:$0xff]  ;;  %v7032_v15 = vld [vmem:[#allocation21 + $0xb48] sm:$0xff] }
0x1b4a   :  { %6929 = vmatpush.msra.mxu0 %v6744_v31  ;;  %6944 = vmatpush.msra.mxu1 %v6807_v35  ;;  %v6970_v31 = vld [vmem:[#allocation21 + $0x958] sm:$0xff]  ;;  %v7033_v35 = vld [vmem:[#allocation21 + $0xb50] sm:$0xff] }
0x1b4b   :  { %7072 = vmatpush.msra.mxu2 %v6965_v23  ;;  %7087 = vmatpush.msrb.mxu3 %v7028_v58  ;;  %v6966_v23 = vld [vmem:[#allocation21 + $0x938] sm:$0xff]  ;;  %v7029_v58 = vld [vmem:[#allocation21 + $0xb30] sm:$0xff] }
0x1b4c   :  { %6930 = vmatpush.msra.mxu0 %v6741_v45  ;;  %6945 = vmatpush.msra.mxu1 %v6804_v13  ;;  %v6967_v45 = vld [vmem:[#allocation21 + $0x940] sm:$0xff]  ;;  %v7030_v13 = vld [vmem:[#allocation21 + $0xb38] sm:$0xff] }
0x1b4d   :  { %7073 = vmatpush.msra.mxu2 %v6962_v33  ;;  %7088 = vmatpush.msrb.mxu3 %v7025_v62  ;;  %v6963_v33 = vld [vmem:[#allocation21 + $0x920] sm:$0xff]  ;;  %v7026_v62 = vld [vmem:[#allocation21 + $0xb18] sm:$0xff] }
0x1b4e   :  { %6931 = vmatpush.msra.mxu0 %v6738_v2  ;;  %6946 = vmatpush.msra.mxu1 %v6801_v47  ;;  %v6964_v2 = vld [vmem:[#allocation21 + $0x928] sm:$0xff]  ;;  %v7027_v47 = vld [vmem:[#allocation21 + $0xb20] sm:$0xff] }
0x1b4f   :  { %7074 = vmatpush.msra.mxu2 %v6959_v57  ;;  %7089 = vmatpush.msrb.mxu3 %v7022_v10  ;;  %v6960_v57 = vld [vmem:[#allocation21 + $0x908] sm:$0xff]  ;;  %v7023_v10 = vld [vmem:[#allocation21 + $0xb00] sm:$0xff] }
0x1b50   :  { %6932 = vmatmul.f32.vlgmr.msra.gmra.mxu0 %v11438_v28  ;;  %7075 = vmatmul.f32.vlgmr.msra.gmra.mxu2 %v11448_v32  ;;  %v6997_v28 = vld [vmem:[#allocation21 + $0xa30] sm:$0xff] }
0x1b51   :  { %7099 = vmatpush.msrb.mxu0 %v7005_v1  ;;  %7139 = vmatpush.msrb.mxu2 %v7006_v40  ;;  %v6961_v1 = vld [vmem:[#allocation21 + $0x910] sm:$0xff]  ;;  %v7024_v40 = vld [vmem:[#allocation21 + $0xb08] sm:$0xff] }
0x1b52   :  { %6947 = vmatpush.msra.mxu1 %v6798_v25  ;;  %7090 = vmatpush.msrb.mxu3 %v7019_v39  ;;  %v7020_v25 = vld [vmem:[#allocation21 + $0xae8] sm:$0xff]  ;;  %v7021_v39 = vld [vmem:[#allocation21 + $0xaf0] sm:$0xff] }
0x1b53   :  { %7100 = vmatpush.msrb.mxu0 %v7002_v56  ;;  %7140 = vmatpush.msrb.mxu2 %v7003_v37  ;;  %v7017_v56 = vld [vmem:[#allocation21 + $0xad0] sm:$0xff]  ;;  %v7018_v37 = vld [vmem:[#allocation21 + $0xad8] sm:$0xff] }
0x1b54   :  { %6948 = vmatpush.msra.mxu1 %v6795_v34  ;;  %7091 = vmatpush.msrb.mxu3 %v7016_v36  ;;  %v7014_v34 = vld [vmem:[#allocation21 + $0xab8] sm:$0xff]  ;;  %v7015_v36 = vld [vmem:[#allocation21 + $0xac0] sm:$0xff] }
0x1b55   :  { %7101 = vmatpush.msrb.mxu0 %v6999_v11  ;;  %7141 = vmatpush.msrb.mxu2 %v7000_v29  ;;  %v7011_v11 = vld [vmem:[#allocation21 + $0xaa0] sm:$0xff]  ;;  %v7012_v29 = vld [vmem:[#allocation21 + $0xaa8] sm:$0xff] }
0x1b56   :  { %6949 = vmatpush.msra.mxu1 %v6792_v43  ;;  %7092 = vmatpush.msrb.mxu3 %v7013_v18  ;;  %v7008_v43 = vld [vmem:[#allocation21 + $0xa88] sm:$0xff]  ;;  %v7009_v18 = vld [vmem:[#allocation21 + $0xa90] sm:$0xff] }
0x1b57   :  { %7102 = vmatpush.msrb.mxu0 %v6996_v16  ;;  %7142 = vmatpush.msrb.mxu2 %v6997_v28  ;;  %v7207_v16 = vld [vmem:[%s11684_s16 + $0x70] sm:$0xff]  ;;  %v7206_v28 = vld [vmem:[%s11684_s16 + $0x68] sm:$0xff] }
0x1b58   :  { %6950 = vmatpush.msra.mxu1 %v6789_v17  ;;  %7093 = vmatpush.msrb.mxu3 %v7010_v24  ;;  %v7205_v17 = vld [vmem:[%s11684_s16 + $0x60] sm:$0xff]  ;;  %v7204_v24 = vld [vmem:[%s11684_s16 + $0x58] sm:$0xff] }
0x1b59   :  { %7103 = vmatpush.msrb.mxu0 %v6993_v59  ;;  %7143 = vmatpush.msrb.mxu2 %v6994_v60  ;;  %v7203_v59 = vld [vmem:[%s11684_s16 + $0x50] sm:$0xff]  ;;  %v7202_v60 = vld [vmem:[%s11684_s16 + $0x48] sm:$0xff] }
0x1b5a   :  { %6951 = vmatpush.msra.mxu1 %v6786_v12  ;;  %7094 = vmatpush.msrb.mxu3 %v7007_v6  ;;  %v7201_v12 = vld [vmem:[%s11684_s16 + $0x40] sm:$0xff]  ;;  %v7200_v6 = vld [vmem:[%s11684_s16 + $0x38] sm:$0xff] }
0x1b5b   :  { %6952 = vmatmul.f32.vlgmr.msra.gmra.mxu1 %v11443_v54  ;;  %7095 = vmatmul.f32.vlgmr.msrb.gmra.mxu3 %v11453_v48  ;;  %v7044_v54 = vld [vmem:[#allocation21 + $0xba8] sm:$0xff] }
0x1b5c   :  { %7104 = vmatpush.msrb.mxu0 %v6990_v46  ;;  %7119 = vmatpush.msrb.mxu1 %v7053_v22  ;;  %v7198_v46 = vld [vmem:[%s11684_s16 + $0x28] sm:$0xff]  ;;  %v7197_v22 = vld [vmem:[%s11684_s16 + $0x20] sm:$0xff] }
0x1b5d   :  { %7144 = vmatpush.msrb.mxu2 %v6991_v53  ;;  %7159 = vmatpush.msra.mxu3 %v7054_v8 }
0x1b5e   :  { %7105 = vmatpush.msrb.mxu0 %v6987_v51  ;;  %7120 = vmatpush.msrb.mxu1 %v7050_v52  ;;  %v7196_v52 = vld [vmem:[%s11684_s16 + $0x18] sm:$0xff] }
0x1b5f   :  { %7145 = vmatpush.msrb.mxu2 %v6988_v9  ;;  %7160 = vmatpush.msra.mxu3 %v7051_v63  ;;  %v7224_v63 = vld [vmem:[%s11684_s16 + $0xf8] sm:$0xff] }
0x1b60   :  { %7106 = vmatpush.msrb.mxu0 %v6984_v55  ;;  %7121 = vmatpush.msrb.mxu1 %v7047_v49  ;;  %v7195_v55 = vld [vmem:[%s11684_s16 + $0x10] sm:$0xff] }
0x1b61   :  { %7146 = vmatpush.msrb.mxu2 %v6985_v38  ;;  %7161 = vmatpush.msra.mxu3 %v7048_v26  ;;  %v7223_v49 = vld [vmem:[%s11684_s16 + $0xf0] sm:$0xff]  ;;  %v7194_v38 = vld [vmem:[%s11684_s16 + $0x8] sm:$0xff] }
0x1b62   :  { %7107 = vmatpush.msrb.mxu0 %v6981_v30  ;;  %7122 = vmatpush.msrb.mxu1 %v7044_v54  ;;  %v7222_v26 = vld [vmem:[%s11684_s16 + $0xe8] sm:$0xff]  ;;  %v7193_v30 = vld [vmem:[%s11684_s16] sm:$0xff] }
0x1b63   :  { %7147 = vmatpush.msrb.mxu2 %v6982_v50  ;;  %7162 = vmatpush.msra.mxu3 %v7045_v3  ;;  %v7221_v54 = vld [vmem:[%s11684_s16 + $0xe0] sm:$0xff]  ;;  %v7240_v50 = vld [vmem:[%s11684_s16 + $0x178] sm:$0xff] }
0x1b64   :  { %7108 = vmatpush.msrb.mxu0 %v6978_v61  ;;  %7123 = vmatpush.msrb.mxu1 %v7041_v19  ;;  %v7220_v19 = vld [vmem:[%s11684_s16 + $0xd8] sm:$0xff] }
0x1b65   :  { %7148 = vmatpush.msrb.mxu2 %v6979_v44  ;;  %7163 = vmatpush.msra.mxu3 %v7042_v20  ;;  %v7239_v44 = vld [vmem:[%s11684_s16 + $0x170] sm:$0xff]  ;;  %v7238_v20 = vld [vmem:[%s11684_s16 + $0x168] sm:$0xff] }
0x1b66   :  { %7109 = vmatpush.msrb.mxu0 %v6975_v7  ;;  %7124 = vmatpush.msrb.mxu1 %v7038_v0  ;;  %v7219_v0 = vld [vmem:[%s11684_s16 + $0xd0] sm:$0xff] }
0x1b67   :  { %7149 = vmatpush.msrb.mxu2 %v6976_v4  ;;  %7164 = vmatpush.msra.mxu3 %v7039_v27  ;;  %v11506_v9 = vpop.f32.mrf.mxu0  ;;  %v7237_v4 = vld [vmem:[%s11684_s16 + $0x160] sm:$0xff] }
0x1b68   :  { %7110 = vmatpush.msrb.mxu0 %v6972_v14  ;;  %7125 = vmatpush.msrb.mxu1 %v7035_v42  ;;  %v7218_v14 = vld [vmem:[%s11684_s16 + $0xc8] sm:$0xff] }
0x1b69   :  { %7150 = vmatpush.msrb.mxu2 %v6973_v41  ;;  %7165 = vmatpush.msra.mxu3 %v7036_v21  ;;  %v7217_v21 = vld [vmem:[%s11684_s16 + $0xc0] sm:$0xff] }
0x1b6a   :  { %7111 = vmatpush.msrb.mxu0 %v6969_v5  ;;  %7126 = vmatpush.msrb.mxu1 %v7032_v15  ;;  %v7236_v5 = vld [vmem:[%s11684_s16 + $0x158] sm:$0xff] }
0x1b6b   :  { %7151 = vmatpush.msrb.mxu2 %v6970_v31  ;;  %7166 = vmatpush.msra.mxu3 %v7033_v35  ;;  %v7216_v15 = vld [vmem:[%s11684_s16 + $0xb8] sm:$0xff]  ;;  %v7235_v31 = vld [vmem:[%s11684_s16 + $0x150] sm:$0xff] }
0x1b6c   :  { %7112 = vmatpush.msrb.mxu0 %v6966_v23  ;;  %7127 = vmatpush.msrb.mxu1 %v7029_v58  ;;  %v7215_v23 = vld [vmem:[%s11684_s16 + $0xb0] sm:$0xff]  ;;  %v7234_v58 = vld [vmem:[%s11684_s16 + $0x148] sm:$0xff] }
0x1b6d   :  { %7152 = vmatpush.msrb.mxu2 %v6967_v45  ;;  %7167 = vmatpush.msra.mxu3 %v7030_v13  ;;  %v11497_v53 = vpop.f32.mrf.mxu2  ;;  %v7214_v13 = vld [vmem:[%s11684_s16 + $0xa8] sm:$0xff] }
0x1b6e   :  { %7113 = vmatpush.msrb.mxu0 %v6963_v33  ;;  %7128 = vmatpush.msrb.mxu1 %v7026_v62  ;;  %v7233_v33 = vld [vmem:[%s11684_s16 + $0x140] sm:$0xff] }
0x1b6f   :  { %7153 = vmatpush.msrb.mxu2 %v6964_v2  ;;  %7168 = vmatpush.msra.mxu3 %v7027_v47  ;;  %v11549_v27 = vpop.f32.mrf.mxu0  ;;  %v7213_v62 = vld [vmem:[%s11684_s16 + $0xa0] sm:$0xff]  ;;  %v7232_v2 = vld [vmem:[%s11684_s16 + $0x138] sm:$0xff] }
0x1b70   :  { %7114 = vmatpush.msrb.mxu0 %v6960_v57  ;;  %7129 = vmatpush.msrb.mxu1 %v7023_v10 }
0x1b71   :  { %7154 = vmatpush.msrb.mxu2 %v6961_v1  ;;  %7169 = vmatpush.msra.mxu3 %v7024_v40  ;;  %v11501_v51 = vpop.f32.mrf.mxu1  ;;  %v7212_v1 = vld [vmem:[%s11684_s16 + $0x98] sm:$0xff]  ;;  %v7231_v40 = vld [vmem:[%s11684_s16 + $0x130] sm:$0xff] }
0x1b72   :  { %7115 = vmatmul.f32.vlgmr.msrb.gmra.mxu0 %v11448_v32  ;;  %7155 = vmatmul.f32.vlgmr.msrb.gmra.mxu2 %v11448_v32  ;;  %v7208_v32 = vld [vmem:[%s11684_s16 + $0x78] sm:$0xff] }
0x1b73   :  { %7130 = vmatpush.msrb.mxu1 %v7020_v25  ;;  %7170 = vmatpush.msra.mxu3 %v7021_v39  ;;  %v6534_v25 = vadd.f32 %v11501_v51, %v11506_v9 }
0x1b74   :  { %7245 = vmatpush.msra.mxu0 %v7208_v32  ;;  %7285 = vmatpush.msra.mxu2 %v7240_v50 }
0x1b75   :  { %7131 = vmatpush.msrb.mxu1 %v7017_v56  ;;  %7171 = vmatpush.msra.mxu3 %v7018_v37  ;;  %v6633_v3 = vpop.f32.mrf.mxu2  ;;  %v7211_v56 = vld [vmem:[%s11684_s16 + $0x90] sm:$0xff]  ;;  %v7230_v37 = vld [vmem:[%s11684_s16 + $0x128] sm:$0xff] }
0x1b76   :  { %7246 = vmatpush.msra.mxu0 %v7207_v16  ;;  %7286 = vmatpush.msra.mxu2 %v7239_v44 }
0x1b77   :  { %7132 = vmatpush.msrb.mxu1 %v7014_v34  ;;  %7172 = vmatpush.msra.mxu3 %v7015_v36  ;;  %v11499_v8 = vpop.f32.mrf.mxu3  ;;  %v6634_v34 = vadd.f32 %v6633_v3, %v6534_v25 }
0x1b78   :  { %7247 = vmatpush.msra.mxu0 %v7206_v28  ;;  %7287 = vmatpush.msra.mxu2 %v7238_v20  ;;  %v7209_v28 = vld [vmem:[%s11684_s16 + $0x80] sm:$0xff]  ;;  %v6574_v9 = vadd.f32 %v11499_v8, %v11497_v53 }
0x1b79   :  { %7133 = vmatpush.msrb.mxu1 %v7011_v11  ;;  %7173 = vmatpush.msra.mxu3 %v7012_v29  ;;  %v7182_v11 = vld [vmem:[#allocation22] sm:$0x7]  ;;  %v7210_v29 = vld [vmem:[%s11684_s16 + $0x88] sm:$0xff] }
0x1b7a   :  { %7248 = vmatpush.msra.mxu0 %v7205_v17  ;;  %7288 = vmatpush.msra.mxu2 %v7237_v4  ;;  %v7228_v17 = vld [vmem:[%s11684_s16 + $0x118] sm:$0xff]  ;;  %v7185_v3 = vperm.slane %v7182_v11, 1 }
0x1b7b   :  { %7134 = vmatpush.msrb.mxu1 %v7008_v43  ;;  %7174 = vmatpush.msra.mxu3 %v7009_v18  ;;  %v7229_v43 = vld [vmem:[%s11684_s16 + $0x120] sm:$0xff] }
0x1b7c   :  { %7135 = vmatmul.f32.vlgmr.msrb.gmra.mxu1 %v11453_v48  ;;  %7175 = vmatmul.f32.vlgmr.msra.gmra.mxu3 %v11453_v48  ;;  %v7199_v48 = vld [vmem:[%s11684_s16 + $0x30] sm:$0xff]  ;;  %v11541_v7 = vpop.f32.mrf.mxu1 }
0x1b7d   :  { %7249 = vmatpush.msra.mxu0 %v7204_v24  ;;  %7265 = vmatpush.msra.mxu1 %v7224_v63 }
0x1b7e   :  { %7289 = vmatpush.msra.mxu2 %v7236_v5 }
0x1b7f   :  { %7250 = vmatpush.msra.mxu0 %v7203_v59  ;;  %7266 = vmatpush.msra.mxu1 %v7223_v49 }
0x1b80   :  { %v6653_v61 = vpop.f32.mrf.mxu3  ;;  %7290 = vmatpush.msra.mxu2 %v7235_v31  ;;  %v7312_v31 = vld [vmem:[%s11686_s18 + $0x38] sm:$0xff] }
0x1b81   :  { %7251 = vmatpush.msra.mxu0 %v7202_v60  ;;  %7267 = vmatpush.msra.mxu1 %v7222_v26  ;;  %v6654_v18 = vadd.f32 %v6653_v61, %v6634_v34  ;;  %v7184_v60 = vperm.slane %v7182_v11, 0 }
0x1b82   :  { %7291 = vmatpush.msra.mxu2 %v7234_v58  ;;  %v7309_v58 = vld [vmem:[%s11686_s18 + $0x20] sm:$0xff] }
0x1b83   :  { %7252 = vmatpush.msra.mxu0 %v7201_v12  ;;  %7268 = vmatpush.msra.mxu1 %v7221_v54  ;;  %v7227_v12 = vld [vmem:[%s11684_s16 + $0x110] sm:$0xff] }
0x1b84   :  { %7292 = vmatpush.msra.mxu2 %v7233_v33  ;;  %v7306_v33 = vld [vmem:[%s11686_s18 + $0x8] sm:$0xff] }
0x1b85   :  { %7253 = vmatpush.msra.mxu0 %v7200_v6  ;;  %7269 = vmatpush.msra.mxu1 %v7220_v19 }
0x1b86   :  { %7293 = vmatpush.msra.mxu2 %v7232_v2  ;;  %v7925_v2 = vld [vmem:[#allocation24] ss:$0 sm:$0xff] }
0x1b87   :  { %7254 = vmatpush.msra.mxu0 %v7199_v48  ;;  %7270 = vmatpush.msra.mxu1 %v7219_v0  ;;  %v7226_v48 = vld [vmem:[%s11684_s16 + $0x108] sm:$0xff] }
0x1b88   :  { %7294 = vmatpush.msra.mxu2 %v7231_v40 }
0x1b89   :  { %7255 = vmatpush.msra.mxu0 %v7198_v46  ;;  %7271 = vmatpush.msra.mxu1 %v7218_v14  ;;  %v6673_v45 = vpop.f32.mrf.mxu0 }
0x1b8a   :  { %7295 = vmatpush.msra.mxu2 %v7230_v37  ;;  %v6674_v63 = vadd.f32 %v6673_v45, %v6574_v9  ;;  %v7308_v45 = vld [vmem:[%s11686_s18 + $0x18] sm:$0xff] }
0x1b8b   :  { %7256 = vmatpush.msra.mxu0 %v7197_v22  ;;  %7272 = vmatpush.msra.mxu1 %v7217_v21  ;;  %v7225_v22 = vld [vmem:[%s11684_s16 + $0x100] sm:$0xff]  ;;  %v7186_v21 = vperm.slane %v7182_v11, 2 }
0x1b8c   :  { %7296 = vmatpush.msra.mxu2 %v7229_v43 }
0x1b8d   :  { %7257 = vmatpush.msra.mxu0 %v7196_v52  ;;  %7273 = vmatpush.msra.mxu1 %v7216_v15 }
0x1b8e   :  { %7297 = vmatpush.msra.mxu2 %v7228_v17 }
0x1b8f   :  { %7258 = vmatpush.msra.mxu0 %v7195_v55  ;;  %v11554_v42 = vpop.f32.mrf.mxu2  ;;  %7274 = vmatpush.msra.mxu1 %v7215_v23  ;;  %v7310_v23 = vld [vmem:[%s11686_s18 + $0x28] sm:$0xff] }
0x1b90   :  { %7298 = vmatpush.msra.mxu2 %v7227_v12 }
0x1b91   :  { %7259 = vmatpush.msra.mxu0 %v7194_v38  ;;  %7275 = vmatpush.msra.mxu1 %v7214_v13  ;;  %v7307_v13 = vld [vmem:[%s11686_s18 + $0x10] sm:$0xff] }
0x1b92   :  { %7299 = vmatpush.msra.mxu2 %v7226_v48 }
0x1b93   :  { %7260 = vmatpush.msra.mxu0 %v7193_v30  ;;  %7276 = vmatpush.msra.mxu1 %v7213_v62  ;;  %v6614_v30 = vadd.f32 %v11541_v7, %v11549_v27  ;;  %v7316_v7 = vld [vmem:[%s11686_s18 + $0x58] sm:$0xff]  ;;  %v7315_v27 = vld [vmem:[%s11686_s18 + $0x50] sm:$0xff]  ;;  %v7305_v62 = vld [vmem:[%s11686_s18] sm:$0xff] }
0x1b94   :  { %v6693_v35 = vpop.f32.mrf.mxu1  ;;  %7300 = vmatpush.msra.mxu2 %v7225_v22  ;;  %7329 = vmatpush.msrb.mxu3 %v7316_v7 }
0x1b95   :  { %7277 = vmatpush.msra.mxu1 %v7212_v1  ;;  %v6694_v49 = vadd.f32 %v6693_v35, %v6674_v63  ;;  %v6714_v61 = vadd.f32 %v11554_v42, %v6614_v30  ;;  %v7314_v42 = vld [vmem:[%s11686_s18 + $0x48] sm:$0xff]  ;;  %v7311_v35 = vld [vmem:[%s11686_s18 + $0x30] sm:$0xff] }
0x1b96   :  { %7330 = vmatpush.msrb.mxu3 %v7315_v27 }
0x1b97   :  { %7278 = vmatpush.msra.mxu1 %v7211_v56 }
0x1b98   :  { %7331 = vmatpush.msrb.mxu3 %v7314_v42 }
0x1b99   :  { %7279 = vmatpush.msra.mxu1 %v7210_v29 }
0x1b9a   :  { %v11556_v41 = vpop.f32.mrf.mxu3 }
0x1b9b   :  { %7280 = vmatpush.msra.mxu1 %v7209_v28  ;;  %v6734_v20 = vadd.f32 %v11556_v41, %v6714_v61  ;;  %v7313_v41 = vld [vmem:[%s11686_s18 + $0x40] sm:$0xff] }
0x1b9c   :  { %7332 = vmatpush.msrb.mxu3 %v7313_v41 }
0x1b9e   :  { %7333 = vmatpush.msrb.mxu3 %v7312_v31 }
0x1ba0   :  { %7334 = vmatpush.msrb.mxu3 %v7311_v35 }
0x1ba2   :  { %7335 = vmatpush.msrb.mxu3 %v7310_v23 }
0x1ba4   :  { %7336 = vmatpush.msrb.mxu3 %v7309_v58 }
0x1ba6   :  { %7337 = vmatpush.msrb.mxu3 %v7308_v45 }
0x1ba8   :  { %7338 = vmatpush.msrb.mxu3 %v7307_v13 }
0x1baa   :  { %7339 = vmatpush.msrb.mxu3 %v7306_v33 }
0x1bab   :  { %v6853_v39 = vpop.f32.mrf.mxu0 }
0x1bac   :  { %7340 = vmatpush.msrb.mxu3 %v7305_v62 }
0x1bb1   :  { %v6893_v47 = vpop.f32.mrf.mxu2 }
0x1bb6   :  { %v6873_v10 = vpop.f32.mrf.mxu1 }
0x1bb7   :  { %v6874_v36 = vadd.f32 %v6873_v10, %v6853_v39  ;;  %v7926_v39 = vld [vmem:[#allocation25] ss:$0 sm:$0xff] }
0x1bb9   :  { %v6956_v24 = vadd.f32 %v6874_v36, %v6654_v18 }
0x1bbc   :  { %v6913_v57 = vpop.f32.mrf.mxu3 }
0x1bbd   :  { %v6914_v55 = vadd.f32 %v6913_v57, %v6893_v47 }
0x1bbf   :  { %v6957_v54 = vadd.f32 %v6914_v55, %v6694_v49 }
0x1bcd   :  { %v6933_v51 = vpop.f32.mrf.mxu0 }
0x1bd3   :  { %v7076_v32 = vpop.f32.mrf.mxu2 }
0x1bd8   :  { %v6953_v52 = vpop.f32.mrf.mxu1 }
0x1bd9   :  { %v6954_v19 = vadd.f32 %v6953_v52, %v6933_v51 }
0x1bdb   :  { %v6958_v8 = vadd.f32 %v6954_v19, %v6734_v20 }
0x1bde   :  { %v7096_v16 = vpop.f32.mrf.mxu3 }
0x1bdf   :  { %v7097_v59 = vadd.f32 %v7096_v16, %v7076_v32 }
0x1be1   :  { %v7179_v6 = vadd.f32 %v7097_v59, %v6956_v24 }
0x1be3   :  { %v7190_v46 = vadd.f32 %v7184_v60, %v7179_v6 }
0x1be5   :  { %7261 = vmatmul.f32.vlgmr.msra.gmra.mxu0 %v7190_v46 }
0x1bef   :  { %v7116_v38 = vpop.f32.mrf.mxu0 }
0x1bf5   :  { %v7156_v4 = vpop.f32.mrf.mxu2 }
0x1bf9   :  { %v7136_v26 = vpop.f32.mrf.mxu1 }
0x1bfa   :  { %v7137_v50 = vadd.f32 %v7136_v26, %v7116_v38 }
0x1bfc   :  { %v7180_v44 = vadd.f32 %v7137_v50, %v6957_v54 }
0x1bfe   :  { %v7191_v0 = vadd.f32 %v7185_v3, %v7180_v44 }
0x1bff   :  { %v7176_v53 = vpop.f32.mrf.mxu3 }
0x1c00   :  { %v7177_v14 = vadd.f32 %v7176_v53, %v7156_v4  ;;  %7281 = vmatmul.f32.vlgmr.msra.gmra.mxu1 %v7191_v0 }
0x1c02   :  { %v7181_v5 = vadd.f32 %v7177_v14, %v6958_v8 }
0x1c04   :  { %v7192_v15 = vadd.f32 %v7186_v21, %v7181_v5 }
0x1c06   :  { %7301 = vmatmul.f32.vlgmr.msra.gmra.mxu2 %v7192_v15 }
0x1c62   :  { %v7262_v47 = vpop.f32.mrf.mxu0 }
0x1c63   :  { %v7263_v10 = vadd.f32 %v7925_v2, %v7262_v47 }
0x1c7d   :  { %v7282_v57 = vpop.f32.mrf.mxu1 }
0x1c7e   :  { %v7283_v1 = vadd.f32 %v7282_v57, %v7263_v10 }
0x1c89   :  { %v7302_v40 = vpop.f32.mrf.mxu2 }
0x1c8a   :  { %v7303_v25 = vadd.f32 %v7302_v40, %v7283_v1 }
0x1c8c   :  { %7714 = vmatmul.msk.f32.vlgmr.msrb.gmra.mxu3 %vm7321_vm0, %v7303_v25 }
0x1d0f   :  { %v7342_v56 = vpop.f32.mrf.mxu3 }
0x1d10   :  { %v7343_v37 = vadd.f32 %v7926_v39, %v7342_v56 }
0x1d12   :  { %7346 = vst.msk [vmem:[%s11712_s26] sm:$0x3] %vm7345_vm14, %v7343_v37 }
0x1d13   :  { %7351 = vsyncpa [#allocation3], 1 }
0x1d14   :  { %7352 = vsyncpa [#allocation5], 1 }
0x1d15   :  { %7353 = vsyncpa [#allocation8], 1 }
0x1d16   :  { %7354 = vsyncpa [#allocation11], 1 }
0x1d17   :  { %7355 = vsyncpa [#allocation14], 1 }
0x1d18   :  { %7356 = vsyncpa [#allocation17], 1 }
0x1d19   :  { %7357 = vsyncpa [#allocation20], 1 }
0x1d1a   :  { %7358 = vsyncpa [#allocation23], 1 }
0x1d1b   :  { %7359 = vsyncpa [#allocation26], 1 }

</bundles_post_ra>
